<compile_context>
chip_gen: v6e
topology: v6e:2x2x1
jax: 0.10.0
libtpu: 0.0.40
codegen_flags: <defaults>
</compile_context>

<pallas_src>
import jax
import jax.numpy as jnp
from jax.experimental import pallas as pl
from jax.experimental.pallas import tpu as pltpu

LAT = 2          # true latent width
LAT_PAD = 128    # latent padded to a full lane register
FEAT = 784       # true feature width (28*28)
FEAT_PAD = 896   # 7 * 128, lane-dense
TM = 256         # batch tile (multiple of 128; feeds the MXU M dimension)


def _ae_kernel(x_ref,
               w1, b1, w2, b2, w3, b3, w4, b4,
               w5, b5, w6, b6, w7, b7, w8, b8,
               out_ref, lat_ref):
    def lin(h, w, b):
        # bf16 operands on the MXU, f32 accumulation, f32 bias add.
        return jnp.dot(h.astype(jnp.bfloat16), w[...],
                       preferred_element_type=jnp.float32) + b[...]

    h = x_ref[...]                                  # (TM, 896) f32
    # ---------------- encoder ----------------
    h = jnp.tanh(lin(h, w1, b1))                    # (TM, 256)
    h = jnp.tanh(lin(h, w2, b2))                    # (TM, 128)
    h = jnp.tanh(lin(h, w3, b3))                    # (TM, 64)
    lat = jnp.tanh(lin(h, w4, b4))                  # (TM, 128); cols >= 2 are exactly 0
    lat_ref[...] = lat
    # ---------------- decoder ----------------
    h = jnp.tanh(lin(lat, w5, b5))                  # (TM, 64)  (padded latent rows of w5 are 0)
    h = jnp.tanh(lin(h, w6, b6))                    # (TM, 128)
    h = jnp.tanh(lin(h, w7, b7))                    # (TM, 256)
    out_ref[...] = jax.nn.sigmoid(lin(h, w8, b8))   # (TM, 896); cols >= 784 sliced off outside


def init_params(key):
    """Deterministic init mimicking nn.Linear's U(-1/sqrt(fan_in), +) scheme.

    Weights are stored as (in_features, out_features), i.e. transposed relative
    to torch's nn.Linear.weight, so the kernel computes x @ W + b.
    """
    dims = [(784, 256), (256, 128), (128, 64), (64, 2),    # encoder
            (2, 64), (64, 128), (128, 256), (256, 784)]    # decoder
    params = []
    for fin, fout in dims:
        key, kw, kb = jax.random.split(key, 3)
        bound = 1.0 / (fin ** 0.5)
        w = jax.random.uniform(kw, (fin, fout), jnp.float32, -bound, bound)
        b = jax.random.uniform(kb, (1, fout), jnp.float32, -bound, bound)
        params.append((w, b))
    return params


def _prep_params(params):
    """Zero-pad boundary layers to lane-dense widths and cast weights to bf16."""
    (w1, b1), (w2, b2), (w3, b3), (w4, b4), \
        (w5, b5), (w6, b6), (w7, b7), (w8, b8) = params
    w1p = jnp.pad(w1, ((0, FEAT_PAD - FEAT), (0, 0)))          # padded x cols hit zero rows
    w4p = jnp.pad(w4, ((0, 0), (0, LAT_PAD - LAT)))
    b4p = jnp.pad(b4, ((0, 0), (0, LAT_PAD - LAT)))
    w5p = jnp.pad(w5, ((0, LAT_PAD - LAT), (0, 0)))
    w8p = jnp.pad(w8, ((0, 0), (0, FEAT_PAD - FEAT)))
    b8p = jnp.pad(b8, ((0, 0), (0, FEAT_PAD - FEAT)))
    padded = [(w1p, b1), (w2, b2), (w3, b3), (w4p, b4p),
              (w5p, b5), (w6, b6), (w7, b7), (w8p, b8p)]
    flat = []
    for w, b in padded:
        flat += [w.astype(jnp.bfloat16), b.astype(jnp.float32)]
    return flat


def autoencoder_forward(x, params):
    """x: (N, 1, 28, 28) float32 -> (out (N, 1, 28, 28), latent (N, 2))."""
    x2d = x.reshape(-1, FEAT).astype(jnp.float32)
    n = x2d.shape[0]
    num_tiles = pl.cdiv(n, TM)
    n_pad = num_tiles * TM
    x_pad = jnp.pad(x2d, ((0, n_pad - n), (0, FEAT_PAD - FEAT)))

    flat_params = _prep_params(params)

    def row_spec(cols):  # tiled on the batch axis
        return pl.BlockSpec((TM, cols), lambda i: (i, 0))

    def resident_spec(shape):  # constant block index -> loaded once, stays in VMEM
        return pl.BlockSpec(shape, lambda i: (0, 0))

    in_specs = [row_spec(FEAT_PAD)] + [resident_spec(p.shape) for p in flat_params]
    out_specs = (row_spec(FEAT_PAD), row_spec(LAT_PAD))

    out_pad, lat_pad = pl.pallas_call(
        _ae_kernel,
        grid=(num_tiles,),
        in_specs=in_specs,
        out_specs=out_specs,
        out_shape=(jax.ShapeDtypeStruct((n_pad, FEAT_PAD), jnp.float32),
                   jax.ShapeDtypeStruct((n_pad, LAT_PAD), jnp.float32)),
        compiler_params=pltpu.CompilerParams(
            dimension_semantics=("parallel",),
            vmem_limit_bytes=32 << 20),
    )(x_pad, *flat_params)

    out = out_pad[:n, :FEAT].reshape(-1, 1, 28, 28)
    latent = lat_pad[:n, :LAT]
    return out, latent


def _reference_forward(x, params):
    """Pure-JAX reference with matching numerics (bf16 matmul, f32 accumulation)."""
    h = x.reshape(-1, FEAT).astype(jnp.float32)
    acts = [jnp.tanh] * 7 + [jax.nn.sigmoid]
    lat = None
    for i, ((w, b), act) in enumerate(zip(params, acts)):
        y = jnp.dot(h.astype(jnp.bfloat16), w.astype(jnp.bfloat16),
                    preferred_element_type=jnp.float32) + b
        h = act(y)
        if i == 3:
            lat = h
    return h.reshape(-1, 1, 28, 28), lat


if __name__ == "__main__":
    key = jax.random.PRNGKey(0)
    kp, kx = jax.random.split(key)
    params = init_params(kp)
    x = jax.random.uniform(kx, (8, 1, 28, 28), jnp.float32)  # small MNIST-like batch

    out, latent = jax.jit(autoencoder_forward)(x, params)
    jax.block_until_ready((out, latent))

    out_ref, lat_ref = _reference_forward(x, params)
    assert out.shape == (8, 1, 28, 28) and latent.shape == (8, 2)
    assert jnp.allclose(out, out_ref, atol=5e-3, rtol=5e-3)
    assert jnp.allclose(latent, lat_ref, atol=5e-3, rtol=5e-3)

    print("KERNEL_OK")
</pallas_src>

<mosaic_0001>
module attributes {stable_mosaic.version = 11 : i64} {
  func.func @_ae_kernel(%arg0: i32, %arg1: memref<256x896xf32, #tpu.memory_space<vmem>>, %arg2: memref<896x256xbf16, #tpu.memory_space<vmem>>, %arg3: memref<1x256xf32, #tpu.memory_space<vmem>>, %arg4: memref<256x128xbf16, #tpu.memory_space<vmem>>, %arg5: memref<1x128xf32, #tpu.memory_space<vmem>>, %arg6: memref<128x64xbf16, #tpu.memory_space<vmem>>, %arg7: memref<1x64xf32, #tpu.memory_space<vmem>>, %arg8: memref<64x128xbf16, #tpu.memory_space<vmem>>, %arg9: memref<1x128xf32, #tpu.memory_space<vmem>>, %arg10: memref<128x64xbf16, #tpu.memory_space<vmem>>, %arg11: memref<1x64xf32, #tpu.memory_space<vmem>>, %arg12: memref<64x128xbf16, #tpu.memory_space<vmem>>, %arg13: memref<1x128xf32, #tpu.memory_space<vmem>>, %arg14: memref<128x256xbf16, #tpu.memory_space<vmem>>, %arg15: memref<1x256xf32, #tpu.memory_space<vmem>>, %arg16: memref<256x896xbf16, #tpu.memory_space<vmem>>, %arg17: memref<1x896xf32, #tpu.memory_space<vmem>>, %arg18: memref<256x896xf32, #tpu.memory_space<vmem>>, %arg19: memref<256x128xf32, #tpu.memory_space<vmem>>) attributes {dimension_semantics = [#tpu.dimension_semantics<parallel>], iteration_bounds = array<i64: 1>, scalar_prefetch = 0 : i64, scratch_operands = 0 : i64, tpu.core_type = #tpu.core_type<tc>, window_params = [{transform_indices = @transform_0, window_bounds = array<i64: 256, 896>}, {pipeline_mode = #tpu.pipeline_mode<synchronous>, transform_indices = @transform_1, window_bounds = array<i64: 896, 256>}, {pipeline_mode = #tpu.pipeline_mode<synchronous>, transform_indices = @transform_2, window_bounds = array<i64: 1, 256>}, {pipeline_mode = #tpu.pipeline_mode<synchronous>, transform_indices = @transform_3, window_bounds = array<i64: 256, 128>}, {pipeline_mode = #tpu.pipeline_mode<synchronous>, transform_indices = @transform_4, window_bounds = array<i64: 1, 128>}, {pipeline_mode = #tpu.pipeline_mode<synchronous>, transform_indices = @transform_5, window_bounds = array<i64: 128, 64>}, {pipeline_mode = #tpu.pipeline_mode<synchronous>, transform_indices = @transform_6, window_bounds = array<i64: 1, 64>}, {pipeline_mode = #tpu.pipeline_mode<synchronous>, transform_indices = @transform_7, window_bounds = array<i64: 64, 128>}, {pipeline_mode = #tpu.pipeline_mode<synchronous>, transform_indices = @transform_8, window_bounds = array<i64: 1, 128>}, {pipeline_mode = #tpu.pipeline_mode<synchronous>, transform_indices = @transform_9, window_bounds = array<i64: 128, 64>}, {pipeline_mode = #tpu.pipeline_mode<synchronous>, transform_indices = @transform_10, window_bounds = array<i64: 1, 64>}, {pipeline_mode = #tpu.pipeline_mode<synchronous>, transform_indices = @transform_11, window_bounds = array<i64: 64, 128>}, {pipeline_mode = #tpu.pipeline_mode<synchronous>, transform_indices = @transform_12, window_bounds = array<i64: 1, 128>}, {pipeline_mode = #tpu.pipeline_mode<synchronous>, transform_indices = @transform_13, window_bounds = array<i64: 128, 256>}, {pipeline_mode = #tpu.pipeline_mode<synchronous>, transform_indices = @transform_14, window_bounds = array<i64: 1, 256>}, {pipeline_mode = #tpu.pipeline_mode<synchronous>, transform_indices = @transform_15, window_bounds = array<i64: 256, 896>}, {pipeline_mode = #tpu.pipeline_mode<synchronous>, transform_indices = @transform_16, window_bounds = array<i64: 1, 896>}, {transform_indices = @transform_17, window_bounds = array<i64: 256, 896>}, {transform_indices = @transform_18, window_bounds = array<i64: 256, 128>}]} {
    %c0 = arith.constant 0 : index
    %c0_0 = arith.constant 0 : index
    %0 = vector.load %arg1[%c0, %c0_0] : memref<256x896xf32, #tpu.memory_space<vmem>>, vector<256x896xf32>
    %1 = arith.truncf %0 : vector<256x896xf32> to vector<256x896xbf16>
    %c0_1 = arith.constant 0 : index
    %c0_2 = arith.constant 0 : index
    %2 = vector.load %arg2[%c0_1, %c0_2] : memref<896x256xbf16, #tpu.memory_space<vmem>>, vector<896x256xbf16>
    %cst = arith.constant dense<0.000000e+00> : vector<256x256xf32>
    %3 = tpu.matmul %1, %2, %cst {dimension_numbers = #tpu.dot_dimension_numbers<[1], [0], [0], [1], [0, 0, 1, 1], [], []>} : vector<256x896xbf16>, vector<896x256xbf16>, vector<256x256xf32> -> vector<256x256xf32>
    %c0_3 = arith.constant 0 : index
    %c0_4 = arith.constant 0 : index
    %4 = vector.load %arg3[%c0_3, %c0_4] : memref<1x256xf32, #tpu.memory_space<vmem>>, vector<1x256xf32>
    %5 = vector.broadcast %4 : vector<1x256xf32> to vector<256x256xf32>
    %6 = arith.addf %3, %5 : vector<256x256xf32>
    %7 = math.tanh %6 : vector<256x256xf32>
    %8 = arith.truncf %7 : vector<256x256xf32> to vector<256x256xbf16>
    %c0_5 = arith.constant 0 : index
    %c0_6 = arith.constant 0 : index
    %9 = vector.load %arg4[%c0_5, %c0_6] : memref<256x128xbf16, #tpu.memory_space<vmem>>, vector<256x128xbf16>
    %cst_7 = arith.constant dense<0.000000e+00> : vector<256x128xf32>
    %10 = tpu.matmul %8, %9, %cst_7 {dimension_numbers = #tpu.dot_dimension_numbers<[1], [0], [0], [1], [0, 0, 1, 1], [], []>} : vector<256x256xbf16>, vector<256x128xbf16>, vector<256x128xf32> -> vector<256x128xf32>
    %c0_8 = arith.constant 0 : index
    %c0_9 = arith.constant 0 : index
    %11 = vector.load %arg5[%c0_8, %c0_9] : memref<1x128xf32, #tpu.memory_space<vmem>>, vector<1x128xf32>
    %12 = vector.broadcast %11 : vector<1x128xf32> to vector<256x128xf32>
    %13 = arith.addf %10, %12 : vector<256x128xf32>
    %14 = math.tanh %13 : vector<256x128xf32>
    %15 = arith.truncf %14 : vector<256x128xf32> to vector<256x128xbf16>
    %c0_10 = arith.constant 0 : index
    %c0_11 = arith.constant 0 : index
    %16 = vector.load %arg6[%c0_10, %c0_11] : memref<128x64xbf16, #tpu.memory_space<vmem>>, vector<128x64xbf16>
    %cst_12 = arith.constant dense<0.000000e+00> : vector<256x64xf32>
    %17 = tpu.matmul %15, %16, %cst_12 {dimension_numbers = #tpu.dot_dimension_numbers<[1], [0], [0], [1], [0, 0, 1, 1], [], []>} : vector<256x128xbf16>, vector<128x64xbf16>, vector<256x64xf32> -> vector<256x64xf32>
    %c0_13 = arith.constant 0 : index
    %c0_14 = arith.constant 0 : index
    %18 = vector.load %arg7[%c0_13, %c0_14] : memref<1x64xf32, #tpu.memory_space<vmem>>, vector<1x64xf32>
    %19 = vector.broadcast %18 : vector<1x64xf32> to vector<256x64xf32>
    %20 = arith.addf %17, %19 : vector<256x64xf32>
    %21 = math.tanh %20 : vector<256x64xf32>
    %22 = arith.truncf %21 : vector<256x64xf32> to vector<256x64xbf16>
    %c0_15 = arith.constant 0 : index
    %c0_16 = arith.constant 0 : index
    %23 = vector.load %arg8[%c0_15, %c0_16] : memref<64x128xbf16, #tpu.memory_space<vmem>>, vector<64x128xbf16>
    %cst_17 = arith.constant dense<0.000000e+00> : vector<256x128xf32>
    %24 = tpu.matmul %22, %23, %cst_17 {dimension_numbers = #tpu.dot_dimension_numbers<[1], [0], [0], [1], [0, 0, 1, 1], [], []>} : vector<256x64xbf16>, vector<64x128xbf16>, vector<256x128xf32> -> vector<256x128xf32>
    %c0_18 = arith.constant 0 : index
    %c0_19 = arith.constant 0 : index
    %25 = vector.load %arg9[%c0_18, %c0_19] : memref<1x128xf32, #tpu.memory_space<vmem>>, vector<1x128xf32>
    %26 = vector.broadcast %25 : vector<1x128xf32> to vector<256x128xf32>
    %27 = arith.addf %24, %26 : vector<256x128xf32>
    %28 = math.tanh %27 : vector<256x128xf32>
    %c0_20 = arith.constant 0 : index
    %c0_21 = arith.constant 0 : index
    %29 = vector.load %arg19[%c0_20, %c0_21] : memref<256x128xf32, #tpu.memory_space<vmem>>, vector<256x128xf32>
    tpu.vector_store %arg19[%c0_20, %c0_21], %28 {strides = array<i32>} : memref<256x128xf32, #tpu.memory_space<vmem>>, vector<256x128xf32>,
    %30 = arith.truncf %28 : vector<256x128xf32> to vector<256x128xbf16>
    %c0_22 = arith.constant 0 : index
    %c0_23 = arith.constant 0 : index
    %31 = vector.load %arg10[%c0_22, %c0_23] : memref<128x64xbf16, #tpu.memory_space<vmem>>, vector<128x64xbf16>
    %cst_24 = arith.constant dense<0.000000e+00> : vector<256x64xf32>
    %32 = tpu.matmul %30, %31, %cst_24 {dimension_numbers = #tpu.dot_dimension_numbers<[1], [0], [0], [1], [0, 0, 1, 1], [], []>} : vector<256x128xbf16>, vector<128x64xbf16>, vector<256x64xf32> -> vector<256x64xf32>
    %c0_25 = arith.constant 0 : index
    %c0_26 = arith.constant 0 : index
    %33 = vector.load %arg11[%c0_25, %c0_26] : memref<1x64xf32, #tpu.memory_space<vmem>>, vector<1x64xf32>
    %34 = vector.broadcast %33 : vector<1x64xf32> to vector<256x64xf32>
    %35 = arith.addf %32, %34 : vector<256x64xf32>
    %36 = math.tanh %35 : vector<256x64xf32>
    %37 = arith.truncf %36 : vector<256x64xf32> to vector<256x64xbf16>
    %c0_27 = arith.constant 0 : index
    %c0_28 = arith.constant 0 : index
    %38 = vector.load %arg12[%c0_27, %c0_28] : memref<64x128xbf16, #tpu.memory_space<vmem>>, vector<64x128xbf16>
    %cst_29 = arith.constant dense<0.000000e+00> : vector<256x128xf32>
    %39 = tpu.matmul %37, %38, %cst_29 {dimension_numbers = #tpu.dot_dimension_numbers<[1], [0], [0], [1], [0, 0, 1, 1], [], []>} : vector<256x64xbf16>, vector<64x128xbf16>, vector<256x128xf32> -> vector<256x128xf32>
    %c0_30 = arith.constant 0 : index
    %c0_31 = arith.constant 0 : index
    %40 = vector.load %arg13[%c0_30, %c0_31] : memref<1x128xf32, #tpu.memory_space<vmem>>, vector<1x128xf32>
    %41 = vector.broadcast %40 : vector<1x128xf32> to vector<256x128xf32>
    %42 = arith.addf %39, %41 : vector<256x128xf32>
    %43 = math.tanh %42 : vector<256x128xf32>
    %44 = arith.truncf %43 : vector<256x128xf32> to vector<256x128xbf16>
    %c0_32 = arith.constant 0 : index
    %c0_33 = arith.constant 0 : index
    %45 = vector.load %arg14[%c0_32, %c0_33] : memref<128x256xbf16, #tpu.memory_space<vmem>>, vector<128x256xbf16>
    %cst_34 = arith.constant dense<0.000000e+00> : vector<256x256xf32>
    %46 = tpu.matmul %44, %45, %cst_34 {dimension_numbers = #tpu.dot_dimension_numbers<[1], [0], [0], [1], [0, 0, 1, 1], [], []>} : vector<256x128xbf16>, vector<128x256xbf16>, vector<256x256xf32> -> vector<256x256xf32>
    %c0_35 = arith.constant 0 : index
    %c0_36 = arith.constant 0 : index
    %47 = vector.load %arg15[%c0_35, %c0_36] : memref<1x256xf32, #tpu.memory_space<vmem>>, vector<1x256xf32>
    %48 = vector.broadcast %47 : vector<1x256xf32> to vector<256x256xf32>
    %49 = arith.addf %46, %48 : vector<256x256xf32>
    %50 = math.tanh %49 : vector<256x256xf32>
    %51 = arith.truncf %50 : vector<256x256xf32> to vector<256x256xbf16>
    %c0_37 = arith.constant 0 : index
    %c0_38 = arith.constant 0 : index
    %52 = vector.load %arg16[%c0_37, %c0_38] : memref<256x896xbf16, #tpu.memory_space<vmem>>, vector<256x896xbf16>
    %cst_39 = arith.constant dense<0.000000e+00> : vector<256x896xf32>
    %53 = tpu.matmul %51, %52, %cst_39 {dimension_numbers = #tpu.dot_dimension_numbers<[1], [0], [0], [1], [0, 0, 1, 1], [], []>} : vector<256x256xbf16>, vector<256x896xbf16>, vector<256x896xf32> -> vector<256x896xf32>
    %c0_40 = arith.constant 0 : index
    %c0_41 = arith.constant 0 : index
    %54 = vector.load %arg17[%c0_40, %c0_41] : memref<1x896xf32, #tpu.memory_space<vmem>>, vector<1x896xf32>
    %55 = vector.broadcast %54 : vector<1x896xf32> to vector<256x896xf32>
    %56 = arith.addf %53, %55 : vector<256x896xf32>
    %57 = arith.negf %56 : vector<256x896xf32>
    %58 = math.exp %57 : vector<256x896xf32>
    %cst_42 = arith.constant 1.000000e+00 : f32
    %59 = vector.broadcast %cst_42 : f32 to vector<256x896xf32>
    %60 = arith.addf %59, %58 : vector<256x896xf32>
    %61 = arith.divf %59, %60 : vector<256x896xf32>
    %c0_43 = arith.constant 0 : index
    %c0_44 = arith.constant 0 : index
    %62 = vector.load %arg18[%c0_43, %c0_44] : memref<256x896xf32, #tpu.memory_space<vmem>>, vector<256x896xf32>
    tpu.vector_store %arg18[%c0_43, %c0_44], %61 {strides = array<i32>} : memref<256x896xf32, #tpu.memory_space<vmem>>, vector<256x896xf32>,
    return
  }
  func.func @transform_0(%arg0: i32) -> (i32, i32) {
    %c0_i32 = arith.constant 0 : i32
    %c0_i32_0 = arith.constant 0 : i32
    return %arg0, %c0_i32 : i32, i32
  }
  func.func @transform_1(%arg0: i32) -> (i32, i32) {
    %c0_i32 = arith.constant 0 : i32
    %c0_i32_0 = arith.constant 0 : i32
    %c0_i32_1 = arith.constant 0 : i32
    return %c0_i32, %c0_i32_0 : i32, i32
  }
  func.func @transform_2(%arg0: i32) -> (i32, i32) {
    %c0_i32 = arith.constant 0 : i32
    %c0_i32_0 = arith.constant 0 : i32
    %c0_i32_1 = arith.constant 0 : i32
    return %c0_i32, %c0_i32_0 : i32, i32
  }
  func.func @transform_3(%arg0: i32) -> (i32, i32) {
    %c0_i32 = arith.constant 0 : i32
    %c0_i32_0 = arith.constant 0 : i32
    %c0_i32_1 = arith.constant 0 : i32
    return %c0_i32, %c0_i32_0 : i32, i32
  }
  func.func @transform_4(%arg0: i32) -> (i32, i32) {
    %c0_i32 = arith.constant 0 : i32
    %c0_i32_0 = arith.constant 0 : i32
    %c0_i32_1 = arith.constant 0 : i32
    return %c0_i32, %c0_i32_0 : i32, i32
  }
  func.func @transform_5(%arg0: i32) -> (i32, i32) {
    %c0_i32 = arith.constant 0 : i32
    %c0_i32_0 = arith.constant 0 : i32
    %c0_i32_1 = arith.constant 0 : i32
    return %c0_i32, %c0_i32_0 : i32, i32
  }
  func.func @transform_6(%arg0: i32) -> (i32, i32) {
    %c0_i32 = arith.constant 0 : i32
    %c0_i32_0 = arith.constant 0 : i32
    %c0_i32_1 = arith.constant 0 : i32
    return %c0_i32, %c0_i32_0 : i32, i32
  }
  func.func @transform_7(%arg0: i32) -> (i32, i32) {
    %c0_i32 = arith.constant 0 : i32
    %c0_i32_0 = arith.constant 0 : i32
    %c0_i32_1 = arith.constant 0 : i32
    return %c0_i32, %c0_i32_0 : i32, i32
  }
  func.func @transform_8(%arg0: i32) -> (i32, i32) {
    %c0_i32 = arith.constant 0 : i32
    %c0_i32_0 = arith.constant 0 : i32
    %c0_i32_1 = arith.constant 0 : i32
    return %c0_i32, %c0_i32_0 : i32, i32
  }
  func.func @transform_9(%arg0: i32) -> (i32, i32) {
    %c0_i32 = arith.constant 0 : i32
    %c0_i32_0 = arith.constant 0 : i32
    %c0_i32_1 = arith.constant 0 : i32
    return %c0_i32, %c0_i32_0 : i32, i32
  }
  func.func @transform_10(%arg0: i32) -> (i32, i32) {
    %c0_i32 = arith.constant 0 : i32
    %c0_i32_0 = arith.constant 0 : i32
    %c0_i32_1 = arith.constant 0 : i32
    return %c0_i32, %c0_i32_0 : i32, i32
  }
  func.func @transform_11(%arg0: i32) -> (i32, i32) {
    %c0_i32 = arith.constant 0 : i32
    %c0_i32_0 = arith.constant 0 : i32
    %c0_i32_1 = arith.constant 0 : i32
    return %c0_i32, %c0_i32_0 : i32, i32
  }
  func.func @transform_12(%arg0: i32) -> (i32, i32) {
    %c0_i32 = arith.constant 0 : i32
    %c0_i32_0 = arith.constant 0 : i32
    %c0_i32_1 = arith.constant 0 : i32
    return %c0_i32, %c0_i32_0 : i32, i32
  }
  func.func @transform_13(%arg0: i32) -> (i32, i32) {
    %c0_i32 = arith.constant 0 : i32
    %c0_i32_0 = arith.constant 0 : i32
    %c0_i32_1 = arith.constant 0 : i32
    return %c0_i32, %c0_i32_0 : i32, i32
  }
  func.func @transform_14(%arg0: i32) -> (i32, i32) {
    %c0_i32 = arith.constant 0 : i32
    %c0_i32_0 = arith.constant 0 : i32
    %c0_i32_1 = arith.constant 0 : i32
    return %c0_i32, %c0_i32_0 : i32, i32
  }
  func.func @transform_15(%arg0: i32) -> (i32, i32) {
    %c0_i32 = arith.constant 0 : i32
    %c0_i32_0 = arith.constant 0 : i32
    %c0_i32_1 = arith.constant 0 : i32
    return %c0_i32, %c0_i32_0 : i32, i32
  }
  func.func @transform_16(%arg0: i32) -> (i32, i32) {
    %c0_i32 = arith.constant 0 : i32
    %c0_i32_0 = arith.constant 0 : i32
    %c0_i32_1 = arith.constant 0 : i32
    return %c0_i32, %c0_i32_0 : i32, i32
  }
  func.func @transform_17(%arg0: i32) -> (i32, i32) {
    %c0_i32 = arith.constant 0 : i32
    %c0_i32_0 = arith.constant 0 : i32
    return %arg0, %c0_i32 : i32, i32
  }
  func.func @transform_18(%arg0: i32) -> (i32, i32) {
    %c0_i32 = arith.constant 0 : i32
    %c0_i32_0 = arith.constant 0 : i32
    return %arg0, %c0_i32 : i32, i32
  }
}

</mosaic_0001>

<bundles_post_ra>
// kernel: autoencoder_forward.1
= control target key start
LH: loop header
LB: loop body
LE: loop exit
PB: predicated region body
PF: predicated region fallthrough
CT: control target
= control target key end

     0   :  { %vm2610_vm0 = vcmask 523264   ;;  %s14318_s1 = inlined_call_operand.vmem [shape: bf16[896,256], index: 1, kind: input, shape index: {}]   ;;  %s14319_s0 = inlined_call_operand.vmem [shape: f32[256,896], index: 0, kind: input, shape index: {}]   ;;  %s14320_s3 = inlined_call_operand.vmem [shape: bf16[256,128], index: 3, kind: input, shape index: {}]   ;;  %s14321_s2 = inlined_call_operand.vmem [shape: f32[1,256], index: 2, kind: input, shape index: {}]   ;;  %s14322_s5 = inlined_call_operand.vmem [shape: bf16[128,64], index: 5, kind: input, shape index: {}]   ;;  %s14323_s4 = inlined_call_operand.vmem [shape: f32[1,128], index: 4, kind: input, shape index: {}]   ;;  %s14324_s7 = inlined_call_operand.vmem [shape: bf16[64,128], index: 7, kind: input, shape index: {}]   ;;  %s14325_s9 = inlined_call_operand.vmem [shape: bf16[128,64], index: 9, kind: input, shape index: {}]   ;;  %s14326_s6 = inlined_call_operand.vmem [shape: f32[1,64], index: 6, kind: input, shape index: {}]   ;;  %s14327_s8 = inlined_call_operand.vmem [shape: f32[1,128], index: 8, kind: input, shape index: {}]   ;;  %s14328_s11 = inlined_call_operand.vmem [shape: bf16[64,128], index: 11, kind: input, shape index: {}]   ;;  %s14329_s18 = inlined_call_operand.vmem [shape: f32[256,128], index: 18, kind: output, shape index: {1}]   ;;  %s14330_s10 = inlined_call_operand.vmem [shape: f32[1,64], index: 10, kind: input, shape index: {}]   ;;  %s14331_s13 = inlined_call_operand.vmem [shape: bf16[128,256], index: 13, kind: input, shape index: {}]   ;;  %s14332_s15 = inlined_call_operand.vmem [shape: bf16[256,896], index: 15, kind: input, shape index: {}]   ;;  %s14333_s12 = inlined_call_operand.vmem [shape: f32[1,128], index: 12, kind: input, shape index: {}]   ;;  %s14334_s14 = inlined_call_operand.vmem [shape: f32[1,256], index: 14, kind: input, shape index: {}]   ;;  %s14335_s16 = inlined_call_operand.vmem [shape: f32[1,896], index: 16, kind: input, shape index: {}]   ;;  %s14336_s17 = inlined_call_operand.vmem [shape: f32[256,896], index: 17, kind: output, shape index: {0}]  }
   0x1   :  { %14349 = sst [smem:[#allocation75_spill]] %s14318_s1 }
   0x2   :  { %14350 = sst [smem:[#allocation76_spill]] %s14319_s0 }
   0x3   :  { %14351 = sst [smem:[#allocation77_spill]] %s14320_s3 }
   0x4   :  { %s14352_s29 = sld [smem:[#allocation75_spill]] }
   0x5   :  { %s14353_s27 = sld [smem:[#allocation76_spill]] }
   0x6   :  { %s14354_s28 = sld [smem:[#allocation77_spill]] }
   0xa   :  { %v7992_v0 = vld [vmem:[%s14352_s29 + $0x74] ss:$8 sps:$4 sm:$0xff]   ;;  %v7994_v1 = vld [vmem:[%s14352_s29 + $0x70] ss:$8 sps:$4 sm:$0xff]   ;;  %v7995_v2 = vld [vmem:[%s14352_s29 + $0x64] ss:$8 sps:$4 sm:$0xff]  }
   0xb   :  { %7959 = vmatprep.subr.bf16.mxu1 %v7992_v0  ;;  %1079 = vmatprep.subr.bf16.mxu0 %v7992_v0  ;;  %v7997_v3 = vld [vmem:[%s14352_s29 + $0x60] ss:$8 sps:$4 sm:$0xff]   ;;  %v7998_v4 = vld [vmem:[%s14352_s29 + $0x54] ss:$8 sps:$4 sm:$0xff]   ;;  %v8000_v5 = vld [vmem:[%s14352_s29 + $0x50] ss:$8 sps:$4 sm:$0xff]  }
   0xc   :  { %7975 = vmatpush1.bf16.msra.mxu1 %v7994_v1  ;;  %1080 = vmatpush1.bf16.msra.mxu0 %v7994_v1  ;;  %v8001_v6 = vld [vmem:[%s14352_s29 + $0x44] ss:$8 sps:$4 sm:$0xff]   ;;  %v8003_v7 = vld [vmem:[%s14352_s29 + $0x40] ss:$8 sps:$4 sm:$0xff]   ;;  %v8004_v8 = vld [vmem:[%s14352_s29 + $0x34] ss:$8 sps:$4 sm:$0xff]  }
   0xd   :  { %7960 = vmatprep.subr.bf16.mxu1 %v7995_v2  ;;  %1081 = vmatprep.subr.bf16.mxu0 %v7995_v2  ;;  %v8006_v9 = vld [vmem:[%s14352_s29 + $0x30] ss:$8 sps:$4 sm:$0xff]   ;;  %v8007_v10 = vld [vmem:[%s14352_s29 + $0x24] ss:$8 sps:$4 sm:$0xff]   ;;  %v8009_v11 = vld [vmem:[%s14352_s29 + $0x20] ss:$8 sps:$4 sm:$0xff]  }
   0xe   :  { %v8010_v12 = vld [vmem:[%s14352_s29 + $0x14] ss:$8 sps:$4 sm:$0xff]   ;;  %v172_v13 = vld [vmem:[%s14353_s27 + $0x388] sm:$0xff]  ;;  %v179_v14 = vld [vmem:[%s14353_s27 + $0x3c0] sm:$0xff] }
   0xf   :  { %v340_v15 = vpack.c.bf16 %v179_v14, %v172_v13  ;;  %v8012_v16 = vld [vmem:[%s14352_s29 + $0x10] ss:$8 sps:$4 sm:$0xff]   ;;  %v8013_v17 = vld [vmem:[%s14352_s29 + $0x4] ss:$8 sps:$4 sm:$0xff]   ;;  %v8015_v21 = vld [vmem:[%s14352_s29] ss:$8 sps:$4 sm:$0xff]  }
  0x10   :  { %7976 = vmatpush1.bf16.msra.mxu1 %v7997_v3  ;;  %1082 = vmatpush1.bf16.msra.mxu0 %v7997_v3  ;;  %v60_v18 = vld [vmem:[%s14353_s27 + $0x8] sm:$0xff]  ;;  %v67_v19 = vld [vmem:[%s14353_s27 + $0x40] sm:$0xff]  ;;  %v8016_v22 = vld [vmem:[%s14352_s29 + $0xf4] ss:$8 sps:$4 sm:$0xff]  }
  0x11   :  { %7961 = vmatprep.subr.bf16.mxu1 %v7998_v4  ;;  %1083 = vmatprep.subr.bf16.mxu0 %v7998_v4  ;;  %v284_v20 = vpack.c.bf16 %v67_v19, %v60_v18  ;;  %v8018_v23 = vld [vmem:[%s14352_s29 + $0xf0] ss:$8 sps:$4 sm:$0xff]   ;;  %v8019_v24 = vld [vmem:[%s14352_s29 + $0xe4] ss:$8 sps:$4 sm:$0xff]   ;;  %v8021_v25 = vld [vmem:[%s14352_s29 + $0xe0] ss:$8 sps:$4 sm:$0xff]  }
  0x12   :  { %1191 = vmatprep.mubr.bf16.mxu1 %v340_v15  ;;  %v8022_v26 = vld [vmem:[%s14352_s29 + $0xd4] ss:$8 sps:$4 sm:$0xff]   ;;  %v8024_v27 = vld [vmem:[%s14352_s29 + $0xd0] ss:$8 sps:$4 sm:$0xff]   ;;  %v8025_v28 = vld [vmem:[%s14352_s29 + $0xc4] ss:$8 sps:$4 sm:$0xff]  }
  0x13   :  { %1111 = vmatprep.mubr.bf16.mxu0 %v284_v20  ;;  %v8027_v29 = vld [vmem:[%s14352_s29 + $0xc0] ss:$8 sps:$4 sm:$0xff]   ;;  %v8028_v30 = vld [vmem:[%s14352_s29 + $0xb4] ss:$8 sps:$4 sm:$0xff]   ;;  %v8030_v31 = vld [vmem:[%s14352_s29 + $0xb0] ss:$8 sps:$4 sm:$0xff]  }
  0x14   :  { %7977 = vmatpush1.bf16.msra.mxu1 %v8000_v5  ;;  %1084 = vmatpush1.bf16.msra.mxu0 %v8000_v5  ;;  %v8031_v32 = vld [vmem:[%s14352_s29 + $0xa4] ss:$8 sps:$4 sm:$0xff]   ;;  %v8033_v33 = vld [vmem:[%s14352_s29 + $0xa0] ss:$8 sps:$4 sm:$0xff]   ;;  %v8034_v34 = vld [vmem:[%s14352_s29 + $0x94] ss:$8 sps:$4 sm:$0xff]  }
  0x15   :  { %7962 = vmatprep.subr.bf16.mxu1 %v8001_v6  ;;  %1085 = vmatprep.subr.bf16.mxu0 %v8001_v6  ;;  %v8036_v35 = vld [vmem:[%s14352_s29 + $0x90] ss:$8 sps:$4 sm:$0xff]   ;;  %v8037_v36 = vld [vmem:[%s14352_s29 + $0x84] ss:$8 sps:$4 sm:$0xff]   ;;  %v8039_v37 = vld [vmem:[%s14352_s29 + $0x80] ss:$8 sps:$4 sm:$0xff]  }
  0x16   :  { %v171_v38 = vld [vmem:[%s14353_s27 + $0x380] sm:$0xff]  ;;  %v178_v39 = vld [vmem:[%s14353_s27 + $0x3b8] sm:$0xff]  ;;  %v193_v45 = vld [vmem:[%s14353_s27 + $0x430] sm:$0xff] }
  0x17   :  { %v8042_v40 = vld [vmem:[%s14352_s29 + $0x174] ss:$8 sps:$4 sm:$0xff]   ;;  %v59_v41 = vld [vmem:[%s14353_s27] sm:$0xff]  ;;  %v339_v46 = vpack.c.bf16 %v178_v39, %v171_v38  ;;  %v8040_v50 = vld [vmem:[%s14352_s29 + $0x170] ss:$8 sps:$4 sm:$0xff]  }
  0x18   :  { %7978 = vmatpush1.bf16.msra.mxu1 %v8003_v7  ;;  %1086 = vmatpush1.bf16.msra.mxu0 %v8003_v7  ;;  %v66_v42 = vld [vmem:[%s14353_s27 + $0x38] sm:$0xff]  ;;  %v81_v49 = vld [vmem:[%s14353_s27 + $0xb0] sm:$0xff]  ;;  %v8048_v52 = vld [vmem:[%s14352_s29 + $0x164] ss:$8 sps:$4 sm:$0xff]  }
  0x19   :  { %7963 = vmatprep.subr.bf16.mxu1 %v8004_v8  ;;  %1087 = vmatprep.subr.bf16.mxu0 %v8004_v8  ;;  %v8045_v43 = vld [vmem:[%s14352_s29 + $0x274] ss:$8 sps:$4 sm:$0xff]   ;;  %v283_v47 = vpack.c.bf16 %v66_v42, %v59_v41  ;;  %v8043_v51 = vld [vmem:[%s14352_s29 + $0x270] ss:$8 sps:$4 sm:$0xff]   ;;  %v8051_v53 = vld [vmem:[%s14352_s29 + $0x264] ss:$8 sps:$4 sm:$0xff]  }
  0x1a   :  { %v186_v44 = vld [vmem:[%s14353_s27 + $0x3f8] sm:$0xff]  ;;  %v8046_v54 = vld [vmem:[%s14352_s29 + $0x160] ss:$8 sps:$4 sm:$0xff]   ;;  %v185_v57 = vld [vmem:[%s14353_s27 + $0x3f0] sm:$0xff] }
  0x1b   :  { %v74_v48 = vld [vmem:[%s14353_s27 + $0x78] sm:$0xff]  ;;  %v8049_v55 = vld [vmem:[%s14352_s29 + $0x260] ss:$8 sps:$4 sm:$0xff]   ;;  %v347_v56 = vpack.c.bf16 %v193_v45, %v186_v44  ;;  %v73_v61 = vld [vmem:[%s14353_s27 + $0x70] sm:$0xff] }
  0x1c   :  { %7979 = vmatpush1.bf16.msra.mxu1 %v8006_v9  ;;  %1088 = vmatpush1.bf16.msra.mxu0 %v8006_v9  ;;  %v291_v58 = vpack.c.bf16 %v81_v49, %v74_v48  ;;  %v192_v59 = vld [vmem:[%s14353_s27 + $0x428] sm:$0xff]  ;;  %v8054_v60 = vld [vmem:[%s14352_s29 + $0x154] ss:$8 sps:$4 sm:$0xff]   ;;  %v207_v1 = vld [vmem:[%s14353_s27 + $0x4a0] sm:$0xff] }
  0x1d   :  { %7964 = vmatprep.subr.bf16.mxu1 %v8007_v10  ;;  %1089 = vmatprep.subr.bf16.mxu0 %v8007_v10  ;;  %v80_v62 = vld [vmem:[%s14353_s27 + $0xa8] sm:$0xff]  ;;  %v8057_v63 = vld [vmem:[%s14352_s29 + $0x254] ss:$8 sps:$4 sm:$0xff]   ;;  %v346_v2 = vpack.c.bf16 %v192_v59, %v185_v57  ;;  %v95_v5 = vld [vmem:[%s14353_s27 + $0x120] sm:$0xff] }
  0x1e   :  { %v200_v0 = vld [vmem:[%s14353_s27 + $0x468] sm:$0xff]  ;;  %v290_v3 = vpack.c.bf16 %v80_v62, %v73_v61  ;;  %v8052_v6 = vld [vmem:[%s14352_s29 + $0x150] ss:$8 sps:$4 sm:$0xff]   ;;  %v199_v13 = vld [vmem:[%s14353_s27 + $0x460] sm:$0xff] }
  0x1f   :  { %v88_v4 = vld [vmem:[%s14353_s27 + $0xe8] sm:$0xff]  ;;  %v8055_v7 = vld [vmem:[%s14352_s29 + $0x250] ss:$8 sps:$4 sm:$0xff]   ;;  %v8069_v19 = vld [vmem:[%s14352_s29 + $0x234] ss:$8 sps:$4 sm:$0xff]  }
  0x20   :  { %7980 = vmatpush1.bf16.msra.mxu1 %v8009_v11  ;;  %1090 = vmatpush1.bf16.msra.mxu0 %v8009_v11  ;;  %v8060_v8 = vld [vmem:[%s14352_s29 + $0x144] ss:$8 sps:$4 sm:$0xff]   ;;  %v8058_v10 = vld [vmem:[%s14352_s29 + $0x140] ss:$8 sps:$4 sm:$0xff]   ;;  %v298_v14 = vpack.c.bf16 %v95_v5, %v88_v4  ;;  %v206_v15 = vld [vmem:[%s14353_s27 + $0x498] sm:$0xff] }
  0x21   :  { %7965 = vmatprep.subr.bf16.mxu1 %v8010_v12  ;;  %1091 = vmatprep.subr.bf16.mxu0 %v8010_v12  ;;  %v8063_v9 = vld [vmem:[%s14352_s29 + $0x244] ss:$8 sps:$4 sm:$0xff]   ;;  %v8061_v11 = vld [vmem:[%s14352_s29 + $0x240] ss:$8 sps:$4 sm:$0xff]   ;;  %v354_v12 = vpack.c.bf16 %v207_v1, %v200_v0  ;;  %v94_v18 = vld [vmem:[%s14353_s27 + $0x118] sm:$0xff] }
  0x22   :  { %v214_v20 = vld [vmem:[%s14353_s27 + $0x4d8] sm:$0xff]  ;;  %v108_v38 = vld [vmem:[%s14353_s27 + $0x188] sm:$0xff]  ;;  %v235_v41 = vld [vmem:[%s14353_s27 + $0x580] sm:$0xff] }
  0x23   :  { %v8081_v39 = vld [vmem:[%s14352_s29 + $0x214] ss:$8 sps:$4 sm:$0xff]   ;;  %v116_v44 = vld [vmem:[%s14353_s27 + $0x1c8] sm:$0xff]  ;;  %v123_v45 = vld [vmem:[%s14353_s27 + $0x200] sm:$0xff] }
  0x24   :  { %7981 = vmatpush1.bf16.msra.mxu1 %v8012_v16  ;;  %1092 = vmatpush1.bf16.msra.mxu0 %v8012_v16  ;;  %v8066_v16 = vld [vmem:[%s14352_s29 + $0x134] ss:$8 sps:$4 sm:$0xff]   ;;  %v8084_v48 = vld [vmem:[%s14352_s29 + $0x104] ss:$8 sps:$4 sm:$0xff]  }
  0x25   :  { %7966 = vmatprep.subr.bf16.mxu1 %v8013_v17  ;;  %1093 = vmatprep.subr.bf16.mxu0 %v8013_v17  ;;  %v87_v17 = vld [vmem:[%s14353_s27 + $0xe0] sm:$0xff]  ;;  %v122_v57 = vld [vmem:[%s14353_s27 + $0x1f8] sm:$0xff]  ;;  %v137_v1 = vld [vmem:[%s14353_s27 + $0x270] sm:$0xff] }
  0x26   :  { %v8087_v49 = vld [vmem:[%s14352_s29 + $0x204] ss:$8 sps:$4 sm:$0xff]   ;;  %v8093_v59 = vld [vmem:[%s14352_s29 + $0x2f4] ss:$8 sps:$4 sm:$0xff]  }
  0x27   :  { %v130_v0 = vld [vmem:[%s14353_s27 + $0x238] sm:$0xff]  ;;  %v8096_v4 = vld [vmem:[%s14352_s29 + $0x1e4] ss:$8 sps:$4 sm:$0xff]  }
  0x28   :  { %7982 = vmatpush1.bf16.msra.mxu1 %v8015_v21  ;;  %1094 = vmatpush1.bf16.msra.mxu0 %v8015_v21  ;;  %v221_v21 = vld [vmem:[%s14353_s27 + $0x510] sm:$0xff]  ;;  %v8099_v5 = vld [vmem:[%s14352_s29 + $0x2e4] ss:$8 sps:$4 sm:$0xff]  }
  0x29   :  { %7967 = vmatprep.subr.bf16.mxu1 %v8016_v22  ;;  %1095 = vmatprep.subr.bf16.mxu0 %v8016_v22  ;;  %v353_v22 = vpack.c.bf16 %v206_v15, %v199_v13  ;;  %v129_v13 = vld [vmem:[%s14353_s27 + $0x230] sm:$0xff] }
  0x2a   :  { %v8105_v15 = vld [vmem:[%s14352_s29 + $0x2d4] ss:$8 sps:$4 sm:$0xff]  }
  0x2c   :  { %7983 = vmatpush2.bf16.msra.mxu1 %v8018_v23  ;;  %1096 = vmatpush2.bf16.msra.mxu0 %v8018_v23  ;;  %v297_v23 = vpack.c.bf16 %v94_v18, %v87_v17 }
  0x2d   :  { %7968 = vmatprep.subr.bf16.mxu1 %v8019_v24  ;;  %1097 = vmatprep.subr.bf16.mxu0 %v8019_v24  ;;  %v102_v24 = vld [vmem:[%s14353_s27 + $0x158] sm:$0xff] }
  0x30   :  { %7984 = vmatpush2.bf16.msra.mxu1 %v8021_v25  ;;  %1098 = vmatpush2.bf16.msra.mxu0 %v8021_v25  ;;  %v109_v25 = vld [vmem:[%s14353_s27 + $0x190] sm:$0xff] }
  0x31   :  { %7969 = vmatprep.subr.bf16.mxu1 %v8022_v26  ;;  %1099 = vmatprep.subr.bf16.mxu0 %v8022_v26  ;;  %v8064_v26 = vld [vmem:[%s14352_s29 + $0x130] ss:$8 sps:$4 sm:$0xff]  }
  0x34   :  { %7985 = vmatpush2.bf16.msra.mxu1 %v8024_v27  ;;  %1100 = vmatpush2.bf16.msra.mxu0 %v8024_v27  ;;  %v8067_v27 = vld [vmem:[%s14352_s29 + $0x230] ss:$8 sps:$4 sm:$0xff]  }
  0x35   :  { %7970 = vmatprep.subr.bf16.mxu1 %v8025_v28  ;;  %1101 = vmatprep.subr.bf16.mxu0 %v8025_v28  ;;  %v8072_v28 = vld [vmem:[%s14352_s29 + $0x124] ss:$8 sps:$4 sm:$0xff]  }
  0x38   :  { %7986 = vmatpush2.bf16.msra.mxu1 %v8027_v29  ;;  %1102 = vmatpush2.bf16.msra.mxu0 %v8027_v29  ;;  %v8075_v29 = vld [vmem:[%s14352_s29 + $0x224] ss:$8 sps:$4 sm:$0xff]  }
  0x39   :  { %7971 = vmatprep.subr.bf16.mxu1 %v8028_v30  ;;  %1103 = vmatprep.subr.bf16.mxu0 %v8028_v30  ;;  %v8070_v30 = vld [vmem:[%s14352_s29 + $0x120] ss:$8 sps:$4 sm:$0xff]  }
  0x3c   :  { %7987 = vmatpush2.bf16.msra.mxu1 %v8030_v31  ;;  %1104 = vmatpush2.bf16.msra.mxu0 %v8030_v31  ;;  %v8073_v31 = vld [vmem:[%s14352_s29 + $0x220] ss:$8 sps:$4 sm:$0xff]  }
  0x3d   :  { %7972 = vmatprep.subr.bf16.mxu1 %v8031_v32  ;;  %1105 = vmatprep.subr.bf16.mxu0 %v8031_v32  ;;  %v361_v32 = vpack.c.bf16 %v221_v21, %v214_v20  ;;  %v144_v20 = vld [vmem:[%s14353_s27 + $0x2a8] sm:$0xff]  ;;  %v151_v21 = vld [vmem:[%s14353_s27 + $0x2e0] sm:$0xff] }
  0x40   :  { %7988 = vmatpush2.bf16.msra.mxu1 %v8033_v33  ;;  %1106 = vmatpush2.bf16.msra.mxu0 %v8033_v33  ;;  %v213_v33 = vld [vmem:[%s14353_s27 + $0x4d0] sm:$0xff] }
  0x41   :  { %7973 = vmatprep.subr.bf16.mxu1 %v8034_v34  ;;  %1107 = vmatprep.subr.bf16.mxu0 %v8034_v34  ;;  %v305_v34 = vpack.c.bf16 %v109_v25, %v102_v24  ;;  %v8108_v24 = vld [vmem:[%s14352_s29 + $0x1c4] ss:$8 sps:$4 sm:$0xff]  }
  0x42   :  { %v8111_v25 = vld [vmem:[%s14352_s29 + $0x2c4] ss:$8 sps:$4 sm:$0xff]  }
  0x44   :  { %7989 = vmatpush2.bf16.msra.mxu1 %v8036_v35  ;;  %1108 = vmatpush2.bf16.msra.mxu0 %v8036_v35  ;;  %v220_v35 = vld [vmem:[%s14353_s27 + $0x508] sm:$0xff] }
  0x45   :  { %7974 = vmatprep.subr.bf16.mxu1 %v8037_v36  ;;  %1109 = vmatprep.subr.bf16.mxu0 %v8037_v36  ;;  %v8078_v36 = vld [vmem:[%s14352_s29 + $0x114] ss:$8 sps:$4 sm:$0xff]   ;;  %v360_v42 = vpack.c.bf16 %v220_v35, %v213_v33 }
  0x46   :  { %v150_v33 = vld [vmem:[%s14353_s27 + $0x2d8] sm:$0xff] }
  0x47   :  { %v8117_v35 = vld [vmem:[%s14352_s29 + $0x2b4] ss:$8 sps:$4 sm:$0xff]  }
  0x48   :  { %7990 = vmatpush2.bf16.msra.mxu1 %v8039_v37  ;;  %1110 = vmatpush2.bf16.msra.mxu0 %v8039_v37  ;;  %v101_v37 = vld [vmem:[%s14353_s27 + $0x150] sm:$0xff] }
  0x49   :  { %1272 = vmatprep.subr.bf16.mxu1 %v8042_v40  ;;  %1465 = vmatprep.subr.bf16.mxu0 %v8045_v43  ;;  %v228_v40 = vld [vmem:[%s14353_s27 + $0x548] sm:$0xff]  ;;  %v304_v43 = vpack.c.bf16 %v108_v38, %v101_v37 }
  0x4b   :  { %1192 = vmatmul.mubr.bf16.vlgmr.msra.gmra.mxu1 %v339_v46  ;;  %1112 = vmatmul.mubr.bf16.vlgmr.msra.gmra.mxu0 %v283_v47  ;;  %v8076_v46 = vld [vmem:[%s14352_s29 + $0x110] ss:$8 sps:$4 sm:$0xff]  }
  0x4c   :  { %1273 = vmatpush1.bf16.msra.mxu1 %v8040_v50  ;;  %1466 = vmatpush1.bf16.msra.mxu0 %v8043_v51  ;;  %v8079_v47 = vld [vmem:[%s14352_s29 + $0x210] ss:$8 sps:$4 sm:$0xff]   ;;  %v368_v50 = vpack.c.bf16 %v235_v41, %v228_v40  ;;  %v312_v51 = vpack.c.bf16 %v123_v45, %v116_v44  ;;  %v8120_v44 = vld [vmem:[%s14352_s29 + $0x1a4] ss:$8 sps:$4 sm:$0xff]  }
  0x4d   :  { %1274 = vmatprep.subr.bf16.mxu1 %v8048_v52  ;;  %1467 = vmatprep.subr.bf16.mxu0 %v8051_v53  ;;  %v8082_v52 = vld [vmem:[%s14352_s29 + $0x100] ss:$8 sps:$4 sm:$0xff]   ;;  %v158_v40 = vld [vmem:[%s14353_s27 + $0x318] sm:$0xff]  ;;  %v165_v41 = vld [vmem:[%s14353_s27 + $0x350] sm:$0xff] }
  0x4e   :  { %1201 = vmatprep.mubr.bf16.mxu1 %v347_v56  ;;  %1121 = vmatprep.mubr.bf16.mxu0 %v291_v58  ;;  %v8085_v53 = vld [vmem:[%s14352_s29 + $0x200] ss:$8 sps:$4 sm:$0xff]   ;;  %v8090_v58 = vld [vmem:[%s14352_s29 + $0x1f4] ss:$8 sps:$4 sm:$0xff]   ;;  %v8123_v45 = vld [vmem:[%s14352_s29 + $0x2a4] ss:$8 sps:$4 sm:$0xff]  }
  0x4f   :  { %v115_v56 = vld [vmem:[%s14353_s27 + $0x1c0] sm:$0xff] }
  0x50   :  { %1275 = vmatpush1.bf16.msra.mxu1 %v8046_v54  ;;  %1468 = vmatpush1.bf16.msra.mxu0 %v8049_v55  ;;  %v227_v54 = vld [vmem:[%s14353_s27 + $0x540] sm:$0xff]  ;;  %v234_v55 = vld [vmem:[%s14353_s27 + $0x578] sm:$0xff]  ;;  %v311_v62 = vpack.c.bf16 %v122_v57, %v115_v56 }
  0x51   :  { %1276 = vmatprep.subr.bf16.mxu1 %v8054_v60  ;;  %1469 = vmatprep.subr.bf16.mxu0 %v8057_v63  ;;  %v242_v60 = vld [vmem:[%s14353_s27 + $0x5b8] sm:$0xff]  ;;  %v367_v61 = vpack.c.bf16 %v234_v55, %v227_v54  ;;  %v249_v63 = vld [vmem:[%s14353_s27 + $0x5f0] sm:$0xff] }
  0x52   :  { %v8126_v54 = vld [vmem:[%s14352_s29 + $0x194] ss:$8 sps:$4 sm:$0xff]  }
  0x53   :  { %1202 = vmatmul.mubr.bf16.gmra.mxu1 %v346_v2  ;;  %1122 = vmatmul.mubr.bf16.gmra.mxu0 %v290_v3  ;;  %v8088_v2 = vld [vmem:[%s14352_s29 + $0x1f0] ss:$8 sps:$4 sm:$0xff]   ;;  %v8129_v55 = vld [vmem:[%s14352_s29 + $0x294] ss:$8 sps:$4 sm:$0xff]  }
  0x54   :  { %1277 = vmatpush1.bf16.msra.mxu1 %v8052_v6  ;;  %1470 = vmatpush1.bf16.msra.mxu0 %v8055_v7  ;;  %v8091_v3 = vld [vmem:[%s14352_s29 + $0x2f0] ss:$8 sps:$4 sm:$0xff]   ;;  %v8094_v6 = vld [vmem:[%s14352_s29 + $0x1e0] ss:$8 sps:$4 sm:$0xff]   ;;  %v375_v7 = vpack.c.bf16 %v249_v63, %v242_v60 }
  0x55   :  { %1278 = vmatprep.subr.bf16.mxu1 %v8060_v8  ;;  %1471 = vmatprep.subr.bf16.mxu0 %v8063_v9  ;;  %v319_v8 = vpack.c.bf16 %v137_v1, %v130_v0  ;;  %v8097_v9 = vld [vmem:[%s14352_s29 + $0x2e0] ss:$8 sps:$4 sm:$0xff]   ;;  %v62_v56 = vld [vmem:[%s14353_s27 + $0x18] sm:$0xff]  ;;  %v8132_v0 = vld [vmem:[%s14352_s29 + $0x184] ss:$8 sps:$4 sm:$0xff]  }
  0x56   :  { %1211 = vmatprep.mubr.bf16.mxu1 %v354_v12  ;;  %1131 = vmatprep.mubr.bf16.mxu0 %v298_v14  ;;  %v8102_v12 = vld [vmem:[%s14352_s29 + $0x1d4] ss:$8 sps:$4 sm:$0xff]   ;;  %v136_v14 = vld [vmem:[%s14353_s27 + $0x268] sm:$0xff]  ;;  %v8127_v63 = vld [vmem:[%s14352_s29 + $0x290] ss:$8 sps:$4 sm:$0xff]  }
  0x57   :  { %v318_v18 = vpack.c.bf16 %v136_v14, %v129_v13  ;;  %v64_v60 = vld [vmem:[%s14353_s27 + $0x28] sm:$0xff]  ;;  %v78_v13 = vld [vmem:[%s14353_s27 + $0x98] sm:$0xff]  ;;  %v85_v14 = vld [vmem:[%s14353_s27 + $0xd0] sm:$0xff] }
  0x58   :  { %1279 = vmatpush1.bf16.msra.mxu1 %v8058_v10  ;;  %1472 = vmatpush1.bf16.msra.mxu0 %v8061_v11  ;;  %v241_v10 = vld [vmem:[%s14353_s27 + $0x5b0] sm:$0xff]  ;;  %v248_v11 = vld [vmem:[%s14353_s27 + $0x5e8] sm:$0xff] }
  0x59   :  { %1280 = vmatprep.subr.bf16.mxu1 %v8066_v16  ;;  %1473 = vmatprep.subr.bf16.mxu0 %v8069_v19  ;;  %v256_v16 = vld [vmem:[%s14353_s27 + $0x628] sm:$0xff]  ;;  %v374_v17 = vpack.c.bf16 %v248_v11, %v241_v10  ;;  %v263_v19 = vld [vmem:[%s14353_s27 + $0x660] sm:$0xff]  ;;  %v8138_v10 = vld [vmem:[%s14352_s29 + $0x374] ss:$8 sps:$4 sm:$0xff]  }
  0x5a   :  { %v8135_v1 = vld [vmem:[%s14352_s29 + $0x284] ss:$8 sps:$4 sm:$0xff]  }
  0x5b   :  { %1212 = vmatmul.mubr.bf16.gmra.mxu1 %v353_v22  ;;  %1132 = vmatmul.mubr.bf16.gmra.mxu0 %v297_v23  ;;  %v8100_v22 = vld [vmem:[%s14352_s29 + $0x1d0] ss:$8 sps:$4 sm:$0xff]   ;;  %v76_v11 = vld [vmem:[%s14353_s27 + $0x88] sm:$0xff] }
  0x5c   :  { %1281 = vmatpush1.bf16.msra.mxu1 %v8064_v26  ;;  %1474 = vmatpush1.bf16.msra.mxu0 %v8067_v27  ;;  %v8103_v23 = vld [vmem:[%s14352_s29 + $0x2d0] ss:$8 sps:$4 sm:$0xff]   ;;  %v8106_v26 = vld [vmem:[%s14352_s29 + $0x1c0] ss:$8 sps:$4 sm:$0xff]  }
  0x5d   :  { %1282 = vmatprep.subr.bf16.mxu1 %v8072_v28  ;;  %1475 = vmatprep.subr.bf16.mxu0 %v8075_v29  ;;  %v8109_v27 = vld [vmem:[%s14352_s29 + $0x2c0] ss:$8 sps:$4 sm:$0xff]   ;;  %v382_v28 = vpack.c.bf16 %v263_v19, %v256_v16  ;;  %v326_v29 = vpack.c.bf16 %v151_v21, %v144_v20  ;;  %v295_v19 = vpack.c.bf16 %v85_v14, %v78_v13  ;;  %v8141_v20 = vld [vmem:[%s14352_s29 + $0x364] ss:$8 sps:$4 sm:$0xff]  }
  0x5e   :  { %1221 = vmatprep.mubr.bf16.mxu1 %v361_v32  ;;  %1141 = vmatprep.mubr.bf16.mxu0 %v305_v34  ;;  %v143_v32 = vld [vmem:[%s14353_s27 + $0x2a0] sm:$0xff]  ;;  %v8114_v34 = vld [vmem:[%s14352_s29 + $0x1b4] ss:$8 sps:$4 sm:$0xff]  }
  0x5f   :  { %v325_v38 = vpack.c.bf16 %v150_v33, %v143_v32  ;;  %v75_v21 = vld [vmem:[%s14353_s27 + $0x80] sm:$0xff] }
  0x60   :  { %1283 = vmatpush1.bf16.msra.mxu1 %v8070_v30  ;;  %1476 = vmatpush1.bf16.msra.mxu0 %v8073_v31  ;;  %v255_v30 = vld [vmem:[%s14353_s27 + $0x620] sm:$0xff]  ;;  %v262_v31 = vld [vmem:[%s14353_s27 + $0x658] sm:$0xff] }
  0x61   :  { %1284 = vmatprep.subr.bf16.mxu1 %v8078_v36  ;;  %1477 = vmatprep.subr.bf16.mxu0 %v8081_v39  ;;  %v270_v36 = vld [vmem:[%s14353_s27 + $0x698] sm:$0xff]  ;;  %v381_v37 = vpack.c.bf16 %v262_v31, %v255_v30  ;;  %v277_v39 = vld [vmem:[%s14353_s27 + $0x6d0] sm:$0xff]  ;;  %v8157_v13 = vld [vmem:[%s14352_s29 + $0x300] ss:$8 sps:$4 sm:$0xff]  }
  0x62   :  { %v8144_v30 = vld [vmem:[%s14352_s29 + $0x354] ss:$8 sps:$4 sm:$0xff]  }
  0x63   :  { %1222 = vmatmul.mubr.bf16.gmra.mxu1 %v360_v42  ;;  %1142 = vmatmul.mubr.bf16.gmra.mxu0 %v304_v43  ;;  %v8112_v42 = vld [vmem:[%s14352_s29 + $0x1b0] ss:$8 sps:$4 sm:$0xff]  }
  0x64   :  { %1285 = vmatpush1.bf16.msra.mxu1 %v8076_v46  ;;  %1478 = vmatpush1.bf16.msra.mxu0 %v8079_v47  ;;  %v8115_v43 = vld [vmem:[%s14352_s29 + $0x2b0] ss:$8 sps:$4 sm:$0xff]   ;;  %v389_v46 = vpack.c.bf16 %v277_v39, %v270_v36  ;;  %v333_v47 = vpack.c.bf16 %v165_v41, %v158_v40  ;;  %v8147_v36 = vld [vmem:[%s14352_s29 + $0x344] ss:$8 sps:$4 sm:$0xff]  }
  0x65   :  { %1286 = vmatprep.subr.bf16.mxu1 %v8084_v48  ;;  %1479 = vmatprep.subr.bf16.mxu0 %v8087_v49  ;;  %v8118_v48 = vld [vmem:[%s14352_s29 + $0x1a0] ss:$8 sps:$4 sm:$0xff]   ;;  %v98_v40 = vld [vmem:[%s14353_s27 + $0x138] sm:$0xff] }
  0x66   :  { %1231 = vmatprep.mubr.bf16.mxu1 %v368_v50  ;;  %1151 = vmatprep.mubr.bf16.mxu0 %v312_v51  ;;  %v8121_v49 = vld [vmem:[%s14352_s29 + $0x2a0] ss:$8 sps:$4 sm:$0xff]   ;;  %v269_v50 = vld [vmem:[%s14353_s27 + $0x690] sm:$0xff] }
  0x67   :  { %v276_v51 = vld [vmem:[%s14353_s27 + $0x6c8] sm:$0xff]  ;;  %v91_v39 = vld [vmem:[%s14353_s27 + $0x100] sm:$0xff] }
  0x68   :  { %1287 = vmatpush1.bf16.msra.mxu1 %v8082_v52  ;;  %1480 = vmatpush1.bf16.msra.mxu0 %v8085_v53  ;;  %v157_v52 = vld [vmem:[%s14353_s27 + $0x310] sm:$0xff]  ;;  %v164_v53 = vld [vmem:[%s14353_s27 + $0x348] sm:$0xff]  ;;  %v388_v57 = vpack.c.bf16 %v276_v51, %v269_v50 }
  0x69   :  { %1288 = vmatprep.subr.bf16.mxu1 %v8090_v58  ;;  %1481 = vmatprep.subr.bf16.mxu0 %v8093_v59  ;;  %v332_v58 = vpack.c.bf16 %v164_v53, %v157_v52  ;;  %v69_v59 = vld [vmem:[%s14353_s27 + $0x50] sm:$0xff]  ;;  %v104_v41 = vld [vmem:[%s14353_s27 + $0x168] sm:$0xff]  ;;  %v103_v53 = vld [vmem:[%s14353_s27 + $0x160] sm:$0xff] }
  0x6a   :  { %v8148_v51 = vld [vmem:[%s14352_s29 + $0x330] ss:$8 sps:$4 sm:$0xff]   ;;  %v8153_v52 = vld [vmem:[%s14352_s29 + $0x324] ss:$8 sps:$4 sm:$0xff]  }
  0x6b   :  { %1232 = vmatmul.mubr.bf16.gmra.mxu1 %v367_v61  ;;  %1152 = vmatmul.mubr.bf16.gmra.mxu0 %v311_v62  ;;  %v71_v61 = vld [vmem:[%s14353_s27 + $0x60] sm:$0xff]  ;;  %v8124_v62 = vld [vmem:[%s14352_s29 + $0x190] ss:$8 sps:$4 sm:$0xff]  }
  0x6c   :  { %1289 = vmatpush2.bf16.msra.mxu1 %v8088_v2  ;;  %1482 = vmatpush2.bf16.msra.mxu0 %v8091_v3  ;;  %v286_v2 = vpack.c.bf16 %v69_v59, %v62_v56  ;;  %v288_v3 = vpack.c.bf16 %v71_v61, %v64_v60  ;;  %v112_v56 = vld [vmem:[%s14353_s27 + $0x1a8] sm:$0xff]  ;;  %v127_v60 = vld [vmem:[%s14353_s27 + $0x220] sm:$0xff] }
  0x6d   :  { %1290 = vmatprep.subr.bf16.mxu1 %v8096_v4  ;;  %1483 = vmatprep.subr.bf16.mxu0 %v8099_v5  ;;  %v8130_v4 = vld [vmem:[%s14352_s29 + $0x180] ss:$8 sps:$4 sm:$0xff]  }
  0x6e   :  { %1241 = vmatprep.mubr.bf16.mxu1 %v375_v7  ;;  %1161 = vmatprep.mubr.bf16.mxu0 %v319_v8  ;;  %v8133_v5 = vld [vmem:[%s14352_s29 + $0x280] ss:$8 sps:$4 sm:$0xff]  }
  0x6f   :  { %v68_v7 = vld [vmem:[%s14353_s27 + $0x48] sm:$0xff]  ;;  %v63_v8 = vld [vmem:[%s14353_s27 + $0x20] sm:$0xff] }
  0x70   :  { %1291 = vmatpush2.bf16.msra.mxu1 %v8094_v6  ;;  %1484 = vmatpush2.bf16.msra.mxu0 %v8097_v9  ;;  %v61_v6 = vld [vmem:[%s14353_s27 + $0x10] sm:$0xff]  ;;  %v70_v9 = vld [vmem:[%s14353_s27 + $0x58] sm:$0xff]  ;;  %v120_v59 = vld [vmem:[%s14353_s27 + $0x1e8] sm:$0xff] }
  0x71   :  { %1292 = vmatprep.subr.bf16.mxu1 %v8102_v12  ;;  %1485 = vmatprep.subr.bf16.mxu0 %v8105_v15  ;;  %v83_v12 = vld [vmem:[%s14353_s27 + $0xc0] sm:$0xff]  ;;  %v285_v15 = vpack.c.bf16 %v68_v7, %v61_v6  ;;  %v287_v16 = vpack.c.bf16 %v70_v9, %v63_v8  ;;  %v124_v6 = vld [vmem:[%s14353_s27 + $0x208] sm:$0xff]  ;;  %v126_v8 = vld [vmem:[%s14353_s27 + $0x218] sm:$0xff] }
  0x72   :  { %v8151_v61 = vld [vmem:[%s14352_s29 + $0x320] ss:$8 sps:$4 sm:$0xff]  }
  0x73   :  { %1242 = vmatmul.mubr.bf16.gmra.mxu1 %v374_v17  ;;  %1162 = vmatmul.mubr.bf16.gmra.mxu0 %v318_v18  ;;  %v8136_v17 = vld [vmem:[%s14352_s29 + $0x370] ss:$8 sps:$4 sm:$0xff]   ;;  %v293_v18 = vpack.c.bf16 %v83_v12, %v76_v11  ;;  %v119_v7 = vld [vmem:[%s14353_s27 + $0x1e0] sm:$0xff]  ;;  %v132_v9 = vld [vmem:[%s14353_s27 + $0x248] sm:$0xff] }
  0x74   :  { %1293 = vmatpush2.bf16.msra.mxu1 %v8100_v22  ;;  %1486 = vmatpush2.bf16.msra.mxu0 %v8103_v23  ;;  %v82_v22 = vld [vmem:[%s14353_s27 + $0xb8] sm:$0xff]  ;;  %v77_v23 = vld [vmem:[%s14353_s27 + $0x90] sm:$0xff] }
  0x75   :  { %1294 = vmatprep.subr.bf16.mxu1 %v8108_v24  ;;  %1487 = vmatprep.subr.bf16.mxu0 %v8111_v25  ;;  %v84_v24 = vld [vmem:[%s14353_s27 + $0xc8] sm:$0xff]  ;;  %v90_v25 = vld [vmem:[%s14353_s27 + $0xf8] sm:$0xff]  ;;  %v292_v31 = vpack.c.bf16 %v82_v22, %v75_v21  ;;  %v141_v12 = vld [vmem:[%s14353_s27 + $0x290] sm:$0xff] }
  0x76   :  { %1251 = vmatprep.mubr.bf16.mxu1 %v382_v28  ;;  %1171 = vmatprep.mubr.bf16.mxu0 %v326_v29  ;;  %v92_v28 = vld [vmem:[%s14353_s27 + $0x108] sm:$0xff]  ;;  %v99_v29 = vld [vmem:[%s14353_s27 + $0x140] sm:$0xff]  ;;  %v294_v32 = vpack.c.bf16 %v84_v24, %v77_v23  ;;  %v134_v11 = vld [vmem:[%s14353_s27 + $0x258] sm:$0xff] }
  0x77   :  { %v140_v21 = vld [vmem:[%s14353_s27 + $0x288] sm:$0xff]  ;;  %v146_v22 = vld [vmem:[%s14353_s27 + $0x2b8] sm:$0xff]  ;;  %v153_v23 = vld [vmem:[%s14353_s27 + $0x2f0] sm:$0xff] }
  0x78   :  { %1295 = vmatpush2.bf16.msra.mxu1 %v8106_v26  ;;  %1488 = vmatpush2.bf16.msra.mxu0 %v8109_v27  ;;  %v97_v26 = vld [vmem:[%s14353_s27 + $0x130] sm:$0xff]  ;;  %v8139_v27 = vld [vmem:[%s14352_s29 + $0x360] ss:$8 sps:$4 sm:$0xff]  }
  0x79   :  { %1296 = vmatprep.subr.bf16.mxu1 %v8114_v34  ;;  %1489 = vmatprep.subr.bf16.mxu0 %v8117_v35  ;;  %v300_v33 = vpack.c.bf16 %v97_v26, %v90_v25  ;;  %v302_v34 = vpack.c.bf16 %v99_v29, %v92_v28  ;;  %v8142_v35 = vld [vmem:[%s14352_s29 + $0x350] ss:$8 sps:$4 sm:$0xff]   ;;  %v148_v24 = vld [vmem:[%s14353_s27 + $0x2c8] sm:$0xff]  ;;  %v155_v25 = vld [vmem:[%s14353_s27 + $0x300] sm:$0xff]  ;;  %v328_v28 = vpack.c.bf16 %v153_v23, %v146_v22 }
  0x7a   :  { %v330_v29 = vpack.c.bf16 %v155_v25, %v148_v24 }
  0x7b   :  { %1252 = vmatmul.mubr.bf16.gmra.mxu1 %v381_v37  ;;  %1172 = vmatmul.mubr.bf16.gmra.mxu0 %v325_v38  ;;  %v89_v37 = vld [vmem:[%s14353_s27 + $0xf0] sm:$0xff]  ;;  %v96_v38 = vld [vmem:[%s14353_s27 + $0x128] sm:$0xff] }
  0x7c   :  { %1297 = vmatpush2.bf16.msra.mxu1 %v8112_v42  ;;  %1490 = vmatpush2.bf16.msra.mxu0 %v8115_v43  ;;  %v111_v42 = vld [vmem:[%s14353_s27 + $0x1a0] sm:$0xff]  ;;  %v106_v43 = vld [vmem:[%s14353_s27 + $0x178] sm:$0xff] }
  0x7d   :  { %1298 = vmatprep.subr.bf16.mxu1 %v8120_v44  ;;  %1491 = vmatprep.subr.bf16.mxu0 %v8123_v45  ;;  %v113_v44 = vld [vmem:[%s14353_s27 + $0x1b0] sm:$0xff]  ;;  %v8145_v45 = vld [vmem:[%s14352_s29 + $0x340] ss:$8 sps:$4 sm:$0xff]  }
  0x7e   :  { %1261 = vmatprep.mubr.bf16.mxu1 %v389_v46  ;;  %1181 = vmatprep.mubr.bf16.mxu0 %v333_v47  ;;  %v8150_v46 = vld [vmem:[%s14352_s29 + $0x334] ss:$8 sps:$4 sm:$0xff]   ;;  %v299_v47 = vpack.c.bf16 %v96_v38, %v89_v37  ;;  %v309_v50 = vpack.c.bf16 %v113_v44, %v106_v43 }
  0x7f   :  { %v169_v37 = vld [vmem:[%s14353_s27 + $0x370] sm:$0xff]  ;;  %v166_v43 = vld [vmem:[%s14353_s27 + $0x358] sm:$0xff] }
  0x80   :  { %1299 = vmatpush2.bf16.msra.mxu1 %v8118_v48  ;;  %1492 = vmatpush2.bf16.msra.mxu0 %v8121_v49  ;;  %v301_v48 = vpack.c.bf16 %v98_v40, %v91_v39  ;;  %v307_v49 = vpack.c.bf16 %v111_v42, %v104_v41  ;;  %v159_v42 = vld [vmem:[%s14353_s27 + $0x320] sm:$0xff]  ;;  %v161_v44 = vld [vmem:[%s14353_s27 + $0x330] sm:$0xff] }
  0x81   :  { %1300 = vmatprep.subr.bf16.mxu1 %v8126_v54  ;;  %1493 = vmatprep.subr.bf16.mxu0 %v8129_v55  ;;  %v110_v54 = vld [vmem:[%s14353_s27 + $0x198] sm:$0xff]  ;;  %v105_v55 = vld [vmem:[%s14353_s27 + $0x170] sm:$0xff] }
  0x83   :  { %1262 = vmatmul.mubr.bf16.gmra.mxu1 %v388_v57  ;;  %1182 = vmatmul.mubr.bf16.gmra.mxu0 %v332_v58  ;;  %v118_v57 = vld [vmem:[%s14353_s27 + $0x1d8] sm:$0xff]  ;;  %v125_v58 = vld [vmem:[%s14353_s27 + $0x210] sm:$0xff] }
  0x84   :  { %1301 = vmatpush2.bf16.msra.mxu1 %v8124_v62  ;;  %1494 = vmatpush2.bf16.msra.mxu0 %v8127_v63  ;;  %v8156_v62 = vld [vmem:[%s14352_s29 + $0x314] ss:$8 sps:$4 sm:$0xff]   ;;  %v306_v63 = vpack.c.bf16 %v110_v54, %v103_v53 }
  0x85   :  { %1302 = vmatprep.subr.bf16.mxu1 %v8132_v0  ;;  %1495 = vmatprep.subr.bf16.mxu0 %v8135_v1  ;;  %v308_v0 = vpack.c.bf16 %v112_v56, %v105_v55  ;;  %v314_v1 = vpack.c.bf16 %v125_v58, %v118_v57  ;;  %v173_v54 = vld [vmem:[%s14353_s27 + $0x390] sm:$0xff]  ;;  %v180_v55 = vld [vmem:[%s14353_s27 + $0x3c8] sm:$0xff]  ;;  %v175_v56 = vld [vmem:[%s14353_s27 + $0x3a0] sm:$0xff] }
  0x86   :  { %1304 = vmatprep.mubr.bf16.mxu1 %v286_v2  ;;  %1497 = vmatprep.mubr.bf16.mxu0 %v288_v3  ;;  %v316_v2 = vpack.c.bf16 %v127_v60, %v120_v59  ;;  %v8154_v3 = vld [vmem:[%s14352_s29 + $0x310] ss:$8 sps:$4 sm:$0xff]   ;;  %v188_v58 = vld [vmem:[%s14353_s27 + $0x408] sm:$0xff]  ;;  %v195_v59 = vld [vmem:[%s14353_s27 + $0x440] sm:$0xff] }
  0x87   :  { %v182_v57 = vld [vmem:[%s14353_s27 + $0x3d8] sm:$0xff] }
  0x88   :  { %1303 = vmatpush2.bf16.msra.mxu1 %v8130_v4  ;;  %1496 = vmatpush2.bf16.msra.mxu0 %v8133_v5  ;;  %v8159_v4 = vld [vmem:[%s14352_s29 + $0x304] ss:$8 sps:$4 sm:$0xff]   ;;  %v117_v5 = vld [vmem:[%s14353_s27 + $0x1d0] sm:$0xff]  ;;  %v190_v60 = vld [vmem:[%s14353_s27 + $0x418] sm:$0xff] }
  0x89   :  { %1658 = vmatprep.subr.bf16.mxu1 %v8138_v10  ;;  %v139_v10 = vld [vmem:[%s14353_s27 + $0x280] sm:$0xff]  ;;  %v313_v14 = vpack.c.bf16 %v124_v6, %v117_v5  ;;  %v196_v5 = vld [vmem:[%s14353_s27 + $0x448] sm:$0xff]  ;;  %v202_v6 = vld [vmem:[%s14353_s27 + $0x478] sm:$0xff] }
  0x8b   :  { %1305 = vmatmul.mubr.bf16.vlgmr.msra.gmra.mxu1 %v285_v15  ;;  %1498 = vmatmul.mubr.bf16.vlgmr.msra.gmra.mxu0 %v287_v16  ;;  %v315_v15 = vpack.c.bf16 %v126_v8, %v119_v7  ;;  %v321_v16 = vpack.c.bf16 %v139_v10, %v132_v9  ;;  %v209_v7 = vld [vmem:[%s14353_s27 + $0x4b0] sm:$0xff]  ;;  %v204_v8 = vld [vmem:[%s14353_s27 + $0x488] sm:$0xff]  ;;  %v211_v9 = vld [vmem:[%s14353_s27 + $0x4c0] sm:$0xff] }
  0x8c   :  { %1659 = vmatpush1.bf16.msra.mxu1 %v8136_v17  ;;  %1314 = vmatprep.mubr.bf16.mxu1 %v293_v18  ;;  %v323_v17 = vpack.c.bf16 %v141_v12, %v134_v11  ;;  %v131_v18 = vld [vmem:[%s14353_s27 + $0x240] sm:$0xff]  ;;  %v356_v12 = vpack.c.bf16 %v209_v7, %v202_v6  ;;  %v274_v6 = vld [vmem:[%s14353_s27 + $0x6b8] sm:$0xff]  ;;  %v281_v7 = vld [vmem:[%s14353_s27 + $0x6f0] sm:$0xff] }
  0x8d   :  { %1507 = vmatprep.mubr.bf16.mxu0 %v295_v19  ;;  %1660 = vmatprep.subr.bf16.mxu1 %v8141_v20  ;;  %v138_v19 = vld [vmem:[%s14353_s27 + $0x278] sm:$0xff]  ;;  %v133_v20 = vld [vmem:[%s14353_s27 + $0x250] sm:$0xff] }
  0x8e   :  { %v320_v26 = vpack.c.bf16 %v138_v19, %v131_v18  ;;  %v216_v18 = vld [vmem:[%s14353_s27 + $0x4e8] sm:$0xff]  ;;  %v223_v19 = vld [vmem:[%s14353_s27 + $0x520] sm:$0xff] }
  0x8f   :  { %v363_v24 = vpack.c.bf16 %v223_v19, %v216_v18  ;;  %v509_v18 = vlaneseq }
  0x90   :  { %1661 = vmatpush1.bf16.msra.mxu1 %v8139_v27  ;;  %v322_v27 = vpack.c.bf16 %v140_v21, %v133_v20  ;;  %v218_v20 = vld [vmem:[%s14353_s27 + $0x4f8] sm:$0xff]  ;;  %v225_v21 = vld [vmem:[%s14353_s27 + $0x530] sm:$0xff] }
  0x91   :  { %1662 = vmatprep.subr.bf16.mxu1 %v8144_v30  ;;  %v145_v30 = vld [vmem:[%s14353_s27 + $0x2b0] sm:$0xff]  ;;  %v365_v25 = vpack.c.bf16 %v225_v21, %v218_v20  ;;  %v10877_v21 = vshrl.u32 %v509_v18, 7 }
  0x93   :  { %1315 = vmatmul.mubr.bf16.gmra.mxu1 %v292_v31  ;;  %1508 = vmatmul.mubr.bf16.gmra.mxu0 %v294_v32  ;;  %v152_v31 = vld [vmem:[%s14353_s27 + $0x2e8] sm:$0xff]  ;;  %v147_v32 = vld [vmem:[%s14353_s27 + $0x2c0] sm:$0xff]  ;;  %14355 = vst [vmem:[#allocation2_spill] sm:$0xff] %v10877_v21 }
  0x94   :  { %1324 = vmatprep.mubr.bf16.mxu1 %v300_v33  ;;  %1517 = vmatprep.mubr.bf16.mxu0 %v302_v34  ;;  %v154_v33 = vld [vmem:[%s14353_s27 + $0x2f8] sm:$0xff]  ;;  %v160_v34 = vld [vmem:[%s14353_s27 + $0x328] sm:$0xff]  ;;  %v327_v38 = vpack.c.bf16 %v152_v31, %v145_v30  ;;  %v237_v31 = vld [vmem:[%s14353_s27 + $0x590] sm:$0xff] }
  0x95   :  { %1663 = vmatpush1.bf16.msra.mxu1 %v8142_v35  ;;  %v167_v35 = vld [vmem:[%s14353_s27 + $0x360] sm:$0xff]  ;;  %v329_v39 = vpack.c.bf16 %v154_v33, %v147_v32  ;;  %v230_v30 = vld [vmem:[%s14353_s27 + $0x558] sm:$0xff]  ;;  %v232_v32 = vld [vmem:[%s14353_s27 + $0x568] sm:$0xff] }
  0x96   :  { %1664 = vmatprep.subr.bf16.mxu1 %v8147_v36  ;;  %v162_v36 = vld [vmem:[%s14353_s27 + $0x338] sm:$0xff]  ;;  %v335_v40 = vpack.c.bf16 %v167_v35, %v160_v34  ;;  %v239_v33 = vld [vmem:[%s14353_s27 + $0x5a0] sm:$0xff] }
  0x97   :  { %v337_v41 = vpack.c.bf16 %v169_v37, %v162_v36  ;;  %v370_v36 = vpack.c.bf16 %v237_v31, %v230_v30  ;;  %v372_v37 = vpack.c.bf16 %v239_v33, %v232_v32 }
  0x99   :  { %1665 = vmatpush1.bf16.msra.mxu1 %v8145_v45  ;;  %v168_v45 = vld [vmem:[%s14353_s27 + $0x368] sm:$0xff] }
  0x9a   :  { %1666 = vmatprep.subr.bf16.mxu1 %v8150_v46  ;;  %v174_v46 = vld [vmem:[%s14353_s27 + $0x398] sm:$0xff] }
  0x9b   :  { %1325 = vmatmul.mubr.bf16.gmra.mxu1 %v299_v47  ;;  %1518 = vmatmul.mubr.bf16.gmra.mxu0 %v301_v48  ;;  %v181_v47 = vld [vmem:[%s14353_s27 + $0x3d0] sm:$0xff]  ;;  %v176_v48 = vld [vmem:[%s14353_s27 + $0x3a8] sm:$0xff] }
  0x9c   :  { %1334 = vmatprep.mubr.bf16.mxu1 %v307_v49  ;;  %1527 = vmatprep.mubr.bf16.mxu0 %v309_v50  ;;  %v183_v49 = vld [vmem:[%s14353_s27 + $0x3e0] sm:$0xff]  ;;  %v334_v50 = vpack.c.bf16 %v166_v43, %v159_v42  ;;  %v244_v42 = vld [vmem:[%s14353_s27 + $0x5c8] sm:$0xff] }
  0x9d   :  { %1667 = vmatpush1.bf16.msra.mxu1 %v8148_v51  ;;  %v336_v51 = vpack.c.bf16 %v168_v45, %v161_v44  ;;  %v344_v53 = vpack.c.bf16 %v183_v49, %v176_v48  ;;  %v251_v43 = vld [vmem:[%s14353_s27 + $0x600] sm:$0xff]  ;;  %v246_v44 = vld [vmem:[%s14353_s27 + $0x5d8] sm:$0xff]  ;;  %v253_v45 = vld [vmem:[%s14353_s27 + $0x610] sm:$0xff] }
  0x9e   :  { %1668 = vmatprep.subr.bf16.mxu1 %v8153_v52  ;;  %v342_v52 = vpack.c.bf16 %v181_v47, %v174_v46  ;;  %v8160_v48 = vld [vmem:[%s14354_s28 + $0x78] sm:$0xff]   ;;  %v377_v49 = vpack.c.bf16 %v251_v43, %v244_v42 }
  0x9f   :  { %7471 = vmatprep.subr.bf16.mxu0 %v8160_v48 }
  0xa1   :  { %1669 = vmatpush1.bf16.msra.mxu1 %v8151_v61  ;;  %v197_v61 = vld [vmem:[%s14353_s27 + $0x450] sm:$0xff] }
  0xa2   :  { %1670 = vmatprep.subr.bf16.mxu1 %v8156_v62  ;;  %v341_v62 = vpack.c.bf16 %v180_v55, %v173_v54  ;;  %v245_v54 = vld [vmem:[%s14353_s27 + $0x5d0] sm:$0xff]  ;;  %v252_v55 = vld [vmem:[%s14353_s27 + $0x608] sm:$0xff] }
  0xa3   :  { %1335 = vmatmul.mubr.bf16.gmra.mxu1 %v306_v63  ;;  %1528 = vmatmul.mubr.bf16.gmra.mxu0 %v308_v0  ;;  %v343_v63 = vpack.c.bf16 %v182_v57, %v175_v56  ;;  %v349_v0 = vpack.c.bf16 %v195_v59, %v188_v58  ;;  %v258_v56 = vld [vmem:[%s14353_s27 + $0x638] sm:$0xff]  ;;  %v265_v57 = vld [vmem:[%s14353_s27 + $0x670] sm:$0xff]  ;;  %v260_v58 = vld [vmem:[%s14353_s27 + $0x648] sm:$0xff] }
  0xa4   :  { %1344 = vmatprep.mubr.bf16.mxu1 %v314_v1  ;;  %1537 = vmatprep.mubr.bf16.mxu0 %v316_v2  ;;  %v351_v1 = vpack.c.bf16 %v197_v61, %v190_v60  ;;  %v187_v2 = vld [vmem:[%s14353_s27 + $0x400] sm:$0xff]  ;;  %v378_v61 = vpack.c.bf16 %v252_v55, %v245_v54 }
  0xa5   :  { %1671 = vmatpush1.bf16.msra.mxu1 %v8154_v3  ;;  %v194_v3 = vld [vmem:[%s14353_s27 + $0x438] sm:$0xff]  ;;  %v267_v59 = vld [vmem:[%s14353_s27 + $0x680] sm:$0xff] }
  0xa6   :  { %1672 = vmatprep.subr.bf16.mxu1 %v8159_v4  ;;  %v189_v4 = vld [vmem:[%s14353_s27 + $0x410] sm:$0xff]  ;;  %v348_v10 = vpack.c.bf16 %v194_v3, %v187_v2  ;;  %v259_v2 = vld [vmem:[%s14353_s27 + $0x640] sm:$0xff]  ;;  %v266_v3 = vld [vmem:[%s14353_s27 + $0x678] sm:$0xff] }
  0xa7   :  { %v350_v11 = vpack.c.bf16 %v196_v5, %v189_v4  ;;  %v272_v4 = vld [vmem:[%s14353_s27 + $0x6a8] sm:$0xff]  ;;  %v279_v5 = vld [vmem:[%s14353_s27 + $0x6e0] sm:$0xff] }
  0xa9   :  { %1673 = vmatpush1.bf16.msra.mxu1 %v8157_v13  ;;  %v358_v13 = vpack.c.bf16 %v211_v9, %v204_v8  ;;  %v8162_v8 = vld [vmem:[%s14354_s28 + $0x70] sm:$0xff]  }
  0xaa   :  { %v8163_v9 = vld [vmem:[%s14354_s28 + $0x30] sm:$0xff]  }
  0xab   :  { %1345 = vmatmul.mubr.bf16.gmra.mxu1 %v313_v14  ;;  %1538 = vmatmul.mubr.bf16.gmra.mxu0 %v315_v15  ;;  %v201_v14 = vld [vmem:[%s14353_s27 + $0x470] sm:$0xff]  ;;  %v208_v15 = vld [vmem:[%s14353_s27 + $0x4a8] sm:$0xff] }
  0xac   :  { %1354 = vmatprep.mubr.bf16.mxu1 %v321_v16  ;;  %1547 = vmatprep.mubr.bf16.mxu0 %v323_v17  ;;  %v203_v16 = vld [vmem:[%s14353_s27 + $0x480] sm:$0xff]  ;;  %v210_v17 = vld [vmem:[%s14353_s27 + $0x4b8] sm:$0xff]  ;;  %v355_v22 = vpack.c.bf16 %v208_v15, %v201_v14 }
  0xad   :  { %v357_v23 = vpack.c.bf16 %v210_v17, %v203_v16  ;;  %v271_v14 = vld [vmem:[%s14353_s27 + $0x6a0] sm:$0xff]  ;;  %v278_v15 = vld [vmem:[%s14353_s27 + $0x6d8] sm:$0xff]  ;;  %v273_v16 = vld [vmem:[%s14353_s27 + $0x6b0] sm:$0xff] }
  0xae   :  { %v280_v17 = vld [vmem:[%s14353_s27 + $0x6e8] sm:$0xff]  ;;  %v390_v19 = vpack.c.bf16 %v278_v15, %v271_v14 }
  0xaf   :  { %v392_v20 = vpack.c.bf16 %v280_v17, %v273_v16 }
  0xb3   :  { %1355 = vmatmul.mubr.bf16.gmra.mxu1 %v320_v26  ;;  %1548 = vmatmul.mubr.bf16.gmra.mxu0 %v322_v27  ;;  %v215_v26 = vld [vmem:[%s14353_s27 + $0x4e0] sm:$0xff]  ;;  %v222_v27 = vld [vmem:[%s14353_s27 + $0x518] sm:$0xff] }
  0xb4   :  { %1364 = vmatprep.mubr.bf16.mxu1 %v328_v28  ;;  %1557 = vmatprep.mubr.bf16.mxu0 %v330_v29  ;;  %v217_v28 = vld [vmem:[%s14353_s27 + $0x4f0] sm:$0xff]  ;;  %v224_v29 = vld [vmem:[%s14353_s27 + $0x528] sm:$0xff]  ;;  %v362_v34 = vpack.c.bf16 %v222_v27, %v215_v26  ;;  %v507_v26 = vld [vmem:[%s14321_s2] sm:$0x3]  ;;  %v10893_v27 = vsub.s32 1, %v10877_v21 }
  0xb5   :  { %v364_v35 = vpack.c.bf16 %v224_v29, %v217_v28  ;;  %v8164_v28 = vld [vmem:[%s14354_s28 + $0x68] sm:$0xff]  }
  0xb6   :  { %14357 = vst [vmem:[#allocation4_spill] sm:$0xff] %v10893_v27  ;;  %v8165_v29 = vld [vmem:[%s14354_s28 + $0x28] sm:$0xff]   ;;  %v10905_v32 = vrot.slane %v507_v26, %v10893_v27 }
  0xbb   :  { %1365 = vmatmul.mubr.bf16.gmra.mxu1 %v327_v38  ;;  %1558 = vmatmul.mubr.bf16.gmra.mxu0 %v329_v39  ;;  %v229_v38 = vld [vmem:[%s14353_s27 + $0x550] sm:$0xff]  ;;  %v236_v39 = vld [vmem:[%s14353_s27 + $0x588] sm:$0xff] }
  0xbc   :  { %1374 = vmatprep.mubr.bf16.mxu1 %v335_v40  ;;  %1567 = vmatprep.mubr.bf16.mxu0 %v337_v41  ;;  %v231_v40 = vld [vmem:[%s14353_s27 + $0x560] sm:$0xff]  ;;  %v238_v41 = vld [vmem:[%s14353_s27 + $0x598] sm:$0xff]  ;;  %v369_v46 = vpack.c.bf16 %v236_v39, %v229_v38 }
  0xbd   :  { %v371_v47 = vpack.c.bf16 %v238_v41, %v231_v40 }
  0xc3   :  { %1375 = vmatmul.mubr.bf16.gmra.mxu1 %v334_v50  ;;  %1568 = vmatmul.mubr.bf16.gmra.mxu0 %v336_v51  ;;  %v379_v50 = vpack.c.bf16 %v253_v45, %v246_v44  ;;  %v8161_v51 = vld [vmem:[%s14354_s28 + $0x38] sm:$0xff]  }
  0xc4   :  { %1384 = vmatprep.mubr.bf16.mxu1 %v342_v52  ;;  %1577 = vmatprep.mubr.bf16.mxu0 %v344_v53  ;;  %v243_v52 = vld [vmem:[%s14353_s27 + $0x5c0] sm:$0xff]  ;;  %v250_v53 = vld [vmem:[%s14353_s27 + $0x5f8] sm:$0xff] }
  0xc5   :  { %7472 = vmatpush3.bf16.msra.mxu0 %v8161_v51  ;;  %v376_v60 = vpack.c.bf16 %v250_v53, %v243_v52  ;;  %v93_v51 = vld [vmem:[%s14353_s27 + $0x110] sm:$0xff]  ;;  %v100_v52 = vld [vmem:[%s14353_s27 + $0x148] sm:$0xff] }
  0xc6   :  { %7473 = vmatprep.subr.bf16.mxu0 %v8162_v8 }
  0xc9   :  { %7474 = vmatpush3.bf16.msra.mxu0 %v8163_v9 }
  0xca   :  { %7475 = vmatprep.subr.bf16.mxu0 %v8164_v28  ;;  %v8168_v28 = vld [vmem:[%s14354_s28 + $0x58] sm:$0xff]  }
  0xcb   :  { %1385 = vmatmul.mubr.bf16.gmra.mxu1 %v341_v62  ;;  %1578 = vmatmul.mubr.bf16.gmra.mxu0 %v343_v63  ;;  %v384_v62 = vpack.c.bf16 %v265_v57, %v258_v56  ;;  %v386_v63 = vpack.c.bf16 %v267_v59, %v260_v58  ;;  %v8166_v56 = vld [vmem:[%s14354_s28 + $0x60] sm:$0xff]  }
  0xcc   :  { %1394 = vmatprep.mubr.bf16.mxu1 %v349_v0  ;;  %1587 = vmatprep.mubr.bf16.mxu0 %v351_v1  ;;  %v257_v0 = vld [vmem:[%s14353_s27 + $0x630] sm:$0xff]  ;;  %v264_v1 = vld [vmem:[%s14353_s27 + $0x668] sm:$0xff]  ;;  %v8167_v57 = vld [vmem:[%s14354_s28 + $0x20] sm:$0xff]  }
  0xcd   :  { %7476 = vmatpush3.bf16.msra.mxu0 %v8165_v29  ;;  %v8169_v29 = vld [vmem:[%s14354_s28 + $0x18] sm:$0xff]  }
  0xce   :  { %7477 = vmatprep.subr.bf16.mxu0 %v8166_v56 }
  0xd1   :  { %7478 = vmatpush3.bf16.msra.mxu0 %v8167_v57 }
  0xd2   :  { %7479 = vmatprep.subr.bf16.mxu0 %v8168_v28 }
  0xd3   :  { %1395 = vmatmul.mubr.bf16.gmra.mxu1 %v348_v10  ;;  %1588 = vmatmul.mubr.bf16.gmra.mxu0 %v350_v11  ;;  %v383_v10 = vpack.c.bf16 %v264_v1, %v257_v0  ;;  %v385_v11 = vpack.c.bf16 %v266_v3, %v259_v2 }
  0xd4   :  { %1404 = vmatprep.mubr.bf16.mxu1 %v356_v12  ;;  %1597 = vmatprep.mubr.bf16.mxu0 %v358_v13  ;;  %v391_v12 = vpack.c.bf16 %v279_v5, %v272_v4  ;;  %v393_v13 = vpack.c.bf16 %v281_v7, %v274_v6  ;;  %v107_v4 = vld [vmem:[%s14353_s27 + $0x180] sm:$0xff]  ;;  %v114_v5 = vld [vmem:[%s14353_s27 + $0x1b8] sm:$0xff] }
  0xd5   :  { %7480 = vmatpush3.bf16.msra.mxu0 %v8169_v29 }
  0xdb   :  { %1405 = vmatmul.mubr.bf16.gmra.mxu1 %v355_v22  ;;  %1598 = vmatmul.mubr.bf16.gmra.mxu0 %v357_v23  ;;  %v14340_v22 = vmov 0   ;;  %v10881_v23 = vsub.s32 0, %v10877_v21 }
  0xdc   :  { %1414 = vmatprep.mubr.bf16.mxu1 %v363_v24  ;;  %1607 = vmatprep.mubr.bf16.mxu0 %v365_v25  ;;  %v65_v24 = vld [vmem:[%s14353_s27 + $0x30] sm:$0xff]  ;;  %v72_v25 = vld [vmem:[%s14353_s27 + $0x68] sm:$0xff] }
  0xdd   :  { %14356 = vst [vmem:[#allocation3_spill] sm:$0xff] %v10881_v23  ;;  %v289_v30 = vpack.c.bf16 %v72_v25, %v65_v24  ;;  %v10902_v31 = vrot.slane %v507_v26, %v10881_v23 }
  0xe3   :  { %1415 = vmatmul.mubr.bf16.gmra.mxu1 %v362_v34  ;;  %1608 = vmatmul.mubr.bf16.gmra.mxu0 %v364_v35 }
  0xe4   :  { %1424 = vmatprep.mubr.bf16.mxu1 %v370_v36  ;;  %1617 = vmatprep.mubr.bf16.mxu0 %v372_v37  ;;  %v79_v36 = vld [vmem:[%s14353_s27 + $0xa0] sm:$0xff]  ;;  %v86_v37 = vld [vmem:[%s14353_s27 + $0xd8] sm:$0xff] }
  0xe5   :  { %v296_v43 = vpack.c.bf16 %v86_v37, %v79_v36 }
  0xeb   :  { %1425 = vmatmul.mubr.bf16.gmra.mxu1 %v369_v46  ;;  %1618 = vmatmul.mubr.bf16.gmra.mxu0 %v371_v47 }
  0xec   :  { %1434 = vmatprep.mubr.bf16.mxu1 %v377_v49  ;;  %1627 = vmatprep.mubr.bf16.mxu0 %v379_v50 }
  0xf3   :  { %1435 = vmatmul.mubr.bf16.gmra.mxu1 %v376_v60  ;;  %1628 = vmatmul.mubr.bf16.gmra.mxu0 %v378_v61  ;;  %v303_v60 = vpack.c.bf16 %v100_v52, %v93_v51  ;;  %v135_v52 = vld [vmem:[%s14353_s27 + $0x260] sm:$0xff] }
  0xf4   :  { %1444 = vmatprep.mubr.bf16.mxu1 %v384_v62  ;;  %1637 = vmatprep.mubr.bf16.mxu0 %v386_v63 }
  0xfb   :  { %1445 = vmatmul.mubr.bf16.gmra.mxu1 %v383_v10  ;;  %1638 = vmatmul.mubr.bf16.gmra.mxu0 %v385_v11  ;;  %v310_v11 = vpack.c.bf16 %v114_v5, %v107_v4 }
  0xfc   :  { %1454 = vmatprep.mubr.bf16.mxu1 %v391_v12  ;;  %1647 = vmatprep.mubr.bf16.mxu0 %v393_v13 }
 0x103   :  { %1455 = vmatmul.mubr.bf16.gmra.mxu1 %v390_v19  ;;  %1648 = vmatmul.mubr.bf16.gmra.mxu0 %v392_v20  ;;  %v121_v19 = vld [vmem:[%s14353_s27 + $0x1f0] sm:$0xff]  ;;  %v128_v20 = vld [vmem:[%s14353_s27 + $0x228] sm:$0xff] }
 0x104   :  { %1690 = vmatprep.mubr.bf16.mxu1 %v14340_v22  ;;  %v317_v36 = vpack.c.bf16 %v128_v20, %v121_v19  ;;  %v149_v19 = vld [vmem:[%s14353_s27 + $0x2d0] sm:$0xff]  ;;  %v156_v20 = vld [vmem:[%s14353_s27 + $0x308] sm:$0xff] }
 0x10b   :  { %v1193_v33 = vpop.f32.mrf.mxu1  ;;  %1691 = vmatmul.mubr.bf16.vlgmr.msra.gmra.mxu1 %v289_v30  ;;  %v10907_v34 = vpop.f32.mrf.mxu0 }
 0x10c   :  { %v10910_v35 = vadd.f32 %v1193_v33, %v10902_v31  ;;  %1700 = vmatprep.mubr.bf16.mxu1 %v14340_v22 }
 0x10d   :  { %v1195_v38 = vpop.f32.mrf.mxu1  ;;  %v10919_v39 = vpop.f32.mrf.mxu0 }
 0x10e   :  { %v10922_v40 = vadd.f32 %v1195_v38, %v10905_v32 }
 0x10f   :  { %v1197_v41 = vpop.f32.mrf.mxu1  ;;  %v10924_v42 = vpop.f32.mrf.mxu0 }
 0x110   :  { %v10927_v44 = vadd.f32 %v1197_v41, %v10902_v31 }
 0x111   :  { %v1199_v45 = vpop.f32.mrf.mxu1  ;;  %v10929_v46 = vpop.f32.mrf.mxu0 }
 0x112   :  { %v10932_v47 = vadd.f32 %v1199_v45, %v10905_v32 }
 0x113   :  { %v1203_v48 = vpop.f32.mrf.mxu1  ;;  %1701 = vmatmul.mubr.bf16.gmra.mxu1 %v296_v43  ;;  %v10934_v49 = vpop.f32.mrf.mxu0 }
 0x114   :  { %14358 = vst [vmem:[#allocation5_spill] sm:$0xff] %v10932_v47  ;;  %v10937_v50 = vadd.f32 %v1203_v48, %v10902_v31  ;;  %1710 = vmatprep.mubr.bf16.mxu1 %v14340_v22 }
 0x115   :  { %v1205_v53 = vpop.f32.mrf.mxu1  ;;  %v10946_v54 = vpop.f32.mrf.mxu0 }
 0x116   :  { %v10949_v55 = vadd.f32 %v1205_v53, %v10905_v32  ;;  %v142_v53 = vld [vmem:[%s14353_s27 + $0x298] sm:$0xff] }
 0x117   :  { %v1207_v58 = vpop.f32.mrf.mxu1  ;;  %v10957_v59 = vpop.f32.mrf.mxu0 }
 0x118   :  { %v10960_v61 = vadd.f32 %v1207_v58, %v10902_v31 }
 0x119   :  { %v1209_v62 = vpop.f32.mrf.mxu1  ;;  %v10962_v63 = vpop.f32.mrf.mxu0 }
 0x11a   :  { %v10965_v0 = vadd.f32 %v1209_v62, %v10905_v32 }
 0x11b   :  { %v1213_v1 = vpop.f32.mrf.mxu1  ;;  %1711 = vmatmul.mubr.bf16.gmra.mxu1 %v303_v60  ;;  %v10967_v2 = vpop.f32.mrf.mxu0 }
 0x11c   :  { %14359 = vst [vmem:[#allocation6_spill] sm:$0xff] %v10965_v0  ;;  %v10970_v3 = vadd.f32 %v1213_v1, %v10902_v31  ;;  %1720 = vmatprep.mubr.bf16.mxu1 %v14340_v22  ;;  %v324_v1 = vpack.c.bf16 %v142_v53, %v135_v52  ;;  %v331_v52 = vpack.c.bf16 %v156_v20, %v149_v19  ;;  %v163_v19 = vld [vmem:[%s14353_s27 + $0x340] sm:$0xff]  ;;  %v170_v20 = vld [vmem:[%s14353_s27 + $0x378] sm:$0xff] }
 0x11d   :  { %v1215_v6 = vpop.f32.mrf.mxu1  ;;  %v10979_v7 = vpop.f32.mrf.mxu0 }
 0x11e   :  { %v10982_v8 = vadd.f32 %v1215_v6, %v10905_v32 }
 0x11f   :  { %v1217_v9 = vpop.f32.mrf.mxu1  ;;  %v10984_v10 = vpop.f32.mrf.mxu0 }
 0x120   :  { %14360 = vst [vmem:[#allocation7_spill] sm:$0xff] %v10984_v10  ;;  %v10987_v12 = vadd.f32 %v1217_v9, %v10902_v31 }
 0x121   :  { %v1219_v13 = vpop.f32.mrf.mxu1  ;;  %v10989_v14 = vpop.f32.mrf.mxu0 }
 0x122   :  { %14361 = vst [vmem:[#allocation8_spill] sm:$0xff] %v10989_v14  ;;  %v10992_v15 = vadd.f32 %v1219_v13, %v10905_v32 }
 0x123   :  { %v1223_v16 = vpop.f32.mrf.mxu1  ;;  %1721 = vmatmul.mubr.bf16.gmra.mxu1 %v310_v11  ;;  %v10994_v17 = vpop.f32.mrf.mxu0 }
 0x124   :  { %14362 = vst [vmem:[#allocation9_spill] sm:$0xff] %v10992_v15  ;;  %v10997_v18 = vadd.f32 %v1223_v16, %v10902_v31  ;;  %1730 = vmatprep.mubr.bf16.mxu1 %v14340_v22 }
 0x125   :  { %v1225_v24 = vpop.f32.mrf.mxu1  ;;  %v11006_v25 = vpop.f32.mrf.mxu0 }
 0x126   :  { %v11009_v26 = vadd.f32 %v1225_v24, %v10905_v32 }
 0x127   :  { %v1227_v30 = vpop.f32.mrf.mxu1  ;;  %v11017_v33 = vpop.f32.mrf.mxu0 }
 0x128   :  { %14363 = vst [vmem:[#allocation10_spill] sm:$0xff] %v11017_v33  ;;  %v11020_v37 = vadd.f32 %v1227_v30, %v10902_v31  ;;  %v8170_v30 = vld [vmem:[%s14354_s28 + $0x50] sm:$0xff]   ;;  %v8175_v33 = vld [vmem:[%s14354_s28] sm:$0xff]  }
 0x129   :  { %v1229_v38 = vpop.f32.mrf.mxu1  ;;  %v11022_v41 = vpop.f32.mrf.mxu0  ;;  %7481 = vmatprep.subr.bf16.mxu0 %v8170_v30 }
 0x12a   :  { %14364 = vst [vmem:[#allocation11_spill] sm:$0xff] %v11022_v41  ;;  %v11025_v43 = vadd.f32 %v1229_v38, %v10905_v32 }
 0x12b   :  { %v1233_v45 = vpop.f32.mrf.mxu1  ;;  %1731 = vmatmul.mubr.bf16.gmra.mxu1 %v317_v36  ;;  %v11027_v48 = vpop.f32.mrf.mxu0  ;;  %v8171_v36 = vld [vmem:[%s14354_s28 + $0x10] sm:$0xff]  }
 0x12c   :  { %14365 = vst [vmem:[#allocation12_spill] sm:$0xff] %v11025_v43  ;;  %v11030_v51 = vadd.f32 %v1233_v45, %v10902_v31  ;;  %1740 = vmatprep.mubr.bf16.mxu1 %v14340_v22  ;;  %7482 = vmatpush3.bf16.msra.mxu0 %v8171_v36  ;;  %v14375_v43 = vmov 0  }
 0x12d   :  { %v1235_v56 = vpop.f32.mrf.mxu1  ;;  %v11039_v57 = vpop.f32.mrf.mxu0 }
 0x12e   :  { %v11042_v58 = vadd.f32 %v1235_v56, %v10905_v32 }
 0x12f   :  { %v1237_v60 = vpop.f32.mrf.mxu1  ;;  %v11044_v62 = vpop.f32.mrf.mxu0 }
 0x130   :  { %14366 = vst [vmem:[#allocation13_spill] sm:$0xff] %v11044_v62  ;;  %v11047_v4 = vadd.f32 %v1237_v60, %v10902_v31 }
 0x131   :  { %v1239_v5 = vpop.f32.mrf.mxu1  ;;  %v11049_v6 = vpop.f32.mrf.mxu0 }
 0x132   :  { %14367 = vst [vmem:[#allocation14_spill] sm:$0xff] %v11049_v6  ;;  %v11052_v9 = vadd.f32 %v1239_v5, %v10905_v32 }
 0x133   :  { %v1243_v11 = vpop.f32.mrf.mxu1  ;;  %1741 = vmatmul.mubr.bf16.gmra.mxu1 %v324_v1  ;;  %v11054_v13 = vpop.f32.mrf.mxu0 }
 0x134   :  { %14368 = vst [vmem:[#allocation15_spill] sm:$0xff] %v11052_v9  ;;  %v11057_v16 = vadd.f32 %v1243_v11, %v10902_v31  ;;  %1750 = vmatprep.mubr.bf16.mxu1 %v14340_v22 }
 0x135   :  { %v1245_v24 = vpop.f32.mrf.mxu1  ;;  %v11066_v28 = vpop.f32.mrf.mxu0 }
 0x136   :  { %v11069_v29 = vadd.f32 %v1245_v24, %v10905_v32 }
 0x137   :  { %v1247_v38 = vpop.f32.mrf.mxu1  ;;  %v11077_v45 = vpop.f32.mrf.mxu0 }
 0x138   :  { %14369 = vst [vmem:[#allocation16_spill] sm:$0xff] %v11077_v45  ;;  %v11080_v53 = vadd.f32 %v1247_v38, %v10902_v31  ;;  %v1116_v45 = vadd.f32 %v10919_v39, %v10905_v32 }
 0x139   :  { %v1249_v56 = vpop.f32.mrf.mxu1  ;;  %v11082_v60 = vpop.f32.mrf.mxu0 }
 0x13a   :  { %14370 = vst [vmem:[#allocation17_spill] sm:$0xff] %v11082_v60  ;;  %v11085_v1 = vadd.f32 %v1249_v56, %v10905_v32 }
 0x13b   :  { %v1253_v5 = vpop.f32.mrf.mxu1  ;;  %1751 = vmatmul.mubr.bf16.gmra.mxu1 %v331_v52  ;;  %v11087_v11 = vpop.f32.mrf.mxu0 }
 0x13c   :  { %14371 = vst [vmem:[#allocation18_spill] sm:$0xff] %v11085_v1  ;;  %v11090_v24 = vadd.f32 %v1253_v5, %v10902_v31  ;;  %1760 = vmatprep.mubr.bf16.mxu1 %v14340_v22  ;;  %v338_v5 = vpack.c.bf16 %v170_v20, %v163_v19  ;;  %v177_v19 = vld [vmem:[%s14353_s27 + $0x3b0] sm:$0xff]  ;;  %v184_v20 = vld [vmem:[%s14353_s27 + $0x3e8] sm:$0xff] }
 0x13d   :  { %v1255_v30 = vpop.f32.mrf.mxu1  ;;  %v11099_v36 = vpop.f32.mrf.mxu0  ;;  %v345_v47 = vpack.c.bf16 %v184_v20, %v177_v19 }
 0x13e   :  { %v11102_v38 = vadd.f32 %v1255_v30, %v10905_v32 }
 0x13f   :  { %v1257_v52 = vpop.f32.mrf.mxu1  ;;  %v11104_v56 = vpop.f32.mrf.mxu0 }
 0x140   :  { %14372 = vst [vmem:[#allocation19_spill] sm:$0xff] %v11104_v56  ;;  %v11107_v22 = vadd.f32 %v1257_v52, %v10902_v31 }
 0x141   :  { %v1259_v21 = vpop.f32.mrf.mxu1  ;;  %v11109_v23 = vpop.f32.mrf.mxu0 }
 0x142   :  { %14373 = vst [vmem:[#allocation20_spill] sm:$0xff] %v11109_v23  ;;  %v11112_v27 = vadd.f32 %v1259_v21, %v10905_v32  ;;  %v1114_v23 = vadd.f32 %v10907_v34, %v10902_v31  ;;  %v191_v34 = vld [vmem:[%s14353_s27 + $0x420] sm:$0xff] }
 0x143   :  { %v1263_v1 = vpop.f32.mrf.mxu1  ;;  %1761 = vmatmul.mubr.bf16.gmra.mxu1 %v338_v5  ;;  %v11114_v9 = vpop.f32.mrf.mxu0 }
 0x144   :  { %14374 = vst [vmem:[#allocation21_spill] sm:$0xff] %v11112_v27  ;;  %v11117_v30 = vadd.f32 %v1263_v1, %v10902_v31  ;;  %1770 = vmatprep.mubr.bf16.mxu1 %v14375_v43  ;;  %v8172_v1 = vld [vmem:[%s14354_s28 + $0x48] sm:$0xff]  }
 0x145   :  { %v1265_v52 = vpop.f32.mrf.mxu1  ;;  %v11126_v21 = vpop.f32.mrf.mxu0  ;;  %v8173_v27 = vld [vmem:[%s14354_s28 + $0x8] sm:$0xff]   ;;  %7483 = vmatprep.subr.bf16.mxu0 %v8172_v1 }
 0x146   :  { %v11129_v5 = vadd.f32 %v1265_v52, %v10905_v32  ;;  %7484 = vmatpush3.bf16.msra.mxu0 %v8173_v27  ;;  %v198_v27 = vld [vmem:[%s14353_s27 + $0x458] sm:$0xff] }
 0x147   :  { %v1267_v15 = vpop.f32.mrf.mxu1  ;;  %v11137_v0 = vpop.f32.mrf.mxu0 }
 0x148   :  { %14376 = vst [vmem:[#allocation22_spill] sm:$0xff] %v11137_v0  ;;  %v11142_v56 = vadd.f32 %v1267_v15, %v10902_v31 }
 0x149   :  { %v1269_v52 = vpop.f32.mrf.mxu1  ;;  %v11144_v60 = vpop.f32.mrf.mxu0 }
 0x14a   :  { %14377 = vst [vmem:[#allocation23_spill] sm:$0xff] %v11144_v60  ;;  %v11149_v6 = vadd.f32 %v1269_v52, %v10905_v32  ;;  %v352_v52 = vpack.c.bf16 %v198_v27, %v191_v34  ;;  %v1126_v60 = vadd.f32 %v10946_v54, %v10905_v32 }
 0x14b   :  { %v1306_v62 = vpop.f32.mrf.mxu1  ;;  %1771 = vmatmul.mubr.bf16.gmra.mxu1 %v345_v47  ;;  %v11151_v19 = vpop.f32.mrf.mxu0 }
 0x14c   :  { %14378 = vst [vmem:[#allocation24_spill] sm:$0xff] %v11149_v6  ;;  %v11153_v20 = vadd.f32 %v1306_v62, %v1114_v23  ;;  %1780 = vmatprep.mubr.bf16.mxu1 %v14375_v43  ;;  %v1124_v23 = vadd.f32 %v10934_v49, %v10902_v31  ;;  %v212_v49 = vld [vmem:[%s14353_s27 + $0x4c8] sm:$0xff] }
 0x14d   :  { %v1308_v39 = vpop.f32.mrf.mxu1  ;;  %v11162_v15 = vpop.f32.mrf.mxu0 }
 0x14e   :  { %v11164_v1 = vadd.f32 %v1308_v39, %v1116_v45  ;;  %v205_v45 = vld [vmem:[%s14353_s27 + $0x490] sm:$0xff] }
 0x14f   :  { %v11166_v47 = vpop.f32.mrf.mxu1  ;;  %v11172_v6 = vpop.f32.mrf.mxu0 }
 0x151   :  { %v11170_v62 = vpop.f32.mrf.mxu1  ;;  %v11185_v34 = vpop.f32.mrf.mxu0 }
 0x153   :  { %v1316_v0 = vpop.f32.mrf.mxu1  ;;  %1781 = vmatmul.mubr.bf16.gmra.mxu1 %v352_v52  ;;  %v359_v52 = vpack.c.bf16 %v212_v49, %v205_v45  ;;  %v11199_v14 = vpop.f32.mrf.mxu0  ;;  %v219_v49 = vld [vmem:[%s14353_s27 + $0x500] sm:$0xff] }
 0x154   :  { %v11176_v41 = vadd.f32 %v1316_v0, %v1124_v23  ;;  %1790 = vmatprep.mubr.bf16.mxu1 %v14375_v43  ;;  %v1134_v0 = vadd.f32 %v10967_v2, %v10902_v31  ;;  %v8174_v23 = vld [vmem:[%s14354_s28 + $0x40] sm:$0xff]   ;;  %14381 = vst [vmem:[#allocation27_spill] sm:$0xff] %v11199_v14 }
 0x155   :  { %v1318_v27 = vpop.f32.mrf.mxu1  ;;  %7485 = vmatprep.subr.bf16.mxu0 %v8174_v23 }
 0x156   :  { %14379 = vst [vmem:[#allocation25_spill] sm:$0xff] %v11176_v41  ;;  %v11187_v39 = vadd.f32 %v1318_v27, %v1126_v60  ;;  %v1136_v60 = vadd.f32 %v10979_v7, %v10905_v32  ;;  %7486 = vmatpush3.bf16.msra.mxu0 %v8175_v33  ;;  %v226_v27 = vld [vmem:[%s14353_s27 + $0x538] sm:$0xff] }
 0x157   :  { %v11189_v54 = vpop.f32.mrf.mxu1  ;;  %v366_v33 = vpack.c.bf16 %v226_v27, %v219_v49 }
 0x158   :  { %14380 = vst [vmem:[#allocation26_spill] sm:$0xff] %v11187_v39  ;;  %v11214_v39 = vpop.f32.mrf.mxu0 }
 0x159   :  { %v11201_v10 = vpop.f32.mrf.mxu1 }
 0x15a   :  { %14382 = vst [vmem:[#allocation28_spill] sm:$0xff] %v11201_v10 }
 0x15b   :  { %v1326_v45 = vpop.f32.mrf.mxu1  ;;  %1791 = vmatmul.mubr.bf16.gmra.mxu1 %v359_v52  ;;  %v1144_v52 = vadd.f32 %v10994_v17, %v10902_v31  ;;  %v240_v17 = vld [vmem:[%s14353_s27 + $0x5a8] sm:$0xff] }
 0x15c   :  { %v11205_v2 = vadd.f32 %v1326_v45, %v1134_v0  ;;  %1800 = vmatprep.mubr.bf16.mxu1 %v14375_v43  ;;  %v11222_v0 = vpop.f32.mrf.mxu0 }
 0x15d   :  { %v1328_v10 = vpop.f32.mrf.mxu1 }
 0x15e   :  { %14383 = vst [vmem:[#allocation29_spill] sm:$0xff] %v11205_v2  ;;  %v11216_v7 = vadd.f32 %v1328_v10, %v1136_v60  ;;  %v1146_v2 = vadd.f32 %v11006_v25, %v10905_v32  ;;  %v233_v10 = vld [vmem:[%s14353_s27 + $0x570] sm:$0xff]  ;;  %v11237_v60 = vpop.f32.mrf.mxu0 }
 0x15f   :  { %v11218_v23 = vpop.f32.mrf.mxu1 }
 0x160   :  { %14384 = vst [vmem:[#allocation30_spill] sm:$0xff] %v11216_v7  ;;  %14385 = vst [vmem:[#allocation31_spill] sm:$0xff] %v11218_v23  ;;  %v1156_v7 = vadd.f32 %v11039_v57, %v10905_v32 }
 0x161   :  { %v11224_v45 = vpop.f32.mrf.mxu1 }
 0x162   :  { %14386 = vst [vmem:[#allocation32_spill] sm:$0xff] %v11224_v45 }
 0x163   :  { %v1336_v14 = vpop.f32.mrf.mxu1  ;;  %1801 = vmatmul.mubr.bf16.gmra.mxu1 %v366_v33  ;;  %v373_v33 = vpack.c.bf16 %v240_v17, %v233_v10 }
 0x164   :  { %v11228_v41 = vadd.f32 %v1336_v14, %v1144_v52  ;;  %1810 = vmatprep.mubr.bf16.mxu1 %v14375_v43  ;;  %v1154_v14 = vadd.f32 %v11027_v48, %v10902_v31  ;;  %v11245_v52 = vpop.f32.mrf.mxu0  ;;  %v254_v48 = vld [vmem:[%s14353_s27 + $0x618] sm:$0xff] }
 0x165   :  { %v1338_v49 = vpop.f32.mrf.mxu1 }
 0x166   :  { %14387 = vst [vmem:[#allocation33_spill] sm:$0xff] %v11228_v41  ;;  %v11239_v27 = vadd.f32 %v1338_v49, %v1146_v2  ;;  %v247_v2 = vld [vmem:[%s14353_s27 + $0x5e0] sm:$0xff]  ;;  %v11260_v10 = vpop.f32.mrf.mxu0 }
 0x167   :  { %v11241_v25 = vpop.f32.mrf.mxu1 }
 0x168   :  { %14388 = vst [vmem:[#allocation34_spill] sm:$0xff] %v11239_v27  ;;  %14389 = vst [vmem:[#allocation35_spill] sm:$0xff] %v11241_v25  ;;  %v1166_v27 = vadd.f32 %v11066_v28, %v10905_v32 }
 0x169   :  { %v11247_v41 = vpop.f32.mrf.mxu1 }
 0x16a   :  { %14390 = vst [vmem:[#allocation36_spill] sm:$0xff] %v11247_v41 }
 0x16b   :  { %v1346_v45 = vpop.f32.mrf.mxu1  ;;  %1811 = vmatmul.mubr.bf16.gmra.mxu1 %v373_v33  ;;  %v380_v33 = vpack.c.bf16 %v254_v48, %v247_v2 }
 0x16c   :  { %v11251_v23 = vadd.f32 %v1346_v45, %v1154_v14  ;;  %1820 = vmatprep.mubr.bf16.mxu1 %v14375_v43  ;;  %v1164_v45 = vadd.f32 %v11054_v13, %v10902_v31  ;;  %v11268_v14 = vpop.f32.mrf.mxu0  ;;  %v268_v13 = vld [vmem:[%s14353_s27 + $0x688] sm:$0xff] }
 0x16d   :  { %v1348_v17 = vpop.f32.mrf.mxu1 }
 0x16e   :  { %14391 = vst [vmem:[#allocation37_spill] sm:$0xff] %v11251_v23  ;;  %v11262_v49 = vadd.f32 %v1348_v17, %v1156_v7  ;;  %v261_v7 = vld [vmem:[%s14353_s27 + $0x650] sm:$0xff]  ;;  %v11283_v2 = vpop.f32.mrf.mxu0 }
 0x16f   :  { %v11264_v57 = vpop.f32.mrf.mxu1 }
 0x170   :  { %14392 = vst [vmem:[#allocation38_spill] sm:$0xff] %v11262_v49  ;;  %14393 = vst [vmem:[#allocation39_spill] sm:$0xff] %v11264_v57  ;;  %v1176_v49 = vadd.f32 %v11099_v36, %v10905_v32 }
 0x171   :  { %v11270_v23 = vpop.f32.mrf.mxu1 }
 0x172   :  { %14394 = vst [vmem:[#allocation40_spill] sm:$0xff] %v11270_v23 }
 0x173   :  { %v1356_v41 = vpop.f32.mrf.mxu1  ;;  %1821 = vmatmul.mubr.bf16.gmra.mxu1 %v380_v33  ;;  %v387_v33 = vpack.c.bf16 %v268_v13, %v261_v7 }
 0x174   :  { %v11274_v25 = vadd.f32 %v1356_v41, %v1164_v45  ;;  %1830 = vmatprep.mubr.bf16.mxu1 %v14375_v43  ;;  %v1174_v41 = vadd.f32 %v11087_v11, %v10902_v31  ;;  %v11291_v45 = vpop.f32.mrf.mxu0  ;;  %v282_v11 = vld [vmem:[%s14353_s27 + $0x6f8] sm:$0xff] }
 0x175   :  { %v1358_v48 = vpop.f32.mrf.mxu1 }
 0x176   :  { %14395 = vst [vmem:[#allocation41_spill] sm:$0xff] %v11274_v25  ;;  %v11285_v17 = vadd.f32 %v1358_v48, %v1166_v27  ;;  %v275_v27 = vld [vmem:[%s14353_s27 + $0x6c0] sm:$0xff]  ;;  %v11306_v7 = vpop.f32.mrf.mxu0 }
 0x177   :  { %v11287_v28 = vpop.f32.mrf.mxu1 }
 0x178   :  { %14396 = vst [vmem:[#allocation42_spill] sm:$0xff] %v11285_v17  ;;  %14397 = vst [vmem:[#allocation43_spill] sm:$0xff] %v11287_v28 }
 0x179   :  { %v11293_v25 = vpop.f32.mrf.mxu1 }
 0x17a   :  { %14398 = vst [vmem:[#allocation44_spill] sm:$0xff] %v11293_v25 }
 0x17b   :  { %v1366_v23 = vpop.f32.mrf.mxu1  ;;  %1831 = vmatmul.mubr.bf16.gmra.mxu1 %v387_v33  ;;  %v394_v33 = vpack.c.bf16 %v282_v11, %v275_v27 }
 0x17c   :  { %v11297_v57 = vadd.f32 %v1366_v23, %v1174_v41  ;;  %1840 = vmatprep.mubr.bf16.mxu1 %v14375_v43  ;;  %v1184_v23 = vadd.f32 %v11114_v9, %v10902_v31  ;;  %v11314_v41 = vpop.f32.mrf.mxu0 }
 0x17d   :  { %v1368_v13 = vpop.f32.mrf.mxu1 }
 0x17e   :  { %14399 = vst [vmem:[#allocation45_spill] sm:$0xff] %v11297_v57  ;;  %v11308_v48 = vadd.f32 %v1368_v13, %v1176_v49  ;;  %v1186_v57 = vadd.f32 %v11126_v21, %v10905_v32  ;;  %v11322_v28 = vpop.f32.mrf.mxu0 }
 0x17f   :  { %v11310_v36 = vpop.f32.mrf.mxu1 }
 0x180   :  { %14400 = vst [vmem:[#allocation46_spill] sm:$0xff] %v11308_v48  ;;  %v11328_v11 = vpop.f32.mrf.mxu0 }
 0x181   :  { %v11316_v43 = vpop.f32.mrf.mxu1 }
 0x182   :  { %14401 = vst [vmem:[#allocation47_spill] sm:$0xff] %v11316_v43  ;;  %v11335_v21 = vpop.f32.mrf.mxu0 }
 0x183   :  { %v1376_v17 = vpop.f32.mrf.mxu1  ;;  %1841 = vmatmul.mubr.bf16.gmra.mxu1 %v394_v33 }
 0x184   :  { %v11320_v25 = vadd.f32 %v1376_v17, %v1184_v23 }
 0x185   :  { %v1378_v49 = vpop.f32.mrf.mxu1 }
 0x186   :  { %14402 = vst [vmem:[#allocation48_spill] sm:$0xff] %v11320_v25  ;;  %v11324_v13 = vadd.f32 %v1378_v49, %v1186_v57  ;;  %v11343_v49 = vpop.f32.mrf.mxu0 }
 0x187   :  { %v11326_v27 = vpop.f32.mrf.mxu1 }
 0x188   :  { %14403 = vst [vmem:[#allocation49_spill] sm:$0xff] %v11324_v13 }
 0x189   :  { %v11330_v9 = vpop.f32.mrf.mxu1 }
 0x18a   :  { %14404 = vst [vmem:[#allocation50_spill] sm:$0xff] %v11330_v9 }
 0x18b   :  { %v1386_v48 = vpop.f32.mrf.mxu1 }
 0x18c   :  { %v11333_v43 = vadd.f32 %v1386_v48, %v10910_v35  ;;  %v11350_v35 = vpop.f32.mrf.mxu0 }
 0x18d   :  { %v1388_v33 = vpop.f32.mrf.mxu1 }
 0x18e   :  { %14405 = vst [vmem:[#allocation51_spill] sm:$0xff] %v11333_v43  ;;  %v11338_v17 = vadd.f32 %v1388_v33, %v10922_v40 }
 0x18f   :  { %v1390_v23 = vpop.f32.mrf.mxu1 }
 0x190   :  { %14406 = vst [vmem:[#allocation52_spill] sm:$0xff] %v11338_v17  ;;  %v11341_v57 = vadd.f32 %v1390_v23, %v10927_v44  ;;  %v11358_v44 = vpop.f32.mrf.mxu0 }
 0x191   :  { %v11345_v13 = vpop.f32.mrf.mxu1 }
 0x192   :  { %14407 = vst [vmem:[#allocation53_spill] sm:$0xff] %v11341_v57 }
 0x193   :  { %v1396_v25 = vpop.f32.mrf.mxu1 }
 0x194   :  { %v11348_v9 = vadd.f32 %v1396_v25, %v10937_v50  ;;  %v11365_v50 = vpop.f32.mrf.mxu0 }
 0x195   :  { %v1398_v48 = vpop.f32.mrf.mxu1 }
 0x196   :  { %14408 = vst [vmem:[#allocation54_spill] sm:$0xff] %v11348_v9  ;;  %v11353_v43 = vadd.f32 %v1398_v48, %v10949_v55 }
 0x197   :  { %v1400_v40 = vpop.f32.mrf.mxu1 }
 0x198   :  { %14409 = vst [vmem:[#allocation55_spill] sm:$0xff] %v11353_v43  ;;  %v11356_v33 = vadd.f32 %v1400_v40, %v10960_v61  ;;  %v11373_v61 = vpop.f32.mrf.mxu0 }
 0x199   :  { %v11360_v23 = vpop.f32.mrf.mxu1 }
 0x19a   :  { %14410 = vst [vmem:[#allocation56_spill] sm:$0xff] %v11356_v33 }
 0x19b   :  { %v1406_v57 = vpop.f32.mrf.mxu1 }
 0x19c   :  { %v11363_v17 = vadd.f32 %v1406_v57, %v10970_v3  ;;  %v11380_v3 = vpop.f32.mrf.mxu0 }
 0x19d   :  { %v1408_v25 = vpop.f32.mrf.mxu1 }
 0x19e   :  { %14411 = vst [vmem:[#allocation57_spill] sm:$0xff] %v11363_v17  ;;  %v11368_v9 = vadd.f32 %v1408_v25, %v10982_v8 }
 0x19f   :  { %v1410_v55 = vpop.f32.mrf.mxu1 }
 0x1a0   :  { %14412 = vst [vmem:[#allocation58_spill] sm:$0xff] %v11368_v9  ;;  %v11371_v48 = vadd.f32 %v1410_v55, %v10987_v12  ;;  %v11388_v12 = vpop.f32.mrf.mxu0 }
 0x1a1   :  { %v11375_v40 = vpop.f32.mrf.mxu1 }
 0x1a2   :  { %14413 = vst [vmem:[#allocation59_spill] sm:$0xff] %v11371_v48 }
 0x1a3   :  { %v1416_v33 = vpop.f32.mrf.mxu1 }
 0x1a4   :  { %v11378_v43 = vadd.f32 %v1416_v33, %v10997_v18  ;;  %v11395_v18 = vpop.f32.mrf.mxu0 }
 0x1a5   :  { %v1418_v57 = vpop.f32.mrf.mxu1 }
 0x1a6   :  { %14414 = vst [vmem:[#allocation60_spill] sm:$0xff] %v11378_v43  ;;  %v11383_v17 = vadd.f32 %v1418_v57, %v11009_v26 }
 0x1a7   :  { %v1420_v8 = vpop.f32.mrf.mxu1 }
 0x1a8   :  { %14415 = vst [vmem:[#allocation61_spill] sm:$0xff] %v11383_v17  ;;  %v11386_v25 = vadd.f32 %v1420_v8, %v11020_v37  ;;  %v11403_v37 = vpop.f32.mrf.mxu0 }
 0x1a9   :  { %v11390_v55 = vpop.f32.mrf.mxu1 }
 0x1aa   :  { %14416 = vst [vmem:[#allocation62_spill] sm:$0xff] %v11386_v25 }
 0x1ab   :  { %v1426_v48 = vpop.f32.mrf.mxu1 }
 0x1ac   :  { %v11393_v9 = vadd.f32 %v1426_v48, %v11030_v51  ;;  %v11410_v51 = vpop.f32.mrf.mxu0 }
 0x1ad   :  { %v1428_v33 = vpop.f32.mrf.mxu1 }
 0x1ae   :  { %14417 = vst [vmem:[#allocation63_spill] sm:$0xff] %v11393_v9  ;;  %v11398_v43 = vadd.f32 %v1428_v33, %v11042_v58 }
 0x1af   :  { %v1430_v26 = vpop.f32.mrf.mxu1 }
 0x1b0   :  { %14418 = vst [vmem:[#allocation64_spill] sm:$0xff] %v11398_v43  ;;  %v11401_v57 = vadd.f32 %v1430_v26, %v11047_v4  ;;  %v11418_v4 = vpop.f32.mrf.mxu0 }
 0x1b1   :  { %v11405_v8 = vpop.f32.mrf.mxu1 }
 0x1b2   :  { %14419 = vst [vmem:[#allocation65_spill] sm:$0xff] %v11401_v57 }
 0x1b3   :  { %v1436_v25 = vpop.f32.mrf.mxu1 }
 0x1b4   :  { %v11408_v17 = vadd.f32 %v1436_v25, %v11057_v16  ;;  %v11425_v16 = vpop.f32.mrf.mxu0 }
 0x1b5   :  { %v1438_v48 = vpop.f32.mrf.mxu1 }
 0x1b6   :  { %14420 = vst [vmem:[#allocation66_spill] sm:$0xff] %v11408_v17  ;;  %v11413_v9 = vadd.f32 %v1438_v48, %v11069_v29 }
 0x1b7   :  { %v1440_v58 = vpop.f32.mrf.mxu1 }
 0x1b8   :  { %14421 = vst [vmem:[#allocation67_spill] sm:$0xff] %v11413_v9  ;;  %v11416_v33 = vadd.f32 %v1440_v58, %v11080_v53  ;;  %v11433_v53 = vpop.f32.mrf.mxu0 }
 0x1b9   :  { %v11420_v26 = vpop.f32.mrf.mxu1 }
 0x1ba   :  { %14422 = vst [vmem:[#allocation68_spill] sm:$0xff] %v11416_v33 }
 0x1bb   :  { %v1446_v57 = vpop.f32.mrf.mxu1 }
 0x1bc   :  { %v11423_v43 = vadd.f32 %v1446_v57, %v11090_v24  ;;  %v11440_v24 = vpop.f32.mrf.mxu0 }
 0x1bd   :  { %v1448_v25 = vpop.f32.mrf.mxu1 }
 0x1be   :  { %14423 = vst [vmem:[#allocation69_spill] sm:$0xff] %v11423_v43  ;;  %v11428_v17 = vadd.f32 %v1448_v25, %v11102_v38  ;;  %v1118_v43 = vadd.f32 %v10924_v42, %v10902_v31 }
 0x1bf   :  { %v1450_v29 = vpop.f32.mrf.mxu1 }
 0x1c0   :  { %v11431_v48 = vadd.f32 %v1450_v29, %v11107_v22  ;;  %v1120_v22 = vadd.f32 %v10929_v46, %v10905_v32  ;;  %v1502_v46 = vadd.f32 %v11162_v15, %v11164_v1 }
 0x1c1   :  { %v11435_v58 = vpop.f32.mrf.mxu1 }
 0x1c2   :  { %14424 = vst [vmem:[#allocation70_spill] sm:$0xff] %v11431_v48  ;;  %v11452_v48 = vpop.f32.mrf.mxu0 }
 0x1c3   :  { %v1456_v33 = vpop.f32.mrf.mxu1 }
 0x1c4   :  { %v11438_v9 = vadd.f32 %v1456_v33, %v11117_v30  ;;  %v1311_v33 = vadd.f32 %v11166_v47, %v1118_v43  ;;  %v1128_v43 = vadd.f32 %v10957_v59, %v10902_v31  ;;  %v14429_v59 = vld [vmem:[#allocation25_spill] sm:$0xff] }
 0x1c5   :  { %v1458_v57 = vpop.f32.mrf.mxu1 }
 0x1c6   :  { %14425 = vst [vmem:[#allocation71_spill] sm:$0xff] %v11438_v9  ;;  %v11445_v38 = vadd.f32 %v1458_v57, %v11129_v5  ;;  %v1500_v9 = vadd.f32 %v11151_v19, %v11153_v20  ;;  %v8176_v5 = vld [vmem:[%s14322_s5 + $0x38] sm:$0xff]   ;;  %v1313_v57 = vadd.f32 %v11170_v62, %v1120_v22  ;;  %v1504_v19 = vadd.f32 %v11172_v6, %v1311_v33  ;;  %v14431_v33 = vld [vmem:[#allocation28_spill] sm:$0xff] }
 0x1c7   :  { %v1460_v25 = vpop.f32.mrf.mxu1  ;;  %7783 = vmatprep.subr.bf16.mxu1 %v8176_v5 }
 0x1c8   :  { %14426 = vst [vmem:[#allocation72_spill] sm:$0xff] %v11445_v38  ;;  %v11450_v29 = vadd.f32 %v1460_v25, %v11142_v56  ;;  %v11465_v56 = vpop.f32.mrf.mxu0  ;;  %7784 = vmatpush3.bf16.msra.mxu1 %v8176_v5  ;;  %v1130_v38 = vadd.f32 %v10962_v63, %v10905_v32  ;;  %v1506_v62 = vadd.f32 %v11185_v34, %v1313_v57  ;;  %v14432_v63 = vld [vmem:[#allocation26_spill] sm:$0xff] }
 0x1c9   :  { %v11454_v30 = vpop.f32.mrf.mxu1  ;;  %v1512_v34 = vadd.f32 %v11214_v39, %v14432_v63  ;;  %v14437_v63 = vld [vmem:[#allocation32_spill] sm:$0xff] }
 0x1ca   :  { %14427 = vst [vmem:[#allocation73_spill] sm:$0xff] %v11450_v29  ;;  %14428 = vst [vmem:[#allocation74_spill] sm:$0xff] %v11454_v30  ;;  %v11473_v15 = vpop.f32.mrf.mxu0  ;;  %v14430_v30 = vld [vmem:[#allocation27_spill] sm:$0xff]  ;;  %v1323_v5 = vadd.f32 %v14431_v33, %v1130_v38  ;;  %v14434_v38 = vld [vmem:[#allocation8_spill] sm:$0xff] }
 0x1cb   :  { %v1692_v42 = vpop.f32.mrf.mxu1  ;;  %v1510_v6 = vadd.f32 %v14430_v30, %v14429_v59  ;;  %v14435_v59 = vld [vmem:[#allocation31_spill] sm:$0xff]  ;;  %v14436_v33 = vld [vmem:[#allocation29_spill] sm:$0xff] }
 0x1cc   :  { %v1693_v25 = vadd.f32 %v1692_v42, %v1500_v9  ;;  %v1321_v9 = vadd.f32 %v11189_v54, %v1128_v43  ;;  %v11481_v57 = vpop.f32.mrf.mxu0  ;;  %v8177_v54 = vld [vmem:[%s14322_s5 + $0x30] sm:$0xff]   ;;  %v14433_v43 = vld [vmem:[#allocation7_spill] sm:$0xff]  ;;  %v1516_v39 = vadd.f32 %v11237_v60, %v1323_v5 }
 0x1cd   :  { %v1694_v29 = vpop.f32.mrf.mxu1  ;;  %7785 = vmatprep.subr.bf16.mxu1 %v8177_v54 }
 0x1ce   :  { %v1695_v20 = vadd.f32 %v1694_v29, %v1502_v46  ;;  %8384 = vtanh.f32 %v1693_v25  ;;  %v1514_v30 = vadd.f32 %v11222_v0, %v1321_v9  ;;  %7786 = vmatpush3.bf16.msra.mxu1 %v8177_v54  ;;  %v1520_v0 = vadd.f32 %v11245_v52, %v14436_v33  ;;  %v8179_v52 = vld [vmem:[%s14322_s5 + $0x20] sm:$0xff]  }
 0x1cf   :  { %v1696_v47 = vpop.f32.mrf.mxu1 }
 0x1d0   :  { %v1697_v22 = vadd.f32 %v1696_v47, %v1504_v19  ;;  %v1138_v19 = vadd.f32 %v14433_v43, %v10902_v31  ;;  %v8178_v43 = vld [vmem:[%s14322_s5 + $0x28] sm:$0xff]  }
 0x1d1   :  { %v1698_v1 = vpop.f32.mrf.mxu1  ;;  %7787 = vmatprep.subr.bf16.mxu1 %v8178_v43 }
 0x1d2   :  { %8386 = vtanh.f32 %v1697_v22  ;;  %v1699_v42 = vadd.f32 %v1698_v1, %v1506_v62  ;;  %v1140_v62 = vadd.f32 %v14434_v38, %v10905_v32  ;;  %v11492_v1 = vpop.f32.mrf.mxu0  ;;  %7788 = vmatpush3.bf16.msra.mxu1 %v8178_v43  ;;  %v14443_v43 = vld [vmem:[#allocation36_spill] sm:$0xff] }
 0x1d3   :  { %8388 = vtanh.f32 %v1695_v20  ;;  %v1702_v29 = vpop.f32.mrf.mxu1  ;;  %7789 = vmatprep.subr.bf16.mxu1 %v8179_v52 }
 0x1d4   :  { %8390 = vtanh.f32 %v1699_v42  ;;  %v1703_v46 = vadd.f32 %v1702_v29, %v1510_v6  ;;  %v1331_v6 = vadd.f32 %v14435_v59, %v1138_v19  ;;  %v11500_v5 = vpop.f32.mrf.mxu0 }
 0x1d5   :  { %v1704_v25 = vpop.f32.mrf.mxu1 }
 0x1d6   :  { %v1705_v20 = vadd.f32 %v1704_v25, %v1512_v34  ;;  %8392 = vtanh.f32 %v1703_v46  ;;  %v1333_v34 = vadd.f32 %v14437_v63, %v1140_v62  ;;  %v14438_v25 = vld [vmem:[#allocation30_spill] sm:$0xff]  ;;  %7790 = vmatpush3.bf16.msra.mxu1 %v8179_v52 }
 0x1d7   :  { %v1706_v47 = vpop.f32.mrf.mxu1  ;;  %v1522_v60 = vadd.f32 %v11260_v10, %v14438_v25 }
 0x1d8   :  { %v1707_v22 = vadd.f32 %v1706_v47, %v1514_v30  ;;  %v14439_v30 = vld [vmem:[#allocation10_spill] sm:$0xff]  ;;  %v1524_v47 = vadd.f32 %v11268_v14, %v1331_v6  ;;  %v1526_v59 = vadd.f32 %v11283_v2, %v1333_v34  ;;  %v8180_v14 = vld [vmem:[%s14322_s5 + $0x18] sm:$0xff]   ;;  %v14441_v6 = vld [vmem:[#allocation35_spill] sm:$0xff] }
 0x1d9   :  { %v1708_v42 = vpop.f32.mrf.mxu1  ;;  %7791 = vmatprep.subr.bf16.mxu1 %v8180_v14 }
 0x1da   :  { %8394 = vtanh.f32 %v1707_v22  ;;  %v1709_v29 = vadd.f32 %v1708_v42, %v1516_v39  ;;  %v14440_v22 = vld [vmem:[#allocation11_spill] sm:$0xff]  ;;  %7792 = vmatpush3.bf16.msra.mxu1 %v8180_v14  ;;  %v14450_v14 = vld [vmem:[#allocation38_spill] sm:$0xff] }
 0x1db   :  { %8396 = vtanh.f32 %v1705_v20  ;;  %v1712_v9 = vpop.f32.mrf.mxu1  ;;  %v8385_v19 = vpop.eup %8384  ;;  %v1148_v20 = vadd.f32 %v14439_v30, %v10902_v31  ;;  %v1150_v42 = vadd.f32 %v14440_v22, %v10905_v32  ;;  %v14442_v30 = vld [vmem:[#allocation33_spill] sm:$0xff] }
 0x1dc   :  { %8398 = vtanh.f32 %v1709_v29  ;;  %v1713_v54 = vadd.f32 %v1712_v9, %v1520_v0  ;;  %v11514_v9 = vpop.f32.mrf.mxu0  ;;  %v1530_v2 = vadd.f32 %v11291_v45, %v14442_v30  ;;  %v8181_v45 = vld [vmem:[%s14322_s5 + $0x10] sm:$0xff]  }
 0x1dd   :  { %v1714_v46 = vpop.f32.mrf.mxu1  ;;  %v1341_v25 = vadd.f32 %v14441_v6, %v1148_v20  ;;  %7793 = vmatprep.subr.bf16.mxu1 %v8181_v45 }
 0x1de   :  { %v1715_v10 = vadd.f32 %v1714_v46, %v1522_v60  ;;  %8400 = vtanh.f32 %v1713_v54  ;;  %v14444_v54 = vld [vmem:[#allocation34_spill] sm:$0xff]  ;;  %7794 = vmatpush3.bf16.msra.mxu1 %v8181_v45  ;;  %v14452_v45 = vld [vmem:[#allocation17_spill] sm:$0xff] }
 0x1df   :  { %v8387_v38 = vpop.eup %8386  ;;  %v1716_v62 = vpop.f32.mrf.mxu1 }
 0x1e0   :  { %v8389_v39 = vpop.eup %8388  ;;  %v1717_v29 = vadd.f32 %v1716_v62, %v1524_v47  ;;  %v1915_v33 = vpack.c.bf16 %v8387_v38, %v8385_v19  ;;  %v1343_v19 = vadd.f32 %v14443_v43, %v1150_v42  ;;  %v1532_v47 = vadd.f32 %v11306_v7, %v14444_v54  ;;  %v11525_v38 = vpop.f32.mrf.mxu0  ;;  %v14448_v54 = vld [vmem:[#allocation37_spill] sm:$0xff] }
 0x1e1   :  { %v8391_v0 = vpop.eup %8390  ;;  %v1718_v63 = vpop.f32.mrf.mxu1  ;;  %v1534_v42 = vadd.f32 %v11314_v41, %v1341_v25 }
 0x1e2   :  { %8402 = vtanh.f32 %v1717_v29  ;;  %v1719_v60 = vadd.f32 %v1718_v63, %v1526_v59  ;;  %v1916_v46 = vpack.c.bf16 %v8391_v0, %v8389_v39  ;;  %v14445_v39 = vld [vmem:[#allocation13_spill] sm:$0xff]  ;;  %v14446_v0 = vld [vmem:[#allocation14_spill] sm:$0xff]  ;;  %v11536_v30 = vpop.f32.mrf.mxu0 }
 0x1e3   :  { %8404 = vtanh.f32 %v1715_v10  ;;  %v1722_v34 = vpop.f32.mrf.mxu1  ;;  %v8393_v10 = vpop.eup %8392  ;;  %v1158_v22 = vadd.f32 %v14445_v39, %v10902_v31  ;;  %v1160_v63 = vadd.f32 %v14446_v0, %v10905_v32 }
 0x1e4   :  { %8406 = vtanh.f32 %v1719_v60  ;;  %2114 = vmatprep.mubr.bf16.mxu0 %v1916_v46  ;;  %v1723_v62 = vadd.f32 %v1722_v34, %v1530_v2  ;;  %v14447_v34 = vld [vmem:[#allocation39_spill] sm:$0xff] }
 0x1e5   :  { %v1724_v20 = vpop.f32.mrf.mxu1  ;;  %2115 = vmatmul.mubr.bf16.vlgmr.msra.gmra.mxu0 %v1915_v33  ;;  %v1536_v33 = vadd.f32 %v11322_v28, %v1343_v19  ;;  %v1351_v41 = vadd.f32 %v14447_v34, %v1158_v22  ;;  %v14449_v28 = vld [vmem:[#allocation40_spill] sm:$0xff] }
 0x1e6   :  { %v1725_v59 = vadd.f32 %v1724_v20, %v1532_v47  ;;  %8408 = vtanh.f32 %v1723_v62  ;;  %v1540_v47 = vadd.f32 %v11328_v11, %v14448_v54  ;;  %v1353_v19 = vadd.f32 %v14449_v28, %v1160_v63  ;;  %v14454_v54 = vld [vmem:[#allocation41_spill] sm:$0xff]  ;;  %v14455_v28 = vld [vmem:[#allocation44_spill] sm:$0xff] }
 0x1e7   :  { %v8395_v52 = vpop.eup %8394  ;;  %v1726_v29 = vpop.f32.mrf.mxu1  ;;  %v1542_v62 = vadd.f32 %v11335_v21, %v14450_v14  ;;  %v1544_v11 = vadd.f32 %v11343_v49, %v1351_v41 }
 0x1e8   :  { %v8397_v7 = vpop.eup %8396  ;;  %v1727_v6 = vadd.f32 %v1726_v29, %v1534_v42  ;;  %v1917_v60 = vpack.c.bf16 %v8395_v52, %v8393_v10  ;;  %v11544_v10 = vpop.f32.mrf.mxu0  ;;  %v14451_v52 = vld [vmem:[#allocation16_spill] sm:$0xff]  ;;  %v1546_v21 = vadd.f32 %v11350_v35, %v1353_v19  ;;  %v14456_v35 = vld [vmem:[#allocation42_spill] sm:$0xff] }
 0x1e9   :  { %v8399_v46 = vpop.eup %8398  ;;  %v1728_v2 = vpop.f32.mrf.mxu1  ;;  %v1168_v29 = vadd.f32 %v14451_v52, %v10902_v31  ;;  %v1552_v19 = vadd.f32 %v11365_v50, %v14456_v35  ;;  %v14457_v52 = vld [vmem:[#allocation19_spill] sm:$0xff] }
 0x1ea   :  { %8410 = vtanh.f32 %v1727_v6  ;;  %v1729_v25 = vadd.f32 %v1728_v2, %v1536_v33  ;;  %v1918_v43 = vpack.c.bf16 %v8399_v46, %v8397_v7  ;;  %v1170_v33 = vadd.f32 %v14452_v45, %v10905_v32  ;;  %v11552_v34 = vpop.f32.mrf.mxu0 }
 0x1eb   :  { %8412 = vtanh.f32 %v1725_v59  ;;  %v1732_v20 = vpop.f32.mrf.mxu1  ;;  %v8401_v42 = vpop.eup %8400 }
 0x1ec   :  { %8414 = vtanh.f32 %v1729_v25  ;;  %2122 = vmatprep.mubr.bf16.mxu0 %v1918_v43  ;;  %v1733_v39 = vadd.f32 %v1732_v20, %v1540_v47  ;;  %v14453_v25 = vld [vmem:[#allocation43_spill] sm:$0xff]  ;;  %v1550_v47 = vadd.f32 %v11358_v44, %v14454_v54  ;;  %v1363_v14 = vadd.f32 %v14455_v28, %v1170_v33 }
 0x1ed   :  { %v1734_v22 = vpop.f32.mrf.mxu1  ;;  %2123 = vmatmul.mubr.bf16.gmra.mxu0 %v1917_v60  ;;  %v1361_v43 = vadd.f32 %v14453_v25, %v1168_v29  ;;  %v1178_v29 = vadd.f32 %v14457_v52, %v10902_v31  ;;  %v14460_v54 = vld [vmem:[#allocation47_spill] sm:$0xff] }
 0x1ee   :  { %v1735_v7 = vadd.f32 %v1734_v22, %v1542_v62  ;;  %8416 = vtanh.f32 %v1733_v39  ;;  %v11560_v62 = vpop.f32.mrf.mxu0  ;;  %v1556_v50 = vadd.f32 %v11380_v3, %v1363_v14  ;;  %v14461_v3 = vld [vmem:[#allocation46_spill] sm:$0xff] }
 0x1ef   :  { %v8403_v59 = vpop.eup %8402  ;;  %v1736_v0 = vpop.f32.mrf.mxu1  ;;  %v1554_v44 = vadd.f32 %v11373_v61, %v1361_v43  ;;  %v14459_v43 = vld [vmem:[#allocation45_spill] sm:$0xff] }
 0x1f0   :  { %v8405_v63 = vpop.eup %8404  ;;  %v1737_v6 = vadd.f32 %v1736_v0, %v1544_v11  ;;  %v1919_v46 = vpack.c.bf16 %v8403_v59, %v8401_v42 }
 0x1f1   :  { %v8407_v2 = vpop.eup %8406  ;;  %v1738_v60 = vpop.f32.mrf.mxu1 }
 0x1f2   :  { %8418 = vtanh.f32 %v1737_v6  ;;  %v1739_v49 = vadd.f32 %v1738_v60, %v1546_v21  ;;  %v1920_v41 = vpack.c.bf16 %v8407_v2, %v8405_v63  ;;  %v14458_v63 = vld [vmem:[#allocation20_spill] sm:$0xff]  ;;  %v11568_v2 = vpop.f32.mrf.mxu0  ;;  %v1371_v60 = vadd.f32 %v11310_v36, %v1178_v29 }
 0x1f3   :  { %8420 = vtanh.f32 %v1735_v7  ;;  %v1742_v20 = vpop.f32.mrf.mxu1  ;;  %v8409_v42 = vpop.eup %8408  ;;  %v1180_v45 = vadd.f32 %v14458_v63, %v10905_v32 }
 0x1f4   :  { %8422 = vtanh.f32 %v1739_v49  ;;  %2130 = vmatprep.mubr.bf16.mxu0 %v1920_v41  ;;  %v1743_v39 = vadd.f32 %v1742_v20, %v1550_v47  ;;  %v1560_v49 = vadd.f32 %v11388_v12, %v14459_v43  ;;  %v1562_v20 = vadd.f32 %v11395_v18, %v14461_v3  ;;  %v11576_v28 = vpop.f32.mrf.mxu0 }
 0x1f5   :  { %v1744_v22 = vpop.f32.mrf.mxu1  ;;  %2131 = vmatmul.mubr.bf16.gmra.mxu0 %v1919_v46  ;;  %v1373_v47 = vadd.f32 %v14460_v54, %v1180_v45  ;;  %v1564_v12 = vadd.f32 %v11403_v37, %v1371_v60 }
 0x1f6   :  { %v1745_v59 = vadd.f32 %v1744_v22, %v1552_v19  ;;  %8424 = vtanh.f32 %v1743_v39  ;;  %v14462_v19 = vld [vmem:[#allocation22_spill] sm:$0xff]  ;;  %v11584_v63 = vpop.f32.mrf.mxu0 }
 0x1f7   :  { %v8411_v11 = vpop.eup %8410  ;;  %v1746_v7 = vpop.f32.mrf.mxu1  ;;  %v1188_v39 = vadd.f32 %v14462_v19, %v10902_v31  ;;  %v1566_v18 = vadd.f32 %v11410_v51, %v1373_v47  ;;  %v14466_v51 = vld [vmem:[#allocation49_spill] sm:$0xff] }
 0x1f8   :  { %v8413_v0 = vpop.eup %8412  ;;  %v1747_v33 = vadd.f32 %v1746_v7, %v1554_v44  ;;  %v1921_v21 = vpack.c.bf16 %v8411_v11, %v8409_v42  ;;  %v14463_v44 = vld [vmem:[#allocation23_spill] sm:$0xff]  ;;  %v1572_v60 = vadd.f32 %v11425_v16, %v14466_v51  ;;  %v14471_v51 = vld [vmem:[#allocation54_spill] sm:$0xff] }
 0x1f9   :  { %v8415_v6 = vpop.eup %8414  ;;  %v1748_v46 = vpop.f32.mrf.mxu1  ;;  %v1190_v11 = vadd.f32 %v14463_v44, %v10905_v32  ;;  %v1381_v31 = vadd.f32 %v11326_v27, %v1188_v39  ;;  %v14465_v32 = vld [vmem:[#allocation50_spill] sm:$0xff] }
 0x1fa   :  { %8426 = vtanh.f32 %v1747_v33  ;;  %v1749_v61 = vadd.f32 %v1748_v46, %v1556_v50  ;;  %v1922_v25 = vpack.c.bf16 %v8415_v6, %v8413_v0  ;;  %v14464_v33 = vld [vmem:[#allocation48_spill] sm:$0xff] }
 0x1fb   :  { %8428 = vtanh.f32 %v1745_v59  ;;  %v1752_v41 = vpop.f32.mrf.mxu1  ;;  %v8417_v36 = vpop.eup %8416  ;;  %v1383_v46 = vadd.f32 %v14465_v32, %v1190_v11 }
 0x1fc   :  { %8430 = vtanh.f32 %v1749_v61  ;;  %2138 = vmatprep.mubr.bf16.mxu0 %v1922_v25  ;;  %v1753_v14 = vadd.f32 %v1752_v41, %v1560_v49  ;;  %v11592_v61 = vpop.f32.mrf.mxu0  ;;  %v1574_v49 = vadd.f32 %v11433_v53, %v1381_v31 }
 0x1fd   :  { %v1754_v35 = vpop.f32.mrf.mxu1  ;;  %2139 = vmatmul.mubr.bf16.gmra.mxu0 %v1921_v21  ;;  %v1570_v21 = vadd.f32 %v11418_v4, %v14464_v33  ;;  %v1576_v3 = vadd.f32 %v11440_v24, %v1383_v46  ;;  %v14469_v24 = vld [vmem:[#allocation52_spill] sm:$0xff] }
 0x1fe   :  { %v1755_v42 = vadd.f32 %v1754_v35, %v1562_v20  ;;  %8432 = vtanh.f32 %v1753_v14 }
 0x1ff   :  { %v8419_v22 = vpop.eup %8418  ;;  %v1756_v52 = vpop.f32.mrf.mxu1 }
 0x200   :  { %v8421_v29 = vpop.eup %8420  ;;  %v1757_v59 = vadd.f32 %v1756_v52, %v1564_v12  ;;  %v1923_v7 = vpack.c.bf16 %v8419_v22, %v8417_v36  ;;  %v11596_v36 = vpop.f32.mrf.mxu0  ;;  %v14467_v12 = vld [vmem:[#allocation51_spill] sm:$0xff] }
 0x201   :  { %v8423_v0 = vpop.eup %8422  ;;  %v1758_v45 = vpop.f32.mrf.mxu1  ;;  %v1580_v22 = vadd.f32 %v11452_v48, %v14467_v12 }
 0x202   :  { %8434 = vtanh.f32 %v1757_v59  ;;  %v1759_v37 = vadd.f32 %v1758_v45, %v1566_v18  ;;  %v1924_v50 = vpack.c.bf16 %v8423_v0, %v8421_v29  ;;  %v1582_v29 = vadd.f32 %v11465_v56, %v14469_v24  ;;  %v11604_v44 = vpop.f32.mrf.mxu0  ;;  %v14476_v24 = vld [vmem:[#allocation9_spill] sm:$0xff] }
 0x203   :  { %8436 = vtanh.f32 %v1755_v42  ;;  %v1762_v6 = vpop.f32.mrf.mxu1  ;;  %v8425_v27 = vpop.eup %8424  ;;  %v14468_v42 = vld [vmem:[#allocation5_spill] sm:$0xff] }
 0x204   :  { %8438 = vtanh.f32 %v1759_v37  ;;  %2146 = vmatprep.mubr.bf16.mxu0 %v1924_v50  ;;  %v1763_v25 = vadd.f32 %v1762_v6, %v1570_v21  ;;  %v1393_v52 = vadd.f32 %v11345_v13, %v14468_v42  ;;  %v11609_v6 = vpop.f32.mrf.mxu0  ;;  %v14475_v42 = vld [vmem:[#allocation57_spill] sm:$0xff] }
 0x205   :  { %v1764_v43 = vpop.f32.mrf.mxu1  ;;  %2147 = vmatmul.mubr.bf16.gmra.mxu0 %v1923_v7  ;;  %v14470_v7 = vld [vmem:[#allocation53_spill] sm:$0xff] }
 0x206   :  { %v1765_v54 = vadd.f32 %v1764_v43, %v1572_v60  ;;  %8440 = vtanh.f32 %v1763_v25  ;;  %v1584_v0 = vadd.f32 %v11473_v15, %v14470_v7  ;;  %v1586_v13 = vadd.f32 %v11481_v57, %v1393_v52  ;;  %v14472_v25 = vld [vmem:[#allocation6_spill] sm:$0xff]  ;;  %v14473_v57 = vld [vmem:[#allocation55_spill] sm:$0xff] }
 0x207   :  { %v8427_v41 = vpop.eup %8426  ;;  %v1766_v4 = vpop.f32.mrf.mxu1  ;;  %v1590_v60 = vadd.f32 %v11492_v1, %v14471_v51  ;;  %v1403_v43 = vadd.f32 %v11360_v23, %v14472_v25  ;;  %v1600_v52 = vadd.f32 %v11536_v30, %v14475_v42  ;;  %v14479_v51 = vld [vmem:[#allocation60_spill] sm:$0xff] }
 0x208   :  { %v8429_v47 = vpop.eup %8428  ;;  %v1767_v20 = vadd.f32 %v1766_v4, %v1574_v49  ;;  %v1925_v14 = vpack.c.bf16 %v8427_v41, %v8425_v27  ;;  %v1592_v27 = vadd.f32 %v11500_v5, %v14473_v57  ;;  %v11617_v49 = vpop.f32.mrf.mxu0 }
 0x209   :  { %v8431_v35 = vpop.eup %8430  ;;  %v1768_v16 = vpop.f32.mrf.mxu1  ;;  %v1596_v23 = vadd.f32 %v11525_v38, %v1403_v43  ;;  %v14477_v38 = vld [vmem:[#allocation58_spill] sm:$0xff] }
 0x20a   :  { %8442 = vtanh.f32 %v1767_v20  ;;  %v1769_v19 = vadd.f32 %v1768_v16, %v1576_v3  ;;  %v1926_v39 = vpack.c.bf16 %v8431_v35, %v8429_v47  ;;  %v14474_v47 = vld [vmem:[#allocation56_spill] sm:$0xff]  ;;  %v11622_v12 = vpop.f32.mrf.mxu0 }
 0x20b   :  { %8444 = vtanh.f32 %v1765_v54  ;;  %v1772_v53 = vpop.f32.mrf.mxu1  ;;  %v8433_v59 = vpop.eup %8432  ;;  %v1594_v3 = vadd.f32 %v11514_v9, %v14474_v47 }
 0x20c   :  { %8446 = vtanh.f32 %v1769_v19  ;;  %2154 = vmatprep.mubr.bf16.mxu0 %v1926_v39  ;;  %v1773_v11 = vadd.f32 %v1772_v53, %v1580_v22 }
 0x20d   :  { %v1774_v18 = vpop.f32.mrf.mxu1  ;;  %2155 = vmatmul.mubr.bf16.gmra.mxu0 %v1925_v14 }
 0x20e   :  { %v1775_v45 = vadd.f32 %v1774_v18, %v1582_v29  ;;  %8448 = vtanh.f32 %v1773_v11  ;;  %v1413_v29 = vadd.f32 %v11375_v40, %v14476_v24  ;;  %v1602_v11 = vadd.f32 %v11544_v10, %v14477_v38  ;;  %v11630_v18 = vpop.f32.mrf.mxu0 }
 0x20f   :  { %v8435_v48 = vpop.eup %8434  ;;  %v1776_v31 = vpop.f32.mrf.mxu1 }
 0x210   :  { %v8437_v37 = vpop.eup %8436  ;;  %v1777_v50 = vadd.f32 %v1776_v31, %v1584_v0  ;;  %v1927_v33 = vpack.c.bf16 %v8435_v48, %v8433_v59  ;;  %v14478_v48 = vld [vmem:[#allocation59_spill] sm:$0xff]  ;;  %v1606_v40 = vadd.f32 %v11560_v62, %v1413_v29  ;;  %v14481_v62 = vld [vmem:[#allocation61_spill] sm:$0xff] }
 0x211   :  { %v8439_v21 = vpop.eup %8438  ;;  %v1778_v56 = vpop.f32.mrf.mxu1  ;;  %v1612_v43 = vadd.f32 %v11576_v28, %v14481_v62 }
 0x212   :  { %8450 = vtanh.f32 %v1777_v50  ;;  %v1779_v32 = vadd.f32 %v1778_v56, %v1586_v13  ;;  %v1928_v46 = vpack.c.bf16 %v8439_v21, %v8437_v37  ;;  %v11635_v56 = vpop.f32.mrf.mxu0 }
 0x213   :  { %8452 = vtanh.f32 %v1775_v45  ;;  %v1782_v15 = vpop.f32.mrf.mxu1  ;;  %v8441_v4 = vpop.eup %8440  ;;  %v1604_v45 = vadd.f32 %v11552_v34, %v14478_v48 }
 0x214   :  { %8454 = vtanh.f32 %v1779_v32  ;;  %2162 = vmatprep.mubr.bf16.mxu0 %v1928_v46  ;;  %v1783_v41 = vadd.f32 %v1782_v15, %v1590_v60  ;;  %v1610_v60 = vadd.f32 %v11568_v2, %v14479_v51  ;;  %v14480_v15 = vld [vmem:[#allocation12_spill] sm:$0xff]  ;;  %v11643_v57 = vpop.f32.mrf.mxu0 }
 0x215   :  { %v1784_v54 = vpop.f32.mrf.mxu1  ;;  %2163 = vmatmul.mubr.bf16.gmra.mxu0 %v1927_v33  ;;  %v1423_v25 = vadd.f32 %v11390_v55, %v14480_v15 }
 0x216   :  { %v1785_v20 = vadd.f32 %v1784_v54, %v1592_v27  ;;  %8456 = vtanh.f32 %v1783_v41 }
 0x217   :  { %v8443_v1 = vpop.eup %8442  ;;  %v1786_v14 = vpop.f32.mrf.mxu1  ;;  %v1616_v55 = vadd.f32 %v11592_v61, %v1423_v25  ;;  %v8182_v61 = vld [vmem:[%s14322_s5 + $0x8] sm:$0xff]   ;;  %v14490_v25 = vld [vmem:[#allocation68_spill] sm:$0xff] }
 0x218   :  { %v8445_v35 = vpop.eup %8444  ;;  %v1787_v16 = vadd.f32 %v1786_v14, %v1594_v3  ;;  %v1929_v19 = vpack.c.bf16 %v8443_v1, %v8441_v4  ;;  %v14482_v4 = vld [vmem:[#allocation62_spill] sm:$0xff]  ;;  %7795 = vmatprep.subr.bf16.mxu1 %v8182_v61  ;;  %v1634_v62 = vadd.f32 %v11635_v56, %v14490_v25 }
 0x219   :  { %v8447_v39 = vpop.eup %8446  ;;  %v1788_v5 = vpop.f32.mrf.mxu1  ;;  %v1614_v47 = vadd.f32 %v11584_v63, %v14482_v4  ;;  %7796 = vmatpush3.bf16.msra.mxu1 %v8182_v61 }
 0x21a   :  { %8458 = vtanh.f32 %v1787_v16  ;;  %v1789_v22 = vadd.f32 %v1788_v5, %v1596_v23  ;;  %v1930_v53 = vpack.c.bf16 %v8447_v39, %v8445_v35  ;;  %v11648_v16 = vpop.f32.mrf.mxu0  ;;  %v14483_v5 = vld [vmem:[#allocation63_spill] sm:$0xff] }
 0x21b   :  { %8460 = vtanh.f32 %v1785_v20  ;;  %v1792_v9 = vpop.f32.mrf.mxu1  ;;  %v8449_v0 = vpop.eup %8448 }
 0x21c   :  { %8462 = vtanh.f32 %v1789_v22  ;;  %2170 = vmatprep.mubr.bf16.mxu0 %v1930_v53  ;;  %v1793_v59 = vadd.f32 %v1792_v9, %v1600_v52  ;;  %v1620_v22 = vadd.f32 %v11596_v36, %v14483_v5  ;;  %v14484_v53 = vld [vmem:[#allocation15_spill] sm:$0xff]  ;;  %v14485_v52 = vld [vmem:[#allocation64_spill] sm:$0xff]  ;;  %v1641_v24 = vpop.f32.mrf.mxu0  ;;  %v14486_v36 = vld [vmem:[#allocation65_spill] sm:$0xff] }
 0x21d   :  { %v1794_v7 = vpop.f32.mrf.mxu1  ;;  %2171 = vmatmul.mubr.bf16.gmra.mxu0 %v1929_v19  ;;  %v1433_v42 = vadd.f32 %v11405_v8, %v14484_v53  ;;  %v1622_v9 = vadd.f32 %v11604_v44, %v14485_v52 }
 0x21e   :  { %v1795_v31 = vadd.f32 %v1794_v7, %v1602_v11  ;;  %8464 = vtanh.f32 %v1793_v59  ;;  %v1624_v59 = vadd.f32 %v11609_v6, %v14486_v36  ;;  %v1643_v44 = vpop.f32.mrf.mxu0  ;;  %v14494_v36 = vld [vmem:[#allocation71_spill] sm:$0xff] }
 0x21f   :  { %v8451_v30 = vpop.eup %8450  ;;  %v1796_v37 = vpop.f32.mrf.mxu1 }
 0x220   :  { %v8453_v13 = vpop.eup %8452  ;;  %v1797_v50 = vadd.f32 %v1796_v37, %v1604_v45  ;;  %v1931_v33 = vpack.c.bf16 %v8451_v30, %v8449_v0  ;;  %v1626_v45 = vadd.f32 %v11617_v49, %v1433_v42  ;;  %v14489_v49 = vld [vmem:[#allocation67_spill] sm:$0xff]  ;;  %v1645_v51 = vpop.f32.mrf.mxu0 }
 0x221   :  { %v8455_v21 = vpop.eup %8454  ;;  %v1798_v10 = vpop.f32.mrf.mxu1 }
 0x222   :  { %8466 = vtanh.f32 %v1797_v50  ;;  %v1799_v32 = vadd.f32 %v1798_v10, %v1606_v40  ;;  %v1932_v46 = vpack.c.bf16 %v8455_v21, %v8453_v13  ;;  %v14488_v10 = vld [vmem:[#allocation18_spill] sm:$0xff] }
 0x223   :  { %8468 = vtanh.f32 %v1795_v31  ;;  %v1802_v34 = vpop.f32.mrf.mxu1  ;;  %v8457_v54 = vpop.eup %8456 }
 0x224   :  { %8470 = vtanh.f32 %v1799_v32  ;;  %2178 = vmatprep.mubr.bf16.mxu0 %v1932_v46  ;;  %v1803_v27 = vadd.f32 %v1802_v34, %v1610_v60  ;;  %v1443_v32 = vadd.f32 %v11420_v26, %v14488_v10  ;;  %v1632_v46 = vadd.f32 %v11630_v18, %v14489_v49 }
 0x225   :  { %v1804_v41 = vpop.f32.mrf.mxu1  ;;  %2179 = vmatmul.mubr.bf16.gmra.mxu0 %v1931_v33  ;;  %v14487_v33 = vld [vmem:[#allocation66_spill] sm:$0xff] }
 0x226   :  { %v1805_v3 = vadd.f32 %v1804_v41, %v1612_v43  ;;  %8472 = vtanh.f32 %v1803_v27  ;;  %v1630_v6 = vadd.f32 %v11622_v12, %v14487_v33 }
 0x227   :  { %v8459_v2 = vpop.eup %8458  ;;  %v1806_v1 = vpop.f32.mrf.mxu1 }
 0x228   :  { %v8461_v20 = vpop.eup %8460  ;;  %v1807_v14 = vadd.f32 %v1806_v1, %v1614_v47  ;;  %v1933_v35 = vpack.c.bf16 %v8459_v2, %v8457_v54  ;;  %v1636_v54 = vadd.f32 %v11643_v57, %v1443_v32  ;;  %v1649_v2 = vpop.f32.mrf.mxu0  ;;  %v8183_v57 = vld [vmem:[%s14322_s5] sm:$0xff]  }
 0x229   :  { %v8463_v23 = vpop.eup %8462  ;;  %v1808_v28 = vpop.f32.mrf.mxu1  ;;  %7797 = vmatprep.subr.bf16.mxu1 %v8183_v57 }
 0x22a   :  { %8474 = vtanh.f32 %v1807_v14  ;;  %v1809_v19 = vadd.f32 %v1808_v28, %v1616_v55  ;;  %v1934_v39 = vpack.c.bf16 %v8463_v23, %v8461_v20  ;;  %v14491_v20 = vld [vmem:[#allocation69_spill] sm:$0xff]  ;;  %v1642_v23 = vadd.f32 %v1641_v24, %v11428_v17  ;;  %v1651_v28 = vpop.f32.mrf.mxu0  ;;  %7798 = vmatpush3.bf16.msra.mxu1 %v8183_v57 }
 0x22b   :  { %8476 = vtanh.f32 %v1805_v3  ;;  %v1812_v63 = vpop.f32.mrf.mxu1  ;;  %v8465_v11 = vpop.eup %8464  ;;  %v1640_v55 = vadd.f32 %v11648_v16, %v14491_v20  ;;  %v14492_v14 = vld [vmem:[#allocation21_spill] sm:$0xff]  ;;  %v11688_v20 = vld [vmem:[%s14323_s4] ss:$0 sm:$0xff] }
 0x22c   :  { %8478 = vtanh.f32 %v1809_v19  ;;  %2186 = vmatprep.mubr.bf16.mxu0 %v1934_v39  ;;  %v1813_v29 = vadd.f32 %v1812_v63, %v1620_v22  ;;  %v14493_v22 = vld [vmem:[#allocation70_spill] sm:$0xff] }
 0x22d   :  { %v1814_v38 = vpop.f32.mrf.mxu1  ;;  %2187 = vmatmul.mubr.bf16.gmra.mxu0 %v1933_v35  ;;  %v1453_v35 = vadd.f32 %v11435_v58, %v14492_v14  ;;  %v1644_v16 = vadd.f32 %v1643_v44, %v14493_v22 }
 0x22e   :  { %v1815_v8 = vadd.f32 %v1814_v38, %v1622_v9  ;;  %8480 = vtanh.f32 %v1813_v29  ;;  %v1653_v38 = vpop.f32.mrf.mxu0 }
 0x22f   :  { %v8467_v7 = vpop.eup %8466  ;;  %v1816_v0 = vpop.f32.mrf.mxu1  ;;  %v1646_v61 = vadd.f32 %v1645_v51, %v1453_v35 }
 0x230   :  { %v8469_v48 = vpop.eup %8468  ;;  %v1817_v30 = vadd.f32 %v1816_v0, %v1624_v59  ;;  %v1935_v31 = vpack.c.bf16 %v8467_v7, %v8465_v11  ;;  %v1650_v59 = vadd.f32 %v1649_v2, %v14494_v36  ;;  %v14496_v0 = vld [vmem:[#allocation74_spill] sm:$0xff] }
 0x231   :  { %v8471_v37 = vpop.eup %8470  ;;  %v1818_v13 = vpop.f32.mrf.mxu1 }
 0x232   :  { %8482 = vtanh.f32 %v1817_v30  ;;  %v1819_v40 = vadd.f32 %v1818_v13, %v1626_v45  ;;  %v1936_v50 = vpack.c.bf16 %v8471_v37, %v8469_v48  ;;  %v14497_v45 = vld [vmem:[#allocation72_spill] sm:$0xff] }
 0x233   :  { %8484 = vtanh.f32 %v1815_v8  ;;  %v1822_v21 = vpop.f32.mrf.mxu1  ;;  %v8473_v15 = vpop.eup %8472  ;;  %v14495_v8 = vld [vmem:[#allocation24_spill] sm:$0xff]  ;;  %v1652_v30 = vadd.f32 %v1651_v28, %v14497_v45 }
 0x234   :  { %8486 = vtanh.f32 %v1819_v40  ;;  %2194 = vmatprep.mubr.bf16.mxu0 %v1936_v50  ;;  %v1823_v60 = vadd.f32 %v1822_v21, %v1630_v6  ;;  %v1463_v48 = vadd.f32 %v14496_v0, %v14495_v8  ;;  %v14498_v40 = vld [vmem:[#allocation73_spill] sm:$0xff] }
 0x235   :  { %v1824_v34 = vpop.f32.mrf.mxu1  ;;  %2195 = vmatmul.mubr.bf16.gmra.mxu0 %v1935_v31  ;;  %v1655_v31 = vpop.f32.mrf.mxu0  ;;  %v1654_v50 = vadd.f32 %v1653_v38, %v14498_v40 }
 0x236   :  { %v1825_v12 = vadd.f32 %v1824_v34, %v1632_v46  ;;  %8488 = vtanh.f32 %v1823_v60  ;;  %v1656_v32 = vadd.f32 %v1655_v31, %v1463_v48 }
 0x237   :  { %v8475_v43 = vpop.eup %8474  ;;  %v1826_v27 = vpop.f32.mrf.mxu1 }
 0x238   :  { %v8477_v41 = vpop.eup %8476  ;;  %v1827_v26 = vadd.f32 %v1826_v27, %v1634_v62  ;;  %v1937_v4 = vpack.c.bf16 %v8475_v43, %v8473_v15 }
 0x239   :  { %v8479_v47 = vpop.eup %8478  ;;  %v1828_v18 = vpop.f32.mrf.mxu1 }
 0x23a   :  { %8490 = vtanh.f32 %v1827_v26  ;;  %v1829_v3 = vadd.f32 %v1828_v18, %v1636_v54  ;;  %v1938_v1 = vpack.c.bf16 %v8479_v47, %v8477_v41 }
 0x23b   :  { %8492 = vtanh.f32 %v1825_v12  ;;  %v1832_v56 = vpop.f32.mrf.mxu1  ;;  %v8481_v5 = vpop.eup %8480 }
 0x23c   :  { %8494 = vtanh.f32 %v1829_v3  ;;  %2202 = vmatprep.mubr.bf16.mxu0 %v1938_v1  ;;  %v1833_v19 = vadd.f32 %v1832_v56, %v1640_v55 }
 0x23d   :  { %v1834_v39 = vpop.f32.mrf.mxu1  ;;  %2203 = vmatmul.mubr.bf16.gmra.mxu0 %v1937_v4 }
 0x23e   :  { %v1835_v53 = vadd.f32 %v1834_v39, %v1642_v23  ;;  %8496 = vtanh.f32 %v1833_v19 }
 0x23f   :  { %v8483_v63 = vpop.eup %8482  ;;  %v1836_v42 = vpop.f32.mrf.mxu1 }
 0x240   :  { %v8485_v58 = vpop.eup %8484  ;;  %v1837_v52 = vadd.f32 %v1836_v42, %v1644_v16  ;;  %v1939_v9 = vpack.c.bf16 %v8483_v63, %v8481_v5 }
 0x241   :  { %v8487_v29 = vpop.eup %8486  ;;  %v1838_v17 = vpop.f32.mrf.mxu1 }
 0x242   :  { %8498 = vtanh.f32 %v1837_v52  ;;  %v1839_v24 = vadd.f32 %v1838_v17, %v1646_v61  ;;  %v1940_v11 = vpack.c.bf16 %v8487_v29, %v8485_v58 }
 0x243   :  { %8500 = vtanh.f32 %v1835_v53  ;;  %v1842_v7 = vpop.f32.mrf.mxu1  ;;  %v8489_v13 = vpop.eup %8488 }
 0x244   :  { %8502 = vtanh.f32 %v1839_v24  ;;  %2210 = vmatprep.mubr.bf16.mxu0 %v1940_v11  ;;  %v1843_v37 = vadd.f32 %v1842_v7, %v1650_v59 }
 0x245   :  { %v1844_v44 = vpop.f32.mrf.mxu1  ;;  %2211 = vmatmul.mubr.bf16.gmra.mxu0 %v1939_v9  ;;  %v8184_v9 = vld [vmem:[%s14324_s7 + $0x18] sm:$0xff]  }
 0x246   :  { %v1845_v6 = vadd.f32 %v1844_v44, %v1652_v30  ;;  %8504 = vtanh.f32 %v1843_v37  ;;  %7831 = vmatprep.subr.bf16.mxu1 %v8184_v9 }
 0x247   :  { %v8491_v33 = vpop.eup %8490  ;;  %v1846_v21 = vpop.f32.mrf.mxu1 }
 0x248   :  { %v8493_v10 = vpop.eup %8492  ;;  %v1847_v49 = vadd.f32 %v1846_v21, %v1654_v50  ;;  %v1941_v46 = vpack.c.bf16 %v8491_v33, %v8489_v13  ;;  %v8185_v33 = vld [vmem:[%s14324_s7 + $0x10] sm:$0xff]  }
 0x249   :  { %v8495_v51 = vpop.eup %8494  ;;  %v1848_v60 = vpop.f32.mrf.mxu1 }
 0x24a   :  { %8506 = vtanh.f32 %v1847_v49  ;;  %v1849_v34 = vadd.f32 %v1848_v60, %v1656_v32  ;;  %v1942_v15 = vpack.c.bf16 %v8495_v51, %v8493_v10  ;;  %v8186_v32 = vld [vmem:[%s14324_s7 + $0x8] sm:$0xff]  }
 0x24b   :  { %8508 = vtanh.f32 %v1845_v6  ;;  %v8497_v25 = vpop.eup %8496 }
 0x24c   :  { %8510 = vtanh.f32 %v1849_v34  ;;  %2218 = vmatprep.mubr.bf16.mxu0 %v1942_v15 }
 0x24d   :  { %2219 = vmatmul.mubr.bf16.gmra.mxu0 %v1941_v46 }
 0x24f   :  { %v8499_v62 = vpop.eup %8498 }
 0x250   :  { %v8501_v43 = vpop.eup %8500  ;;  %v1943_v12 = vpack.c.bf16 %v8499_v62, %v8497_v25 }
 0x251   :  { %v8503_v27 = vpop.eup %8502 }
 0x252   :  { %v1944_v41 = vpack.c.bf16 %v8503_v27, %v8501_v43 }
 0x253   :  { %v8505_v54 = vpop.eup %8504 }
 0x254   :  { %2226 = vmatprep.mubr.bf16.mxu0 %v1944_v41 }
 0x255   :  { %2227 = vmatmul.mubr.bf16.gmra.mxu0 %v1943_v12 }
 0x257   :  { %v8507_v26 = vpop.eup %8506 }
 0x258   :  { %v8509_v4 = vpop.eup %8508  ;;  %v1945_v47 = vpack.c.bf16 %v8507_v26, %v8505_v54 }
 0x259   :  { %v8511_v2 = vpop.eup %8510 }
 0x25a   :  { %v1946_v18 = vpack.c.bf16 %v8511_v2, %v8509_v4 }
 0x25c   :  { %2234 = vmatprep.mubr.bf16.mxu0 %v1946_v18 }
 0x25d   :  { %2235 = vmatmul.mubr.bf16.gmra.mxu0 %v1945_v47 }
 0x2a5   :  { %v7487_v3 = vpop.f32.mrf.mxu0 }
 0x2a7   :  { %v7488_v1 = vpop.f32.mrf.mxu0 }
 0x2a8   :  { %v7489_v55 = vadd.f32 %v7488_v1, %v7487_v3 }
 0x2a9   :  { %v7490_v56 = vpop.f32.mrf.mxu0 }
 0x2aa   :  { %v2117_v14 = vadd.f32 %v7489_v55, %v11688_v20 }
 0x2ab   :  { %v7491_v35 = vpop.f32.mrf.mxu0 }
 0x2ac   :  { %v7492_v57 = vadd.f32 %v7491_v35, %v7490_v56  ;;  %8512 = vtanh.f32 %v2117_v14 }
 0x2ad   :  { %v7493_v23 = vpop.f32.mrf.mxu0 }
 0x2ae   :  { %v2120_v28 = vadd.f32 %v7492_v57, %v11688_v20 }
 0x2af   :  { %v7494_v19 = vpop.f32.mrf.mxu0 }
 0x2b0   :  { %8514 = vtanh.f32 %v2120_v28  ;;  %v7495_v39 = vadd.f32 %v7494_v19, %v7493_v23 }
 0x2b1   :  { %v7496_v5 = vpop.f32.mrf.mxu0 }
 0x2b2   :  { %v2125_v22 = vadd.f32 %v7495_v39, %v11688_v20 }
 0x2b3   :  { %v7497_v16 = vpop.f32.mrf.mxu0 }
 0x2b4   :  { %v7498_v63 = vadd.f32 %v7497_v16, %v7496_v5  ;;  %8516 = vtanh.f32 %v2125_v22 }
 0x2b5   :  { %v7499_v53 = vpop.f32.mrf.mxu0 }
 0x2b6   :  { %v2128_v42 = vadd.f32 %v7498_v63, %v11688_v20 }
 0x2b7   :  { %v7500_v58 = vpop.f32.mrf.mxu0 }
 0x2b8   :  { %8518 = vtanh.f32 %v2128_v42  ;;  %v7501_v61 = vadd.f32 %v7500_v58, %v7499_v53 }
 0x2b9   :  { %v7502_v52 = vpop.f32.mrf.mxu0  ;;  %v8513_v17 = vpop.eup %8512 }
 0x2ba   :  { %v2133_v29 = vadd.f32 %v7501_v61, %v11688_v20 }
 0x2bb   :  { %v7503_v38 = vpop.f32.mrf.mxu0 }
 0x2bc   :  { %v7504_v24 = vadd.f32 %v7503_v38, %v7502_v52  ;;  %8520 = vtanh.f32 %v2133_v29 }
 0x2bd   :  { %v8515_v11 = vpop.eup %8514  ;;  %v7505_v36 = vpop.f32.mrf.mxu0 }
 0x2be   :  { %v2136_v59 = vadd.f32 %v7504_v24, %v11688_v20  ;;  %v2275_v7 = vpack.c.bf16 %v8515_v11, %v8513_v17 }
 0x2bf   :  { %v7506_v8 = vpop.f32.mrf.mxu0 }
 0x2c0   :  { %8522 = vtanh.f32 %v2136_v59  ;;  %v7507_v0 = vadd.f32 %v7506_v8, %v7505_v36  ;;  %7799 = vmatprep.mubr.bf16.mxu1 %v2275_v7 }
 0x2c1   :  { %v7508_v48 = vpop.f32.mrf.mxu0  ;;  %v8517_v31 = vpop.eup %8516 }
 0x2c2   :  { %v2141_v45 = vadd.f32 %v7507_v0, %v11688_v20 }
 0x2c3   :  { %v7509_v30 = vpop.f32.mrf.mxu0 }
 0x2c4   :  { %v7510_v37 = vadd.f32 %v7509_v30, %v7508_v48  ;;  %8524 = vtanh.f32 %v2141_v45 }
 0x2c5   :  { %v8519_v44 = vpop.eup %8518  ;;  %v7511_v13 = vpop.f32.mrf.mxu0 }
 0x2c6   :  { %v2144_v40 = vadd.f32 %v7510_v37, %v11688_v20  ;;  %v2276_v50 = vpack.c.bf16 %v8519_v44, %v8517_v31 }
 0x2c7   :  { %v7512_v6 = vpop.f32.mrf.mxu0 }
 0x2c8   :  { %8526 = vtanh.f32 %v2144_v40  ;;  %v7513_v21 = vadd.f32 %v7512_v6, %v7511_v13  ;;  %7800 = vmatmul.mubr.bf16.vlgmr.msra.gmra.mxu1 %v2276_v50 }
 0x2c9   :  { %v7514_v10 = vpop.f32.mrf.mxu0  ;;  %7832 = vmatpush3.bf16.msra.mxu1 %v8184_v9  ;;  %v8521_v51 = vpop.eup %8520 }
 0x2ca   :  { %7833 = vmatprep.subr.bf16.mxu1 %v8185_v33  ;;  %v2149_v49 = vadd.f32 %v7513_v21, %v11688_v20 }
 0x2cb   :  { %v7515_v46 = vpop.f32.mrf.mxu0 }
 0x2cc   :  { %v7516_v60 = vadd.f32 %v7515_v46, %v7514_v10  ;;  %8528 = vtanh.f32 %v2149_v49 }
 0x2cd   :  { %v8523_v34 = vpop.eup %8522  ;;  %v7517_v15 = vpop.f32.mrf.mxu0  ;;  %7834 = vmatpush3.bf16.msra.mxu1 %v8185_v33 }
 0x2ce   :  { %v2152_v25 = vadd.f32 %v7516_v60, %v11688_v20  ;;  %v2277_v62 = vpack.c.bf16 %v8523_v34, %v8521_v51  ;;  %7835 = vmatprep.subr.bf16.mxu1 %v8186_v32 }
 0x2cf   :  { %v7518_v43 = vpop.f32.mrf.mxu0 }
 0x2d0   :  { %8530 = vtanh.f32 %v2152_v25  ;;  %v7519_v12 = vadd.f32 %v7518_v43, %v7517_v15  ;;  %7803 = vmatprep.mubr.bf16.mxu1 %v2277_v62 }
 0x2d1   :  { %v7520_v27 = vpop.f32.mrf.mxu0  ;;  %7836 = vmatpush3.bf16.msra.mxu1 %v8186_v32  ;;  %v8525_v26 = vpop.eup %8524 }
 0x2d2   :  { %v2157_v41 = vadd.f32 %v7519_v12, %v11688_v20 }
 0x2d3   :  { %v7521_v54 = vpop.f32.mrf.mxu0 }
 0x2d4   :  { %v7522_v4 = vadd.f32 %v7521_v54, %v7520_v27  ;;  %8532 = vtanh.f32 %v2157_v41 }
 0x2d5   :  { %v8527_v47 = vpop.eup %8526  ;;  %v7523_v2 = vpop.f32.mrf.mxu0 }
 0x2d6   :  { %v2160_v18 = vadd.f32 %v7522_v4, %v11688_v20  ;;  %v2278_v3 = vpack.c.bf16 %v8527_v47, %v8525_v26 }
 0x2d7   :  { %v7524_v1 = vpop.f32.mrf.mxu0 }
 0x2d8   :  { %8534 = vtanh.f32 %v2160_v18  ;;  %v7525_v55 = vadd.f32 %v7524_v1, %v7523_v2  ;;  %7804 = vmatmul.mubr.bf16.gmra.mxu1 %v2278_v3 }
 0x2d9   :  { %v7526_v56 = vpop.f32.mrf.mxu0  ;;  %v8529_v57 = vpop.eup %8528 }
 0x2da   :  { %v2165_v14 = vadd.f32 %v7525_v55, %v11688_v20 }
 0x2db   :  { %v7527_v35 = vpop.f32.mrf.mxu0 }
 0x2dc   :  { %v7528_v23 = vadd.f32 %v7527_v35, %v7526_v56  ;;  %8536 = vtanh.f32 %v2165_v14 }
 0x2dd   :  { %v8531_v28 = vpop.eup %8530  ;;  %v7529_v19 = vpop.f32.mrf.mxu0 }
 0x2de   :  { %v2168_v39 = vadd.f32 %v7528_v23, %v11688_v20  ;;  %v2279_v5 = vpack.c.bf16 %v8531_v28, %v8529_v57 }
 0x2df   :  { %v7530_v22 = vpop.f32.mrf.mxu0 }
 0x2e0   :  { %8538 = vtanh.f32 %v2168_v39  ;;  %v7531_v16 = vadd.f32 %v7530_v22, %v7529_v19  ;;  %7807 = vmatprep.mubr.bf16.mxu1 %v2279_v5 }
 0x2e1   :  { %v7532_v63 = vpop.f32.mrf.mxu0  ;;  %v8533_v58 = vpop.eup %8532 }
 0x2e2   :  { %v2173_v53 = vadd.f32 %v7531_v16, %v11688_v20 }
 0x2e3   :  { %v7533_v42 = vpop.f32.mrf.mxu0 }
 0x2e4   :  { %v7534_v61 = vadd.f32 %v7533_v42, %v7532_v63  ;;  %8540 = vtanh.f32 %v2173_v53 }
 0x2e5   :  { %v8535_v52 = vpop.eup %8534  ;;  %v7535_v9 = vpop.f32.mrf.mxu0 }
 0x2e6   :  { %v2176_v29 = vadd.f32 %v7534_v61, %v11688_v20  ;;  %v2280_v38 = vpack.c.bf16 %v8535_v52, %v8533_v58 }
 0x2e7   :  { %v7536_v17 = vpop.f32.mrf.mxu0 }
 0x2e8   :  { %8542 = vtanh.f32 %v2176_v29  ;;  %v7537_v24 = vadd.f32 %v7536_v17, %v7535_v9  ;;  %7808 = vmatmul.mubr.bf16.gmra.mxu1 %v2280_v38 }
 0x2e9   :  { %v7538_v11 = vpop.f32.mrf.mxu0  ;;  %v8537_v7 = vpop.eup %8536 }
 0x2ea   :  { %v2181_v36 = vadd.f32 %v7537_v24, %v11688_v20 }
 0x2eb   :  { %v7539_v59 = vpop.f32.mrf.mxu0 }
 0x2ec   :  { %v7540_v8 = vadd.f32 %v7539_v59, %v7538_v11  ;;  %8544 = vtanh.f32 %v2181_v36 }
 0x2ed   :  { %v8539_v0 = vpop.eup %8538  ;;  %v7541_v48 = vpop.f32.mrf.mxu0 }
 0x2ee   :  { %v2184_v45 = vadd.f32 %v7540_v8, %v11688_v20  ;;  %v2281_v30 = vpack.c.bf16 %v8539_v0, %v8537_v7 }
 0x2ef   :  { %v7542_v31 = vpop.f32.mrf.mxu0 }
 0x2f0   :  { %8546 = vtanh.f32 %v2184_v45  ;;  %v7543_v37 = vadd.f32 %v7542_v31, %v7541_v48  ;;  %7811 = vmatprep.mubr.bf16.mxu1 %v2281_v30  ;;  %v8187_v30 = vld [vmem:[%s14324_s7] sm:$0xff]  }
 0x2f1   :  { %v7544_v44 = vpop.f32.mrf.mxu0  ;;  %v8541_v50 = vpop.eup %8540  ;;  %7837 = vmatprep.subr.bf16.mxu1 %v8187_v30 }
 0x2f2   :  { %v2189_v13 = vadd.f32 %v7543_v37, %v11688_v20  ;;  %7838 = vmatpush3.bf16.msra.mxu1 %v8187_v30 }
 0x2f3   :  { %v7545_v40 = vpop.f32.mrf.mxu0 }
 0x2f4   :  { %v7546_v33 = vadd.f32 %v7545_v40, %v7544_v44  ;;  %8548 = vtanh.f32 %v2189_v13 }
 0x2f5   :  { %v8543_v6 = vpop.eup %8542  ;;  %v7547_v21 = vpop.f32.mrf.mxu0 }
 0x2f6   :  { %v2192_v10 = vadd.f32 %v7546_v33, %v11688_v20  ;;  %v2282_v32 = vpack.c.bf16 %v8543_v6, %v8541_v50 }
 0x2f7   :  { %v7548_v49 = vpop.f32.mrf.mxu0 }
 0x2f8   :  { %8550 = vtanh.f32 %v2192_v10  ;;  %v7549_v46 = vadd.f32 %v7548_v49, %v7547_v21  ;;  %7812 = vmatmul.mubr.bf16.gmra.mxu1 %v2282_v32 }
 0x2f9   :  { %v7550_v51 = vpop.f32.mrf.mxu0  ;;  %v8545_v15 = vpop.eup %8544 }
 0x2fa   :  { %v2197_v60 = vadd.f32 %v7549_v46, %v11688_v20 }
 0x2fb   :  { %v7551_v34 = vpop.f32.mrf.mxu0 }
 0x2fc   :  { %v7552_v25 = vadd.f32 %v7551_v34, %v7550_v51  ;;  %8552 = vtanh.f32 %v2197_v60 }
 0x2fd   :  { %v8547_v62 = vpop.eup %8546  ;;  %v7553_v43 = vpop.f32.mrf.mxu0 }
 0x2fe   :  { %v2200_v12 = vadd.f32 %v7552_v25, %v11688_v20  ;;  %v2283_v27 = vpack.c.bf16 %v8547_v62, %v8545_v15 }
 0x2ff   :  { %v7554_v41 = vpop.f32.mrf.mxu0 }
 0x300   :  { %8554 = vtanh.f32 %v2200_v12  ;;  %v7555_v54 = vadd.f32 %v7554_v41, %v7553_v43  ;;  %7815 = vmatprep.mubr.bf16.mxu1 %v2283_v27  ;;  %v8188_v12 = vld [vmem:[%s14325_s9 + $0x38] sm:$0xff]   ;;  %v11743_v41 = vld [vmem:[%s14326_s6] ss:$0 sm:$0xff] }
 0x301   :  { %v7556_v26 = vpop.f32.mrf.mxu0  ;;  %v8549_v2 = vpop.eup %8548  ;;  %7871 = vmatprep.subr.bf16.mxu0 %v8188_v12 }
 0x302   :  { %v2205_v4 = vadd.f32 %v7555_v54, %v11688_v20  ;;  %7872 = vmatpush3.bf16.msra.mxu0 %v8188_v12 }
 0x303   :  { %v7557_v47 = vpop.f32.mrf.mxu0 }
 0x304   :  { %v7558_v18 = vadd.f32 %v7557_v47, %v7556_v26  ;;  %8556 = vtanh.f32 %v2205_v4 }
 0x305   :  { %v8551_v3 = vpop.eup %8550  ;;  %v7559_v1 = vpop.f32.mrf.mxu0 }
 0x306   :  { %v2208_v55 = vadd.f32 %v7558_v18, %v11688_v20  ;;  %v2284_v56 = vpack.c.bf16 %v8551_v3, %v8549_v2 }
 0x307   :  { %v7560_v14 = vpop.f32.mrf.mxu0 }
 0x308   :  { %8558 = vtanh.f32 %v2208_v55  ;;  %v7561_v35 = vadd.f32 %v7560_v14, %v7559_v1  ;;  %7816 = vmatmul.mubr.bf16.gmra.mxu1 %v2284_v56  ;;  %v8190_v1 = vld [vmem:[%s14325_s9 + $0x28] sm:$0xff]   ;;  %v8191_v55 = vld [vmem:[%s14325_s9 + $0x20] sm:$0xff]   ;;  %v8192_v56 = vld [vmem:[%s14325_s9 + $0x18] sm:$0xff]  }
 0x309   :  { %v7562_v57 = vpop.f32.mrf.mxu0  ;;  %v8553_v19 = vpop.eup %8552 }
 0x30a   :  { %v2213_v23 = vadd.f32 %v7561_v35, %v11688_v20 }
 0x30b   :  { %v7563_v28 = vpop.f32.mrf.mxu0 }
 0x30c   :  { %v7564_v39 = vadd.f32 %v7563_v28, %v7562_v57  ;;  %8560 = vtanh.f32 %v2213_v23  ;;  %v8193_v57 = vld [vmem:[%s14325_s9 + $0x10] sm:$0xff]  }
 0x30d   :  { %v8555_v5 = vpop.eup %8554  ;;  %v7565_v22 = vpop.f32.mrf.mxu0 }
 0x30e   :  { %v2216_v16 = vadd.f32 %v7564_v39, %v11688_v20  ;;  %v2285_v63 = vpack.c.bf16 %v8555_v5, %v8553_v19 }
 0x30f   :  { %v7566_v53 = vpop.f32.mrf.mxu0 }
 0x310   :  { %8562 = vtanh.f32 %v2216_v16  ;;  %v7567_v42 = vadd.f32 %v7566_v53, %v7565_v22  ;;  %7819 = vmatprep.mubr.bf16.mxu1 %v2285_v63  ;;  %v8194_v53 = vld [vmem:[%s14325_s9 + $0x8] sm:$0xff]  }
 0x311   :  { %v7568_v58 = vpop.f32.mrf.mxu0  ;;  %v8557_v9 = vpop.eup %8556 }
 0x312   :  { %v2221_v61 = vadd.f32 %v7567_v42, %v11688_v20 }
 0x313   :  { %v7569_v52 = vpop.f32.mrf.mxu0 }
 0x314   :  { %v7570_v29 = vadd.f32 %v7569_v52, %v7568_v58  ;;  %8564 = vtanh.f32 %v2221_v61 }
 0x315   :  { %v8559_v38 = vpop.eup %8558  ;;  %v7571_v17 = vpop.f32.mrf.mxu0 }
 0x316   :  { %v2224_v24 = vadd.f32 %v7570_v29, %v11688_v20  ;;  %v2286_v11 = vpack.c.bf16 %v8559_v38, %v8557_v9 }
 0x317   :  { %v7572_v36 = vpop.f32.mrf.mxu0 }
 0x318   :  { %8566 = vtanh.f32 %v2224_v24  ;;  %v7573_v59 = vadd.f32 %v7572_v36, %v7571_v17  ;;  %7820 = vmatmul.mubr.bf16.gmra.mxu1 %v2286_v11 }
 0x319   :  { %v7574_v7 = vpop.f32.mrf.mxu0  ;;  %v8561_v48 = vpop.eup %8560 }
 0x31a   :  { %v2229_v8 = vadd.f32 %v7573_v59, %v11688_v20 }
 0x31b   :  { %v7575_v0 = vpop.f32.mrf.mxu0 }
 0x31c   :  { %v7576_v45 = vadd.f32 %v7575_v0, %v7574_v7  ;;  %8568 = vtanh.f32 %v2229_v8 }
 0x31d   :  { %v8563_v31 = vpop.eup %8562  ;;  %v7577_v37 = vpop.f32.mrf.mxu0 }
 0x31e   :  { %v2232_v44 = vadd.f32 %v7576_v45, %v11688_v20  ;;  %v2287_v13 = vpack.c.bf16 %v8563_v31, %v8561_v48 }
 0x31f   :  { %v7578_v40 = vpop.f32.mrf.mxu0 }
 0x320   :  { %8570 = vtanh.f32 %v2232_v44  ;;  %v7579_v50 = vadd.f32 %v7578_v40, %v7577_v37  ;;  %7823 = vmatprep.mubr.bf16.mxu1 %v2287_v13 }
 0x321   :  { %v7580_v33 = vpop.f32.mrf.mxu0  ;;  %v8565_v10 = vpop.eup %8564 }
 0x322   :  { %v2237_v6 = vadd.f32 %v7579_v50, %v11688_v20 }
 0x323   :  { %v7581_v21 = vpop.f32.mrf.mxu0 }
 0x324   :  { %v7582_v32 = vadd.f32 %v7581_v21, %v7580_v33  ;;  %8572 = vtanh.f32 %v2237_v6 }
 0x325   :  { %v8567_v49 = vpop.eup %8566 }
 0x326   :  { %v2240_v46 = vadd.f32 %v7582_v32, %v11688_v20  ;;  %v2288_v51 = vpack.c.bf16 %v8567_v49, %v8565_v10  ;;  %v8189_v20 = vld [vmem:[%s14325_s9 + $0x30] sm:$0xff]  }
 0x327   :  { %7873 = vmatprep.subr.bf16.mxu0 %v8189_v20 }
 0x328   :  { %8574 = vtanh.f32 %v2240_v46  ;;  %7824 = vmatmul.mubr.bf16.gmra.mxu1 %v2288_v51  ;;  %7874 = vmatpush3.bf16.msra.mxu0 %v8189_v20 }
 0x329   :  { %v8569_v60 = vpop.eup %8568  ;;  %7875 = vmatprep.subr.bf16.mxu0 %v8190_v1 }
 0x32c   :  { %7876 = vmatpush3.bf16.msra.mxu0 %v8190_v1 }
 0x32d   :  { %v8571_v34 = vpop.eup %8570  ;;  %7877 = vmatprep.subr.bf16.mxu0 %v8191_v55 }
 0x32e   :  { %v2289_v15 = vpack.c.bf16 %v8571_v34, %v8569_v60 }
 0x330   :  { %7827 = vmatprep.mubr.bf16.mxu1 %v2289_v15  ;;  %7878 = vmatpush3.bf16.msra.mxu0 %v8191_v55 }
 0x331   :  { %v8573_v25 = vpop.eup %8572  ;;  %7879 = vmatprep.subr.bf16.mxu0 %v8192_v56 }
 0x334   :  { %7880 = vmatpush3.bf16.msra.mxu0 %v8192_v56 }
 0x335   :  { %v8575_v62 = vpop.eup %8574  ;;  %7881 = vmatprep.subr.bf16.mxu0 %v8193_v57 }
 0x336   :  { %v2290_v43 = vpack.c.bf16 %v8575_v62, %v8573_v25 }
 0x338   :  { %7828 = vmatmul.mubr.bf16.gmra.mxu1 %v2290_v43  ;;  %7882 = vmatpush3.bf16.msra.mxu0 %v8193_v57 }
 0x339   :  { %7883 = vmatprep.subr.bf16.mxu0 %v8194_v53 }
 0x33c   :  { %7884 = vmatpush3.bf16.msra.mxu0 %v8194_v53 }
 0x388   :  { %v7801_v27 = vpop.f32.mrf.mxu1 }
 0x389   :  { %v2405_v2 = vadd.f32 %v7801_v27, %v11743_v41 }
 0x38a   :  { %v2396_v54 = vpop.f32.mrf.mxu1 }
 0x38b   :  { %v2397_v26 = vadd.f32 %v11743_v41, %v2396_v54 }
 0x38c   :  { %v7802_v4 = vpop.f32.mrf.mxu1 }
 0x38d   :  { %v2408_v47 = vadd.f32 %v7802_v4, %v11743_v41  ;;  %8576 = vtanh.f32 %v2397_v26 }
 0x38e   :  { %v2399_v18 = vpop.f32.mrf.mxu1 }
 0x38f   :  { %v2400_v3 = vadd.f32 %v11743_v41, %v2399_v18  ;;  %8578 = vtanh.f32 %v2408_v47 }
 0x391   :  { %8580 = vtanh.f32 %v2400_v3 }
 0x392   :  { %8582 = vtanh.f32 %v2405_v2 }
 0x398   :  { %v7805_v14 = vpop.f32.mrf.mxu1 }
 0x399   :  { %v2421_v16 = vadd.f32 %v7805_v14, %v11743_v41 }
 0x39a   :  { %v2412_v35 = vpop.f32.mrf.mxu1  ;;  %v8577_v28 = vpop.eup %8576 }
 0x39b   :  { %v2413_v23 = vadd.f32 %v11743_v41, %v2412_v35 }
 0x39c   :  { %v7806_v19 = vpop.f32.mrf.mxu1  ;;  %v8579_v39 = vpop.eup %8578 }
 0x39d   :  { %v2424_v5 = vadd.f32 %v7806_v19, %v11743_v41  ;;  %8584 = vtanh.f32 %v2413_v23 }
 0x39e   :  { %v8581_v22 = vpop.eup %8580  ;;  %v2415_v63 = vpop.f32.mrf.mxu1 }
 0x39f   :  { %v8583_v42 = vpop.eup %8582  ;;  %v2416_v58 = vadd.f32 %v11743_v41, %v2415_v63  ;;  %v2555_v61 = vpack.c.bf16 %v8581_v22, %v8577_v28  ;;  %8586 = vtanh.f32 %v2424_v5 }
 0x3a0   :  { %v2556_v52 = vpack.c.bf16 %v8579_v39, %v8583_v42 }
 0x3a1   :  { %8588 = vtanh.f32 %v2416_v58  ;;  %7839 = vmatprep.mubr.msk.bf16.mxu1 %vm2610_vm0, %v2555_v61 }
 0x3a2   :  { %8590 = vtanh.f32 %v2421_v16  ;;  %7840 = vmatmul.mubr.msk.bf16.vlgmr.msra.gmra.mxu1 %vm2610_vm0, %v2556_v52 }
 0x3a8   :  { %v7809_v9 = vpop.f32.mrf.mxu1 }
 0x3a9   :  { %v2437_v7 = vadd.f32 %v7809_v9, %v11743_v41 }
 0x3aa   :  { %v2428_v29 = vpop.f32.mrf.mxu1  ;;  %v8585_v17 = vpop.eup %8584 }
 0x3ab   :  { %v2429_v38 = vadd.f32 %v11743_v41, %v2428_v29 }
 0x3ac   :  { %v7810_v24 = vpop.f32.mrf.mxu1  ;;  %v8587_v11 = vpop.eup %8586 }
 0x3ad   :  { %v2440_v36 = vadd.f32 %v7810_v24, %v11743_v41  ;;  %8592 = vtanh.f32 %v2429_v38 }
 0x3ae   :  { %v8589_v59 = vpop.eup %8588  ;;  %v2431_v8 = vpop.f32.mrf.mxu1 }
 0x3af   :  { %v8591_v0 = vpop.eup %8590  ;;  %v2432_v48 = vadd.f32 %v11743_v41, %v2431_v8  ;;  %v2557_v45 = vpack.c.bf16 %v8589_v59, %v8585_v17  ;;  %8594 = vtanh.f32 %v2440_v36  ;;  %v8195_v59 = vld [vmem:[%s14325_s9] sm:$0xff]  }
 0x3b0   :  { %v2558_v30 = vpack.c.bf16 %v8587_v11, %v8591_v0  ;;  %7885 = vmatprep.subr.bf16.mxu0 %v8195_v59 }
 0x3b1   :  { %8596 = vtanh.f32 %v2432_v48  ;;  %7843 = vmatprep.mubr.msk.bf16.mxu1 %vm2610_vm0, %v2557_v45  ;;  %7886 = vmatpush3.bf16.msra.mxu0 %v8195_v59 }
 0x3b2   :  { %8598 = vtanh.f32 %v2437_v7  ;;  %7844 = vmatmul.mubr.msk.bf16.gmra.mxu1 %vm2610_vm0, %v2558_v30 }
 0x3b8   :  { %v7813_v31 = vpop.f32.mrf.mxu1 }
 0x3b9   :  { %v2453_v21 = vadd.f32 %v7813_v31, %v11743_v41 }
 0x3ba   :  { %v2444_v37 = vpop.f32.mrf.mxu1  ;;  %v8593_v13 = vpop.eup %8592 }
 0x3bb   :  { %v2445_v44 = vadd.f32 %v11743_v41, %v2444_v37 }
 0x3bc   :  { %v7814_v40 = vpop.f32.mrf.mxu1  ;;  %v8595_v50 = vpop.eup %8594 }
 0x3bd   :  { %v2456_v33 = vadd.f32 %v7814_v40, %v11743_v41  ;;  %8600 = vtanh.f32 %v2445_v44 }
 0x3be   :  { %v8597_v6 = vpop.eup %8596  ;;  %v2447_v10 = vpop.f32.mrf.mxu1 }
 0x3bf   :  { %v8599_v32 = vpop.eup %8598  ;;  %v2448_v49 = vadd.f32 %v11743_v41, %v2447_v10  ;;  %v2559_v46 = vpack.c.bf16 %v8597_v6, %v8593_v13  ;;  %8602 = vtanh.f32 %v2456_v33 }
 0x3c0   :  { %v2560_v51 = vpack.c.bf16 %v8595_v50, %v8599_v32 }
 0x3c1   :  { %8604 = vtanh.f32 %v2448_v49  ;;  %7847 = vmatprep.mubr.msk.bf16.mxu1 %vm2610_vm0, %v2559_v46 }
 0x3c2   :  { %8606 = vtanh.f32 %v2453_v21  ;;  %7848 = vmatmul.mubr.msk.bf16.gmra.mxu1 %vm2610_vm0, %v2560_v51 }
 0x3c8   :  { %v7817_v60 = vpop.f32.mrf.mxu1 }
 0x3c9   :  { %v2469_v27 = vadd.f32 %v7817_v60, %v11743_v41 }
 0x3ca   :  { %v2460_v34 = vpop.f32.mrf.mxu1  ;;  %v8601_v25 = vpop.eup %8600 }
 0x3cb   :  { %v2461_v15 = vadd.f32 %v11743_v41, %v2460_v34 }
 0x3cc   :  { %v7818_v62 = vpop.f32.mrf.mxu1  ;;  %v8603_v43 = vpop.eup %8602 }
 0x3cd   :  { %v2472_v12 = vadd.f32 %v7818_v62, %v11743_v41  ;;  %8608 = vtanh.f32 %v2461_v15 }
 0x3ce   :  { %v8605_v20 = vpop.eup %8604  ;;  %v2463_v54 = vpop.f32.mrf.mxu1 }
 0x3cf   :  { %v8607_v26 = vpop.eup %8606  ;;  %v2464_v4 = vadd.f32 %v11743_v41, %v2463_v54  ;;  %v2561_v47 = vpack.c.bf16 %v8605_v20, %v8601_v25  ;;  %8610 = vtanh.f32 %v2472_v12  ;;  %v8197_v54 = vld [vmem:[%s14328_s11 + $0x10] sm:$0xff]  }
 0x3d0   :  { %v2562_v2 = vpack.c.bf16 %v8603_v43, %v8607_v26  ;;  %v8198_v26 = vld [vmem:[%s14328_s11 + $0x8] sm:$0xff]  }
 0x3d1   :  { %8612 = vtanh.f32 %v2464_v4  ;;  %7851 = vmatprep.mubr.msk.bf16.mxu1 %vm2610_vm0, %v2561_v47 }
 0x3d2   :  { %8614 = vtanh.f32 %v2469_v27  ;;  %7852 = vmatmul.mubr.msk.bf16.gmra.mxu1 %vm2610_vm0, %v2562_v2  ;;  %v8196_v27 = vld [vmem:[%s14328_s11 + $0x18] sm:$0xff]  }
 0x3d3   :  { %7919 = vmatprep.subr.bf16.mxu1 %v8196_v27 }
 0x3d4   :  { %7920 = vmatpush3.bf16.msra.mxu1 %v8196_v27 }
 0x3d5   :  { %7921 = vmatprep.subr.bf16.mxu1 %v8197_v54 }
 0x3d8   :  { %v7821_v18 = vpop.f32.mrf.mxu1  ;;  %7922 = vmatpush3.bf16.msra.mxu1 %v8197_v54 }
 0x3d9   :  { %v2485_v23 = vadd.f32 %v7821_v18, %v11743_v41  ;;  %7923 = vmatprep.subr.bf16.mxu1 %v8198_v26 }
 0x3da   :  { %v2476_v3 = vpop.f32.mrf.mxu1  ;;  %v8609_v55 = vpop.eup %8608 }
 0x3db   :  { %v2477_v1 = vadd.f32 %v11743_v41, %v2476_v3 }
 0x3dc   :  { %v7822_v56 = vpop.f32.mrf.mxu1  ;;  %v8611_v14 = vpop.eup %8610  ;;  %7924 = vmatpush3.bf16.msra.mxu1 %v8198_v26 }
 0x3dd   :  { %v2488_v35 = vadd.f32 %v7822_v56, %v11743_v41  ;;  %8616 = vtanh.f32 %v2477_v1 }
 0x3de   :  { %v8613_v57 = vpop.eup %8612  ;;  %v2479_v28 = vpop.f32.mrf.mxu1 }
 0x3df   :  { %v8615_v19 = vpop.eup %8614  ;;  %v2480_v39 = vadd.f32 %v11743_v41, %v2479_v28  ;;  %v2563_v5 = vpack.c.bf16 %v8613_v57, %v8609_v55  ;;  %8618 = vtanh.f32 %v2488_v35 }
 0x3e0   :  { %v2564_v22 = vpack.c.bf16 %v8611_v14, %v8615_v19 }
 0x3e1   :  { %8620 = vtanh.f32 %v2480_v39  ;;  %7855 = vmatprep.mubr.msk.bf16.mxu1 %vm2610_vm0, %v2563_v5 }
 0x3e2   :  { %8622 = vtanh.f32 %v2485_v23  ;;  %7856 = vmatmul.mubr.msk.bf16.gmra.mxu1 %vm2610_vm0, %v2564_v22 }
 0x3e8   :  { %v7825_v16 = vpop.f32.mrf.mxu1 }
 0x3e9   :  { %v2501_v29 = vadd.f32 %v7825_v16, %v11743_v41 }
 0x3ea   :  { %v2492_v63 = vpop.f32.mrf.mxu1  ;;  %v8617_v42 = vpop.eup %8616 }
 0x3eb   :  { %v2493_v53 = vadd.f32 %v11743_v41, %v2492_v63 }
 0x3ec   :  { %v7826_v58 = vpop.f32.mrf.mxu1  ;;  %v8619_v61 = vpop.eup %8618 }
 0x3ed   :  { %v2504_v52 = vadd.f32 %v7826_v58, %v11743_v41  ;;  %8624 = vtanh.f32 %v2493_v53 }
 0x3ee   :  { %v8621_v9 = vpop.eup %8620  ;;  %v2495_v38 = vpop.f32.mrf.mxu1 }
 0x3ef   :  { %v8623_v17 = vpop.eup %8622  ;;  %v2496_v24 = vadd.f32 %v11743_v41, %v2495_v38  ;;  %v2565_v11 = vpack.c.bf16 %v8621_v9, %v8617_v42  ;;  %8626 = vtanh.f32 %v2504_v52 }
 0x3f0   :  { %v2566_v36 = vpack.c.bf16 %v8619_v61, %v8623_v17 }
 0x3f1   :  { %8628 = vtanh.f32 %v2496_v24  ;;  %7859 = vmatprep.mubr.msk.bf16.mxu1 %vm2610_vm0, %v2565_v11 }
 0x3f2   :  { %8630 = vtanh.f32 %v2501_v29  ;;  %7860 = vmatmul.mubr.msk.bf16.gmra.mxu1 %vm2610_vm0, %v2566_v36 }
 0x3f8   :  { %v7829_v7 = vpop.f32.mrf.mxu1 }
 0x3f9   :  { %v2517_v44 = vadd.f32 %v7829_v7, %v11743_v41 }
 0x3fa   :  { %v2508_v8 = vpop.f32.mrf.mxu1  ;;  %v8625_v48 = vpop.eup %8624 }
 0x3fb   :  { %v2509_v0 = vadd.f32 %v11743_v41, %v2508_v8 }
 0x3fc   :  { %v7830_v45 = vpop.f32.mrf.mxu1  ;;  %v8627_v30 = vpop.eup %8626 }
 0x3fd   :  { %v2520_v31 = vadd.f32 %v7830_v45, %v11743_v41  ;;  %8632 = vtanh.f32 %v2509_v0 }
 0x3fe   :  { %v8629_v37 = vpop.eup %8628  ;;  %v2511_v13 = vpop.f32.mrf.mxu1 }
 0x3ff   :  { %v8631_v40 = vpop.eup %8630  ;;  %v2512_v50 = vadd.f32 %v11743_v41, %v2511_v13  ;;  %v2567_v33 = vpack.c.bf16 %v8629_v37, %v8625_v48  ;;  %8634 = vtanh.f32 %v2520_v31  ;;  %v11814_v41 = vld [vmem:[%s14327_s8] ss:$0 sm:$0xff] }
 0x400   :  { %v2568_v6 = vpack.c.bf16 %v8627_v30, %v8631_v40 }
 0x401   :  { %8636 = vtanh.f32 %v2512_v50  ;;  %7863 = vmatprep.mubr.msk.bf16.mxu1 %vm2610_vm0, %v2567_v33 }
 0x402   :  { %8638 = vtanh.f32 %v2517_v44  ;;  %7864 = vmatmul.mubr.msk.bf16.gmra.mxu1 %vm2610_vm0, %v2568_v6 }
 0x40a   :  { %v8633_v21 = vpop.eup %8632 }
 0x40c   :  { %v8635_v10 = vpop.eup %8634 }
 0x40e   :  { %v8637_v32 = vpop.eup %8636 }
 0x40f   :  { %v8639_v49 = vpop.eup %8638  ;;  %v2569_v46 = vpack.c.bf16 %v8637_v32, %v8633_v21 }
 0x410   :  { %v2570_v51 = vpack.c.bf16 %v8635_v10, %v8639_v49 }
 0x411   :  { %7867 = vmatprep.mubr.msk.bf16.mxu1 %vm2610_vm0, %v2569_v46 }
 0x412   :  { %7868 = vmatmul.mubr.msk.bf16.gmra.mxu1 %vm2610_vm0, %v2570_v51 }
 0x462   :  { %v7841_v60 = vpop.f32.mrf.mxu1 }
 0x463   :  { %v2702_v34 = vadd.f32 %v7841_v60, %v11814_v41 }
 0x464   :  { %v2693_v15 = vpop.f32.mrf.mxu1 }
 0x465   :  { %8640 = vtanh.f32 %v2702_v34  ;;  %v2694_v25 = vadd.f32 %v11814_v41, %v2693_v15 }
 0x466   :  { %v7842_v62 = vpop.f32.mrf.mxu1 }
 0x467   :  { %8642 = vtanh.f32 %v2694_v25  ;;  %v2705_v43 = vadd.f32 %v7842_v62, %v11814_v41 }
 0x468   :  { %v2696_v12 = vpop.f32.mrf.mxu1 }
 0x469   :  { %8644 = vtanh.f32 %v2705_v43  ;;  %v2697_v20 = vadd.f32 %v11814_v41, %v2696_v12 }
 0x46b   :  { %8646 = vtanh.f32 %v2697_v20 }
 0x472   :  { %v8641_v4 = vpop.eup %8640  ;;  %v7845_v47 = vpop.f32.mrf.mxu1 }
 0x473   :  { %2854 = vst [vmem:[%s14329_s18 + $0x10] sm:$0xff] %v8641_v4  ;;  %v2718_v2 = vadd.f32 %v7845_v47, %v11814_v41 }
 0x474   :  { %v8643_v18 = vpop.eup %8642  ;;  %v2709_v3 = vpop.f32.mrf.mxu1 }
 0x475   :  { %2852 = vst [vmem:[%s14329_s18] sm:$0xff] %v8643_v18  ;;  %8648 = vtanh.f32 %v2718_v2  ;;  %v2710_v1 = vadd.f32 %v11814_v41, %v2709_v3 }
 0x476   :  { %v8645_v55 = vpop.eup %8644  ;;  %v7846_v56 = vpop.f32.mrf.mxu1 }
 0x477   :  { %2855 = vst [vmem:[%s14329_s18 + $0x18] sm:$0xff] %v8645_v55  ;;  %8650 = vtanh.f32 %v2710_v1  ;;  %v2721_v14 = vadd.f32 %v7846_v56, %v11814_v41  ;;  %v2885_v19 = vpack.c.bf16 %v8645_v55, %v8641_v4 }
 0x478   :  { %v8647_v35 = vpop.eup %8646  ;;  %v2712_v57 = vpop.f32.mrf.mxu1 }
 0x479   :  { %2853 = vst [vmem:[%s14329_s18 + $0x8] sm:$0xff] %v8647_v35  ;;  %8652 = vtanh.f32 %v2721_v14  ;;  %v2713_v23 = vadd.f32 %v11814_v41, %v2712_v57  ;;  %v2884_v28 = vpack.c.bf16 %v8647_v35, %v8643_v18 }
 0x47b   :  { %8654 = vtanh.f32 %v2713_v23  ;;  %7887 = vmatprep.mubr.bf16.mxu0 %v2884_v28 }
 0x47c   :  { %7888 = vmatmul.mubr.bf16.vlgmr.msra.gmra.mxu0 %v2885_v19 }
 0x482   :  { %v8649_v39 = vpop.eup %8648  ;;  %v7849_v5 = vpop.f32.mrf.mxu1 }
 0x483   :  { %2858 = vst [vmem:[%s14329_s18 + $0x30] sm:$0xff] %v8649_v39  ;;  %v2734_v22 = vadd.f32 %v7849_v5, %v11814_v41 }
 0x484   :  { %v8651_v16 = vpop.eup %8650  ;;  %v2725_v63 = vpop.f32.mrf.mxu1 }
 0x485   :  { %2856 = vst [vmem:[%s14329_s18 + $0x20] sm:$0xff] %v8651_v16  ;;  %8656 = vtanh.f32 %v2734_v22  ;;  %v2726_v53 = vadd.f32 %v11814_v41, %v2725_v63 }
 0x486   :  { %v8653_v42 = vpop.eup %8652  ;;  %v7850_v58 = vpop.f32.mrf.mxu1 }
 0x487   :  { %2859 = vst [vmem:[%s14329_s18 + $0x38] sm:$0xff] %v8653_v42  ;;  %8658 = vtanh.f32 %v2726_v53  ;;  %v2737_v61 = vadd.f32 %v7850_v58, %v11814_v41  ;;  %v2887_v17 = vpack.c.bf16 %v8653_v42, %v8649_v39  ;;  %v8199_v58 = vld [vmem:[%s14328_s11] sm:$0xff]  }
 0x488   :  { %v8655_v52 = vpop.eup %8654  ;;  %v2728_v9 = vpop.f32.mrf.mxu1  ;;  %7925 = vmatprep.subr.bf16.mxu1 %v8199_v58 }
 0x489   :  { %2857 = vst [vmem:[%s14329_s18 + $0x28] sm:$0xff] %v8655_v52  ;;  %8660 = vtanh.f32 %v2737_v61  ;;  %v2729_v29 = vadd.f32 %v11814_v41, %v2728_v9  ;;  %v2886_v38 = vpack.c.bf16 %v8655_v52, %v8651_v16  ;;  %7926 = vmatpush3.bf16.msra.mxu1 %v8199_v58 }
 0x48b   :  { %8662 = vtanh.f32 %v2729_v29  ;;  %7891 = vmatprep.mubr.bf16.mxu0 %v2886_v38 }
 0x48c   :  { %7892 = vmatmul.mubr.bf16.gmra.mxu0 %v2887_v17 }
 0x492   :  { %v8657_v24 = vpop.eup %8656  ;;  %v7853_v11 = vpop.f32.mrf.mxu1 }
 0x493   :  { %2862 = vst [vmem:[%s14329_s18 + $0x50] sm:$0xff] %v8657_v24  ;;  %v2750_v36 = vadd.f32 %v7853_v11, %v11814_v41 }
 0x494   :  { %v8659_v59 = vpop.eup %8658  ;;  %v2741_v7 = vpop.f32.mrf.mxu1 }
 0x495   :  { %2860 = vst [vmem:[%s14329_s18 + $0x40] sm:$0xff] %v8659_v59  ;;  %8664 = vtanh.f32 %v2750_v36  ;;  %v2742_v8 = vadd.f32 %v11814_v41, %v2741_v7 }
 0x496   :  { %v8661_v0 = vpop.eup %8660  ;;  %v7854_v48 = vpop.f32.mrf.mxu1 }
 0x497   :  { %2863 = vst [vmem:[%s14329_s18 + $0x58] sm:$0xff] %v8661_v0  ;;  %8666 = vtanh.f32 %v2742_v8  ;;  %v2753_v45 = vadd.f32 %v7854_v48, %v11814_v41  ;;  %v2889_v13 = vpack.c.bf16 %v8661_v0, %v8657_v24 }
 0x498   :  { %v8663_v30 = vpop.eup %8662  ;;  %v2744_v31 = vpop.f32.mrf.mxu1 }
 0x499   :  { %2861 = vst [vmem:[%s14329_s18 + $0x48] sm:$0xff] %v8663_v30  ;;  %8668 = vtanh.f32 %v2753_v45  ;;  %v2745_v37 = vadd.f32 %v11814_v41, %v2744_v31  ;;  %v2888_v44 = vpack.c.bf16 %v8663_v30, %v8659_v59 }
 0x49b   :  { %8670 = vtanh.f32 %v2745_v37  ;;  %7895 = vmatprep.mubr.bf16.mxu0 %v2888_v44 }
 0x49c   :  { %7896 = vmatmul.mubr.bf16.gmra.mxu0 %v2889_v13  ;;  %v14499_v13 = vmov 0  }
 0x4a2   :  { %v8665_v40 = vpop.eup %8664  ;;  %v7857_v50 = vpop.f32.mrf.mxu1 }
 0x4a3   :  { %2866 = vst [vmem:[%s14329_s18 + $0x70] sm:$0xff] %v8665_v40  ;;  %v2766_v33 = vadd.f32 %v7857_v50, %v11814_v41  ;;  %v11960_v50 = vld [vmem:[%s14330_s10] ss:$0 sm:$0xff] }
 0x4a4   :  { %v8667_v6 = vpop.eup %8666  ;;  %v2757_v21 = vpop.f32.mrf.mxu1 }
 0x4a5   :  { %2864 = vst [vmem:[%s14329_s18 + $0x60] sm:$0xff] %v8667_v6  ;;  %8672 = vtanh.f32 %v2766_v33  ;;  %v2758_v10 = vadd.f32 %v11814_v41, %v2757_v21 }
 0x4a6   :  { %v8669_v32 = vpop.eup %8668  ;;  %v7858_v49 = vpop.f32.mrf.mxu1 }
 0x4a7   :  { %2867 = vst [vmem:[%s14329_s18 + $0x78] sm:$0xff] %v8669_v32  ;;  %8674 = vtanh.f32 %v2758_v10  ;;  %v2769_v46 = vadd.f32 %v7858_v49, %v11814_v41  ;;  %v2891_v25 = vpack.c.bf16 %v8669_v32, %v8665_v40 }
 0x4a8   :  { %v8671_v51 = vpop.eup %8670  ;;  %v2760_v60 = vpop.f32.mrf.mxu1 }
 0x4a9   :  { %2865 = vst [vmem:[%s14329_s18 + $0x68] sm:$0xff] %v8671_v51  ;;  %8676 = vtanh.f32 %v2769_v46  ;;  %v2761_v34 = vadd.f32 %v11814_v41, %v2760_v60  ;;  %v2890_v15 = vpack.c.bf16 %v8671_v51, %v8667_v6  ;;  %v8200_v51 = vld [vmem:[%s14331_s13 + $0x70] ss:$8 sps:$4 sm:$0xff]   ;;  %v8202_v60 = vld [vmem:[%s14331_s13 + $0x74] ss:$8 sps:$4 sm:$0xff]  }
 0x4aa   :  { %3584 = vmatprep.subr.bf16.mxu0 %v8202_v60 }
 0x4ab   :  { %8678 = vtanh.f32 %v2761_v34  ;;  %7899 = vmatprep.mubr.bf16.mxu0 %v2890_v15  ;;  %v8205_v34 = vld [vmem:[%s14331_s13 + $0x64] ss:$8 sps:$4 sm:$0xff]   ;;  %3585 = vmatpush1.bf16.msra.mxu0 %v8200_v51  ;;  %v8203_v15 = vld [vmem:[%s14331_s13 + $0x60] ss:$8 sps:$4 sm:$0xff]  }
 0x4ac   :  { %7900 = vmatmul.mubr.bf16.gmra.mxu0 %v2891_v25  ;;  %3586 = vmatprep.subr.bf16.mxu0 %v8205_v34 }
 0x4af   :  { %3587 = vmatpush1.bf16.msra.mxu0 %v8203_v15 }
 0x4b2   :  { %v8673_v62 = vpop.eup %8672  ;;  %v7861_v43 = vpop.f32.mrf.mxu1 }
 0x4b3   :  { %2870 = vst [vmem:[%s14329_s18 + $0x90] sm:$0xff] %v8673_v62  ;;  %v2782_v12 = vadd.f32 %v7861_v43, %v11814_v41 }
 0x4b4   :  { %v8675_v20 = vpop.eup %8674  ;;  %v2773_v27 = vpop.f32.mrf.mxu1 }
 0x4b5   :  { %2868 = vst [vmem:[%s14329_s18 + $0x80] sm:$0xff] %v8675_v20  ;;  %8680 = vtanh.f32 %v2782_v12  ;;  %v2774_v54 = vadd.f32 %v11814_v41, %v2773_v27 }
 0x4b6   :  { %v8677_v26 = vpop.eup %8676  ;;  %v7862_v4 = vpop.f32.mrf.mxu1 }
 0x4b7   :  { %2871 = vst [vmem:[%s14329_s18 + $0x98] sm:$0xff] %v8677_v26  ;;  %8682 = vtanh.f32 %v2774_v54  ;;  %v2785_v47 = vadd.f32 %v7862_v4, %v11814_v41  ;;  %v2893_v55 = vpack.c.bf16 %v8677_v26, %v8673_v62  ;;  %v8208_v62 = vld [vmem:[%s14331_s13 + $0x54] ss:$8 sps:$4 sm:$0xff]   ;;  %v8211_v26 = vld [vmem:[%s14331_s13 + $0x44] ss:$8 sps:$4 sm:$0xff]  }
 0x4b8   :  { %v8679_v2 = vpop.eup %8678  ;;  %v2776_v18 = vpop.f32.mrf.mxu1  ;;  %3588 = vmatprep.subr.bf16.mxu0 %v8208_v62 }
 0x4b9   :  { %2869 = vst [vmem:[%s14329_s18 + $0x88] sm:$0xff] %v8679_v2  ;;  %8684 = vtanh.f32 %v2785_v47  ;;  %v2777_v3 = vadd.f32 %v11814_v41, %v2776_v18  ;;  %v2892_v1 = vpack.c.bf16 %v8679_v2, %v8675_v20  ;;  %v8206_v20 = vld [vmem:[%s14331_s13 + $0x50] ss:$8 sps:$4 sm:$0xff]  }
 0x4ba   :  { %3589 = vmatpush1.bf16.msra.mxu0 %v8206_v20 }
 0x4bb   :  { %8686 = vtanh.f32 %v2777_v3  ;;  %7903 = vmatprep.mubr.bf16.mxu0 %v2892_v1  ;;  %3590 = vmatprep.subr.bf16.mxu0 %v8211_v26 }
 0x4bc   :  { %7904 = vmatmul.mubr.bf16.gmra.mxu0 %v2893_v55 }
 0x4c2   :  { %v8681_v56 = vpop.eup %8680  ;;  %v7865_v14 = vpop.f32.mrf.mxu1 }
 0x4c3   :  { %2874 = vst [vmem:[%s14329_s18 + $0xb0] sm:$0xff] %v8681_v56  ;;  %v2798_v35 = vadd.f32 %v7865_v14, %v11814_v41  ;;  %v8209_v14 = vld [vmem:[%s14331_s13 + $0x40] ss:$8 sps:$4 sm:$0xff]  }
 0x4c4   :  { %v8683_v57 = vpop.eup %8682  ;;  %v2789_v23 = vpop.f32.mrf.mxu1  ;;  %3591 = vmatpush1.bf16.msra.mxu0 %v8209_v14 }
 0x4c5   :  { %2872 = vst [vmem:[%s14329_s18 + $0xa0] sm:$0xff] %v8683_v57  ;;  %8688 = vtanh.f32 %v2798_v35  ;;  %v2790_v28 = vadd.f32 %v11814_v41, %v2789_v23  ;;  %v8212_v23 = vld [vmem:[%s14331_s13 + $0x30] ss:$8 sps:$4 sm:$0xff]  }
 0x4c6   :  { %v8685_v19 = vpop.eup %8684  ;;  %v7866_v39 = vpop.f32.mrf.mxu1 }
 0x4c7   :  { %2875 = vst [vmem:[%s14329_s18 + $0xb8] sm:$0xff] %v8685_v19  ;;  %8690 = vtanh.f32 %v2790_v28  ;;  %v2801_v5 = vadd.f32 %v7866_v39, %v11814_v41  ;;  %v2895_v42 = vpack.c.bf16 %v8685_v19, %v8681_v56 }
 0x4c8   :  { %v8687_v22 = vpop.eup %8686  ;;  %v2792_v16 = vpop.f32.mrf.mxu1 }
 0x4c9   :  { %2873 = vst [vmem:[%s14329_s18 + $0xa8] sm:$0xff] %v8687_v22  ;;  %8692 = vtanh.f32 %v2801_v5  ;;  %v2793_v63 = vadd.f32 %v11814_v41, %v2792_v16  ;;  %v2894_v53 = vpack.c.bf16 %v8687_v22, %v8683_v57  ;;  %v8214_v57 = vld [vmem:[%s14331_s13 + $0x34] ss:$8 sps:$4 sm:$0xff]  }
 0x4ca   :  { %3592 = vmatprep.subr.bf16.mxu0 %v8214_v57 }
 0x4cb   :  { %8694 = vtanh.f32 %v2793_v63  ;;  %7907 = vmatprep.mubr.bf16.mxu0 %v2894_v53  ;;  %3593 = vmatpush1.bf16.msra.mxu0 %v8212_v23 }
 0x4cc   :  { %7908 = vmatmul.mubr.bf16.gmra.mxu0 %v2895_v42 }
 0x4d2   :  { %v8689_v61 = vpop.eup %8688  ;;  %v7869_v52 = vpop.f32.mrf.mxu1 }
 0x4d3   :  { %2878 = vst [vmem:[%s14329_s18 + $0xd0] sm:$0xff] %v8689_v61  ;;  %v2814_v9 = vadd.f32 %v7869_v52, %v11814_v41 }
 0x4d4   :  { %v8691_v29 = vpop.eup %8690  ;;  %v2805_v38 = vpop.f32.mrf.mxu1 }
 0x4d5   :  { %2876 = vst [vmem:[%s14329_s18 + $0xc0] sm:$0xff] %v8691_v29  ;;  %8696 = vtanh.f32 %v2814_v9  ;;  %v2806_v17 = vadd.f32 %v11814_v41, %v2805_v38 }
 0x4d6   :  { %v8693_v24 = vpop.eup %8692  ;;  %v7870_v11 = vpop.f32.mrf.mxu1 }
 0x4d7   :  { %2879 = vst [vmem:[%s14329_s18 + $0xd8] sm:$0xff] %v8693_v24  ;;  %8698 = vtanh.f32 %v2806_v17  ;;  %v2817_v36 = vadd.f32 %v7870_v11, %v11814_v41  ;;  %v2897_v48 = vpack.c.bf16 %v8693_v24, %v8689_v61 }
 0x4d8   :  { %v8695_v59 = vpop.eup %8694  ;;  %v2808_v7 = vpop.f32.mrf.mxu1 }
 0x4d9   :  { %2877 = vst [vmem:[%s14329_s18 + $0xc8] sm:$0xff] %v8695_v59  ;;  %8700 = vtanh.f32 %v2817_v36  ;;  %v2809_v8 = vadd.f32 %v11814_v41, %v2808_v7  ;;  %v2896_v0 = vpack.c.bf16 %v8695_v59, %v8691_v29 }
 0x4db   :  { %8702 = vtanh.f32 %v2809_v8  ;;  %7911 = vmatprep.mubr.bf16.mxu0 %v2896_v0 }
 0x4dc   :  { %7912 = vmatmul.mubr.bf16.gmra.mxu0 %v2897_v48 }
 0x4e2   :  { %v8697_v45 = vpop.eup %8696 }
 0x4e3   :  { %2882 = vst [vmem:[%s14329_s18 + $0xf0] sm:$0xff] %v8697_v45 }
 0x4e4   :  { %v8699_v30 = vpop.eup %8698 }
 0x4e5   :  { %2880 = vst [vmem:[%s14329_s18 + $0xe0] sm:$0xff] %v8699_v30 }
 0x4e6   :  { %v8701_v31 = vpop.eup %8700 }
 0x4e7   :  { %2883 = vst [vmem:[%s14329_s18 + $0xf8] sm:$0xff] %v8701_v31  ;;  %v2899_v44 = vpack.c.bf16 %v8701_v31, %v8697_v45 }
 0x4e8   :  { %v8703_v41 = vpop.eup %8702 }
 0x4e9   :  { %2881 = vst [vmem:[%s14329_s18 + $0xe8] sm:$0xff] %v8703_v41  ;;  %v2898_v37 = vpack.c.bf16 %v8703_v41, %v8699_v30 }
 0x4eb   :  { %7915 = vmatprep.mubr.bf16.mxu0 %v2898_v37 }
 0x4ec   :  { %7916 = vmatmul.mubr.bf16.gmra.mxu0 %v2899_v44 }
 0x4ed   :  { %3616 = vmatprep.mubr.bf16.mxu0 %v14499_v13 }
 0x53c   :  { %v7889_v40 = vpop.f32.mrf.mxu0 }
 0x53d   :  { %v3014_v32 = vadd.f32 %v7889_v40, %v11960_v50 }
 0x53e   :  { %v3005_v33 = vpop.f32.mrf.mxu0 }
 0x53f   :  { %v3006_v6 = vadd.f32 %v11960_v50, %v3005_v33 }
 0x540   :  { %v7890_v21 = vpop.f32.mrf.mxu0 }
 0x541   :  { %v3017_v10 = vadd.f32 %v7890_v21, %v11960_v50  ;;  %8704 = vtanh.f32 %v3006_v6 }
 0x542   :  { %v3008_v49 = vpop.f32.mrf.mxu0 }
 0x543   :  { %v3009_v46 = vadd.f32 %v11960_v50, %v3008_v49  ;;  %8706 = vtanh.f32 %v3017_v10 }
 0x545   :  { %8708 = vtanh.f32 %v3009_v46 }
 0x546   :  { %8710 = vtanh.f32 %v3014_v32 }
 0x54c   :  { %v7893_v25 = vpop.f32.mrf.mxu0 }
 0x54d   :  { %v3030_v18 = vadd.f32 %v7893_v25, %v11960_v50 }
 0x54e   :  { %v3021_v43 = vpop.f32.mrf.mxu0  ;;  %v8705_v27 = vpop.eup %8704 }
 0x54f   :  { %v3022_v12 = vadd.f32 %v11960_v50, %v3021_v43 }
 0x550   :  { %v7894_v54 = vpop.f32.mrf.mxu0  ;;  %v8707_v4 = vpop.eup %8706 }
 0x551   :  { %v3033_v47 = vadd.f32 %v7894_v54, %v11960_v50  ;;  %8712 = vtanh.f32 %v3022_v12 }
 0x552   :  { %v8709_v2 = vpop.eup %8708  ;;  %v3024_v3 = vpop.f32.mrf.mxu0 }
 0x553   :  { %v8711_v1 = vpop.eup %8710  ;;  %v3025_v55 = vadd.f32 %v11960_v50, %v3024_v3  ;;  %v3164_v56 = vpack.c.bf16 %v8709_v2, %v8705_v27  ;;  %8714 = vtanh.f32 %v3033_v47 }
 0x554   :  { %v3165_v35 = vpack.c.bf16 %v8707_v4, %v8711_v1 }
 0x555   :  { %8716 = vtanh.f32 %v3025_v55  ;;  %7927 = vmatprep.mubr.msk.bf16.mxu1 %vm2610_vm0, %v3164_v56  ;;  %v8215_v55 = vld [vmem:[%s14331_s13 + $0x20] ss:$8 sps:$4 sm:$0xff]   ;;  %v8217_v56 = vld [vmem:[%s14331_s13 + $0x24] ss:$8 sps:$4 sm:$0xff]  }
 0x556   :  { %8718 = vtanh.f32 %v3030_v18  ;;  %7928 = vmatmul.mubr.msk.bf16.vlgmr.msra.gmra.mxu1 %vm2610_vm0, %v3165_v35  ;;  %3594 = vmatprep.subr.bf16.mxu0 %v8217_v56  ;;  %v8254_v56 = vld [vmem:[%s14332_s15 + $0x150] ss:$28 sps:$4 sm:$0xff]  }
 0x557   :  { %3595 = vmatpush1.bf16.msra.mxu0 %v8215_v55  ;;  %v8229_v55 = vld [vmem:[%s14332_s15 + $0x15c] ss:$28 sps:$4 sm:$0xff]  }
 0x55c   :  { %v7897_v28 = vpop.f32.mrf.mxu0 }
 0x55d   :  { %v3046_v42 = vadd.f32 %v7897_v28, %v11960_v50 }
 0x55e   :  { %v3037_v19 = vpop.f32.mrf.mxu0  ;;  %v8713_v5 = vpop.eup %8712 }
 0x55f   :  { %v3038_v39 = vadd.f32 %v11960_v50, %v3037_v19 }
 0x560   :  { %v7898_v22 = vpop.f32.mrf.mxu0  ;;  %v8715_v16 = vpop.eup %8714 }
 0x561   :  { %v3049_v63 = vadd.f32 %v7898_v22, %v11960_v50  ;;  %8720 = vtanh.f32 %v3038_v39 }
 0x562   :  { %v8717_v53 = vpop.eup %8716  ;;  %v3040_v58 = vpop.f32.mrf.mxu0 }
 0x563   :  { %v8719_v61 = vpop.eup %8718  ;;  %v3041_v52 = vadd.f32 %v11960_v50, %v3040_v58  ;;  %v3166_v9 = vpack.c.bf16 %v8717_v53, %v8713_v5  ;;  %8722 = vtanh.f32 %v3049_v63 }
 0x564   :  { %v3167_v29 = vpack.c.bf16 %v8715_v16, %v8719_v61  ;;  %v8220_v61 = vld [vmem:[%s14331_s13 + $0x14] ss:$8 sps:$4 sm:$0xff]  }
 0x565   :  { %8724 = vtanh.f32 %v3041_v52  ;;  %7931 = vmatprep.mubr.msk.bf16.mxu1 %vm2610_vm0, %v3166_v9  ;;  %v8218_v52 = vld [vmem:[%s14331_s13 + $0x10] ss:$8 sps:$4 sm:$0xff]   ;;  %3596 = vmatprep.subr.bf16.mxu0 %v8220_v61  ;;  %v8223_v9 = vld [vmem:[%s14331_s13 + $0x4] ss:$8 sps:$4 sm:$0xff]  }
 0x566   :  { %8726 = vtanh.f32 %v3046_v42  ;;  %7932 = vmatmul.mubr.msk.bf16.gmra.mxu1 %vm2610_vm0, %v3167_v29  ;;  %3597 = vmatpush1.bf16.msra.mxu0 %v8218_v52  ;;  %v8221_v29 = vld [vmem:[%s14331_s13] ss:$8 sps:$4 sm:$0xff]  }
 0x567   :  { %3598 = vmatprep.subr.bf16.mxu0 %v8223_v9  ;;  %v8233_v52 = vld [vmem:[%s14332_s15 + $0xe8] ss:$28 sps:$4 sm:$0xff]   ;;  %v8238_v9 = vld [vmem:[%s14332_s15 + $0xb4] ss:$28 sps:$4 sm:$0xff]  }
 0x56a   :  { %3599 = vmatpush1.bf16.msra.mxu0 %v8221_v29  ;;  %v8266_v29 = vld [vmem:[%s14332_s15 + $0xa8] ss:$28 sps:$4 sm:$0xff]  }
 0x56c   :  { %v7901_v38 = vpop.f32.mrf.mxu0 }
 0x56d   :  { %v3062_v0 = vadd.f32 %v7901_v38, %v11960_v50 }
 0x56e   :  { %v3053_v17 = vpop.f32.mrf.mxu0  ;;  %v8721_v11 = vpop.eup %8720 }
 0x56f   :  { %v3054_v24 = vadd.f32 %v11960_v50, %v3053_v17 }
 0x570   :  { %v7902_v36 = vpop.f32.mrf.mxu0  ;;  %v8723_v59 = vpop.eup %8722 }
 0x571   :  { %v3065_v7 = vadd.f32 %v7902_v36, %v11960_v50  ;;  %8728 = vtanh.f32 %v3054_v24 }
 0x572   :  { %v8725_v8 = vpop.eup %8724  ;;  %v3056_v48 = vpop.f32.mrf.mxu0 }
 0x573   :  { %v8727_v45 = vpop.eup %8726  ;;  %v3057_v30 = vadd.f32 %v11960_v50, %v3056_v48  ;;  %v3168_v31 = vpack.c.bf16 %v8725_v8, %v8721_v11  ;;  %8730 = vtanh.f32 %v3065_v7 }
 0x574   :  { %v3169_v41 = vpack.c.bf16 %v8723_v59, %v8727_v45 }
 0x575   :  { %8732 = vtanh.f32 %v3057_v30  ;;  %7935 = vmatprep.mubr.msk.bf16.mxu1 %vm2610_vm0, %v3168_v31 }
 0x576   :  { %8734 = vtanh.f32 %v3062_v0  ;;  %7936 = vmatmul.mubr.msk.bf16.gmra.mxu1 %vm2610_vm0, %v3169_v41 }
 0x57c   :  { %v7905_v37 = vpop.f32.mrf.mxu0 }
 0x57d   :  { %v3078_v49 = vadd.f32 %v7905_v37, %v11960_v50 }
 0x57e   :  { %v3069_v44 = vpop.f32.mrf.mxu0  ;;  %v8729_v33 = vpop.eup %8728 }
 0x57f   :  { %v3070_v40 = vadd.f32 %v11960_v50, %v3069_v44 }
 0x580   :  { %v7906_v6 = vpop.f32.mrf.mxu0  ;;  %v8731_v21 = vpop.eup %8730 }
 0x581   :  { %v3081_v10 = vadd.f32 %v7906_v6, %v11960_v50  ;;  %8736 = vtanh.f32 %v3070_v40 }
 0x582   :  { %v8733_v32 = vpop.eup %8732  ;;  %v3072_v46 = vpop.f32.mrf.mxu0 }
 0x583   :  { %v8735_v51 = vpop.eup %8734  ;;  %v3073_v60 = vadd.f32 %v11960_v50, %v3072_v46  ;;  %v3170_v34 = vpack.c.bf16 %v8733_v32, %v8729_v33  ;;  %8738 = vtanh.f32 %v3081_v10  ;;  %v12064_v32 = vld [vmem:[%s14333_s12] ss:$0 sm:$0xff] }
 0x584   :  { %v3171_v15 = vpack.c.bf16 %v8731_v21, %v8735_v51 }
 0x585   :  { %8740 = vtanh.f32 %v3073_v60  ;;  %7939 = vmatprep.mubr.msk.bf16.mxu1 %vm2610_vm0, %v3170_v34 }
 0x586   :  { %8742 = vtanh.f32 %v3078_v49  ;;  %7940 = vmatmul.mubr.msk.bf16.gmra.mxu1 %vm2610_vm0, %v3171_v15 }
 0x58c   :  { %v7909_v25 = vpop.f32.mrf.mxu0 }
 0x58d   :  { %v3094_v4 = vadd.f32 %v7909_v25, %v11960_v50 }
 0x58e   :  { %v3085_v62 = vpop.f32.mrf.mxu0  ;;  %v8737_v12 = vpop.eup %8736 }
 0x58f   :  { %v3086_v43 = vadd.f32 %v11960_v50, %v3085_v62 }
 0x590   :  { %v7910_v20 = vpop.f32.mrf.mxu0  ;;  %v8739_v27 = vpop.eup %8738 }
 0x591   :  { %v3097_v54 = vadd.f32 %v7910_v20, %v11960_v50  ;;  %8744 = vtanh.f32 %v3086_v43 }
 0x592   :  { %v8741_v26 = vpop.eup %8740  ;;  %v3088_v47 = vpop.f32.mrf.mxu0 }
 0x593   :  { %v8743_v2 = vpop.eup %8742  ;;  %v3089_v18 = vadd.f32 %v11960_v50, %v3088_v47  ;;  %v3172_v3 = vpack.c.bf16 %v8741_v26, %v8737_v12  ;;  %8746 = vtanh.f32 %v3097_v54  ;;  %v8248_v12 = vld [vmem:[%s14332_s15 + $0x188] ss:$28 sps:$4 sm:$0xff]  }
 0x594   :  { %v3173_v1 = vpack.c.bf16 %v8739_v27, %v8743_v2  ;;  %v8250_v54 = vld [vmem:[%s14332_s15 + $0x18c] ss:$28 sps:$4 sm:$0xff]  }
 0x595   :  { %8748 = vtanh.f32 %v3089_v18  ;;  %7943 = vmatprep.mubr.msk.bf16.mxu1 %vm2610_vm0, %v3172_v3  ;;  %v8224_v18 = vld [vmem:[%s14332_s15 + $0x190] ss:$28 sps:$4 sm:$0xff]   ;;  %4614 = vmatprep.subr.bf16.mxu1 %v8250_v54 }
 0x596   :  { %8750 = vtanh.f32 %v3094_v4  ;;  %7944 = vmatmul.mubr.msk.bf16.gmra.mxu1 %vm2610_vm0, %v3173_v1  ;;  %v8256_v4 = vld [vmem:[%s14332_s15 + $0x154] ss:$28 sps:$4 sm:$0xff]  }
 0x597   :  { %4615 = vmatpush1.bf16.msra.mxu1 %v8248_v12 }
 0x598   :  { %4616 = vmatprep.subr.bf16.mxu1 %v8256_v4 }
 0x59b   :  { %4617 = vmatpush1.bf16.msra.mxu1 %v8254_v56 }
 0x59c   :  { %v7913_v14 = vpop.f32.mrf.mxu0 }
 0x59d   :  { %v3110_v22 = vadd.f32 %v7913_v14, %v11960_v50  ;;  %v8259_v14 = vld [vmem:[%s14332_s15 + $0x11c] ss:$28 sps:$4 sm:$0xff]  }
 0x59e   :  { %v3101_v35 = vpop.f32.mrf.mxu0  ;;  %v8745_v23 = vpop.eup %8744  ;;  %4618 = vmatprep.subr.bf16.mxu1 %v8259_v14  ;;  %v8271_v14 = vld [vmem:[%s14332_s15 + $0x2e4] ss:$28 sps:$4 sm:$0xff]  }
 0x59f   :  { %v3102_v57 = vadd.f32 %v11960_v50, %v3101_v35  ;;  %v8227_v35 = vld [vmem:[%s14332_s15 + $0x158] ss:$28 sps:$4 sm:$0xff]  }
 0x5a0   :  { %v7914_v28 = vpop.f32.mrf.mxu0  ;;  %v8747_v19 = vpop.eup %8746 }
 0x5a1   :  { %v3113_v39 = vadd.f32 %v7914_v28, %v11960_v50  ;;  %8752 = vtanh.f32 %v3102_v57  ;;  %v8257_v28 = vld [vmem:[%s14332_s15 + $0x118] ss:$28 sps:$4 sm:$0xff]  }
 0x5a2   :  { %v8749_v5 = vpop.eup %8748  ;;  %v3104_v16 = vpop.f32.mrf.mxu0  ;;  %4619 = vmatpush1.bf16.msra.mxu1 %v8257_v28  ;;  %v8269_v28 = vld [vmem:[%s14332_s15 + $0x2e0] ss:$28 sps:$4 sm:$0xff]  }
 0x5a3   :  { %v8751_v63 = vpop.eup %8750  ;;  %v3105_v53 = vadd.f32 %v11960_v50, %v3104_v16  ;;  %v3174_v42 = vpack.c.bf16 %v8749_v5, %v8745_v23  ;;  %8754 = vtanh.f32 %v3113_v39  ;;  %v8232_v23 = vld [vmem:[%s14332_s15 + $0x124] ss:$28 sps:$4 sm:$0xff]   ;;  %v8235_v16 = vld [vmem:[%s14332_s15 + $0xec] ss:$28 sps:$4 sm:$0xff]  }
 0x5a4   :  { %v3175_v58 = vpack.c.bf16 %v8747_v19, %v8751_v63  ;;  %v8265_v39 = vld [vmem:[%s14332_s15 + $0xe4] ss:$28 sps:$4 sm:$0xff]  }
 0x5a5   :  { %8756 = vtanh.f32 %v3105_v53  ;;  %7947 = vmatprep.mubr.msk.bf16.mxu1 %vm2610_vm0, %v3174_v42  ;;  %v8263_v63 = vld [vmem:[%s14332_s15 + $0xe0] ss:$28 sps:$4 sm:$0xff]   ;;  %v8268_v42 = vld [vmem:[%s14332_s15 + $0xac] ss:$28 sps:$4 sm:$0xff]   ;;  %4620 = vmatprep.subr.bf16.mxu1 %v8265_v39 }
 0x5a6   :  { %8758 = vtanh.f32 %v3110_v22  ;;  %7948 = vmatmul.mubr.msk.bf16.gmra.mxu1 %vm2610_vm0, %v3175_v58  ;;  %v8230_v22 = vld [vmem:[%s14332_s15 + $0x120] ss:$28 sps:$4 sm:$0xff]   ;;  %v8280_v39 = vld [vmem:[%s14332_s15 + $0x2ac] ss:$28 sps:$4 sm:$0xff]  }
 0x5a7   :  { %4621 = vmatpush1.bf16.msra.mxu1 %v8263_v63  ;;  %v8289_v63 = vld [vmem:[%s14332_s15 + $0x274] ss:$28 sps:$4 sm:$0xff]  }
 0x5a8   :  { %4622 = vmatprep.subr.bf16.mxu1 %v8268_v42 }
 0x5ab   :  { %4623 = vmatpush1.bf16.msra.mxu1 %v8266_v29 }
 0x5ac   :  { %v7917_v38 = vpop.f32.mrf.mxu0 }
 0x5ad   :  { %v3126_v0 = vadd.f32 %v7917_v38, %v11960_v50 }
 0x5ae   :  { %v3117_v17 = vpop.f32.mrf.mxu0  ;;  %v8753_v11 = vpop.eup %8752 }
 0x5af   :  { %v3118_v24 = vadd.f32 %v11960_v50, %v3117_v17  ;;  %v8274_v17 = vld [vmem:[%s14332_s15 + $0x74] ss:$28 sps:$4 sm:$0xff]  }
 0x5b0   :  { %v7918_v36 = vpop.f32.mrf.mxu0  ;;  %v8755_v59 = vpop.eup %8754  ;;  %4624 = vmatprep.subr.bf16.mxu1 %v8274_v17 }
 0x5b1   :  { %v3129_v7 = vadd.f32 %v7918_v36, %v11960_v50  ;;  %8760 = vtanh.f32 %v3118_v24  ;;  %v8236_v36 = vld [vmem:[%s14332_s15 + $0xb0] ss:$28 sps:$4 sm:$0xff]  }
 0x5b2   :  { %v8757_v8 = vpop.eup %8756  ;;  %v3120_v48 = vpop.f32.mrf.mxu0 }
 0x5b3   :  { %v8759_v45 = vpop.eup %8758  ;;  %v3121_v30 = vadd.f32 %v11960_v50, %v3120_v48  ;;  %v3176_v31 = vpack.c.bf16 %v8757_v8, %v8753_v11  ;;  %8762 = vtanh.f32 %v3129_v7  ;;  %v8226_v50 = vld [vmem:[%s14332_s15 + $0x194] ss:$28 sps:$4 sm:$0xff]   ;;  %v8241_v7 = vld [vmem:[%s14332_s15 + $0x7c] ss:$28 sps:$4 sm:$0xff]  }
 0x5b4   :  { %v3177_v41 = vpack.c.bf16 %v8755_v59, %v8759_v45  ;;  %4807 = vmatprep.subr.bf16.mxu0 %v8226_v50  ;;  %v8272_v8 = vld [vmem:[%s14332_s15 + $0x70] ss:$28 sps:$4 sm:$0xff]   ;;  %v8277_v45 = vld [vmem:[%s14332_s15 + $0x3c] ss:$28 sps:$4 sm:$0xff]  }
 0x5b5   :  { %8764 = vtanh.f32 %v3121_v30  ;;  %7951 = vmatprep.mubr.msk.bf16.mxu1 %vm2610_vm0, %v3176_v31  ;;  %4625 = vmatpush1.bf16.msra.mxu1 %v8272_v8 }
 0x5b6   :  { %8766 = vtanh.f32 %v3126_v0  ;;  %7952 = vmatmul.mubr.msk.bf16.gmra.mxu1 %vm2610_vm0, %v3177_v41  ;;  %v8239_v41 = vld [vmem:[%s14332_s15 + $0x78] ss:$28 sps:$4 sm:$0xff]   ;;  %4626 = vmatprep.subr.bf16.mxu1 %v8277_v45 }
 0x5be   :  { %v8761_v37 = vpop.eup %8760 }
 0x5c0   :  { %v8763_v44 = vpop.eup %8762 }
 0x5c2   :  { %v8765_v40 = vpop.eup %8764 }
 0x5c3   :  { %v8767_v33 = vpop.eup %8766  ;;  %v3178_v6 = vpack.c.bf16 %v8765_v40, %v8761_v37  ;;  %v8244_v37 = vld [vmem:[%s14332_s15 + $0x44] ss:$28 sps:$4 sm:$0xff]  }
 0x5c4   :  { %v3179_v21 = vpack.c.bf16 %v8763_v44, %v8767_v33  ;;  %v8275_v44 = vld [vmem:[%s14332_s15 + $0x38] ss:$28 sps:$4 sm:$0xff]   ;;  %v8283_v40 = vld [vmem:[%s14332_s15 + $0x4] ss:$28 sps:$4 sm:$0xff]  }
 0x5c5   :  { %7955 = vmatprep.mubr.msk.bf16.mxu1 %vm2610_vm0, %v3178_v6  ;;  %4627 = vmatpush1.bf16.msra.mxu1 %v8275_v44  ;;  %v8295_v44 = vld [vmem:[%s14332_s15 + $0x2dc] ss:$28 sps:$4 sm:$0xff]  }
 0x5c6   :  { %7956 = vmatmul.mubr.msk.bf16.gmra.mxu1 %vm2610_vm0, %v3179_v21  ;;  %v8242_v21 = vld [vmem:[%s14332_s15 + $0x40] ss:$28 sps:$4 sm:$0xff]   ;;  %4628 = vmatprep.subr.bf16.mxu1 %v8283_v40  ;;  %v8293_v40 = vld [vmem:[%s14332_s15 + $0x2d8] ss:$28 sps:$4 sm:$0xff]  }
 0x616   :  { %v7929_v10 = vpop.f32.mrf.mxu1 }
 0x617   :  { %v3310_v25 = vadd.f32 %v7929_v10, %v12064_v32  ;;  %v8247_v10 = vld [vmem:[%s14332_s15 + $0xc] ss:$28 sps:$4 sm:$0xff]  }
 0x618   :  { %v3301_v49 = vpop.f32.mrf.mxu1 }
 0x619   :  { %v3302_v46 = vadd.f32 %v12064_v32, %v3301_v49  ;;  %v8281_v49 = vld [vmem:[%s14332_s15] ss:$28 sps:$4 sm:$0xff]  }
 0x61a   :  { %v7930_v51 = vpop.f32.mrf.mxu1  ;;  %4629 = vmatpush1.bf16.msra.mxu1 %v8281_v49  ;;  %v8296_v49 = vld [vmem:[%s14332_s15 + $0x238] ss:$28 sps:$4 sm:$0xff]  }
 0x61b   :  { %8768 = vtanh.f32 %v3302_v46  ;;  %v3313_v15 = vadd.f32 %v7930_v51, %v12064_v32 }
 0x61c   :  { %v3304_v60 = vpop.f32.mrf.mxu1 }
 0x61d   :  { %v3305_v34 = vadd.f32 %v12064_v32, %v3304_v60 }
 0x61f   :  { %8770 = vtanh.f32 %v3305_v34  ;;  %v8286_v34 = vld [vmem:[%s14332_s15 + $0x34c] ss:$28 sps:$4 sm:$0xff]  }
 0x620   :  { %8772 = vtanh.f32 %v3313_v15  ;;  %4630 = vmatprep.subr.bf16.mxu1 %v8286_v34 }
 0x621   :  { %8774 = vtanh.f32 %v3310_v25  ;;  %v8245_v25 = vld [vmem:[%s14332_s15 + $0x8] ss:$28 sps:$4 sm:$0xff]  }
 0x626   :  { %v7933_v62 = vpop.f32.mrf.mxu1 }
 0x627   :  { %v3326_v5 = vadd.f32 %v7933_v62, %v12064_v32  ;;  %v8253_v62 = vld [vmem:[%s14332_s15 + $0x354] ss:$28 sps:$4 sm:$0xff]  }
 0x628   :  { %v3317_v43 = vpop.f32.mrf.mxu1  ;;  %v8769_v26 = vpop.eup %8768 }
 0x629   :  { %v3318_v20 = vadd.f32 %v12064_v32, %v3317_v43  ;;  %v8284_v43 = vld [vmem:[%s14332_s15 + $0x348] ss:$28 sps:$4 sm:$0xff]  }
 0x62a   :  { %v7934_v27 = vpop.f32.mrf.mxu1  ;;  %4631 = vmatpush2.bf16.msra.mxu1 %v8284_v43 }
 0x62b   :  { %8776 = vtanh.f32 %v3318_v20  ;;  %v3329_v57 = vadd.f32 %v7934_v27, %v12064_v32  ;;  %v8292_v27 = vld [vmem:[%s14332_s15 + $0x314] ss:$28 sps:$4 sm:$0xff]  }
 0x62c   :  { %v8771_v47 = vpop.eup %8770  ;;  %v3320_v2 = vpop.f32.mrf.mxu1  ;;  %4632 = vmatprep.subr.bf16.mxu1 %v8292_v27  ;;  %v8310_v27 = vld [vmem:[%s14332_s15 + $0x234] ss:$28 sps:$4 sm:$0xff]  }
 0x62d   :  { %v3460_v3 = vpack.c.bf16 %v8771_v47, %v8769_v26  ;;  %v3321_v1 = vadd.f32 %v12064_v32, %v3320_v2  ;;  %v8773_v19 = vpop.eup %8772  ;;  %v8251_v47 = vld [vmem:[%s14332_s15 + $0x350] ss:$28 sps:$4 sm:$0xff]  }
 0x62e   :  { %v8775_v53 = vpop.eup %8774 }
 0x62f   :  { %8778 = vtanh.f32 %v3321_v1  ;;  %3617 = vmatmul.mubr.bf16.vlgmr.msra.gmra.mxu0 %v3460_v3  ;;  %v3461_v58 = vpack.c.bf16 %v8773_v19, %v8775_v53  ;;  %v8262_v3 = vld [vmem:[%s14332_s15 + $0x31c] ss:$28 sps:$4 sm:$0xff]   ;;  %v8290_v1 = vld [vmem:[%s14332_s15 + $0x310] ss:$28 sps:$4 sm:$0xff]  }
 0x630   :  { %3626 = vmatprep.mubr.bf16.mxu0 %v14499_v13  ;;  %4808 = vmatpush1.bf16.msra.mxu0 %v8224_v18  ;;  %8780 = vtanh.f32 %v3329_v57 }
 0x631   :  { %4809 = vmatprep.subr.bf16.mxu0 %v8229_v55  ;;  %8782 = vtanh.f32 %v3326_v5  ;;  %v8260_v55 = vld [vmem:[%s14332_s15 + $0x318] ss:$28 sps:$4 sm:$0xff]   ;;  %4633 = vmatpush2.bf16.msra.mxu1 %v8290_v1  ;;  %v8305_v1 = vld [vmem:[%s14332_s15 + $0x200] ss:$28 sps:$4 sm:$0xff]  }
 0x632   :  { %4634 = vmatprep.subr.bf16.mxu1 %v8295_v44  ;;  %v14501_v44 = vld [vmem:[#allocation3_spill] sm:$0xff] }
 0x634   :  { %4810 = vmatpush1.bf16.msra.mxu0 %v8227_v35 }
 0x635   :  { %4811 = vmatprep.subr.bf16.mxu0 %v8232_v23  ;;  %4635 = vmatpush2.bf16.msra.mxu1 %v8293_v40 }
 0x636   :  { %v7937_v61 = vpop.f32.mrf.mxu1 }
 0x637   :  { %3627 = vmatmul.mubr.bf16.gmra.mxu0 %v3461_v58  ;;  %v3342_v50 = vadd.f32 %v7937_v61, %v12064_v32 }
 0x638   :  { %v3333_v38 = vpop.f32.mrf.mxu1  ;;  %3636 = vmatprep.mubr.bf16.mxu0 %v14499_v13  ;;  %4812 = vmatpush1.bf16.msra.mxu0 %v8230_v22  ;;  %v8777_v59 = vpop.eup %8776 }
 0x639   :  { %4813 = vmatprep.subr.bf16.mxu0 %v8235_v16  ;;  %v3334_v24 = vadd.f32 %v12064_v32, %v3333_v38  ;;  %v8278_v16 = vld [vmem:[%s14332_s15 + $0x2a8] ss:$28 sps:$4 sm:$0xff]  }
 0x63a   :  { %v7938_v11 = vpop.f32.mrf.mxu1 }
 0x63b   :  { %8784 = vtanh.f32 %v3334_v24  ;;  %v3345_v33 = vadd.f32 %v7938_v11, %v12064_v32 }
 0x63c   :  { %v8779_v0 = vpop.eup %8778  ;;  %v3336_v48 = vpop.f32.mrf.mxu1  ;;  %4814 = vmatpush1.bf16.msra.mxu0 %v8233_v52 }
 0x63d   :  { %v3337_v30 = vadd.f32 %v12064_v32, %v3336_v48  ;;  %v3462_v31 = vpack.c.bf16 %v8779_v0, %v8777_v59  ;;  %4815 = vmatprep.subr.bf16.mxu0 %v8238_v9  ;;  %v8781_v6 = vpop.eup %8780  ;;  %v8287_v9 = vld [vmem:[%s14332_s15 + $0x270] ss:$28 sps:$4 sm:$0xff]  }
 0x63e   :  { %v8783_v46 = vpop.eup %8782 }
 0x63f   :  { %8786 = vtanh.f32 %v3337_v30  ;;  %3637 = vmatmul.mubr.bf16.gmra.mxu0 %v3462_v31  ;;  %v3463_v51 = vpack.c.bf16 %v8781_v6, %v8783_v46  ;;  %v8298_v46 = vld [vmem:[%s14332_s15 + $0x23c] ss:$28 sps:$4 sm:$0xff]  }
 0x640   :  { %3646 = vmatprep.mubr.bf16.mxu0 %v14499_v13  ;;  %4816 = vmatpush1.bf16.msra.mxu0 %v8236_v36  ;;  %8788 = vtanh.f32 %v3345_v33 }
 0x641   :  { %4817 = vmatprep.subr.bf16.mxu0 %v8241_v7  ;;  %8790 = vtanh.f32 %v3342_v50  ;;  %v8301_v50 = vld [vmem:[%s14332_s15 + $0x2a4] ss:$28 sps:$4 sm:$0xff]  }
 0x642   :  { %4636 = vmatprep.subr.bf16.mxu1 %v8301_v50 }
 0x644   :  { %4818 = vmatpush1.bf16.msra.mxu0 %v8239_v41 }
 0x645   :  { %4819 = vmatprep.subr.bf16.mxu0 %v8244_v37 }
 0x646   :  { %v7941_v60 = vpop.f32.mrf.mxu1 }
 0x647   :  { %3647 = vmatmul.mubr.bf16.gmra.mxu0 %v3463_v51  ;;  %v3358_v57 = vadd.f32 %v7941_v60, %v12064_v32  ;;  %v8299_v51 = vld [vmem:[%s14332_s15 + $0x2a0] ss:$28 sps:$4 sm:$0xff]  }
 0x648   :  { %v3349_v15 = vpop.f32.mrf.mxu1  ;;  %3656 = vmatprep.mubr.bf16.mxu0 %v14499_v13  ;;  %4820 = vmatpush1.bf16.msra.mxu0 %v8242_v21  ;;  %v8785_v54 = vpop.eup %8784 }
 0x649   :  { %4821 = vmatprep.subr.bf16.mxu0 %v8247_v10  ;;  %v3350_v12 = vadd.f32 %v12064_v32, %v3349_v15  ;;  %4637 = vmatpush2.bf16.msra.mxu1 %v8299_v51  ;;  %v8304_v15 = vld [vmem:[%s14332_s15 + $0x26c] ss:$28 sps:$4 sm:$0xff]  }
 0x64a   :  { %v7942_v20 = vpop.f32.mrf.mxu1  ;;  %4638 = vmatprep.subr.bf16.mxu1 %v8304_v15 }
 0x64b   :  { %8792 = vtanh.f32 %v3350_v12  ;;  %v3361_v56 = vadd.f32 %v7942_v20, %v12064_v32 }
 0x64c   :  { %v8787_v26 = vpop.eup %8786  ;;  %v3352_v4 = vpop.f32.mrf.mxu1  ;;  %4822 = vmatpush1.bf16.msra.mxu0 %v8245_v25 }
 0x64d   :  { %v3353_v2 = vadd.f32 %v12064_v32, %v3352_v4  ;;  %v3464_v18 = vpack.c.bf16 %v8787_v26, %v8785_v54  ;;  %4823 = vmatprep.subr.bf16.mxu0 %v8253_v62  ;;  %v8789_v35 = vpop.eup %8788  ;;  %v8302_v62 = vld [vmem:[%s14332_s15 + $0x268] ss:$28 sps:$4 sm:$0xff]   ;;  %v8308_v4 = vld [vmem:[%s14332_s15 + $0x230] ss:$28 sps:$4 sm:$0xff]  }
 0x64e   :  { %v8791_v23 = vpop.eup %8790  ;;  %4639 = vmatpush2.bf16.msra.mxu1 %v8302_v62 }
 0x64f   :  { %8794 = vtanh.f32 %v3353_v2  ;;  %3657 = vmatmul.mubr.bf16.gmra.mxu0 %v3464_v18  ;;  %v3465_v19 = vpack.c.bf16 %v8789_v35, %v8791_v23  ;;  %4640 = vmatprep.subr.bf16.mxu1 %v8310_v27  ;;  %v8307_v18 = vld [vmem:[%s14332_s15 + $0x204] ss:$28 sps:$4 sm:$0xff]  }
 0x650   :  { %3666 = vmatprep.mubr.bf16.mxu0 %v14499_v13  ;;  %4824 = vmatpush2.bf16.msra.mxu0 %v8251_v47  ;;  %8796 = vtanh.f32 %v3361_v56  ;;  %v8319_v23 = vld [vmem:[%s14332_s15 + $0x1c4] ss:$28 sps:$4 sm:$0xff]  }
 0x651   :  { %4825 = vmatprep.subr.bf16.mxu0 %v8262_v3  ;;  %8798 = vtanh.f32 %v3358_v57  ;;  %v8313_v3 = vld [vmem:[%s14332_s15 + $0x1fc] ss:$28 sps:$4 sm:$0xff]   ;;  %v8316_v57 = vld [vmem:[%s14332_s15 + $0x1cc] ss:$28 sps:$4 sm:$0xff]  }
 0x652   :  { %4641 = vmatpush2.bf16.msra.mxu1 %v8308_v4 }
 0x653   :  { %4642 = vmatprep.subr.bf16.mxu1 %v8313_v3 }
 0x654   :  { %4826 = vmatpush2.bf16.msra.mxu0 %v8260_v55  ;;  %v8311_v55 = vld [vmem:[%s14332_s15 + $0x1f8] ss:$28 sps:$4 sm:$0xff]  }
 0x655   :  { %4827 = vmatprep.subr.bf16.mxu0 %v8271_v14 }
 0x656   :  { %v7945_v5 = vpop.f32.mrf.mxu1  ;;  %4643 = vmatpush2.bf16.msra.mxu1 %v8311_v55 }
 0x657   :  { %3667 = vmatmul.mubr.bf16.gmra.mxu0 %v3465_v19  ;;  %v3374_v11 = vadd.f32 %v7945_v5, %v12064_v32  ;;  %v8314_v19 = vld [vmem:[%s14332_s15 + $0x1c8] ss:$28 sps:$4 sm:$0xff]   ;;  %4644 = vmatprep.subr.bf16.mxu1 %v8319_v23 }
 0x658   :  { %v3365_v22 = vpop.f32.mrf.mxu1  ;;  %3676 = vmatprep.mubr.bf16.mxu0 %v14499_v13  ;;  %4828 = vmatpush2.bf16.msra.mxu0 %v8269_v28  ;;  %v8793_v58 = vpop.eup %8792 }
 0x659   :  { %4829 = vmatprep.subr.bf16.mxu0 %v8280_v39  ;;  %v3366_v53 = vadd.f32 %v12064_v32, %v3365_v22  ;;  %v8317_v39 = vld [vmem:[%s14332_s15 + $0x1c0] ss:$28 sps:$4 sm:$0xff]  }
 0x65a   :  { %v7946_v42 = vpop.f32.mrf.mxu1  ;;  %4645 = vmatpush2.bf16.msra.mxu1 %v8317_v39 }
 0x65b   :  { %8800 = vtanh.f32 %v3366_v53  ;;  %v3377_v17 = vadd.f32 %v7946_v42, %v12064_v32 }
 0x65c   :  { %v8795_v61 = vpop.eup %8794  ;;  %v3368_v52 = vpop.f32.mrf.mxu1  ;;  %4830 = vmatpush2.bf16.msra.mxu0 %v8278_v16 }
 0x65d   :  { %v3369_v29 = vadd.f32 %v12064_v32, %v3368_v52  ;;  %v3466_v38 = vpack.c.bf16 %v8795_v61, %v8793_v58  ;;  %4831 = vmatprep.subr.bf16.mxu0 %v8289_v63  ;;  %v8797_v24 = vpop.eup %8796  ;;  %v8320_v52 = vld [vmem:[%s14332_s15 + $0x360] ss:$28 sps:$4 sm:$0xff]  }
 0x65e   :  { %v8799_v36 = vpop.eup %8798 }
 0x65f   :  { %8802 = vtanh.f32 %v3369_v29  ;;  %3677 = vmatmul.mubr.bf16.gmra.mxu0 %v3466_v38  ;;  %v3467_v59 = vpack.c.bf16 %v8797_v24, %v8799_v36  ;;  %v8324_v38 = vld [vmem:[%s14332_s15 + $0x19c] ss:$28 sps:$4 sm:$0xff]  }
 0x660   :  { %3686 = vmatprep.mubr.bf16.mxu0 %v14499_v13  ;;  %4832 = vmatpush2.bf16.msra.mxu0 %v8287_v9  ;;  %8804 = vtanh.f32 %v3377_v17 }
 0x661   :  { %8806 = vtanh.f32 %v3374_v11  ;;  %4833 = vmatprep.subr.bf16.mxu0 %v8298_v46  ;;  %5000 = vmatprep.subr.bf16.mxu1 %v8324_v38 }
 0x664   :  { %4834 = vmatpush2.bf16.msra.mxu0 %v8296_v49 }
 0x665   :  { %4835 = vmatprep.subr.bf16.mxu0 %v8307_v18 }
 0x666   :  { %v7949_v7 = vpop.f32.mrf.mxu1 }
 0x667   :  { %3687 = vmatmul.mubr.bf16.gmra.mxu0 %v3467_v59  ;;  %v3390_v21 = vadd.f32 %v7949_v7, %v12064_v32 }
 0x668   :  { %v3381_v8 = vpop.f32.mrf.mxu1  ;;  %3696 = vmatprep.mubr.bf16.mxu0 %v14499_v13  ;;  %v8801_v45 = vpop.eup %8800  ;;  %4836 = vmatpush2.bf16.msra.mxu0 %v8305_v1 }
 0x669   :  { %v3382_v0 = vadd.f32 %v12064_v32, %v3381_v8  ;;  %4837 = vmatprep.subr.bf16.mxu0 %v8316_v57 }
 0x66a   :  { %v7950_v48 = vpop.f32.mrf.mxu1 }
 0x66b   :  { %8808 = vtanh.f32 %v3382_v0  ;;  %v3393_v33 = vadd.f32 %v7950_v48, %v12064_v32 }
 0x66c   :  { %v8803_v30 = vpop.eup %8802  ;;  %v3384_v31 = vpop.f32.mrf.mxu1  ;;  %4838 = vmatpush2.bf16.msra.mxu0 %v8314_v19  ;;  %v8328_v19 = vld [vmem:[%s14332_s15 + $0x328] ss:$28 sps:$4 sm:$0xff]  }
 0x66d   :  { %v3385_v41 = vadd.f32 %v12064_v32, %v3384_v31  ;;  %v3468_v37 = vpack.c.bf16 %v8803_v30, %v8801_v45  ;;  %v8805_v6 = vpop.eup %8804  ;;  %7671 = vmatprep.subr.bf16.mxu0 %v8320_v52  ;;  %v14500_v31 = vld [vmem:[#allocation4_spill] sm:$0xff] }
 0x66e   :  { %v8807_v10 = vpop.eup %8806 }
 0x66f   :  { %8810 = vtanh.f32 %v3385_v41  ;;  %3697 = vmatmul.mubr.bf16.gmra.mxu0 %v3468_v37  ;;  %v3469_v60 = vpack.c.bf16 %v8805_v6, %v8807_v10 }
 0x670   :  { %3706 = vmatprep.mubr.bf16.mxu0 %v14499_v13  ;;  %8812 = vtanh.f32 %v3393_v33 }
 0x671   :  { %8814 = vtanh.f32 %v3390_v21 }
 0x676   :  { %v7953_v34 = vpop.f32.mrf.mxu1 }
 0x677   :  { %3707 = vmatmul.mubr.bf16.gmra.mxu0 %v3469_v60  ;;  %v3406_v35 = vadd.f32 %v7953_v34, %v12064_v32 }
 0x678   :  { %v3397_v25 = vpop.f32.mrf.mxu1  ;;  %3716 = vmatprep.mubr.bf16.mxu0 %v14499_v13  ;;  %v8809_v20 = vpop.eup %8808 }
 0x679   :  { %v3398_v43 = vadd.f32 %v12064_v32, %v3397_v25 }
 0x67a   :  { %v7954_v12 = vpop.f32.mrf.mxu1 }
 0x67b   :  { %8816 = vtanh.f32 %v3398_v43  ;;  %v3409_v56 = vadd.f32 %v7954_v12, %v12064_v32 }
 0x67c   :  { %v8811_v54 = vpop.eup %8810  ;;  %v3400_v26 = vpop.f32.mrf.mxu1 }
 0x67d   :  { %v3401_v47 = vadd.f32 %v12064_v32, %v3400_v26  ;;  %v3470_v2 = vpack.c.bf16 %v8811_v54, %v8809_v20  ;;  %v8813_v14 = vpop.eup %8812 }
 0x67e   :  { %v8815_v28 = vpop.eup %8814 }
 0x67f   :  { %8818 = vtanh.f32 %v3401_v47  ;;  %3717 = vmatmul.mubr.bf16.gmra.mxu0 %v3470_v2  ;;  %v3471_v5 = vpack.c.bf16 %v8813_v14, %v8815_v28  ;;  %v8321_v14 = vld [vmem:[%s14332_s15 + $0x1a0] ss:$28 sps:$4 sm:$0xff]  }
 0x680   :  { %3726 = vmatprep.mubr.bf16.mxu0 %v14499_v13  ;;  %8820 = vtanh.f32 %v3409_v56  ;;  %v8327_v28 = vld [vmem:[%s14332_s15 + $0x164] ss:$28 sps:$4 sm:$0xff]  }
 0x681   :  { %8822 = vtanh.f32 %v3406_v35  ;;  %v8322_v35 = vld [vmem:[%s14332_s15 + $0x198] ss:$28 sps:$4 sm:$0xff]  }
 0x686   :  { %v7957_v22 = vpop.f32.mrf.mxu1 }
 0x687   :  { %3727 = vmatmul.mubr.bf16.gmra.mxu0 %v3471_v5  ;;  %v3422_v11 = vadd.f32 %v7957_v22, %v12064_v32  ;;  %v8325_v22 = vld [vmem:[%s14332_s15 + $0x160] ss:$28 sps:$4 sm:$0xff]  }
 0x688   :  { %v3413_v16 = vpop.f32.mrf.mxu1  ;;  %3736 = vmatprep.mubr.bf16.mxu0 %v14499_v13  ;;  %v8817_v42 = vpop.eup %8816 }
 0x689   :  { %v3414_v63 = vadd.f32 %v12064_v32, %v3413_v16  ;;  %v8329_v16 = vld [vmem:[%s14332_s15 + $0x168] ss:$28 sps:$4 sm:$0xff]  }
 0x68a   :  { %v7958_v53 = vpop.f32.mrf.mxu1 }
 0x68b   :  { %8824 = vtanh.f32 %v3414_v63  ;;  %v3425_v17 = vadd.f32 %v7958_v53, %v12064_v32 }
 0x68c   :  { %v8819_v58 = vpop.eup %8818  ;;  %v3416_v61 = vpop.f32.mrf.mxu1 }
 0x68d   :  { %v3417_v9 = vadd.f32 %v12064_v32, %v3416_v61  ;;  %v3472_v29 = vpack.c.bf16 %v8819_v58, %v8817_v42  ;;  %v8821_v24 = vpop.eup %8820  ;;  %v3492_v32 = vld [vmem:[%s14334_s14] sm:$0x3]  ;;  %v8332_v42 = vld [vmem:[%s14332_s15 + $0x12c] ss:$28 sps:$4 sm:$0xff]  }
 0x68e   :  { %v8823_v36 = vpop.eup %8822  ;;  %v12312_v41 = vrot.slane %v3492_v32, %v14500_v31  ;;  %v12315_v40 = vrot.slane %v3492_v32, %v14501_v44  ;;  %v8336_v58 = vld [vmem:[%s14332_s15 + $0x2f0] ss:$28 sps:$4 sm:$0xff]  }
 0x68f   :  { %8826 = vtanh.f32 %v3417_v9  ;;  %3737 = vmatmul.mubr.bf16.gmra.mxu0 %v3472_v29  ;;  %v3473_v59 = vpack.c.bf16 %v8821_v24, %v8823_v36  ;;  %v8330_v36 = vld [vmem:[%s14332_s15 + $0x128] ss:$28 sps:$4 sm:$0xff]   ;;  %v8333_v32 = vld [vmem:[%s14332_s15 + $0xf0] ss:$28 sps:$4 sm:$0xff]  }
 0x690   :  { %3746 = vmatprep.mubr.bf16.mxu0 %v14499_v13  ;;  %8828 = vtanh.f32 %v3425_v17 }
 0x691   :  { %8830 = vtanh.f32 %v3422_v11 }
 0x697   :  { %3747 = vmatmul.mubr.bf16.gmra.mxu0 %v3473_v59  ;;  %v8337_v59 = vld [vmem:[%s14332_s15 + $0x130] ss:$28 sps:$4 sm:$0xff]  }
 0x698   :  { %3756 = vmatprep.mubr.bf16.mxu0 %v14499_v13  ;;  %v8825_v7 = vpop.eup %8824 }
 0x69c   :  { %v8827_v8 = vpop.eup %8826 }
 0x69d   :  { %v3474_v0 = vpack.c.bf16 %v8827_v8, %v8825_v7  ;;  %v8829_v48 = vpop.eup %8828 }
 0x69e   :  { %v8831_v45 = vpop.eup %8830 }
 0x69f   :  { %3757 = vmatmul.mubr.bf16.gmra.mxu0 %v3474_v0  ;;  %v3475_v30 = vpack.c.bf16 %v8829_v48, %v8831_v45  ;;  %v8335_v0 = vld [vmem:[%s14332_s15 + $0xf4] ss:$28 sps:$4 sm:$0xff]  }
 0x6a0   :  { %3766 = vmatprep.mubr.bf16.mxu0 %v14499_v13  ;;  %v8344_v48 = vld [vmem:[%s14332_s15 + $0x2b8] ss:$28 sps:$4 sm:$0xff]  }
 0x6a7   :  { %3767 = vmatmul.mubr.bf16.gmra.mxu0 %v3475_v30 }
 0x6ef   :  { %v3618_v37 = vpop.f32.mrf.mxu0 }
 0x6f0   :  { %v3619_v50 = vadd.f32 %v3618_v37, %v12315_v40  ;;  %v8345_v37 = vld [vmem:[%s14332_s15 + $0xf8] ss:$28 sps:$4 sm:$0xff]  }
 0x6f1   :  { %v3620_v33 = vpop.f32.mrf.mxu0 }
 0x6f2   :  { %v3621_v6 = vadd.f32 %v3620_v33, %v12312_v41 }
 0x6f3   :  { %v3622_v21 = vpop.f32.mrf.mxu0 }
 0x6f4   :  { %v3623_v13 = vadd.f32 %v3622_v21, %v12315_v40  ;;  %8832 = vtanh.f32 %v3621_v6  ;;  %v8340_v21 = vld [vmem:[%s14332_s15 + $0xbc] ss:$28 sps:$4 sm:$0xff]  }
 0x6f5   :  { %v3624_v10 = vpop.f32.mrf.mxu0 }
 0x6f6   :  { %v3625_v49 = vadd.f32 %v3624_v10, %v12312_v41  ;;  %8834 = vtanh.f32 %v3623_v13  ;;  %v8352_v13 = vld [vmem:[%s14332_s15 + $0x280] ss:$28 sps:$4 sm:$0xff]  }
 0x6f7   :  { %v3628_v46 = vpop.f32.mrf.mxu0 }
 0x6f8   :  { %8836 = vtanh.f32 %v3625_v49  ;;  %v3629_v25 = vadd.f32 %v3628_v46, %v12315_v40 }
 0x6f9   :  { %8838 = vtanh.f32 %v3619_v50  ;;  %v3630_v51 = vpop.f32.mrf.mxu0 }
 0x6fa   :  { %v3631_v60 = vadd.f32 %v3630_v51, %v12312_v41 }
 0x6fb   :  { %v3632_v34 = vpop.f32.mrf.mxu0 }
 0x6fc   :  { %v3633_v15 = vadd.f32 %v3632_v34, %v12315_v40  ;;  %8840 = vtanh.f32 %v3631_v60 }
 0x6fd   :  { %v3634_v62 = vpop.f32.mrf.mxu0 }
 0x6fe   :  { %v3635_v43 = vadd.f32 %v3634_v62, %v12312_v41  ;;  %8842 = vtanh.f32 %v3633_v15  ;;  %v8353_v62 = vld [vmem:[%s14332_s15 + $0xc0] ss:$28 sps:$4 sm:$0xff]  }
 0x6ff   :  { %v3638_v12 = vpop.f32.mrf.mxu0 }
 0x700   :  { %8844 = vtanh.f32 %v3635_v43  ;;  %v3639_v18 = vadd.f32 %v3638_v12, %v12315_v40 }
 0x701   :  { %8846 = vtanh.f32 %v3629_v25  ;;  %v3640_v20 = vpop.f32.mrf.mxu0  ;;  %v8833_v54 = vpop.eup %8832  ;;  %v8338_v25 = vld [vmem:[%s14332_s15 + $0xb8] ss:$28 sps:$4 sm:$0xff]  }
 0x702   :  { %v3641_v27 = vadd.f32 %v3640_v20, %v12312_v41  ;;  %v8343_v20 = vld [vmem:[%s14332_s15 + $0x84] ss:$28 sps:$4 sm:$0xff]  }
 0x703   :  { %v3642_v26 = vpop.f32.mrf.mxu0  ;;  %v8835_v4 = vpop.eup %8834 }
 0x704   :  { %v3643_v47 = vadd.f32 %v3642_v26, %v12315_v40  ;;  %8848 = vtanh.f32 %v3641_v27  ;;  %v8360_v27 = vld [vmem:[%s14332_s15 + $0x248] ss:$28 sps:$4 sm:$0xff]  }
 0x705   :  { %v8837_v2 = vpop.eup %8836  ;;  %v3644_v3 = vpop.f32.mrf.mxu0 }
 0x706   :  { %v8839_v1 = vpop.eup %8838  ;;  %v3645_v55 = vadd.f32 %v3644_v3, %v12312_v41  ;;  %v12329_v56 = vpack.c.bf16 %v8837_v2, %v8833_v54  ;;  %8850 = vtanh.f32 %v3643_v47  ;;  %v8361_v47 = vld [vmem:[%s14332_s15 + $0x88] ss:$28 sps:$4 sm:$0xff]  }
 0x707   :  { %v12337_v57 = vpack.c.bf16 %v8835_v4, %v8839_v1  ;;  %v3648_v23 = vpop.f32.mrf.mxu0  ;;  %v8341_v4 = vld [vmem:[%s14332_s15 + $0x80] ss:$28 sps:$4 sm:$0xff]   ;;  %v8348_v3 = vld [vmem:[%s14332_s15 + $0x4c] ss:$28 sps:$4 sm:$0xff]  }
 0x708   :  { %8852 = vtanh.f32 %v3645_v55  ;;  %4646 = vmatprep.mubr.bf16.mxu1 %v12329_v56  ;;  %4839 = vmatprep.mubr.bf16.mxu0 %v12329_v56  ;;  %v3649_v29 = vadd.f32 %v3648_v23, %v12315_v40  ;;  %v8368_v1 = vld [vmem:[%s14332_s15 + $0x210] ss:$28 sps:$4 sm:$0xff]  }
 0x709   :  { %8854 = vtanh.f32 %v3639_v18  ;;  %v3650_v39 = vpop.f32.mrf.mxu0  ;;  %4647 = vmatmul.mubr.bf16.vlgmr.msra.gmra.mxu1 %v12337_v57  ;;  %4840 = vmatmul.mubr.bf16.vlgmr.msra.gmra.mxu0 %v12337_v57  ;;  %v8841_v63 = vpop.eup %8840 }
 0x70a   :  { %v3651_v5 = vadd.f32 %v3650_v39, %v12312_v41  ;;  %7672 = vmatpush3.bf16.msra.mxu0 %v8321_v14  ;;  %5001 = vmatpush1.bf16.msra.mxu1 %v8322_v35 }
 0x70b   :  { %v3652_v53 = vpop.f32.mrf.mxu0  ;;  %5002 = vmatprep.subr.bf16.mxu1 %v8327_v28  ;;  %7673 = vmatprep.subr.bf16.mxu0 %v8328_v19  ;;  %v8843_v61 = vpop.eup %8842 }
 0x70c   :  { %v3653_v52 = vadd.f32 %v3652_v53, %v12315_v40  ;;  %8856 = vtanh.f32 %v3651_v5 }
 0x70d   :  { %v8845_v9 = vpop.eup %8844  ;;  %v3654_v38 = vpop.f32.mrf.mxu0 }
 0x70e   :  { %v8847_v17 = vpop.eup %8846  ;;  %v3655_v24 = vadd.f32 %v3654_v38, %v12312_v41  ;;  %v12365_v11 = vpack.c.bf16 %v8845_v9, %v8841_v63  ;;  %5003 = vmatpush1.bf16.msra.mxu1 %v8325_v22  ;;  %7674 = vmatpush3.bf16.msra.mxu0 %v8329_v16  ;;  %8858 = vtanh.f32 %v3653_v52  ;;  %v8346_v22 = vld [vmem:[%s14332_s15 + $0x48] ss:$28 sps:$4 sm:$0xff]   ;;  %v8369_v16 = vld [vmem:[%s14332_s15 + $0x50] ss:$28 sps:$4 sm:$0xff]  }
 0x70f   :  { %v3658_v7 = vpop.f32.mrf.mxu0  ;;  %v12373_v8 = vpack.c.bf16 %v8843_v61, %v8847_v17  ;;  %5004 = vmatprep.subr.bf16.mxu1 %v8332_v42  ;;  %7675 = vmatprep.subr.bf16.mxu0 %v8336_v58  ;;  %v8351_v42 = vld [vmem:[%s14332_s15 + $0x14] ss:$28 sps:$4 sm:$0xff]  }
 0x710   :  { %8860 = vtanh.f32 %v3655_v24  ;;  %4656 = vmatprep.mubr.bf16.mxu1 %v12365_v11  ;;  %4849 = vmatprep.mubr.bf16.mxu0 %v12365_v11  ;;  %v3659_v46 = vadd.f32 %v3658_v7, %v12315_v40  ;;  %v8376_v58 = vld [vmem:[%s14332_s15 + $0x1d8] ss:$28 sps:$4 sm:$0xff]   ;;  %v8349_v9 = vld [vmem:[%s14332_s15 + $0x10] ss:$28 sps:$4 sm:$0xff]  }
 0x711   :  { %8862 = vtanh.f32 %v3649_v29  ;;  %v3660_v45 = vpop.f32.mrf.mxu0  ;;  %4657 = vmatmul.mubr.bf16.gmra.mxu1 %v12373_v8  ;;  %4850 = vmatmul.mubr.bf16.gmra.mxu0 %v12373_v8  ;;  %v8849_v33 = vpop.eup %8848  ;;  %v8377_v29 = vld [vmem:[%s14332_s15 + $0x18] ss:$28 sps:$4 sm:$0xff]  }
 0x712   :  { %v3661_v30 = vadd.f32 %v3660_v45, %v12312_v41  ;;  %5005 = vmatpush1.bf16.msra.mxu1 %v8330_v36  ;;  %7676 = vmatpush3.bf16.msra.mxu0 %v8337_v59  ;;  %v8356_v24 = vld [vmem:[%s14332_s15 + $0x35c] ss:$28 sps:$4 sm:$0xff]  }
 0x713   :  { %v3662_v6 = vpop.f32.mrf.mxu0  ;;  %5006 = vmatprep.subr.bf16.mxu1 %v8335_v0  ;;  %7677 = vmatprep.subr.bf16.mxu0 %v8344_v48  ;;  %v8851_v50 = vpop.eup %8850 }
 0x714   :  { %v3663_v10 = vadd.f32 %v3662_v6, %v12315_v40  ;;  %8864 = vtanh.f32 %v3661_v30 }
 0x715   :  { %v8853_v49 = vpop.eup %8852  ;;  %v3664_v51 = vpop.f32.mrf.mxu0 }
 0x716   :  { %v8855_v60 = vpop.eup %8854  ;;  %v3665_v34 = vadd.f32 %v3664_v51, %v12312_v41  ;;  %v12401_v15 = vpack.c.bf16 %v8853_v49, %v8849_v33  ;;  %5007 = vmatpush1.bf16.msra.mxu1 %v8333_v32  ;;  %7678 = vmatpush3.bf16.msra.mxu0 %v8345_v37  ;;  %8866 = vtanh.f32 %v3663_v10  ;;  %v8354_v37 = vld [vmem:[%s14332_s15 + $0x358] ss:$28 sps:$4 sm:$0xff]   ;;  %v8357_v10 = vld [vmem:[%s14332_s15 + $0x320] ss:$28 sps:$4 sm:$0xff]   ;;  %v8364_v51 = vld [vmem:[%s14332_s15 + $0x2ec] ss:$28 sps:$4 sm:$0xff]  }
 0x717   :  { %v3668_v43 = vpop.f32.mrf.mxu0  ;;  %v12409_v12 = vpack.c.bf16 %v8851_v50, %v8855_v60  ;;  %5008 = vmatprep.subr.bf16.mxu1 %v8340_v21  ;;  %7679 = vmatprep.subr.bf16.mxu0 %v8352_v13  ;;  %v8359_v21 = vld [vmem:[%s14332_s15 + $0x324] ss:$28 sps:$4 sm:$0xff]  }
 0x718   :  { %8868 = vtanh.f32 %v3665_v34  ;;  %4666 = vmatprep.mubr.bf16.mxu1 %v12401_v15  ;;  %4859 = vmatprep.mubr.bf16.mxu0 %v12401_v15  ;;  %v3669_v23 = vadd.f32 %v3668_v43, %v12315_v40 }
 0x719   :  { %8870 = vtanh.f32 %v3659_v46  ;;  %v3670_v54 = vpop.f32.mrf.mxu0  ;;  %4667 = vmatmul.mubr.bf16.gmra.mxu1 %v12409_v12  ;;  %4860 = vmatmul.mubr.bf16.gmra.mxu0 %v12409_v12  ;;  %v8857_v2 = vpop.eup %8856 }
 0x71a   :  { %v3671_v26 = vadd.f32 %v3670_v54, %v12312_v41  ;;  %5009 = vmatpush1.bf16.msra.mxu1 %v8338_v25  ;;  %7680 = vmatpush3.bf16.msra.mxu0 %v8353_v62 }
 0x71b   :  { %v3672_v18 = vpop.f32.mrf.mxu0  ;;  %5010 = vmatprep.subr.bf16.mxu1 %v8343_v20  ;;  %7681 = vmatprep.subr.bf16.mxu0 %v8360_v27  ;;  %v8859_v55 = vpop.eup %8858 }
 0x71c   :  { %v3673_v14 = vadd.f32 %v3672_v18, %v12315_v40  ;;  %8872 = vtanh.f32 %v3671_v26  ;;  %v8362_v26 = vld [vmem:[%s14332_s15 + $0x2e8] ss:$28 sps:$4 sm:$0xff]  }
 0x71d   :  { %v8861_v35 = vpop.eup %8860  ;;  %v3674_v28 = vpop.f32.mrf.mxu0 }
 0x71e   :  { %v8863_v19 = vpop.eup %8862  ;;  %v3675_v39 = vadd.f32 %v3674_v28, %v12312_v41  ;;  %v12437_v5 = vpack.c.bf16 %v8861_v35, %v8857_v2  ;;  %5011 = vmatpush1.bf16.msra.mxu1 %v8341_v4  ;;  %7682 = vmatpush3.bf16.msra.mxu0 %v8361_v47  ;;  %8874 = vtanh.f32 %v3673_v14  ;;  %v8367_v2 = vld [vmem:[%s14332_s15 + $0x2b4] ss:$28 sps:$4 sm:$0xff]   ;;  %v8372_v35 = vld [vmem:[%s14332_s15 + $0x27c] ss:$28 sps:$4 sm:$0xff]  }
 0x71f   :  { %v3678_v63 = vpop.f32.mrf.mxu0  ;;  %v12445_v53 = vpack.c.bf16 %v8859_v55, %v8863_v19  ;;  %5012 = vmatprep.subr.bf16.mxu1 %v8348_v3  ;;  %7683 = vmatprep.subr.bf16.mxu0 %v8368_v1  ;;  %v8365_v1 = vld [vmem:[%s14332_s15 + $0x2b0] ss:$28 sps:$4 sm:$0xff]  }
 0x720   :  { %8876 = vtanh.f32 %v3675_v39  ;;  %4676 = vmatprep.mubr.bf16.mxu1 %v12437_v5  ;;  %4869 = vmatprep.mubr.bf16.mxu0 %v12437_v5  ;;  %v3679_v0 = vadd.f32 %v3678_v63, %v12315_v40 }
 0x721   :  { %8878 = vtanh.f32 %v3669_v23  ;;  %v3680_v61 = vpop.f32.mrf.mxu0  ;;  %4677 = vmatmul.mubr.bf16.gmra.mxu1 %v12445_v53  ;;  %4870 = vmatmul.mubr.bf16.gmra.mxu0 %v12445_v53  ;;  %v8865_v38 = vpop.eup %8864 }
 0x722   :  { %v3681_v52 = vadd.f32 %v3680_v61, %v12312_v41  ;;  %5013 = vmatpush1.bf16.msra.mxu1 %v8346_v22  ;;  %7684 = vmatpush3.bf16.msra.mxu0 %v8369_v16 }
 0x723   :  { %v3682_v17 = vpop.f32.mrf.mxu0  ;;  %5014 = vmatprep.subr.bf16.mxu1 %v8351_v42  ;;  %7685 = vmatprep.subr.bf16.mxu0 %v8376_v58  ;;  %v8867_v36 = vpop.eup %8866  ;;  %v8370_v58 = vld [vmem:[%s14332_s15 + $0x278] ss:$28 sps:$4 sm:$0xff]  }
 0x724   :  { %v3683_v59 = vadd.f32 %v3682_v17, %v12315_v40  ;;  %8880 = vtanh.f32 %v3681_v52  ;;  %v8373_v17 = vld [vmem:[%s14332_s15 + $0x240] ss:$28 sps:$4 sm:$0xff]  }
 0x725   :  { %v8869_v7 = vpop.eup %8868  ;;  %v3684_v48 = vpop.f32.mrf.mxu0 }
 0x726   :  { %v8871_v45 = vpop.eup %8870  ;;  %v3685_v30 = vadd.f32 %v3684_v48, %v12312_v41  ;;  %v12470_v32 = vpack.c.bf16 %v8869_v7, %v8865_v38  ;;  %5015 = vmatpush1.bf16.msra.mxu1 %v8349_v9  ;;  %7686 = vmatpush3.bf16.msra.mxu0 %v8377_v29  ;;  %8882 = vtanh.f32 %v3683_v59  ;;  %v8375_v9 = vld [vmem:[%s14332_s15 + $0x244] ss:$28 sps:$4 sm:$0xff]   ;;  %v8380_v59 = vld [vmem:[%s14332_s15 + $0x20c] ss:$28 sps:$4 sm:$0xff]  }
 0x727   :  { %v3688_v33 = vpop.f32.mrf.mxu0  ;;  %v12475_v6 = vpack.c.bf16 %v8867_v36, %v8871_v45  ;;  %5016 = vmatprep.subr.bf16.mxu1 %v8356_v24 }
 0x728   :  { %8884 = vtanh.f32 %v3685_v30  ;;  %4686 = vmatprep.mubr.bf16.mxu1 %v12470_v32  ;;  %4879 = vmatprep.mubr.bf16.mxu0 %v12470_v32  ;;  %v3689_v62 = vadd.f32 %v3688_v33, %v12315_v40 }
 0x729   :  { %8886 = vtanh.f32 %v3679_v0  ;;  %v3690_v13 = vpop.f32.mrf.mxu0  ;;  %4687 = vmatmul.mubr.bf16.gmra.mxu1 %v12475_v6  ;;  %4880 = vmatmul.mubr.bf16.gmra.mxu0 %v12475_v6  ;;  %v8873_v49 = vpop.eup %8872 }
 0x72a   :  { %v3691_v50 = vadd.f32 %v3690_v13, %v12312_v41  ;;  %5017 = vmatpush2.bf16.msra.mxu1 %v8354_v37  ;;  %v8378_v13 = vld [vmem:[%s14332_s15 + $0x208] ss:$28 sps:$4 sm:$0xff]  }
 0x72b   :  { %v3692_v46 = vpop.f32.mrf.mxu0  ;;  %5018 = vmatprep.subr.bf16.mxu1 %v8359_v21  ;;  %v8875_v60 = vpop.eup %8874 }
 0x72c   :  { %v3693_v34 = vadd.f32 %v3692_v46, %v12315_v40  ;;  %8888 = vtanh.f32 %v3691_v50 }
 0x72d   :  { %v8877_v25 = vpop.eup %8876  ;;  %v3694_v43 = vpop.f32.mrf.mxu0 }
 0x72e   :  { %v8879_v20 = vpop.eup %8878  ;;  %v3695_v27 = vadd.f32 %v3694_v43, %v12312_v41  ;;  %v12494_v54 = vpack.c.bf16 %v8877_v25, %v8873_v49  ;;  %5019 = vmatpush2.bf16.msra.mxu1 %v8357_v10  ;;  %8890 = vtanh.f32 %v3693_v34  ;;  %v8383_v49 = vld [vmem:[%s14332_s15 + $0x1d4] ss:$28 sps:$4 sm:$0xff]  }
 0x72f   :  { %v3698_v4 = vpop.f32.mrf.mxu0  ;;  %v12499_v47 = vpack.c.bf16 %v8875_v60, %v8879_v20  ;;  %5020 = vmatprep.subr.bf16.mxu1 %v8364_v51  ;;  %v8381_v60 = vld [vmem:[%s14332_s15 + $0x1d0] ss:$28 sps:$4 sm:$0xff]  }
 0x730   :  { %8892 = vtanh.f32 %v3695_v27  ;;  %4696 = vmatprep.mubr.bf16.mxu1 %v12494_v54  ;;  %4889 = vmatprep.mubr.bf16.mxu0 %v12494_v54  ;;  %v3699_v39 = vadd.f32 %v3698_v4, %v12315_v40 }
 0x731   :  { %8894 = vtanh.f32 %v3689_v62  ;;  %v3700_v18 = vpop.f32.mrf.mxu0  ;;  %4697 = vmatmul.mubr.bf16.gmra.mxu1 %v12499_v47  ;;  %4890 = vmatmul.mubr.bf16.gmra.mxu0 %v12499_v47  ;;  %v8881_v55 = vpop.eup %8880 }
 0x732   :  { %v3701_v3 = vadd.f32 %v3700_v18, %v12312_v41  ;;  %5021 = vmatpush2.bf16.msra.mxu1 %v8362_v26 }
 0x733   :  { %v3702_v14 = vpop.f32.mrf.mxu0  ;;  %5022 = vmatprep.subr.bf16.mxu1 %v8367_v2  ;;  %v8883_v23 = vpop.eup %8882 }
 0x734   :  { %v3703_v28 = vadd.f32 %v3702_v14, %v12315_v40  ;;  %8896 = vtanh.f32 %v3701_v3 }
 0x735   :  { %v8885_v19 = vpop.eup %8884  ;;  %v3704_v22 = vpop.f32.mrf.mxu0 }
 0x736   :  { %v8887_v16 = vpop.eup %8886  ;;  %v3705_v63 = vadd.f32 %v3704_v22, %v12312_v41  ;;  %v12518_v42 = vpack.c.bf16 %v8885_v19, %v8881_v55  ;;  %5023 = vmatpush2.bf16.msra.mxu1 %v8365_v1  ;;  %8898 = vtanh.f32 %v3703_v28 }
 0x737   :  { %v3708_v61 = vpop.f32.mrf.mxu0  ;;  %v12523_v52 = vpack.c.bf16 %v8883_v23, %v8887_v16  ;;  %5024 = vmatprep.subr.bf16.mxu1 %v8372_v35 }
 0x738   :  { %8900 = vtanh.f32 %v3705_v63  ;;  %4706 = vmatprep.mubr.bf16.mxu1 %v12518_v42  ;;  %4899 = vmatprep.mubr.bf16.mxu0 %v12518_v42  ;;  %v3709_v45 = vadd.f32 %v3708_v61, %v12315_v40 }
 0x739   :  { %8902 = vtanh.f32 %v3699_v39  ;;  %v3710_v29 = vpop.f32.mrf.mxu0  ;;  %4707 = vmatmul.mubr.bf16.gmra.mxu1 %v12523_v52  ;;  %4900 = vmatmul.mubr.bf16.gmra.mxu0 %v12523_v52  ;;  %v8889_v24 = vpop.eup %8888 }
 0x73a   :  { %v3711_v38 = vadd.f32 %v3710_v29, %v12312_v41  ;;  %5025 = vmatpush2.bf16.msra.mxu1 %v8370_v58 }
 0x73b   :  { %v3712_v36 = vpop.f32.mrf.mxu0  ;;  %5026 = vmatprep.subr.bf16.mxu1 %v8375_v9  ;;  %v8891_v7 = vpop.eup %8890 }
 0x73c   :  { %v3713_v0 = vadd.f32 %v3712_v36, %v12315_v40  ;;  %8904 = vtanh.f32 %v3711_v38 }
 0x73d   :  { %v8893_v48 = vpop.eup %8892  ;;  %v3714_v30 = vpop.f32.mrf.mxu0 }
 0x73e   :  { %v8895_v37 = vpop.eup %8894  ;;  %v3715_v33 = vadd.f32 %v3714_v30, %v12312_v41  ;;  %v12542_v21 = vpack.c.bf16 %v8893_v48, %v8889_v24  ;;  %5027 = vmatpush2.bf16.msra.mxu1 %v8373_v17  ;;  %8906 = vtanh.f32 %v3713_v0 }
 0x73f   :  { %v3718_v50 = vpop.f32.mrf.mxu0  ;;  %v12547_v10 = vpack.c.bf16 %v8891_v7, %v8895_v37  ;;  %5028 = vmatprep.subr.bf16.mxu1 %v8380_v59 }
 0x740   :  { %8908 = vtanh.f32 %v3715_v33  ;;  %4716 = vmatprep.mubr.bf16.mxu1 %v12542_v21  ;;  %4909 = vmatprep.mubr.bf16.mxu0 %v12542_v21  ;;  %v3719_v27 = vadd.f32 %v3718_v50, %v12315_v40 }
 0x741   :  { %8910 = vtanh.f32 %v3709_v45  ;;  %v3720_v46 = vpop.f32.mrf.mxu0  ;;  %4717 = vmatmul.mubr.bf16.gmra.mxu1 %v12547_v10  ;;  %4910 = vmatmul.mubr.bf16.gmra.mxu0 %v12547_v10  ;;  %v8897_v34 = vpop.eup %8896 }
 0x742   :  { %v3721_v51 = vadd.f32 %v3720_v46, %v12312_v41  ;;  %5029 = vmatpush2.bf16.msra.mxu1 %v8378_v13 }
 0x743   :  { %v3722_v25 = vpop.f32.mrf.mxu0  ;;  %5030 = vmatprep.subr.bf16.mxu1 %v8383_v49  ;;  %v8899_v62 = vpop.eup %8898 }
 0x744   :  { %v3723_v43 = vadd.f32 %v3722_v25, %v12315_v40  ;;  %8912 = vtanh.f32 %v3721_v51 }
 0x745   :  { %v8901_v20 = vpop.eup %8900  ;;  %v3724_v26 = vpop.f32.mrf.mxu0 }
 0x746   :  { %v8903_v4 = vpop.eup %8902  ;;  %v3725_v2 = vadd.f32 %v3724_v26, %v12312_v41  ;;  %v12563_v18 = vpack.c.bf16 %v8901_v20, %v8897_v34  ;;  %5031 = vmatpush2.bf16.msra.mxu1 %v8381_v60  ;;  %8914 = vtanh.f32 %v3723_v43 }
 0x747   :  { %v3728_v3 = vpop.f32.mrf.mxu0  ;;  %v12565_v1 = vpack.c.bf16 %v8899_v62, %v8903_v4 }
 0x748   :  { %8916 = vtanh.f32 %v3725_v2  ;;  %4726 = vmatprep.mubr.bf16.mxu1 %v12563_v18  ;;  %4919 = vmatprep.mubr.bf16.mxu0 %v12563_v18  ;;  %v3729_v22 = vadd.f32 %v3728_v3, %v12315_v40 }
 0x749   :  { %8918 = vtanh.f32 %v3719_v27  ;;  %v3730_v55 = vpop.f32.mrf.mxu0  ;;  %4727 = vmatmul.mubr.bf16.gmra.mxu1 %v12565_v1  ;;  %4920 = vmatmul.mubr.bf16.gmra.mxu0 %v12565_v1  ;;  %v8905_v35 = vpop.eup %8904 }
 0x74a   :  { %v3731_v14 = vadd.f32 %v3730_v55, %v12312_v41 }
 0x74b   :  { %v3732_v23 = vpop.f32.mrf.mxu0  ;;  %v8907_v28 = vpop.eup %8906 }
 0x74c   :  { %v3733_v19 = vadd.f32 %v3732_v23, %v12315_v40  ;;  %8920 = vtanh.f32 %v3731_v14 }
 0x74d   :  { %v8909_v39 = vpop.eup %8908  ;;  %v3734_v16 = vpop.f32.mrf.mxu0 }
 0x74e   :  { %v8911_v63 = vpop.eup %8910  ;;  %v3735_v58 = vadd.f32 %v3734_v16, %v12312_v41  ;;  %v12575_v61 = vpack.c.bf16 %v8909_v39, %v8905_v35  ;;  %8922 = vtanh.f32 %v3733_v19 }
 0x74f   :  { %v3738_v9 = vpop.f32.mrf.mxu0  ;;  %v12577_v29 = vpack.c.bf16 %v8907_v28, %v8911_v63 }
 0x750   :  { %8924 = vtanh.f32 %v3735_v58  ;;  %4736 = vmatprep.mubr.bf16.mxu1 %v12575_v61  ;;  %4929 = vmatprep.mubr.bf16.mxu0 %v12575_v61  ;;  %v3739_v48 = vadd.f32 %v3738_v9, %v12315_v40 }
 0x751   :  { %8926 = vtanh.f32 %v3729_v22  ;;  %v3740_v38 = vpop.f32.mrf.mxu0  ;;  %4737 = vmatmul.mubr.bf16.gmra.mxu1 %v12577_v29  ;;  %4930 = vmatmul.mubr.bf16.gmra.mxu0 %v12577_v29  ;;  %v8913_v24 = vpop.eup %8912 }
 0x752   :  { %v3741_v17 = vadd.f32 %v3740_v38, %v12312_v41 }
 0x753   :  { %v3742_v36 = vpop.f32.mrf.mxu0  ;;  %v8915_v59 = vpop.eup %8914 }
 0x754   :  { %v3743_v7 = vadd.f32 %v3742_v36, %v12315_v40  ;;  %8928 = vtanh.f32 %v3741_v17 }
 0x755   :  { %v8917_v0 = vpop.eup %8916  ;;  %v3744_v45 = vpop.f32.mrf.mxu0 }
 0x756   :  { %v8919_v30 = vpop.eup %8918  ;;  %v3745_v37 = vadd.f32 %v3744_v45, %v12312_v41  ;;  %v12587_v33 = vpack.c.bf16 %v8917_v0, %v8913_v24  ;;  %8930 = vtanh.f32 %v3743_v7 }
 0x757   :  { %v3748_v13 = vpop.f32.mrf.mxu0  ;;  %v12589_v50 = vpack.c.bf16 %v8915_v59, %v8919_v30 }
 0x758   :  { %8932 = vtanh.f32 %v3745_v37  ;;  %4746 = vmatprep.mubr.bf16.mxu1 %v12587_v33  ;;  %4939 = vmatprep.mubr.bf16.mxu0 %v12587_v33  ;;  %v3749_v43 = vadd.f32 %v3748_v13, %v12315_v40 }
 0x759   :  { %8934 = vtanh.f32 %v3739_v48  ;;  %v3750_v49 = vpop.f32.mrf.mxu0  ;;  %4747 = vmatmul.mubr.bf16.gmra.mxu1 %v12589_v50  ;;  %4940 = vmatmul.mubr.bf16.gmra.mxu0 %v12589_v50  ;;  %v8921_v51 = vpop.eup %8920 }
 0x75a   :  { %v3751_v46 = vadd.f32 %v3750_v49, %v12312_v41 }
 0x75b   :  { %v3752_v60 = vpop.f32.mrf.mxu0  ;;  %v8923_v34 = vpop.eup %8922 }
 0x75c   :  { %v3753_v25 = vadd.f32 %v3752_v60, %v12315_v40  ;;  %8936 = vtanh.f32 %v3751_v46 }
 0x75d   :  { %v8925_v62 = vpop.eup %8924  ;;  %v3754_v20 = vpop.f32.mrf.mxu0 }
 0x75e   :  { %v8927_v27 = vpop.eup %8926  ;;  %v3755_v26 = vadd.f32 %v3754_v20, %v12312_v41  ;;  %v12599_v4 = vpack.c.bf16 %v8925_v62, %v8921_v51  ;;  %8938 = vtanh.f32 %v3753_v25 }
 0x75f   :  { %v3758_v2 = vpop.f32.mrf.mxu0  ;;  %v12601_v3 = vpack.c.bf16 %v8923_v34, %v8927_v27 }
 0x760   :  { %8940 = vtanh.f32 %v3755_v26  ;;  %4756 = vmatprep.mubr.bf16.mxu1 %v12599_v4  ;;  %4949 = vmatprep.mubr.bf16.mxu0 %v12599_v4  ;;  %v3759_v22 = vadd.f32 %v3758_v2, %v12315_v40 }
 0x761   :  { %8942 = vtanh.f32 %v3749_v43  ;;  %v3760_v55 = vpop.f32.mrf.mxu0  ;;  %4757 = vmatmul.mubr.bf16.gmra.mxu1 %v12601_v3  ;;  %4950 = vmatmul.mubr.bf16.gmra.mxu0 %v12601_v3  ;;  %v8929_v35 = vpop.eup %8928 }
 0x762   :  { %v3761_v14 = vadd.f32 %v3760_v55, %v12312_v41 }
 0x763   :  { %v3762_v23 = vpop.f32.mrf.mxu0  ;;  %v8931_v28 = vpop.eup %8930 }
 0x764   :  { %v3763_v19 = vadd.f32 %v3762_v23, %v12315_v40  ;;  %8944 = vtanh.f32 %v3761_v14 }
 0x765   :  { %v8933_v39 = vpop.eup %8932  ;;  %v3764_v16 = vpop.f32.mrf.mxu0 }
 0x766   :  { %v8935_v63 = vpop.eup %8934  ;;  %v3765_v58 = vadd.f32 %v3764_v16, %v12312_v41  ;;  %v12611_v9 = vpack.c.bf16 %v8933_v39, %v8929_v35  ;;  %8946 = vtanh.f32 %v3763_v19 }
 0x767   :  { %v3768_v38 = vpop.f32.mrf.mxu0  ;;  %v12613_v17 = vpack.c.bf16 %v8931_v28, %v8935_v63 }
 0x768   :  { %8948 = vtanh.f32 %v3765_v58  ;;  %4766 = vmatprep.mubr.bf16.mxu1 %v12611_v9  ;;  %4959 = vmatprep.mubr.bf16.mxu0 %v12611_v9  ;;  %v3769_v30 = vadd.f32 %v3768_v38, %v12315_v40 }
 0x769   :  { %8950 = vtanh.f32 %v3759_v22  ;;  %v3770_v24 = vpop.f32.mrf.mxu0  ;;  %4767 = vmatmul.mubr.bf16.gmra.mxu1 %v12613_v17  ;;  %4960 = vmatmul.mubr.bf16.gmra.mxu0 %v12613_v17  ;;  %v8937_v59 = vpop.eup %8936 }
 0x76a   :  { %v3771_v36 = vadd.f32 %v3770_v24, %v12312_v41 }
 0x76b   :  { %v3772_v7 = vpop.f32.mrf.mxu0  ;;  %v8939_v0 = vpop.eup %8938 }
 0x76c   :  { %v3773_v48 = vadd.f32 %v3772_v7, %v12315_v40  ;;  %8952 = vtanh.f32 %v3771_v36 }
 0x76d   :  { %v8941_v45 = vpop.eup %8940  ;;  %v3774_v37 = vpop.f32.mrf.mxu0 }
 0x76e   :  { %v8943_v13 = vpop.eup %8942  ;;  %v3775_v49 = vadd.f32 %v3774_v37, %v12312_v41  ;;  %v12623_v46 = vpack.c.bf16 %v8941_v45, %v8937_v59  ;;  %8954 = vtanh.f32 %v3773_v48 }
 0x76f   :  { %v12625_v51 = vpack.c.bf16 %v8939_v0, %v8943_v13 }
 0x770   :  { %8956 = vtanh.f32 %v3775_v49  ;;  %4776 = vmatprep.mubr.bf16.mxu1 %v12623_v46  ;;  %4969 = vmatprep.mubr.bf16.mxu0 %v12623_v46 }
 0x771   :  { %8958 = vtanh.f32 %v3769_v30  ;;  %4777 = vmatmul.mubr.bf16.gmra.mxu1 %v12625_v51  ;;  %4970 = vmatmul.mubr.bf16.gmra.mxu0 %v12625_v51  ;;  %v8945_v40 = vpop.eup %8944 }
 0x773   :  { %v8947_v60 = vpop.eup %8946 }
 0x775   :  { %v8949_v34 = vpop.eup %8948 }
 0x776   :  { %v8951_v25 = vpop.eup %8950  ;;  %v12631_v41 = vpack.c.bf16 %v8949_v34, %v8945_v40 }
 0x777   :  { %v12633_v62 = vpack.c.bf16 %v8947_v60, %v8951_v25 }
 0x778   :  { %4786 = vmatprep.mubr.bf16.mxu1 %v12631_v41  ;;  %4979 = vmatprep.mubr.bf16.mxu0 %v12631_v41 }
 0x779   :  { %4787 = vmatmul.mubr.bf16.gmra.mxu1 %v12633_v62  ;;  %4980 = vmatmul.mubr.bf16.gmra.mxu0 %v12633_v62  ;;  %v8953_v43 = vpop.eup %8952 }
 0x77b   :  { %v8955_v20 = vpop.eup %8954 }
 0x77d   :  { %v8957_v27 = vpop.eup %8956 }
 0x77e   :  { %v8959_v26 = vpop.eup %8958  ;;  %v12639_v2 = vpack.c.bf16 %v8957_v27, %v8953_v43 }
 0x77f   :  { %v12641_v55 = vpack.c.bf16 %v8955_v20, %v8959_v26 }
 0x780   :  { %4796 = vmatprep.mubr.bf16.mxu1 %v12639_v2  ;;  %4989 = vmatprep.mubr.bf16.mxu0 %v12639_v2 }
 0x781   :  { %4797 = vmatmul.mubr.bf16.gmra.mxu1 %v12641_v55  ;;  %4990 = vmatmul.mubr.bf16.gmra.mxu0 %v12641_v55 }
 0x782   :  { %5032 = vmatprep.mubr.bf16.mxu1 %v12329_v56  ;;  %5225 = vmatprep.mubr.bf16.mxu0 %v12329_v56  ;;  %v14502_v56 = vld [vmem:[#allocation2_spill] sm:$0xff] }
 0x789   :  { %5033 = vmatmul.mubr.bf16.vlgmr.msra.gmra.mxu1 %v12337_v57  ;;  %5226 = vmatmul.mubr.bf16.vlgmr.msra.gmra.mxu0 %v12337_v57  ;;  %v4013_v57 = vsub.s32 2, %v14502_v56 }
 0x78a   :  { %5042 = vmatprep.mubr.bf16.mxu1 %v12365_v11  ;;  %5233 = vmatprep.mubr.bf16.mxu0 %v12365_v11  ;;  %v4001_v11 = vld [vmem:[%s14335_s16] sm:$0xff] }
 0x791   :  { %5043 = vmatmul.mubr.bf16.gmra.mxu1 %v12373_v8  ;;  %5234 = vmatmul.mubr.bf16.gmra.mxu0 %v12373_v8  ;;  %v4017_v8 = vsub.s32 3, %v14502_v56 }
 0x792   :  { %5052 = vmatprep.mubr.bf16.mxu1 %v12401_v15  ;;  %5241 = vmatprep.mubr.bf16.mxu0 %v12401_v15  ;;  %v12687_v15 = vrot.slane %v4001_v11, %v14501_v44 }
 0x799   :  { %5053 = vmatmul.mubr.bf16.gmra.mxu1 %v12409_v12  ;;  %5242 = vmatmul.mubr.bf16.gmra.mxu0 %v12409_v12  ;;  %v12689_v12 = vrot.slane %v4001_v11, %v4013_v57 }
 0x79a   :  { %5062 = vmatprep.mubr.bf16.mxu1 %v12437_v5  ;;  %5249 = vmatprep.mubr.bf16.mxu0 %v12437_v5  ;;  %v12692_v5 = vrot.slane %v4001_v11, %v14500_v31 }
 0x7a1   :  { %5063 = vmatmul.mubr.bf16.gmra.mxu1 %v12445_v53  ;;  %5250 = vmatmul.mubr.bf16.gmra.mxu0 %v12445_v53  ;;  %v12694_v53 = vrot.slane %v4001_v11, %v4017_v8 }
 0x7a2   :  { %5072 = vmatprep.mubr.bf16.mxu1 %v12470_v32  ;;  %5257 = vmatprep.mubr.bf16.mxu0 %v12470_v32 }
 0x7a9   :  { %5073 = vmatmul.mubr.bf16.gmra.mxu1 %v12475_v6  ;;  %5258 = vmatmul.mubr.bf16.gmra.mxu0 %v12475_v6 }
 0x7aa   :  { %5082 = vmatprep.mubr.bf16.mxu1 %v12494_v54  ;;  %5265 = vmatprep.mubr.bf16.mxu0 %v12494_v54 }
 0x7b1   :  { %5083 = vmatmul.mubr.bf16.gmra.mxu1 %v12499_v47  ;;  %5266 = vmatmul.mubr.bf16.gmra.mxu0 %v12499_v47 }
 0x7b2   :  { %5092 = vmatprep.mubr.bf16.mxu1 %v12518_v42  ;;  %5273 = vmatprep.mubr.bf16.mxu0 %v12518_v42 }
 0x7b9   :  { %5093 = vmatmul.mubr.bf16.gmra.mxu1 %v12523_v52  ;;  %5274 = vmatmul.mubr.bf16.gmra.mxu0 %v12523_v52 }
 0x7ba   :  { %5102 = vmatprep.mubr.bf16.mxu1 %v12542_v21  ;;  %5281 = vmatprep.mubr.bf16.mxu0 %v12542_v21 }
 0x7c1   :  { %5103 = vmatmul.mubr.bf16.gmra.mxu1 %v12547_v10  ;;  %5282 = vmatmul.mubr.bf16.gmra.mxu0 %v12547_v10 }
 0x7c2   :  { %5112 = vmatprep.mubr.bf16.mxu1 %v12563_v18  ;;  %5289 = vmatprep.mubr.bf16.mxu0 %v12563_v18 }
 0x7c9   :  { %v4648_v32 = vpop.f32.mrf.mxu1  ;;  %v4841_v6 = vpop.f32.mrf.mxu0  ;;  %5113 = vmatmul.mubr.bf16.gmra.mxu1 %v12565_v1  ;;  %5290 = vmatmul.mubr.bf16.gmra.mxu0 %v12565_v1 }
 0x7ca   :  { %v4649_v54 = vadd.f32 %v4648_v32, %v12687_v15  ;;  %v4842_v47 = vadd.f32 %v4841_v6, %v12689_v12  ;;  %5122 = vmatprep.mubr.bf16.mxu1 %v12575_v61  ;;  %5297 = vmatprep.mubr.bf16.mxu0 %v12575_v61 }
 0x7cb   :  { %v4650_v44 = vpop.f32.mrf.mxu1  ;;  %v4843_v42 = vpop.f32.mrf.mxu0 }
 0x7cc   :  { %v7247_v31 = vmul.f32 -1.442695, %v4649_v54  ;;  %v7249_v52 = vmul.f32 -1.442695, %v4842_v47  ;;  %v4651_v21 = vadd.f32 %v4650_v44, %v12692_v5  ;;  %v4844_v10 = vadd.f32 %v4843_v42, %v12694_v53 }
 0x7cd   :  { %v4652_v18 = vpop.f32.mrf.mxu1  ;;  %v4845_v14 = vpop.f32.mrf.mxu0 }
 0x7ce   :  { %8960 = vpow2.f32 %v7247_v31  ;;  %v7248_v1 = vmul.f32 -1.442695, %v4651_v21  ;;  %v7250_v35 = vmul.f32 -1.442695, %v4844_v10  ;;  %v4653_v23 = vadd.f32 %v4652_v18, %v12687_v15 }
 0x7cf   :  { %8962 = vpow2.f32 %v7249_v52  ;;  %v4846_v28 = vadd.f32 %v4845_v14, %v12689_v12  ;;  %v4654_v19 = vpop.f32.mrf.mxu1  ;;  %v4847_v61 = vpop.f32.mrf.mxu0 }
 0x7d0   :  { %8964 = vpow2.f32 %v7248_v1  ;;  %v7254_v39 = vmul.f32 -1.442695, %v4653_v23  ;;  %v4655_v22 = vadd.f32 %v4654_v19, %v12692_v5  ;;  %v4848_v16 = vadd.f32 %v4847_v61, %v12694_v53 }
 0x7d1   :  { %8966 = vpow2.f32 %v7250_v35  ;;  %v7256_v63 = vmul.f32 -1.442695, %v4846_v28  ;;  %v4658_v58 = vpop.f32.mrf.mxu1  ;;  %v4851_v38 = vpop.f32.mrf.mxu0  ;;  %5123 = vmatmul.mubr.bf16.gmra.mxu1 %v12577_v29  ;;  %5298 = vmatmul.mubr.bf16.gmra.mxu0 %v12577_v29 }
 0x7d2   :  { %8968 = vpow2.f32 %v7254_v39  ;;  %v7255_v24 = vmul.f32 -1.442695, %v4655_v22  ;;  %v7257_v36 = vmul.f32 -1.442695, %v4848_v16  ;;  %v4659_v59 = vadd.f32 %v4658_v58, %v12687_v15  ;;  %5132 = vmatprep.mubr.bf16.mxu1 %v12587_v33  ;;  %5305 = vmatprep.mubr.bf16.mxu0 %v12587_v33 }
 0x7d3   :  { %8970 = vpow2.f32 %v7256_v63  ;;  %v4852_v7 = vadd.f32 %v4851_v38, %v12689_v12  ;;  %v4660_v0 = vpop.f32.mrf.mxu1  ;;  %v4853_v48 = vpop.f32.mrf.mxu0 }
 0x7d4   :  { %8972 = vpow2.f32 %v7255_v24  ;;  %v7261_v45 = vmul.f32 -1.442695, %v4659_v59  ;;  %v4661_v30 = vadd.f32 %v4660_v0, %v12692_v5  ;;  %v4854_v29 = vadd.f32 %v4853_v48, %v12694_v53 }
 0x7d5   :  { %8974 = vpow2.f32 %v7257_v36  ;;  %v7263_v37 = vmul.f32 -1.442695, %v4852_v7  ;;  %v4662_v13 = vpop.f32.mrf.mxu1  ;;  %v4855_v49 = vpop.f32.mrf.mxu0 }
 0x7d6   :  { %8976 = vpow2.f32 %v7261_v45  ;;  %v7262_v40 = vmul.f32 -1.442695, %v4661_v30  ;;  %v7264_v60 = vmul.f32 -1.442695, %v4854_v29  ;;  %v4663_v33 = vadd.f32 %v4662_v13, %v12687_v15 }
 0x7d7   :  { %8978 = vpow2.f32 %v7263_v37  ;;  %v4856_v34 = vadd.f32 %v4855_v49, %v12689_v12  ;;  %v4664_v25 = vpop.f32.mrf.mxu1  ;;  %v4857_v43 = vpop.f32.mrf.mxu0 }
 0x7d8   :  { %8980 = vpow2.f32 %v7262_v40  ;;  %v7268_v20 = vmul.f32 -1.442695, %v4663_v33  ;;  %v4665_v27 = vadd.f32 %v4664_v25, %v12692_v5  ;;  %v4858_v26 = vadd.f32 %v4857_v43, %v12694_v53 }
 0x7d9   :  { %8982 = vpow2.f32 %v7264_v60  ;;  %v7270_v57 = vmul.f32 -1.442695, %v4856_v34  ;;  %v4668_v11 = vpop.f32.mrf.mxu1  ;;  %v12720_v8 = vpop.f32.mrf.mxu0  ;;  %5133 = vmatmul.mubr.bf16.gmra.mxu1 %v12589_v50  ;;  %5306 = vmatmul.mubr.bf16.gmra.mxu0 %v12589_v50 }
 0x7da   :  { %8984 = vpow2.f32 %v7268_v20  ;;  %v7269_v32 = vmul.f32 -1.442695, %v4665_v27  ;;  %v7271_v6 = vmul.f32 -1.442695, %v4858_v26  ;;  %5142 = vmatprep.mubr.bf16.mxu1 %v12599_v4  ;;  %5313 = vmatprep.mubr.bf16.mxu0 %v12599_v4  ;;  %v4669_v37 = vadd.f32 %v4668_v11, %v12687_v15 }
 0x7db   :  { %v8961_v54 = vpop.eup %8960  ;;  %8986 = vpow2.f32 %v7270_v57  ;;  %v4670_v47 = vpop.f32.mrf.mxu1  ;;  %v4862_v40 = vadd.f32 %v12720_v8, %v12689_v12 }
 0x7dc   :  { %v12726_v44 = vpop.f32.mrf.mxu0  ;;  %v8963_v42 = vpop.eup %8962  ;;  %v6026_v31 = vadd.f32 1.0, %v8961_v54  ;;  %8988 = vpow2.f32 %v7269_v32  ;;  %v4671_v43 = vadd.f32 %v4670_v47, %v12692_v5 }
 0x7dd   :  { %v8965_v52 = vpop.eup %8964  ;;  %v6028_v21 = vadd.f32 1.0, %v8963_v42  ;;  %8990 = vpow2.f32 %v7271_v6  ;;  %v12728_v10 = vpop.f32.mrf.mxu1  ;;  %v4864_v26 = vadd.f32 %v12726_v44, %v12694_v53  ;;  %v7275_v6 = vmul.f32 -1.442695, %v4669_v37 }
 0x7de   :  { %v12730_v50 = vpop.f32.mrf.mxu0  ;;  %v8967_v18 = vpop.eup %8966  ;;  %8992 = vrcp.f32 %v6026_v31  ;;  %v6027_v14 = vadd.f32 1.0, %v8965_v52  ;;  %v4673_v54 = vadd.f32 %v12728_v10, %v12687_v15  ;;  %v7277_v42 = vmul.f32 -1.442695, %v4862_v40 }
 0x7df   :  { %v8969_v1 = vpop.eup %8968  ;;  %8994 = vrcp.f32 %v6028_v21  ;;  %v6029_v4 = vadd.f32 1.0, %v8967_v18  ;;  %v12732_v35 = vpop.f32.mrf.mxu1  ;;  %v4866_v31 = vadd.f32 %v12730_v50, %v12689_v12  ;;  %v7276_v10 = vmul.f32 -1.442695, %v4671_v43 }
 0x7e0   :  { %v12734_v23 = vpop.f32.mrf.mxu0  ;;  %v8971_v28 = vpop.eup %8970  ;;  %8996 = vrcp.f32 %v6027_v14  ;;  %v6033_v19 = vadd.f32 1.0, %v8969_v1  ;;  %v7278_v50 = vmul.f32 -1.442695, %v4864_v26 }
 0x7e1   :  { %v8973_v61 = vpop.eup %8972  ;;  %8998 = vrcp.f32 %v6029_v4  ;;  %v6035_v39 = vadd.f32 1.0, %v8971_v28  ;;  %v12736_v22 = vpop.f32.mrf.mxu1  ;;  %5143 = vmatmul.mubr.bf16.gmra.mxu1 %v12601_v3  ;;  %5314 = vmatmul.mubr.bf16.gmra.mxu0 %v12601_v3  ;;  %v4868_v14 = vadd.f32 %v12734_v23, %v12694_v53  ;;  %v7284_v23 = vmul.f32 -1.442695, %v4866_v31 }
 0x7e2   :  { %v12738_v16 = vpop.f32.mrf.mxu0  ;;  %v8975_v63 = vpop.eup %8974  ;;  %9000 = vrcp.f32 %v6033_v19  ;;  %v6034_v58 = vadd.f32 1.0, %v8973_v61  ;;  %5152 = vmatprep.mubr.bf16.mxu1 %v12611_v9  ;;  %5321 = vmatprep.mubr.bf16.mxu0 %v12611_v9  ;;  %v4679_v19 = vadd.f32 %v12736_v22, %v12687_v15 }
 0x7e3   :  { %v8977_v38 = vpop.eup %8976  ;;  %9002 = vrcp.f32 %v6035_v39  ;;  %v6036_v24 = vadd.f32 1.0, %v8975_v63  ;;  %v12744_v36 = vpop.f32.mrf.mxu1  ;;  %v4872_v39 = vadd.f32 %v12738_v16, %v12689_v12  ;;  %v7285_v16 = vmul.f32 -1.442695, %v4868_v14 }
 0x7e4   :  { %v12746_v59 = vpop.f32.mrf.mxu0  ;;  %v8979_v7 = vpop.eup %8978  ;;  %9004 = vrcp.f32 %v6034_v58  ;;  %v6040_v0 = vadd.f32 1.0, %v8977_v38 }
 0x7e5   :  { %v8981_v48 = vpop.eup %8980  ;;  %9006 = vrcp.f32 %v6036_v24  ;;  %v6042_v3 = vadd.f32 1.0, %v8979_v7  ;;  %v12748_v45 = vpop.f32.mrf.mxu1  ;;  %v4681_v24 = vadd.f32 %v12744_v36, %v12692_v5  ;;  %v7289_v36 = vmul.f32 -1.442695, %v4679_v19 }
 0x7e6   :  { %v12750_v30 = vpop.f32.mrf.mxu0  ;;  %v8983_v29 = vpop.eup %8982  ;;  %9008 = vrcp.f32 %v6040_v0  ;;  %v6041_v9 = vadd.f32 1.0, %v8981_v48  ;;  %v4874_v0 = vadd.f32 %v12746_v59, %v12694_v53 }
 0x7e7   :  { %v8985_v13 = vpop.eup %8984  ;;  %9010 = vrcp.f32 %v6042_v3  ;;  %v6043_v49 = vadd.f32 1.0, %v8983_v29  ;;  %v12755_v60 = vpop.f32.mrf.mxu1  ;;  %v4876_v37 = vadd.f32 %v12750_v30, %v12689_v12 }
 0x7e8   :  { %v12757_v33 = vpop.f32.mrf.mxu0  ;;  %v8987_v34 = vpop.eup %8986  ;;  %9012 = vrcp.f32 %v6041_v9  ;;  %v6047_v25 = vadd.f32 1.0, %v8985_v13  ;;  %v4683_v9 = vadd.f32 %v12748_v45, %v12687_v15  ;;  %v4685_v45 = vadd.f32 %v12755_v60, %v12692_v5 }
 0x7e9   :  { %v8989_v20 = vpop.eup %8988  ;;  %9014 = vrcp.f32 %v6043_v49  ;;  %v6049_v27 = vadd.f32 1.0, %v8987_v34  ;;  %v12762_v57 = vpop.f32.mrf.mxu1  ;;  %5153 = vmatmul.mubr.bf16.gmra.mxu1 %v12613_v17  ;;  %5322 = vmatmul.mubr.bf16.gmra.mxu0 %v12613_v17  ;;  %v7292_v30 = vmul.f32 -1.442695, %v4874_v0 }
 0x7ea   :  { %v12764_v11 = vpop.f32.mrf.mxu0  ;;  %v8991_v8 = vpop.eup %8990  ;;  %9016 = vrcp.f32 %v6047_v25  ;;  %v6048_v32 = vadd.f32 1.0, %v8989_v20  ;;  %5162 = vmatprep.mubr.bf16.mxu1 %v12623_v46  ;;  %5329 = vmatprep.mubr.bf16.mxu0 %v12623_v46  ;;  %v4675_v46 = vadd.f32 %v12732_v35, %v12692_v5  ;;  %v7282_v35 = vmul.f32 -1.442695, %v4673_v54 }
 0x7eb   :  { %v8993_v47 = vpop.eup %8992  ;;  %9018 = vrcp.f32 %v6049_v27  ;;  %v6050_v44 = vadd.f32 1.0, %v8991_v8  ;;  %v12774_v52 = vpop.f32.mrf.mxu1  ;;  %v4878_v25 = vadd.f32 %v12757_v33, %v12694_v53  ;;  %v7296_v60 = vmul.f32 -1.442695, %v4683_v9 }
 0x7ec   :  { %v12776_v17 = vpop.f32.mrf.mxu0  ;;  %v8995_v21 = vpop.eup %8994  ;;  %6698 = vst [vmem:[%s14336_s17] sm:$0xff] %v8993_v47  ;;  %9020 = vrcp.f32 %v6048_v32  ;;  %v7283_v22 = vmul.f32 -1.442695, %v4675_v46  ;;  %v7298_v8 = vmul.f32 -1.442695, %v4876_v37  ;;  %v7297_v54 = vmul.f32 -1.442695, %v4685_v45 }
 0x7ed   :  { %v8997_v18 = vpop.eup %8996  ;;  %6700 = vst [vmem:[%s14336_s17 + $0x10] sm:$0xff] %v8995_v21  ;;  %9022 = vrcp.f32 %v6050_v44  ;;  %v12788_v1 = vpop.f32.mrf.mxu1  ;;  %v7299_v44 = vmul.f32 -1.442695, %v4878_v25 }
 0x7ee   :  { %v12790_v4 = vpop.f32.mrf.mxu0  ;;  %v8999_v28 = vpop.eup %8998  ;;  %6699 = vst [vmem:[%s14336_s17 + $0x8] sm:$0xff] %v8997_v18  ;;  %9024 = vpow2.f32 %v7275_v6 }
 0x7ef   :  { %v9001_v61 = vpop.eup %9000  ;;  %6701 = vst [vmem:[%s14336_s17 + $0x18] sm:$0xff] %v8999_v28  ;;  %9026 = vpow2.f32 %v7277_v42  ;;  %v12802_v63 = vpop.f32.mrf.mxu1 }
 0x7f0   :  { %v12804_v58 = vpop.f32.mrf.mxu0  ;;  %v9003_v38 = vpop.eup %9002  ;;  %6705 = vst [vmem:[%s14336_s17 + $0x38] sm:$0xff] %v9001_v61  ;;  %9028 = vpow2.f32 %v7276_v10 }
 0x7f1   :  { %v9005_v7 = vpop.eup %9004  ;;  %6707 = vst [vmem:[%s14336_s17 + $0x48] sm:$0xff] %v9003_v38  ;;  %9030 = vpow2.f32 %v7278_v50  ;;  %v12816_v48 = vpop.f32.mrf.mxu1  ;;  %5163 = vmatmul.mubr.bf16.gmra.mxu1 %v12625_v51  ;;  %5330 = vmatmul.mubr.bf16.gmra.mxu0 %v12625_v51  ;;  %v7291_v51 = vmul.f32 -1.442695, %v4872_v39 }
 0x7f2   :  { %v12818_v3 = vpop.f32.mrf.mxu0  ;;  %v9007_v29 = vpop.eup %9006  ;;  %6706 = vst [vmem:[%s14336_s17 + $0x40] sm:$0xff] %v9005_v7  ;;  %9032 = vpow2.f32 %v7282_v35  ;;  %5172 = vmatprep.mubr.bf16.mxu1 %v12631_v41  ;;  %5337 = vmatprep.mubr.bf16.mxu0 %v12631_v41  ;;  %v7290_v41 = vmul.f32 -1.442695, %v4681_v24 }
 0x7f3   :  { %v9009_v59 = vpop.eup %9008  ;;  %6708 = vst [vmem:[%s14336_s17 + $0x50] sm:$0xff] %v9007_v29  ;;  %9034 = vpow2.f32 %v7284_v23  ;;  %v12834_v13 = vpop.f32.mrf.mxu1 }
 0x7f4   :  { %v12836_v49 = vpop.f32.mrf.mxu0  ;;  %v9011_v40 = vpop.eup %9010  ;;  %6712 = vst [vmem:[%s14336_s17 + $0x70] sm:$0xff] %v9009_v59  ;;  %9036 = vpow2.f32 %v7283_v22 }
 0x7f5   :  { %v9013_v34 = vpop.eup %9012  ;;  %6714 = vst [vmem:[%s14336_s17 + $0x80] sm:$0xff] %v9011_v40  ;;  %9038 = vpow2.f32 %v7285_v16  ;;  %v12848_v43 = vpop.f32.mrf.mxu1 }
 0x7f6   :  { %v12850_v20 = vpop.f32.mrf.mxu0  ;;  %v9015_v27 = vpop.eup %9014  ;;  %6713 = vst [vmem:[%s14336_s17 + $0x78] sm:$0xff] %v9013_v34  ;;  %9040 = vpow2.f32 %v7289_v36 }
 0x7f7   :  { %v9017_v26 = vpop.eup %9016  ;;  %6715 = vst [vmem:[%s14336_s17 + $0x88] sm:$0xff] %v9015_v27  ;;  %9042 = vpow2.f32 %v7291_v51  ;;  %v12858_v32 = vpop.f32.mrf.mxu1 }
 0x7f8   :  { %v12860_v33 = vpop.f32.mrf.mxu0  ;;  %v9019_v6 = vpop.eup %9018  ;;  %6719 = vst [vmem:[%s14336_s17 + $0xa8] sm:$0xff] %v9017_v26  ;;  %9044 = vpow2.f32 %v7290_v41 }
 0x7f9   :  { %v9021_v47 = vpop.eup %9020  ;;  %6721 = vst [vmem:[%s14336_s17 + $0xb8] sm:$0xff] %v9019_v6  ;;  %9046 = vpow2.f32 %v7292_v30  ;;  %v12868_v42 = vpop.f32.mrf.mxu1  ;;  %5173 = vmatmul.mubr.bf16.gmra.mxu1 %v12633_v62  ;;  %5338 = vmatmul.mubr.bf16.gmra.mxu0 %v12633_v62 }
 0x7fa   :  { %v12870_v31 = vpop.f32.mrf.mxu0  ;;  %v9023_v21 = vpop.eup %9022  ;;  %6720 = vst [vmem:[%s14336_s17 + $0xb0] sm:$0xff] %v9021_v47  ;;  %9048 = vpow2.f32 %v7296_v60  ;;  %5182 = vmatprep.mubr.bf16.mxu1 %v12639_v2  ;;  %5345 = vmatprep.mubr.bf16.mxu0 %v12639_v2  ;;  %v4882_v47 = vadd.f32 %v12764_v11, %v12689_v12 }
 0x7fb   :  { %v9025_v10 = vpop.eup %9024  ;;  %6722 = vst [vmem:[%s14336_s17 + $0xc0] sm:$0xff] %v9023_v21  ;;  %9050 = vpow2.f32 %v7298_v8  ;;  %v12882_v46 = vpop.f32.mrf.mxu1  ;;  %v4689_v8 = vadd.f32 %v12762_v57, %v12687_v15  ;;  %v4884_v57 = vadd.f32 %v12776_v17, %v12694_v53 }
 0x7fc   :  { %v12884_v18 = vpop.f32.mrf.mxu0  ;;  %v9027_v62 = vpop.eup %9026  ;;  %v6054_v50 = vadd.f32 1.0, %v9025_v10  ;;  %9052 = vpow2.f32 %v7297_v54 }
 0x7fd   :  { %v9029_v14 = vpop.eup %9028  ;;  %v6056_v28 = vadd.f32 1.0, %v9027_v62  ;;  %9054 = vpow2.f32 %v7299_v44  ;;  %v12886_v35 = vpop.f32.mrf.mxu1 }
 0x7fe   :  { %v12888_v19 = vpop.f32.mrf.mxu0  ;;  %v9031_v2 = vpop.eup %9030  ;;  %9056 = vrcp.f32 %v6054_v50  ;;  %v6055_v61 = vadd.f32 1.0, %v9029_v14  ;;  %v4691_v50 = vadd.f32 %v12774_v52, %v12692_v5 }
 0x7ff   :  { %v9033_v23 = vpop.eup %9032  ;;  %9058 = vrcp.f32 %v6056_v28  ;;  %v6057_v39 = vadd.f32 1.0, %v9031_v2  ;;  %v12890_v38 = vpop.f32.mrf.mxu1 }
 0x800   :  { %v12892_v22 = vpop.f32.mrf.mxu0  ;;  %v9035_v24 = vpop.eup %9034  ;;  %9060 = vrcp.f32 %v6055_v61  ;;  %v6061_v7 = vadd.f32 1.0, %v9033_v23 }
 0x801   :  { %v9037_v16 = vpop.eup %9036  ;;  %9062 = vrcp.f32 %v6057_v39  ;;  %v6063_v0 = vadd.f32 1.0, %v9035_v24  ;;  %v12894_v29 = vpop.f32.mrf.mxu1  ;;  %5183 = vmatmul.mubr.bf16.gmra.mxu1 %v12641_v55  ;;  %5346 = vmatmul.mubr.bf16.gmra.mxu0 %v12641_v55  ;;  %v7303_v39 = vmul.f32 -1.442695, %v4689_v8  ;;  %v4693_v24 = vadd.f32 %v12788_v1, %v12687_v15 }
 0x802   :  { %v12896_v36 = vpop.f32.mrf.mxu0  ;;  %v9039_v9 = vpop.eup %9038  ;;  %9064 = vrcp.f32 %v6061_v7  ;;  %v6062_v59 = vadd.f32 1.0, %v9037_v16  ;;  %v7305_v16 = vmul.f32 -1.442695, %v4882_v47  ;;  %v4695_v1 = vadd.f32 %v12802_v63, %v12692_v5 }
 0x803   :  { %v9041_v51 = vpop.eup %9040  ;;  %9066 = vrcp.f32 %v6063_v0  ;;  %v6064_v37 = vadd.f32 1.0, %v9039_v9  ;;  %v12900_v40 = vpop.f32.mrf.mxu1  ;;  %v4886_v0 = vadd.f32 %v12790_v4, %v12689_v12  ;;  %v7306_v4 = vmul.f32 -1.442695, %v4884_v57 }
 0x804   :  { %v12902_v41 = vpop.f32.mrf.mxu0  ;;  %v9043_v45 = vpop.eup %9042  ;;  %9068 = vrcp.f32 %v6062_v59  ;;  %v6068_v34 = vadd.f32 1.0, %v9041_v51  ;;  %v7304_v51 = vmul.f32 -1.442695, %v4691_v50  ;;  %v7310_v63 = vmul.f32 -1.442695, %v4693_v24 }
 0x805   :  { %v9045_v30 = vpop.eup %9044  ;;  %9070 = vrcp.f32 %v6064_v37  ;;  %v6070_v25 = vadd.f32 1.0, %v9043_v45  ;;  %v12904_v27 = vpop.f32.mrf.mxu1  ;;  %v4888_v45 = vadd.f32 %v12804_v58, %v12694_v53  ;;  %v7312_v58 = vmul.f32 -1.442695, %v4886_v0 }
 0x806   :  { %v12906_v60 = vpop.f32.mrf.mxu0  ;;  %v9047_v55 = vpop.eup %9046  ;;  %9072 = vrcp.f32 %v6068_v34  ;;  %v6069_v26 = vadd.f32 1.0, %v9045_v30  ;;  %v4892_v8 = vadd.f32 %v12818_v3, %v12689_v12  ;;  %v4894_v50 = vadd.f32 %v12836_v49, %v12694_v53 }
 0x807   :  { %v9049_v6 = vpop.eup %9048  ;;  %9074 = vrcp.f32 %v6070_v25  ;;  %v6071_v54 = vadd.f32 1.0, %v9047_v55  ;;  %v12912_v44 = vpop.f32.mrf.mxu1  ;;  %v4699_v55 = vadd.f32 %v12816_v48, %v12687_v15  ;;  %v7311_v48 = vmul.f32 -1.442695, %v4695_v1 }
 0x808   :  { %v12914_v21 = vpop.f32.mrf.mxu0  ;;  %v9051_v10 = vpop.eup %9050  ;;  %9076 = vrcp.f32 %v6069_v26  ;;  %v6075_v62 = vadd.f32 1.0, %v9049_v6  ;;  %v7313_v3 = vmul.f32 -1.442695, %v4888_v45  ;;  %v7319_v49 = vmul.f32 -1.442695, %v4892_v8 }
 0x809   :  { %v9053_v14 = vpop.eup %9052  ;;  %9078 = vrcp.f32 %v6071_v54  ;;  %v6077_v28 = vadd.f32 1.0, %v9051_v10  ;;  %v12920_v2 = vpop.f32.mrf.mxu1  ;;  %v4701_v10 = vadd.f32 %v12834_v13, %v12692_v5  ;;  %v7317_v13 = vmul.f32 -1.442695, %v4699_v55 }
 0x80a   :  { %v12922_v61 = vpop.f32.mrf.mxu0  ;;  %v9055_v11 = vpop.eup %9054  ;;  %9080 = vrcp.f32 %v6075_v62  ;;  %v6076_v23 = vadd.f32 1.0, %v9053_v14 }
 0x80b   :  { %v9057_v7 = vpop.eup %9056  ;;  %9082 = vrcp.f32 %v6077_v28  ;;  %v6078_v52 = vadd.f32 1.0, %v9055_v11  ;;  %v12928_v9 = vpop.f32.mrf.mxu1  ;;  %v4703_v11 = vadd.f32 %v12848_v43, %v12687_v15  ;;  %v7318_v43 = vmul.f32 -1.442695, %v4701_v10 }
 0x80c   :  { %v12930_v17 = vpop.f32.mrf.mxu0  ;;  %v9059_v59 = vpop.eup %9058  ;;  %6726 = vst [vmem:[%s14336_s17 + $0xe0] sm:$0xff] %v9057_v7  ;;  %9084 = vrcp.f32 %v6076_v23 }
 0x80d   :  { %v9061_v37 = vpop.eup %9060  ;;  %6728 = vst [vmem:[%s14336_s17 + $0xf0] sm:$0xff] %v9059_v59  ;;  %9086 = vrcp.f32 %v6078_v52  ;;  %v12942_v34 = vpop.f32.mrf.mxu1  ;;  %v4898_v59 = vadd.f32 %v12860_v33, %v12694_v53 }
 0x80e   :  { %v12944_v30 = vpop.f32.mrf.mxu0  ;;  %v9063_v25 = vpop.eup %9062  ;;  %6727 = vst [vmem:[%s14336_s17 + $0xe8] sm:$0xff] %v9061_v37  ;;  %9088 = vpow2.f32 %v7303_v39  ;;  %v4896_v39 = vadd.f32 %v12850_v20, %v12689_v12  ;;  %v7320_v20 = vmul.f32 -1.442695, %v4894_v50 }
 0x80f   :  { %v9065_v26 = vpop.eup %9064  ;;  %6729 = vst [vmem:[%s14336_s17 + $0xf8] sm:$0xff] %v9063_v25  ;;  %9090 = vpow2.f32 %v7305_v16  ;;  %v12956_v6 = vpop.f32.mrf.mxu1  ;;  %v4705_v16 = vadd.f32 %v12858_v32, %v12692_v5  ;;  %v7324_v32 = vmul.f32 -1.442695, %v4703_v11 }
 0x810   :  { %v12958_v54 = vpop.f32.mrf.mxu0  ;;  %v9067_v47 = vpop.eup %9066  ;;  %6733 = vst [vmem:[%s14336_s17 + $0x118] sm:$0xff] %v9065_v26  ;;  %9092 = vpow2.f32 %v7304_v51  ;;  %v7326_v45 = vmul.f32 -1.442695, %v4896_v39 }
 0x811   :  { %v9069_v62 = vpop.eup %9068  ;;  %6735 = vst [vmem:[%s14336_s17 + $0x128] sm:$0xff] %v9067_v47  ;;  %9094 = vpow2.f32 %v7306_v4  ;;  %v12970_v14 = vpop.f32.mrf.mxu1  ;;  %v7325_v55 = vmul.f32 -1.442695, %v4705_v16 }
 0x812   :  { %v12972_v28 = vpop.f32.mrf.mxu0  ;;  %v9071_v57 = vpop.eup %9070  ;;  %6734 = vst [vmem:[%s14336_s17 + $0x120] sm:$0xff] %v9069_v62  ;;  %9096 = vpow2.f32 %v7310_v63 }
 0x813   :  { %v9073_v23 = vpop.eup %9072  ;;  %6736 = vst [vmem:[%s14336_s17 + $0x130] sm:$0xff] %v9071_v57  ;;  %9098 = vpow2.f32 %v7312_v58  ;;  %v12984_v24 = vpop.f32.mrf.mxu1  ;;  %v7327_v58 = vmul.f32 -1.442695, %v4898_v59 }
 0x814   :  { %v12986_v7 = vpop.f32.mrf.mxu0  ;;  %v9075_v52 = vpop.eup %9074  ;;  %6740 = vst [vmem:[%s14336_s17 + $0x150] sm:$0xff] %v9073_v23  ;;  %9100 = vpow2.f32 %v7311_v48 }
 0x815   :  { %v9077_v0 = vpop.eup %9076  ;;  %6742 = vst [vmem:[%s14336_s17 + $0x160] sm:$0xff] %v9075_v52  ;;  %9102 = vpow2.f32 %v7313_v3  ;;  %v12998_v51 = vpop.f32.mrf.mxu1 }
 0x816   :  { %v13000_v1 = vpop.f32.mrf.mxu0  ;;  %v9079_v37 = vpop.eup %9078  ;;  %6741 = vst [vmem:[%s14336_s17 + $0x158] sm:$0xff] %v9077_v0  ;;  %9104 = vpow2.f32 %v7317_v13 }
 0x817   :  { %v9081_v4 = vpop.eup %9080  ;;  %6743 = vst [vmem:[%s14336_s17 + $0x168] sm:$0xff] %v9079_v37  ;;  %9106 = vpow2.f32 %v7319_v49  ;;  %v13008_v25 = vpop.f32.mrf.mxu1 }
 0x818   :  { %v13010_v33 = vpop.f32.mrf.mxu0  ;;  %v9083_v63 = vpop.eup %9082  ;;  %6747 = vst [vmem:[%s14336_s17 + $0x188] sm:$0xff] %v9081_v4  ;;  %9108 = vpow2.f32 %v7318_v43 }
 0x819   :  { %v9085_v26 = vpop.eup %9084  ;;  %6749 = vst [vmem:[%s14336_s17 + $0x198] sm:$0xff] %v9083_v63  ;;  %9110 = vpow2.f32 %v7320_v20  ;;  %v13018_v8 = vpop.f32.mrf.mxu1 }
 0x81a   :  { %v13020_v47 = vpop.f32.mrf.mxu0  ;;  %v9087_v48 = vpop.eup %9086  ;;  %6748 = vst [vmem:[%s14336_s17 + $0x190] sm:$0xff] %v9085_v26  ;;  %9112 = vpow2.f32 %v7324_v32 }
 0x81b   :  { %v9089_v10 = vpop.eup %9088  ;;  %6750 = vst [vmem:[%s14336_s17 + $0x1a0] sm:$0xff] %v9087_v48  ;;  %9114 = vpow2.f32 %v7326_v45  ;;  %v13028_v62 = vpop.f32.mrf.mxu1 }
 0x81c   :  { %v13030_v3 = vpop.f32.mrf.mxu0  ;;  %v9091_v50 = vpop.eup %9090  ;;  %v6082_v57 = vadd.f32 1.0, %v9089_v10  ;;  %9116 = vpow2.f32 %v7325_v55 }
 0x81d   :  { %v9093_v13 = vpop.eup %9092  ;;  %v6084_v11 = vadd.f32 1.0, %v9091_v50  ;;  %9118 = vpow2.f32 %v7327_v58  ;;  %v13032_v23 = vpop.f32.mrf.mxu1 }
 0x81e   :  { %v13034_v49 = vpop.f32.mrf.mxu0  ;;  %v9095_v39 = vpop.eup %9094  ;;  %9120 = vrcp.f32 %v6082_v57  ;;  %v6083_v52 = vadd.f32 1.0, %v9093_v13 }
 0x81f   :  { %v9097_v43 = vpop.eup %9096  ;;  %9122 = vrcp.f32 %v6084_v11  ;;  %v6085_v16 = vadd.f32 1.0, %v9095_v39  ;;  %v13038_v4 = vpop.f32.mrf.mxu1 }
 0x820   :  { %v13036_v0 = vpop.f32.mrf.mxu0  ;;  %v9099_v20 = vpop.eup %9098  ;;  %9124 = vrcp.f32 %v6083_v52  ;;  %v6089_v59 = vadd.f32 1.0, %v9097_v43  ;;  %v4709_v52 = vadd.f32 %v12868_v42, %v12687_v15  ;;  %v4904_v42 = vadd.f32 %v12884_v18, %v12694_v53 }
 0x821   :  { %v9101_v37 = vpop.eup %9100  ;;  %9126 = vrcp.f32 %v6085_v16  ;;  %v6091_v32 = vadd.f32 1.0, %v9099_v20  ;;  %v13042_v13 = vpop.f32.mrf.mxu1 }
 0x822   :  { %v9103_v45 = vpop.eup %9102  ;;  %9128 = vrcp.f32 %v6089_v59  ;;  %v6090_v63 = vadd.f32 1.0, %v9101_v37  ;;  %v13040_v55 = vpop.f32.mrf.mxu0  ;;  %v4902_v59 = vadd.f32 %v12870_v31, %v12689_v12  ;;  %v4713_v31 = vadd.f32 %v12886_v35, %v12687_v15 }
 0x823   :  { %v9105_v26 = vpop.eup %9104  ;;  %9130 = vrcp.f32 %v6091_v32  ;;  %v6092_v58 = vadd.f32 1.0, %v9103_v45  ;;  %v4711_v45 = vadd.f32 %v12882_v46, %v12692_v5 }
 0x824   :  { %v9107_v48 = vpop.eup %9106  ;;  %9132 = vrcp.f32 %v6090_v63  ;;  %v6096_v10 = vadd.f32 1.0, %v9105_v26  ;;  %v13046_v43 = vpop.f32.mrf.mxu0 }
 0x825   :  { %v9109_v50 = vpop.eup %9108  ;;  %9134 = vrcp.f32 %v6092_v58  ;;  %v6098_v57 = vadd.f32 1.0, %v9107_v48  ;;  %v13054_v58 = vpop.f32.mrf.mxu1  ;;  %v7332_v18 = vmul.f32 -1.442695, %v4711_v45  ;;  %v7338_v45 = vmul.f32 -1.442695, %v4713_v31 }
 0x826   :  { %v9111_v11 = vpop.eup %9110  ;;  %9136 = vrcp.f32 %v6096_v10  ;;  %v6097_v39 = vadd.f32 1.0, %v9109_v50  ;;  %v7331_v50 = vmul.f32 -1.442695, %v4709_v52  ;;  %v4715_v52 = vadd.f32 %v12890_v38, %v12692_v5 }
 0x827   :  { %v9113_v16 = vpop.eup %9112  ;;  %9138 = vrcp.f32 %v6098_v57  ;;  %v6099_v20 = vadd.f32 1.0, %v9111_v11  ;;  %v13058_v57 = vpop.f32.mrf.mxu0  ;;  %v4719_v38 = vadd.f32 %v12894_v29, %v12687_v15  ;;  %v4721_v29 = vadd.f32 %v12900_v40, %v12692_v5 }
 0x828   :  { %v9115_v37 = vpop.eup %9114  ;;  %9140 = vrcp.f32 %v6097_v39  ;;  %v6103_v32 = vadd.f32 1.0, %v9113_v16  ;;  %v7333_v39 = vmul.f32 -1.442695, %v4902_v59  ;;  %v4906_v16 = vadd.f32 %v12888_v19, %v12689_v12 }
 0x829   :  { %v9117_v63 = vpop.eup %9116  ;;  %9142 = vrcp.f32 %v6099_v20  ;;  %v6105_v26 = vadd.f32 1.0, %v9115_v37  ;;  %v7334_v59 = vmul.f32 -1.442695, %v4904_v42  ;;  %v4908_v19 = vadd.f32 %v12892_v22, %v12694_v53  ;;  %v13072_v37 = vpop.f32.mrf.mxu1 }
 0x82a   :  { %v9119_v48 = vpop.eup %9118  ;;  %9144 = vrcp.f32 %v6103_v32  ;;  %v6104_v10 = vadd.f32 1.0, %v9117_v63  ;;  %v13079_v63 = vpop.f32.mrf.mxu0  ;;  %v7340_v22 = vmul.f32 -1.442695, %v4906_v16  ;;  %v4912_v42 = vadd.f32 %v12896_v36, %v12689_v12 }
 0x82b   :  { %v9121_v11 = vpop.eup %9120  ;;  %9146 = vrcp.f32 %v6105_v26  ;;  %v6106_v46 = vadd.f32 1.0, %v9119_v48  ;;  %v7341_v31 = vmul.f32 -1.442695, %v4908_v19  ;;  %v4914_v36 = vadd.f32 %v12902_v41, %v12694_v53 }
 0x82c   :  { %v9123_v20 = vpop.eup %9122  ;;  %6754 = vst [vmem:[%s14336_s17 + $0x1c0] sm:$0xff] %v9121_v11  ;;  %9148 = vrcp.f32 %v6104_v10  ;;  %v7339_v10 = vmul.f32 -1.442695, %v4715_v52  ;;  %v13096_v11 = vpop.f32.mrf.mxu1  ;;  %v4723_v40 = vadd.f32 %v12904_v27, %v12687_v15  ;;  %v7347_v41 = vmul.f32 -1.442695, %v4912_v42 }
 0x82d   :  { %v9125_v35 = vpop.eup %9124  ;;  %6756 = vst [vmem:[%s14336_s17 + $0x1d0] sm:$0xff] %v9123_v20  ;;  %9150 = vrcp.f32 %v6106_v46  ;;  %v13103_v16 = vpop.f32.mrf.mxu0  ;;  %v4725_v27 = vadd.f32 %v12912_v44, %v12692_v5  ;;  %v7348_v19 = vmul.f32 -1.442695, %v4914_v36 }
 0x82e   :  { %v9127_v32 = vpop.eup %9126  ;;  %6755 = vst [vmem:[%s14336_s17 + $0x1c8] sm:$0xff] %v9125_v35  ;;  %9152 = vpow2.f32 %v7331_v50  ;;  %v7346_v35 = vmul.f32 -1.442695, %v4721_v29 }
 0x82f   :  { %v9129_v26 = vpop.eup %9128  ;;  %6757 = vst [vmem:[%s14336_s17 + $0x1d8] sm:$0xff] %v9127_v32  ;;  %9154 = vpow2.f32 %v7333_v39  ;;  %v7345_v39 = vmul.f32 -1.442695, %v4719_v38  ;;  %v13120_v32 = vpop.f32.mrf.mxu1  ;;  %v7352_v38 = vmul.f32 -1.442695, %v4723_v40 }
 0x830   :  { %v9131_v48 = vpop.eup %9130  ;;  %6761 = vst [vmem:[%s14336_s17 + $0x1f8] sm:$0xff] %v9129_v26  ;;  %9156 = vpow2.f32 %v7332_v18  ;;  %v4916_v18 = vadd.f32 %v12906_v60, %v12689_v12  ;;  %v4918_v60 = vadd.f32 %v12914_v21, %v12694_v53  ;;  %v13125_v44 = vpop.f32.mrf.mxu0  ;;  %v7353_v21 = vmul.f32 -1.442695, %v4725_v27 }
 0x831   :  { %v9133_v50 = vpop.eup %9132  ;;  %6763 = vst [vmem:[%s14336_s17 + $0x208] sm:$0xff] %v9131_v48  ;;  %9158 = vpow2.f32 %v7334_v59  ;;  %v13136_v29 = vpop.f32.mrf.mxu1 }
 0x832   :  { %v9135_v46 = vpop.eup %9134  ;;  %6762 = vst [vmem:[%s14336_s17 + $0x200] sm:$0xff] %v9133_v50  ;;  %9160 = vpow2.f32 %v7338_v45 }
 0x833   :  { %v9137_v20 = vpop.eup %9136  ;;  %6764 = vst [vmem:[%s14336_s17 + $0x210] sm:$0xff] %v9135_v46  ;;  %9162 = vpow2.f32 %v7340_v22  ;;  %v7354_v22 = vmul.f32 -1.442695, %v4916_v18 }
 0x834   :  { %v9139_v52 = vpop.eup %9138  ;;  %6768 = vst [vmem:[%s14336_s17 + $0x230] sm:$0xff] %v9137_v20  ;;  %9164 = vpow2.f32 %v7339_v10  ;;  %v7355_v10 = vmul.f32 -1.442695, %v4918_v60 }
 0x835   :  { %v9141_v59 = vpop.eup %9140  ;;  %6770 = vst [vmem:[%s14336_s17 + $0x240] sm:$0xff] %v9139_v52  ;;  %9166 = vpow2.f32 %v7341_v31  ;;  %v13141_v31 = vpop.f32.mrf.mxu0 }
 0x836   :  { %v9143_v45 = vpop.eup %9142  ;;  %6769 = vst [vmem:[%s14336_s17 + $0x238] sm:$0xff] %v9141_v59  ;;  %9168 = vpow2.f32 %v7345_v39 }
 0x837   :  { %v9145_v26 = vpop.eup %9144  ;;  %6771 = vst [vmem:[%s14336_s17 + $0x248] sm:$0xff] %v9143_v45  ;;  %9170 = vpow2.f32 %v7347_v41  ;;  %v13146_v41 = vpop.f32.mrf.mxu1 }
 0x838   :  { %v9147_v42 = vpop.eup %9146  ;;  %6775 = vst [vmem:[%s14336_s17 + $0x268] sm:$0xff] %v9145_v26  ;;  %9172 = vpow2.f32 %v7346_v35  ;;  %v13148_v35 = vpop.f32.mrf.mxu0 }
 0x839   :  { %v9149_v48 = vpop.eup %9148  ;;  %6777 = vst [vmem:[%s14336_s17 + $0x278] sm:$0xff] %v9147_v42  ;;  %9174 = vpow2.f32 %v7348_v19  ;;  %v13150_v26 = vpop.f32.mrf.mxu1 }
 0x83a   :  { %v9151_v50 = vpop.eup %9150  ;;  %6776 = vst [vmem:[%s14336_s17 + $0x270] sm:$0xff] %v9149_v48  ;;  %9176 = vpow2.f32 %v7352_v38 }
 0x83b   :  { %v9153_v36 = vpop.eup %9152  ;;  %6778 = vst [vmem:[%s14336_s17 + $0x280] sm:$0xff] %v9151_v50  ;;  %9178 = vpow2.f32 %v7354_v22 }
 0x83c   :  { %v9155_v46 = vpop.eup %9154  ;;  %v6110_v39 = vadd.f32 1.0, %v9153_v36  ;;  %9180 = vpow2.f32 %v7353_v21  ;;  %v13152_v21 = vpop.f32.mrf.mxu0 }
 0x83d   :  { %v9157_v40 = vpop.eup %9156  ;;  %v6112_v20 = vadd.f32 1.0, %v9155_v46  ;;  %9182 = vpow2.f32 %v7355_v10 }
 0x83e   :  { %v9159_v18 = vpop.eup %9158  ;;  %9184 = vrcp.f32 %v6110_v39  ;;  %v6111_v52 = vadd.f32 1.0, %v9157_v40  ;;  %v13154_v40 = vpop.f32.mrf.mxu1 }
 0x83f   :  { %v9161_v27 = vpop.eup %9160  ;;  %9186 = vrcp.f32 %v6112_v20  ;;  %v6113_v59 = vadd.f32 1.0, %v9159_v18 }
 0x840   :  { %v9163_v19 = vpop.eup %9162  ;;  %9188 = vrcp.f32 %v6111_v52  ;;  %v6117_v60 = vadd.f32 1.0, %v9161_v27  ;;  %v4729_v52 = vadd.f32 %v12920_v2, %v12687_v15  ;;  %v13158_v27 = vpop.f32.mrf.mxu0  ;;  %v4924_v2 = vadd.f32 %v12930_v17, %v12694_v53 }
 0x841   :  { %v9165_v45 = vpop.eup %9164  ;;  %9190 = vrcp.f32 %v6113_v59  ;;  %v6119_v38 = vadd.f32 1.0, %v9163_v19 }
 0x842   :  { %v9167_v22 = vpop.eup %9166  ;;  %9192 = vrcp.f32 %v6117_v60  ;;  %v6118_v42 = vadd.f32 1.0, %v9165_v45  ;;  %v4922_v60 = vadd.f32 %v12922_v61, %v12689_v12  ;;  %v4733_v61 = vadd.f32 %v12942_v34, %v12687_v15 }
 0x843   :  { %v9169_v48 = vpop.eup %9168  ;;  %9194 = vrcp.f32 %v6119_v38  ;;  %v6120_v10 = vadd.f32 1.0, %v9167_v22  ;;  %v4731_v22 = vadd.f32 %v12928_v9, %v12692_v5 }
 0x844   :  { %v9171_v50 = vpop.eup %9170  ;;  %9196 = vrcp.f32 %v6118_v42  ;;  %v6124_v36 = vadd.f32 1.0, %v9169_v48 }
 0x845   :  { %v9173_v46 = vpop.eup %9172  ;;  %9198 = vrcp.f32 %v6120_v10  ;;  %v6126_v39 = vadd.f32 1.0, %v9171_v50  ;;  %v13166_v10 = vpop.f32.mrf.mxu1  ;;  %v7360_v17 = vmul.f32 -1.442695, %v4731_v22  ;;  %v7366_v22 = vmul.f32 -1.442695, %v4733_v61 }
 0x846   :  { %v9175_v20 = vpop.eup %9174  ;;  %9200 = vrcp.f32 %v6124_v36  ;;  %v6125_v18 = vadd.f32 1.0, %v9173_v46  ;;  %v7359_v46 = vmul.f32 -1.442695, %v4729_v52  ;;  %v4735_v52 = vadd.f32 %v12956_v6, %v12692_v5 }
 0x847   :  { %v9177_v59 = vpop.eup %9176  ;;  %9202 = vrcp.f32 %v6126_v39  ;;  %v6127_v19 = vadd.f32 1.0, %v9175_v20  ;;  %v13170_v39 = vpop.f32.mrf.mxu0  ;;  %v4739_v6 = vadd.f32 %v12970_v14, %v12687_v15  ;;  %v4741_v14 = vadd.f32 %v12984_v24, %v12692_v5 }
 0x848   :  { %v9179_v45 = vpop.eup %9178  ;;  %9204 = vrcp.f32 %v6125_v18  ;;  %v6131_v38 = vadd.f32 1.0, %v9177_v59  ;;  %v7361_v18 = vmul.f32 -1.442695, %v4922_v60  ;;  %v4926_v59 = vadd.f32 %v12944_v30, %v12689_v12 }
 0x849   :  { %v9181_v42 = vpop.eup %9180  ;;  %9206 = vrcp.f32 %v6127_v19  ;;  %v6133_v48 = vadd.f32 1.0, %v9179_v45  ;;  %v7362_v60 = vmul.f32 -1.442695, %v4924_v2  ;;  %v4928_v30 = vadd.f32 %v12958_v54, %v12694_v53  ;;  %v13184_v45 = vpop.f32.mrf.mxu1 }
 0x84a   :  { %v9183_v50 = vpop.eup %9182  ;;  %9208 = vrcp.f32 %v6131_v38  ;;  %v6132_v36 = vadd.f32 1.0, %v9181_v42  ;;  %v13191_v42 = vpop.f32.mrf.mxu0  ;;  %v7368_v54 = vmul.f32 -1.442695, %v4926_v59  ;;  %v4932_v2 = vadd.f32 %v12972_v28, %v12689_v12 }
 0x84b   :  { %v9185_v20 = vpop.eup %9184  ;;  %9210 = vrcp.f32 %v6133_v48  ;;  %v6134_v9 = vadd.f32 1.0, %v9183_v50  ;;  %v7369_v61 = vmul.f32 -1.442695, %v4928_v30  ;;  %v4934_v28 = vadd.f32 %v12986_v7, %v12694_v53 }
 0x84c   :  { %v9187_v19 = vpop.eup %9186  ;;  %6782 = vst [vmem:[%s14336_s17 + $0x2a0] sm:$0xff] %v9185_v20  ;;  %9212 = vrcp.f32 %v6132_v36  ;;  %v7367_v36 = vmul.f32 -1.442695, %v4735_v52  ;;  %v13208_v20 = vpop.f32.mrf.mxu1  ;;  %v4743_v24 = vadd.f32 %v12998_v51, %v12687_v15  ;;  %v7375_v7 = vmul.f32 -1.442695, %v4932_v2 }
 0x84d   :  { %v9189_v34 = vpop.eup %9188  ;;  %6784 = vst [vmem:[%s14336_s17 + $0x2b0] sm:$0xff] %v9187_v19  ;;  %9214 = vrcp.f32 %v6134_v9  ;;  %v13215_v59 = vpop.f32.mrf.mxu0  ;;  %v4745_v51 = vadd.f32 %v13008_v25, %v12692_v5  ;;  %v7376_v30 = vmul.f32 -1.442695, %v4934_v28 }
 0x84e   :  { %v9191_v38 = vpop.eup %9190  ;;  %6783 = vst [vmem:[%s14336_s17 + $0x2a8] sm:$0xff] %v9189_v34  ;;  %9216 = vpow2.f32 %v7359_v46  ;;  %v7374_v34 = vmul.f32 -1.442695, %v4741_v14 }
 0x84f   :  { %v9193_v48 = vpop.eup %9192  ;;  %6785 = vst [vmem:[%s14336_s17 + $0x2b8] sm:$0xff] %v9191_v38  ;;  %9218 = vpow2.f32 %v7361_v18  ;;  %v7373_v18 = vmul.f32 -1.442695, %v4739_v6  ;;  %v13232_v38 = vpop.f32.mrf.mxu1  ;;  %v7380_v6 = vmul.f32 -1.442695, %v4743_v24 }
 0x850   :  { %v9195_v50 = vpop.eup %9194  ;;  %6789 = vst [vmem:[%s14336_s17 + $0x2d8] sm:$0xff] %v9193_v48  ;;  %9220 = vpow2.f32 %v7360_v17  ;;  %v4936_v17 = vadd.f32 %v13000_v1, %v12689_v12  ;;  %v4938_v1 = vadd.f32 %v13010_v33, %v12694_v53  ;;  %v13237_v25 = vpop.f32.mrf.mxu0  ;;  %v7381_v33 = vmul.f32 -1.442695, %v4745_v51 }
 0x851   :  { %v9197_v46 = vpop.eup %9196  ;;  %6791 = vst [vmem:[%s14336_s17 + $0x2e8] sm:$0xff] %v9195_v50  ;;  %9222 = vpow2.f32 %v7362_v60  ;;  %v13248_v14 = vpop.f32.mrf.mxu1 }
 0x852   :  { %v9199_v9 = vpop.eup %9198  ;;  %6790 = vst [vmem:[%s14336_s17 + $0x2e0] sm:$0xff] %v9197_v46  ;;  %9224 = vpow2.f32 %v7366_v22 }
 0x853   :  { %v9201_v19 = vpop.eup %9200  ;;  %6792 = vst [vmem:[%s14336_s17 + $0x2f0] sm:$0xff] %v9199_v9  ;;  %9226 = vpow2.f32 %v7368_v54  ;;  %v7382_v54 = vmul.f32 -1.442695, %v4936_v17 }
 0x854   :  { %v9203_v52 = vpop.eup %9202  ;;  %6796 = vst [vmem:[%s14336_s17 + $0x310] sm:$0xff] %v9201_v19  ;;  %9228 = vpow2.f32 %v7367_v36  ;;  %v7383_v36 = vmul.f32 -1.442695, %v4938_v1 }
 0x855   :  { %v9205_v60 = vpop.eup %9204  ;;  %6798 = vst [vmem:[%s14336_s17 + $0x320] sm:$0xff] %v9203_v52  ;;  %9230 = vpow2.f32 %v7369_v61  ;;  %v13253_v61 = vpop.f32.mrf.mxu0 }
 0x856   :  { %v9207_v22 = vpop.eup %9206  ;;  %6797 = vst [vmem:[%s14336_s17 + $0x318] sm:$0xff] %v9205_v60  ;;  %9232 = vpow2.f32 %v7373_v18 }
 0x857   :  { %v9209_v48 = vpop.eup %9208  ;;  %6799 = vst [vmem:[%s14336_s17 + $0x328] sm:$0xff] %v9207_v22  ;;  %9234 = vpow2.f32 %v7375_v7  ;;  %v13258_v7 = vpop.f32.mrf.mxu1 }
 0x858   :  { %v9211_v2 = vpop.eup %9210  ;;  %6803 = vst [vmem:[%s14336_s17 + $0x348] sm:$0xff] %v9209_v48  ;;  %9236 = vpow2.f32 %v7374_v34  ;;  %v13260_v34 = vpop.f32.mrf.mxu0 }
 0x859   :  { %v9213_v50 = vpop.eup %9212  ;;  %6805 = vst [vmem:[%s14336_s17 + $0x358] sm:$0xff] %v9211_v2  ;;  %9238 = vpow2.f32 %v7376_v30  ;;  %v13262_v48 = vpop.f32.mrf.mxu1 }
 0x85a   :  { %v9215_v46 = vpop.eup %9214  ;;  %6804 = vst [vmem:[%s14336_s17 + $0x350] sm:$0xff] %v9213_v50  ;;  %9240 = vpow2.f32 %v7380_v6 }
 0x85b   :  { %v9217_v28 = vpop.eup %9216  ;;  %6806 = vst [vmem:[%s14336_s17 + $0x360] sm:$0xff] %v9215_v46  ;;  %9242 = vpow2.f32 %v7382_v54 }
 0x85c   :  { %v9219_v9 = vpop.eup %9218  ;;  %v6138_v18 = vadd.f32 1.0, %v9217_v28  ;;  %9244 = vpow2.f32 %v7381_v33  ;;  %v13264_v33 = vpop.f32.mrf.mxu0 }
 0x85d   :  { %v9221_v24 = vpop.eup %9220  ;;  %v6140_v19 = vadd.f32 1.0, %v9219_v9  ;;  %9246 = vpow2.f32 %v7383_v36 }
 0x85e   :  { %v9223_v17 = vpop.eup %9222  ;;  %9248 = vrcp.f32 %v6138_v18  ;;  %v6139_v52 = vadd.f32 1.0, %v9221_v24  ;;  %v13266_v24 = vpop.f32.mrf.mxu1 }
 0x85f   :  { %v9225_v51 = vpop.eup %9224  ;;  %9250 = vrcp.f32 %v6140_v19  ;;  %v6141_v60 = vadd.f32 1.0, %v9223_v17 }
 0x860   :  { %v9227_v30 = vpop.eup %9226  ;;  %9252 = vrcp.f32 %v6139_v52  ;;  %v6145_v1 = vadd.f32 1.0, %v9225_v51  ;;  %v4749_v52 = vadd.f32 %v13018_v8, %v12687_v15  ;;  %v13270_v51 = vpop.f32.mrf.mxu0  ;;  %v4944_v8 = vadd.f32 %v13030_v3, %v12694_v53 }
 0x861   :  { %v9229_v22 = vpop.eup %9228  ;;  %9254 = vrcp.f32 %v6141_v60  ;;  %v6147_v6 = vadd.f32 1.0, %v9227_v30 }
 0x862   :  { %v9231_v54 = vpop.eup %9230  ;;  %9256 = vrcp.f32 %v6145_v1  ;;  %v6146_v2 = vadd.f32 1.0, %v9229_v22  ;;  %v4942_v1 = vadd.f32 %v13020_v47, %v12689_v12  ;;  %v4753_v47 = vadd.f32 %v13032_v23, %v12687_v15 }
 0x863   :  { %v9233_v50 = vpop.eup %9232  ;;  %9258 = vrcp.f32 %v6147_v6  ;;  %v6148_v36 = vadd.f32 1.0, %v9231_v54  ;;  %v4751_v54 = vadd.f32 %v13028_v62, %v12692_v5 }
 0x864   :  { %v9235_v46 = vpop.eup %9234  ;;  %9260 = vrcp.f32 %v6146_v2  ;;  %v6152_v28 = vadd.f32 1.0, %v9233_v50 }
 0x865   :  { %v9237_v9 = vpop.eup %9236  ;;  %9262 = vrcp.f32 %v6148_v36  ;;  %v6154_v18 = vadd.f32 1.0, %v9235_v46  ;;  %v13278_v36 = vpop.f32.mrf.mxu1  ;;  %v7388_v3 = vmul.f32 -1.442695, %v4751_v54  ;;  %v7394_v54 = vmul.f32 -1.442695, %v4753_v47 }
 0x866   :  { %v9239_v19 = vpop.eup %9238  ;;  %9264 = vrcp.f32 %v6152_v28  ;;  %v6153_v17 = vadd.f32 1.0, %v9237_v9  ;;  %v7387_v9 = vmul.f32 -1.442695, %v4749_v52  ;;  %v4755_v52 = vadd.f32 %v13038_v4, %v12692_v5 }
 0x867   :  { %v9241_v60 = vpop.eup %9240  ;;  %9266 = vrcp.f32 %v6154_v18  ;;  %v6155_v30 = vadd.f32 1.0, %v9239_v19  ;;  %v13282_v18 = vpop.f32.mrf.mxu0  ;;  %v4759_v4 = vadd.f32 %v13042_v13, %v12687_v15  ;;  %v4761_v13 = vadd.f32 %v13054_v58, %v12692_v5 }
 0x868   :  { %v9243_v22 = vpop.eup %9242  ;;  %9268 = vrcp.f32 %v6153_v17  ;;  %v6159_v6 = vadd.f32 1.0, %v9241_v60  ;;  %v7389_v17 = vmul.f32 -1.442695, %v4942_v1  ;;  %v4946_v60 = vadd.f32 %v13034_v49, %v12689_v12 }
 0x869   :  { %v9245_v2 = vpop.eup %9244  ;;  %9270 = vrcp.f32 %v6155_v30  ;;  %v6161_v50 = vadd.f32 1.0, %v9243_v22  ;;  %v7390_v1 = vmul.f32 -1.442695, %v4944_v8  ;;  %v4948_v49 = vadd.f32 %v13036_v0, %v12694_v53  ;;  %v13296_v22 = vpop.f32.mrf.mxu1 }
 0x86a   :  { %v9247_v46 = vpop.eup %9246  ;;  %9272 = vrcp.f32 %v6159_v6  ;;  %v6160_v28 = vadd.f32 1.0, %v9245_v2  ;;  %v13303_v2 = vpop.f32.mrf.mxu0  ;;  %v7396_v0 = vmul.f32 -1.442695, %v4946_v60  ;;  %v4952_v8 = vadd.f32 %v13040_v55, %v12689_v12 }
 0x86b   :  { %v9249_v19 = vpop.eup %9248  ;;  %9274 = vrcp.f32 %v6161_v50  ;;  %v6162_v62 = vadd.f32 1.0, %v9247_v46  ;;  %v7397_v47 = vmul.f32 -1.442695, %v4948_v49  ;;  %v4954_v55 = vadd.f32 %v13046_v43, %v12694_v53 }
 0x86c   :  { %v9251_v30 = vpop.eup %9250  ;;  %6810 = vst [vmem:[%s14336_s17 + $0x380] sm:$0xff] %v9249_v19  ;;  %9276 = vrcp.f32 %v6160_v28  ;;  %v7395_v28 = vmul.f32 -1.442695, %v4755_v52  ;;  %v13320_v19 = vpop.f32.mrf.mxu1  ;;  %v4763_v58 = vadd.f32 %v13072_v37, %v12687_v15  ;;  %v7403_v43 = vmul.f32 -1.442695, %v4952_v8 }
 0x86d   :  { %v9253_v23 = vpop.eup %9252  ;;  %6812 = vst [vmem:[%s14336_s17 + $0x390] sm:$0xff] %v9251_v30  ;;  %9278 = vrcp.f32 %v6162_v62  ;;  %v13327_v60 = vpop.f32.mrf.mxu0  ;;  %v4765_v37 = vadd.f32 %v13096_v11, %v12692_v5  ;;  %v7404_v49 = vmul.f32 -1.442695, %v4954_v55 }
 0x86e   :  { %v9255_v6 = vpop.eup %9254  ;;  %6811 = vst [vmem:[%s14336_s17 + $0x388] sm:$0xff] %v9253_v23  ;;  %9280 = vpow2.f32 %v7387_v9  ;;  %v7402_v23 = vmul.f32 -1.442695, %v4761_v13 }
 0x86f   :  { %v9257_v50 = vpop.eup %9256  ;;  %6813 = vst [vmem:[%s14336_s17 + $0x398] sm:$0xff] %v9255_v6  ;;  %9282 = vpow2.f32 %v7389_v17  ;;  %v7401_v17 = vmul.f32 -1.442695, %v4759_v4  ;;  %v13344_v6 = vpop.f32.mrf.mxu1  ;;  %v7408_v4 = vmul.f32 -1.442695, %v4763_v58 }
 0x870   :  { %v9259_v46 = vpop.eup %9258  ;;  %6817 = vst [vmem:[%s14336_s17 + $0x3b8] sm:$0xff] %v9257_v50  ;;  %9284 = vpow2.f32 %v7388_v3  ;;  %v4956_v3 = vadd.f32 %v13058_v57, %v12689_v12  ;;  %v4958_v57 = vadd.f32 %v13079_v63, %v12694_v53  ;;  %v13349_v11 = vpop.f32.mrf.mxu0  ;;  %v7409_v63 = vmul.f32 -1.442695, %v4765_v37 }
 0x871   :  { %v9261_v9 = vpop.eup %9260  ;;  %6819 = vst [vmem:[%s14336_s17 + $0x3c8] sm:$0xff] %v9259_v46  ;;  %9286 = vpow2.f32 %v7390_v1  ;;  %v13360_v13 = vpop.f32.mrf.mxu1 }
 0x872   :  { %v9263_v62 = vpop.eup %9262  ;;  %6818 = vst [vmem:[%s14336_s17 + $0x3c0] sm:$0xff] %v9261_v9  ;;  %9288 = vpow2.f32 %v7394_v54 }
 0x873   :  { %v9265_v30 = vpop.eup %9264  ;;  %6820 = vst [vmem:[%s14336_s17 + $0x3d0] sm:$0xff] %v9263_v62  ;;  %9290 = vpow2.f32 %v7396_v0  ;;  %v7410_v0 = vmul.f32 -1.442695, %v4956_v3 }
 0x874   :  { %v9267_v52 = vpop.eup %9266  ;;  %6824 = vst [vmem:[%s14336_s17 + $0x3f0] sm:$0xff] %v9265_v30  ;;  %9292 = vpow2.f32 %v7395_v28  ;;  %v7411_v28 = vmul.f32 -1.442695, %v4958_v57 }
 0x875   :  { %v9269_v1 = vpop.eup %9268  ;;  %6826 = vst [vmem:[%s14336_s17 + $0x400] sm:$0xff] %v9267_v52  ;;  %9294 = vpow2.f32 %v7397_v47  ;;  %v13365_v47 = vpop.f32.mrf.mxu0 }
 0x876   :  { %v9271_v54 = vpop.eup %9270  ;;  %6825 = vst [vmem:[%s14336_s17 + $0x3f8] sm:$0xff] %v9269_v1  ;;  %9296 = vpow2.f32 %v7401_v17 }
 0x877   :  { %v9273_v50 = vpop.eup %9272  ;;  %6827 = vst [vmem:[%s14336_s17 + $0x408] sm:$0xff] %v9271_v54  ;;  %9298 = vpow2.f32 %v7403_v43  ;;  %v13370_v43 = vpop.f32.mrf.mxu1 }
 0x878   :  { %v9275_v8 = vpop.eup %9274  ;;  %6831 = vst [vmem:[%s14336_s17 + $0x428] sm:$0xff] %v9273_v50  ;;  %9300 = vpow2.f32 %v7402_v23  ;;  %v13372_v23 = vpop.f32.mrf.mxu0 }
 0x879   :  { %v9277_v46 = vpop.eup %9276  ;;  %6833 = vst [vmem:[%s14336_s17 + $0x438] sm:$0xff] %v9275_v8  ;;  %9302 = vpow2.f32 %v7404_v49  ;;  %v13374_v50 = vpop.f32.mrf.mxu1 }
 0x87a   :  { %v9279_v9 = vpop.eup %9278  ;;  %6832 = vst [vmem:[%s14336_s17 + $0x430] sm:$0xff] %v9277_v46  ;;  %9304 = vpow2.f32 %v7408_v4 }
 0x87b   :  { %v9281_v55 = vpop.eup %9280  ;;  %6834 = vst [vmem:[%s14336_s17 + $0x440] sm:$0xff] %v9279_v9  ;;  %9306 = vpow2.f32 %v7410_v0 }
 0x87c   :  { %v9283_v62 = vpop.eup %9282  ;;  %v6166_v17 = vadd.f32 1.0, %v9281_v55  ;;  %9308 = vpow2.f32 %v7409_v63  ;;  %v13376_v63 = vpop.f32.mrf.mxu0 }
 0x87d   :  { %v9285_v58 = vpop.eup %9284  ;;  %v6168_v30 = vadd.f32 1.0, %v9283_v62  ;;  %9310 = vpow2.f32 %v7411_v28 }
 0x87e   :  { %v9287_v3 = vpop.eup %9286  ;;  %9312 = vrcp.f32 %v6166_v17  ;;  %v6167_v52 = vadd.f32 1.0, %v9285_v58  ;;  %v13378_v58 = vpop.f32.mrf.mxu1 }
 0x87f   :  { %v9289_v37 = vpop.eup %9288  ;;  %9314 = vrcp.f32 %v6168_v30  ;;  %v6169_v1 = vadd.f32 1.0, %v9287_v3 }
 0x880   :  { %v9291_v49 = vpop.eup %9290  ;;  %9316 = vrcp.f32 %v6167_v52  ;;  %v6173_v57 = vadd.f32 1.0, %v9289_v37  ;;  %v4769_v52 = vadd.f32 %v13120_v32, %v12687_v15  ;;  %v13382_v37 = vpop.f32.mrf.mxu0  ;;  %v4964_v32 = vadd.f32 %v13125_v44, %v12694_v53 }
 0x881   :  { %v9293_v54 = vpop.eup %9292  ;;  %9318 = vrcp.f32 %v6169_v1  ;;  %v6175_v4 = vadd.f32 1.0, %v9291_v49 }
 0x882   :  { %v9295_v0 = vpop.eup %9294  ;;  %9320 = vrcp.f32 %v6173_v57  ;;  %v6174_v8 = vadd.f32 1.0, %v9293_v54  ;;  %v4962_v57 = vadd.f32 %v13103_v16, %v12689_v12  ;;  %v4773_v16 = vadd.f32 %v13146_v41, %v12687_v15 }
 0x883   :  { %v9297_v46 = vpop.eup %9296  ;;  %9322 = vrcp.f32 %v6175_v4  ;;  %v6176_v28 = vadd.f32 1.0, %v9295_v0  ;;  %v4771_v0 = vadd.f32 %v13136_v29, %v12692_v5 }
 0x884   :  { %v9299_v9 = vpop.eup %9298  ;;  %9324 = vrcp.f32 %v6174_v8  ;;  %v6180_v55 = vadd.f32 1.0, %v9297_v46 }
 0x885   :  { %v9301_v62 = vpop.eup %9300  ;;  %9326 = vrcp.f32 %v6176_v28  ;;  %v6182_v17 = vadd.f32 1.0, %v9299_v9  ;;  %v13390_v28 = vpop.f32.mrf.mxu1  ;;  %v7416_v44 = vmul.f32 -1.442695, %v4771_v0  ;;  %v7422_v0 = vmul.f32 -1.442695, %v4773_v16 }
 0x886   :  { %v9303_v30 = vpop.eup %9302  ;;  %9328 = vrcp.f32 %v6180_v55  ;;  %v6181_v3 = vadd.f32 1.0, %v9301_v62  ;;  %v7415_v62 = vmul.f32 -1.442695, %v4769_v52  ;;  %v4775_v52 = vadd.f32 %v13150_v26, %v12692_v5 }
 0x887   :  { %v9305_v1 = vpop.eup %9304  ;;  %9330 = vrcp.f32 %v6182_v17  ;;  %v6183_v49 = vadd.f32 1.0, %v9303_v30  ;;  %v13394_v17 = vpop.f32.mrf.mxu0  ;;  %v4779_v26 = vadd.f32 %v13154_v40, %v12687_v15  ;;  %v4781_v40 = vadd.f32 %v13166_v10, %v12692_v5 }
 0x888   :  { %v9307_v54 = vpop.eup %9306  ;;  %9332 = vrcp.f32 %v6181_v3  ;;  %v6187_v4 = vadd.f32 1.0, %v9305_v1  ;;  %v7417_v3 = vmul.f32 -1.442695, %v4962_v57  ;;  %v4966_v1 = vadd.f32 %v13141_v31, %v12689_v12 }
 0x889   :  { %v9309_v8 = vpop.eup %9308  ;;  %9334 = vrcp.f32 %v6183_v49  ;;  %v6189_v46 = vadd.f32 1.0, %v9307_v54  ;;  %v7418_v57 = vmul.f32 -1.442695, %v4964_v32  ;;  %v4968_v31 = vadd.f32 %v13148_v35, %v12694_v53  ;;  %v13408_v54 = vpop.f32.mrf.mxu1 }
 0x88a   :  { %v9311_v9 = vpop.eup %9310  ;;  %9336 = vrcp.f32 %v6187_v4  ;;  %v6188_v55 = vadd.f32 1.0, %v9309_v8  ;;  %v13415_v8 = vpop.f32.mrf.mxu0  ;;  %v7424_v35 = vmul.f32 -1.442695, %v4966_v1  ;;  %v4972_v32 = vadd.f32 %v13152_v21, %v12689_v12 }
 0x88b   :  { %v9313_v30 = vpop.eup %9312  ;;  %9338 = vrcp.f32 %v6189_v46  ;;  %v6190_v29 = vadd.f32 1.0, %v9311_v9  ;;  %v7425_v16 = vmul.f32 -1.442695, %v4968_v31  ;;  %v4974_v21 = vadd.f32 %v13158_v27, %v12694_v53 }
 0x88c   :  { %v9315_v49 = vpop.eup %9314  ;;  %6838 = vst [vmem:[%s14336_s17 + $0x460] sm:$0xff] %v9313_v30  ;;  %9340 = vrcp.f32 %v6188_v55  ;;  %v7423_v55 = vmul.f32 -1.442695, %v4775_v52  ;;  %v13432_v30 = vpop.f32.mrf.mxu1  ;;  %v4783_v10 = vadd.f32 %v13184_v45, %v12687_v15  ;;  %v7431_v27 = vmul.f32 -1.442695, %v4972_v32 }
 0x88d   :  { %v9317_v41 = vpop.eup %9316  ;;  %6840 = vst [vmem:[%s14336_s17 + $0x470] sm:$0xff] %v9315_v49  ;;  %9342 = vrcp.f32 %v6190_v29  ;;  %v13439_v1 = vpop.f32.mrf.mxu0  ;;  %v4785_v45 = vadd.f32 %v13208_v20, %v12692_v5  ;;  %v7432_v31 = vmul.f32 -1.442695, %v4974_v21 }
 0x88e   :  { %v9319_v4 = vpop.eup %9318  ;;  %6839 = vst [vmem:[%s14336_s17 + $0x468] sm:$0xff] %v9317_v41  ;;  %9344 = vpow2.f32 %v7415_v62  ;;  %v7430_v41 = vmul.f32 -1.442695, %v4781_v40 }
 0x88f   :  { %v9321_v46 = vpop.eup %9320  ;;  %6841 = vst [vmem:[%s14336_s17 + $0x478] sm:$0xff] %v9319_v4  ;;  %9346 = vpow2.f32 %v7417_v3  ;;  %v7429_v3 = vmul.f32 -1.442695, %v4779_v26  ;;  %v13456_v4 = vpop.f32.mrf.mxu1  ;;  %v7436_v26 = vmul.f32 -1.442695, %v4783_v10 }
 0x890   :  { %v9323_v9 = vpop.eup %9322  ;;  %6845 = vst [vmem:[%s14336_s17 + $0x498] sm:$0xff] %v9321_v46  ;;  %9348 = vpow2.f32 %v7416_v44  ;;  %v4976_v44 = vadd.f32 %v13170_v39, %v12689_v12  ;;  %v4978_v39 = vadd.f32 %v13191_v42, %v12694_v53  ;;  %v13461_v20 = vpop.f32.mrf.mxu0  ;;  %v7437_v42 = vmul.f32 -1.442695, %v4785_v45 }
 0x891   :  { %v9325_v62 = vpop.eup %9324  ;;  %6847 = vst [vmem:[%s14336_s17 + $0x4a8] sm:$0xff] %v9323_v9  ;;  %9350 = vpow2.f32 %v7418_v57  ;;  %v13472_v40 = vpop.f32.mrf.mxu1 }
 0x892   :  { %v9327_v29 = vpop.eup %9326  ;;  %6846 = vst [vmem:[%s14336_s17 + $0x4a0] sm:$0xff] %v9325_v62  ;;  %9352 = vpow2.f32 %v7422_v0 }
 0x893   :  { %v9329_v49 = vpop.eup %9328  ;;  %6848 = vst [vmem:[%s14336_s17 + $0x4b0] sm:$0xff] %v9327_v29  ;;  %9354 = vpow2.f32 %v7424_v35  ;;  %v7438_v35 = vmul.f32 -1.442695, %v4976_v44 }
 0x894   :  { %v9331_v52 = vpop.eup %9330  ;;  %6852 = vst [vmem:[%s14336_s17 + $0x4d0] sm:$0xff] %v9329_v49  ;;  %9356 = vpow2.f32 %v7423_v55  ;;  %v7439_v55 = vmul.f32 -1.442695, %v4978_v39 }
 0x895   :  { %v9333_v57 = vpop.eup %9332  ;;  %6854 = vst [vmem:[%s14336_s17 + $0x4e0] sm:$0xff] %v9331_v52  ;;  %9358 = vpow2.f32 %v7425_v16  ;;  %v13477_v16 = vpop.f32.mrf.mxu0 }
 0x896   :  { %v9335_v0 = vpop.eup %9334  ;;  %6853 = vst [vmem:[%s14336_s17 + $0x4d8] sm:$0xff] %v9333_v57  ;;  %9360 = vpow2.f32 %v7429_v3 }
 0x897   :  { %v9337_v46 = vpop.eup %9336  ;;  %6855 = vst [vmem:[%s14336_s17 + $0x4e8] sm:$0xff] %v9335_v0  ;;  %9362 = vpow2.f32 %v7431_v27  ;;  %v13482_v27 = vpop.f32.mrf.mxu1 }
 0x898   :  { %v9339_v32 = vpop.eup %9338  ;;  %6859 = vst [vmem:[%s14336_s17 + $0x508] sm:$0xff] %v9337_v46  ;;  %9364 = vpow2.f32 %v7430_v41  ;;  %v13484_v41 = vpop.f32.mrf.mxu0 }
 0x899   :  { %v9341_v9 = vpop.eup %9340  ;;  %6861 = vst [vmem:[%s14336_s17 + $0x518] sm:$0xff] %v9339_v32  ;;  %9366 = vpow2.f32 %v7432_v31  ;;  %v13486_v46 = vpop.f32.mrf.mxu1 }
 0x89a   :  { %v9343_v62 = vpop.eup %9342  ;;  %6860 = vst [vmem:[%s14336_s17 + $0x510] sm:$0xff] %v9341_v9  ;;  %9368 = vpow2.f32 %v7436_v26 }
 0x89b   :  { %v9345_v21 = vpop.eup %9344  ;;  %6862 = vst [vmem:[%s14336_s17 + $0x520] sm:$0xff] %v9343_v62  ;;  %9370 = vpow2.f32 %v7438_v35 }
 0x89c   :  { %v9347_v29 = vpop.eup %9346  ;;  %v6194_v3 = vadd.f32 1.0, %v9345_v21  ;;  %9372 = vpow2.f32 %v7437_v42  ;;  %v13488_v42 = vpop.f32.mrf.mxu0 }
 0x89d   :  { %v9349_v10 = vpop.eup %9348  ;;  %v6196_v49 = vadd.f32 1.0, %v9347_v29  ;;  %9374 = vpow2.f32 %v7439_v55 }
 0x89e   :  { %v9351_v44 = vpop.eup %9350  ;;  %9376 = vrcp.f32 %v6194_v3  ;;  %v6195_v52 = vadd.f32 1.0, %v9349_v10  ;;  %v13490_v10 = vpop.f32.mrf.mxu1 }
 0x89f   :  { %v9353_v45 = vpop.eup %9352  ;;  %9378 = vrcp.f32 %v6196_v49  ;;  %v6197_v57 = vadd.f32 1.0, %v9351_v44 }
 0x8a0   :  { %v9355_v31 = vpop.eup %9354  ;;  %9380 = vrcp.f32 %v6195_v52  ;;  %v6201_v39 = vadd.f32 1.0, %v9353_v45  ;;  %v4789_v52 = vadd.f32 %v13232_v38, %v12687_v15  ;;  %v13494_v45 = vpop.f32.mrf.mxu0  ;;  %v4984_v38 = vadd.f32 %v13237_v25, %v12694_v53 }
 0x8a1   :  { %v9357_v0 = vpop.eup %9356  ;;  %9382 = vrcp.f32 %v6197_v57  ;;  %v6203_v26 = vadd.f32 1.0, %v9355_v31 }
 0x8a2   :  { %v9359_v35 = vpop.eup %9358  ;;  %9384 = vrcp.f32 %v6201_v39  ;;  %v6202_v32 = vadd.f32 1.0, %v9357_v0  ;;  %v4982_v39 = vadd.f32 %v13215_v59, %v12689_v12  ;;  %v4793_v59 = vadd.f32 %v13258_v7, %v12687_v15 }
 0x8a3   :  { %v9361_v9 = vpop.eup %9360  ;;  %9386 = vrcp.f32 %v6203_v26  ;;  %v6204_v55 = vadd.f32 1.0, %v9359_v35  ;;  %v4791_v35 = vadd.f32 %v13248_v14, %v12692_v5 }
 0x8a4   :  { %v9363_v62 = vpop.eup %9362  ;;  %9388 = vrcp.f32 %v6202_v32  ;;  %v6208_v21 = vadd.f32 1.0, %v9361_v9 }
 0x8a5   :  { %v9365_v29 = vpop.eup %9364  ;;  %9390 = vrcp.f32 %v6204_v55  ;;  %v6210_v3 = vadd.f32 1.0, %v9363_v62  ;;  %v13502_v55 = vpop.f32.mrf.mxu1  ;;  %v7444_v25 = vmul.f32 -1.442695, %v4791_v35  ;;  %v7450_v35 = vmul.f32 -1.442695, %v4793_v59 }
 0x8a6   :  { %v9367_v49 = vpop.eup %9366  ;;  %9392 = vrcp.f32 %v6208_v21  ;;  %v6209_v44 = vadd.f32 1.0, %v9365_v29  ;;  %v7443_v29 = vmul.f32 -1.442695, %v4789_v52  ;;  %v4795_v52 = vadd.f32 %v13262_v48, %v12692_v5 }
 0x8a7   :  { %v9369_v57 = vpop.eup %9368  ;;  %9394 = vrcp.f32 %v6210_v3  ;;  %v6211_v31 = vadd.f32 1.0, %v9367_v49  ;;  %v13506_v3 = vpop.f32.mrf.mxu0  ;;  %v4799_v48 = vadd.f32 %v13266_v24, %v12687_v15  ;;  %v4801_v24 = vadd.f32 %v13278_v36, %v12692_v5 }
 0x8a8   :  { %v9371_v0 = vpop.eup %9370  ;;  %9396 = vrcp.f32 %v6209_v44  ;;  %v6215_v26 = vadd.f32 1.0, %v9369_v57  ;;  %v7445_v44 = vmul.f32 -1.442695, %v4982_v39  ;;  %v4986_v57 = vadd.f32 %v13253_v61, %v12689_v12 }
 0x8a9   :  { %v9373_v32 = vpop.eup %9372  ;;  %9398 = vrcp.f32 %v6211_v31  ;;  %v6217_v9 = vadd.f32 1.0, %v9371_v0  ;;  %v7446_v39 = vmul.f32 -1.442695, %v4984_v38  ;;  %v4988_v61 = vadd.f32 %v13260_v34, %v12694_v53  ;;  %v13520_v0 = vpop.f32.mrf.mxu1 }
 0x8aa   :  { %v9375_v62 = vpop.eup %9374  ;;  %9400 = vrcp.f32 %v6215_v26  ;;  %v6216_v21 = vadd.f32 1.0, %v9373_v32  ;;  %v13527_v32 = vpop.f32.mrf.mxu0  ;;  %v7452_v34 = vmul.f32 -1.442695, %v4986_v57  ;;  %v4992_v38 = vadd.f32 %v13264_v33, %v12689_v12 }
 0x8ab   :  { %v9377_v49 = vpop.eup %9376  ;;  %9402 = vrcp.f32 %v6217_v9  ;;  %v6218_v14 = vadd.f32 1.0, %v9375_v62  ;;  %v7453_v59 = vmul.f32 -1.442695, %v4988_v61  ;;  %v4994_v33 = vadd.f32 %v13270_v51, %v12694_v53 }
 0x8ac   :  { %v9379_v31 = vpop.eup %9378  ;;  %6866 = vst [vmem:[%s14336_s17 + $0x540] sm:$0xff] %v9377_v49  ;;  %9404 = vrcp.f32 %v6216_v21  ;;  %v7451_v21 = vmul.f32 -1.442695, %v4795_v52  ;;  %v13544_v49 = vpop.f32.mrf.mxu1  ;;  %v4803_v36 = vadd.f32 %v13296_v22, %v12687_v15  ;;  %v7459_v51 = vmul.f32 -1.442695, %v4992_v38 }
 0x8ad   :  { %v9381_v7 = vpop.eup %9380  ;;  %6868 = vst [vmem:[%s14336_s17 + $0x550] sm:$0xff] %v9379_v31  ;;  %9406 = vrcp.f32 %v6218_v14  ;;  %v13551_v57 = vpop.f32.mrf.mxu0  ;;  %v4805_v15 = vadd.f32 %v13320_v19, %v12692_v5 }
 0x8ae   :  { %v9383_v26 = vpop.eup %9382  ;;  %6867 = vst [vmem:[%s14336_s17 + $0x548] sm:$0xff] %v9381_v7  ;;  %9408 = vpow2.f32 %v7443_v29  ;;  %v7458_v7 = vmul.f32 -1.442695, %v4801_v24 }
 0x8af   :  { %v9385_v9 = vpop.eup %9384  ;;  %6869 = vst [vmem:[%s14336_s17 + $0x558] sm:$0xff] %v9383_v26  ;;  %9410 = vpow2.f32 %v7445_v44  ;;  %v7457_v44 = vmul.f32 -1.442695, %v4799_v48  ;;  %v7464_v26 = vmul.f32 -1.442695, %v4803_v36  ;;  %v13573_v5 = vpop.f32.mrf.mxu0 }
 0x8b0   :  { %v9387_v62 = vpop.eup %9386  ;;  %6873 = vst [vmem:[%s14336_s17 + $0x578] sm:$0xff] %v9385_v9  ;;  %9412 = vpow2.f32 %v7444_v25  ;;  %v4996_v25 = vadd.f32 %v13282_v18, %v12689_v12  ;;  %v4998_v12 = vadd.f32 %v13303_v2, %v12694_v53  ;;  %v13568_v18 = vpop.f32.mrf.mxu1  ;;  %v7465_v53 = vmul.f32 -1.442695, %v4805_v15 }
 0x8b1   :  { %v9389_v29 = vpop.eup %9388  ;;  %6875 = vst [vmem:[%s14336_s17 + $0x588] sm:$0xff] %v9387_v62  ;;  %9414 = vpow2.f32 %v7446_v39  ;;  %v7460_v39 = vmul.f32 -1.442695, %v4994_v33  ;;  %v13589_v62 = vpop.f32.mrf.mxu0 }
 0x8b2   :  { %v9391_v14 = vpop.eup %9390  ;;  %6874 = vst [vmem:[%s14336_s17 + $0x580] sm:$0xff] %v9389_v29  ;;  %9416 = vpow2.f32 %v7450_v35  ;;  %v7466_v35 = vmul.f32 -1.442695, %v4996_v25  ;;  %v7467_v9 = vmul.f32 -1.442695, %v4998_v12 }
 0x8b3   :  { %v9393_v31 = vpop.eup %9392  ;;  %6876 = vst [vmem:[%s14336_s17 + $0x590] sm:$0xff] %v9391_v14  ;;  %9418 = vpow2.f32 %v7452_v34  ;;  %v13584_v34 = vpop.f32.mrf.mxu1  ;;  %v4021_v14 = vsub.s32 4, %v14502_v56 }
 0x8b4   :  { %v9395_v52 = vpop.eup %9394  ;;  %6880 = vst [vmem:[%s14336_s17 + $0x5b0] sm:$0xff] %v9393_v31  ;;  %9420 = vpow2.f32 %v7451_v21 }
 0x8b5   :  { %v9397_v22 = vpop.eup %9396  ;;  %6882 = vst [vmem:[%s14336_s17 + $0x5c0] sm:$0xff] %v9395_v52  ;;  %9422 = vpow2.f32 %v7453_v59 }
 0x8b6   :  { %v9399_v61 = vpop.eup %9398  ;;  %6881 = vst [vmem:[%s14336_s17 + $0x5b8] sm:$0xff] %v9397_v22  ;;  %9424 = vpow2.f32 %v7457_v44  ;;  %v13595_v44 = vpop.f32.mrf.mxu1 }
 0x8b7   :  { %v9401_v19 = vpop.eup %9400  ;;  %6883 = vst [vmem:[%s14336_s17 + $0x5c8] sm:$0xff] %v9399_v61  ;;  %9426 = vpow2.f32 %v7459_v51  ;;  %v13597_v51 = vpop.f32.mrf.mxu0 }
 0x8b8   :  { %v9403_v48 = vpop.eup %9402  ;;  %6887 = vst [vmem:[%s14336_s17 + $0x5e8] sm:$0xff] %v9401_v19  ;;  %9428 = vpow2.f32 %v7458_v7  ;;  %v4025_v7 = vsub.s32 5, %v14502_v56 }
 0x8b9   :  { %v9405_v2 = vpop.eup %9404  ;;  %6889 = vst [vmem:[%s14336_s17 + $0x5f8] sm:$0xff] %v9403_v48  ;;  %9430 = vpow2.f32 %v7460_v39  ;;  %v4029_v39 = vsub.s32 6, %v14502_v56 }
 0x8ba   :  { %v9407_v38 = vpop.eup %9406  ;;  %6888 = vst [vmem:[%s14336_s17 + $0x5f0] sm:$0xff] %v9405_v2  ;;  %9432 = vpow2.f32 %v7464_v26  ;;  %v9856_v26 = vld [vmem:[%s14335_s16] sm:$0xff]  ;;  %v13608_v2 = vpop.f32.mrf.mxu0 }
 0x8bb   :  { %v9409_v21 = vpop.eup %9408  ;;  %6890 = vst [vmem:[%s14336_s17 + $0x600] sm:$0xff] %v9407_v38  ;;  %9434 = vpow2.f32 %v7466_v35  ;;  %v13604_v19 = vrot.slane %v9856_v26, %v4021_v14  ;;  %v13606_v35 = vpop.f32.mrf.mxu1  ;;  %v13610_v56 = vrot.slane %v9856_v26, %v4025_v7 }
 0x8bc   :  { %v9411_v24 = vpop.eup %9410  ;;  %v6222_v29 = vadd.f32 1.0, %v9409_v21  ;;  %9436 = vpow2.f32 %v7465_v53  ;;  %v13620_v7 = vpop.f32.mrf.mxu0 }
 0x8bd   :  { %v9413_v59 = vpop.eup %9412  ;;  %v6224_v33 = vadd.f32 1.0, %v9411_v24  ;;  %9438 = vpow2.f32 %v7467_v9 }
 0x8be   :  { %v9415_v36 = vpop.eup %9414  ;;  %9440 = vrcp.f32 %v6222_v29  ;;  %v6223_v31 = vadd.f32 1.0, %v9413_v59  ;;  %v13612_v29 = vrot.slane %v9856_v26, %v4029_v39  ;;  %v7689_v59 = vadd.f32 %v13349_v11, %v13327_v60 }
 0x8bf   :  { %v9417_v25 = vpop.eup %9416  ;;  %9442 = vrcp.f32 %v6224_v33  ;;  %v6225_v52 = vadd.f32 1.0, %v9415_v36  ;;  %v5035_v36 = vadd.f32 %v13344_v6, %v13604_v19  ;;  %v5037_v39 = vadd.f32 %v13360_v13, %v13610_v56 }
 0x8c0   :  { %v9419_v15 = vpop.eup %9418  ;;  %9444 = vrcp.f32 %v6223_v31  ;;  %v6229_v22 = vadd.f32 1.0, %v9417_v25  ;;  %v13618_v31 = vpop.f32.mrf.mxu1  ;;  %v7692_v60 = vadd.f32 %v13372_v23, %v13365_v47  ;;  %v5228_v6 = vadd.f32 %v7689_v59, %v13612_v29 }
 0x8c1   :  { %v9421_v12 = vpop.eup %9420  ;;  %9446 = vrcp.f32 %v6225_v52  ;;  %v6231_v61 = vadd.f32 1.0, %v9419_v15  ;;  %v5041_v47 = vadd.f32 %v13374_v50, %v13610_v56  ;;  %v7695_v23 = vadd.f32 %v13382_v37, %v13376_v63 }
 0x8c2   :  { %v9423_v48 = vpop.eup %9422  ;;  %9448 = vrcp.f32 %v6229_v22  ;;  %v6230_v53 = vadd.f32 1.0, %v9421_v12  ;;  %v5045_v50 = vadd.f32 %v13378_v58, %v13604_v19  ;;  %v5047_v37 = vadd.f32 %v13390_v28, %v13610_v56 }
 0x8c3   :  { %v9425_v9 = vpop.eup %9424  ;;  %9450 = vrcp.f32 %v6231_v61  ;;  %v6232_v38 = vadd.f32 1.0, %v9423_v48  ;;  %v7251_v48 = vmul.f32 -1.442695, %v5035_v36  ;;  %v7253_v36 = vmul.f32 -1.442695, %v5228_v6 }
 0x8c4   :  { %v9427_v21 = vpop.eup %9426  ;;  %9452 = vrcp.f32 %v6230_v53  ;;  %v6236_v24 = vadd.f32 1.0, %v9425_v9  ;;  %v5039_v53 = vadd.f32 %v13370_v43, %v13604_v19  ;;  %v13629_v9 = vpop.f32.mrf.mxu1  ;;  %v7259_v58 = vmul.f32 -1.442695, %v5041_v47 }
 0x8c5   :  { %v9429_v33 = vpop.eup %9428  ;;  %9454 = vrcp.f32 %v6232_v38  ;;  %v6238_v14 = vadd.f32 1.0, %v9427_v21  ;;  %v13635_v21 = vpop.f32.mrf.mxu0  ;;  %v5051_v6 = vadd.f32 %v13432_v30, %v13610_v56 }
 0x8c6   :  { %v9431_v25 = vpop.eup %9430  ;;  %9456 = vrcp.f32 %v6236_v24  ;;  %v6237_v52 = vadd.f32 1.0, %v9429_v33  ;;  %v7252_v33 = vmul.f32 -1.442695, %v5037_v39  ;;  %v7258_v63 = vmul.f32 -1.442695, %v5039_v53 }
 0x8c7   :  { %v9433_v15 = vpop.eup %9432  ;;  %9458 = vrcp.f32 %v6238_v14  ;;  %v6239_v22 = vadd.f32 1.0, %v9431_v25  ;;  %v5231_v14 = vadd.f32 %v7692_v60, %v13612_v29  ;;  %v5236_v39 = vadd.f32 %v7695_v23, %v13612_v29  ;;  %v13656_v60 = vpop.f32.mrf.mxu0 }
 0x8c8   :  { %v9435_v11 = vpop.eup %9434  ;;  %9460 = vrcp.f32 %v6237_v52  ;;  %v6243_v12 = vadd.f32 1.0, %v9433_v15  ;;  %v7698_v52 = vadd.f32 %v13415_v8, %v13394_v17  ;;  %v13650_v15 = vpop.f32.mrf.mxu1  ;;  %v5049_v17 = vadd.f32 %v13408_v54, %v13604_v19 }
 0x8c9   :  { %v9437_v61 = vpop.eup %9436  ;;  %9462 = vrcp.f32 %v6239_v22  ;;  %v6245_v26 = vadd.f32 1.0, %v9435_v11  ;;  %v7260_v28 = vmul.f32 -1.442695, %v5231_v14  ;;  %v7266_v54 = vmul.f32 -1.442695, %v5047_v37 }
 0x8ca   :  { %v9439_v38 = vpop.eup %9438  ;;  %9464 = vrcp.f32 %v6243_v12  ;;  %v6244_v13 = vadd.f32 1.0, %v9437_v61  ;;  %v7265_v12 = vmul.f32 -1.442695, %v5045_v50  ;;  %v7701_v61 = vadd.f32 %v13461_v20, %v13439_v1  ;;  %v13674_v53 = vpop.f32.mrf.mxu1 }
 0x8cb   :  { %v9441_v24 = vpop.eup %9440  ;;  %9466 = vrcp.f32 %v6245_v26  ;;  %v6246_v59 = vadd.f32 1.0, %v9439_v38  ;;  %v7267_v30 = vmul.f32 -1.442695, %v5236_v39  ;;  %v5055_v1 = vadd.f32 %v13456_v4, %v13604_v19  ;;  %v13681_v20 = vpop.f32.mrf.mxu0 }
 0x8cc   :  { %v9443_v43 = vpop.eup %9442  ;;  %6894 = vst [vmem:[%s14336_s17 + $0x620] sm:$0xff] %v9441_v24  ;;  %9468 = vrcp.f32 %v6244_v13  ;;  %v7272_v47 = vmul.f32 -1.442695, %v5049_v17  ;;  %v5057_v23 = vadd.f32 %v13472_v40, %v13610_v56  ;;  %v5244_v4 = vadd.f32 %v7701_v61, %v13612_v29  ;;  %v13697_v40 = vpop.f32.mrf.mxu1 }
 0x8cd   :  { %v9445_v25 = vpop.eup %9444  ;;  %6896 = vst [vmem:[%s14336_s17 + $0x630] sm:$0xff] %v9443_v43  ;;  %9470 = vrcp.f32 %v6246_v59  ;;  %v7273_v59 = vmul.f32 -1.442695, %v5051_v6  ;;  %v5059_v43 = vadd.f32 %v13482_v27, %v13604_v19  ;;  %v7279_v50 = vmul.f32 -1.442695, %v5055_v1 }
 0x8ce   :  { %v9447_v22 = vpop.eup %9446  ;;  %6895 = vst [vmem:[%s14336_s17 + $0x628] sm:$0xff] %v9445_v25  ;;  %9472 = vpow2.f32 %v7251_v48  ;;  %v5239_v48 = vadd.f32 %v7698_v52, %v13612_v29  ;;  %v13702_v25 = vpop.f32.mrf.mxu0  ;;  %v7280_v37 = vmul.f32 -1.442695, %v5057_v23  ;;  %v7281_v27 = vmul.f32 -1.442695, %v5244_v4 }
 0x8cf   :  { %v9449_v11 = vpop.eup %9448  ;;  %6897 = vst [vmem:[%s14336_s17 + $0x638] sm:$0xff] %v9447_v22  ;;  %9474 = vpow2.f32 %v7252_v33  ;;  %v13713_v39 = vpop.f32.mrf.mxu1 }
 0x8d0   :  { %v9451_v8 = vpop.eup %9450  ;;  %6901 = vst [vmem:[%s14336_s17 + $0x658] sm:$0xff] %v9449_v11  ;;  %9476 = vpow2.f32 %v7253_v36  ;;  %v7274_v14 = vmul.f32 -1.442695, %v5239_v48 }
 0x8d1   :  { %v9453_v26 = vpop.eup %9452  ;;  %6903 = vst [vmem:[%s14336_s17 + $0x668] sm:$0xff] %v9451_v8  ;;  %9478 = vpow2.f32 %v7258_v63 }
 0x8d2   :  { %v9455_v38 = vpop.eup %9454  ;;  %6902 = vst [vmem:[%s14336_s17 + $0x660] sm:$0xff] %v9453_v26  ;;  %9480 = vpow2.f32 %v7259_v58  ;;  %v7286_v58 = vmul.f32 -1.442695, %v5059_v43  ;;  %v13723_v26 = vpop.f32.mrf.mxu1 }
 0x8d3   :  { %v9457_v13 = vpop.eup %9456  ;;  %6904 = vst [vmem:[%s14336_s17 + $0x670] sm:$0xff] %v9455_v38  ;;  %9482 = vpow2.f32 %v7260_v28  ;;  %v13718_v28 = vpop.f32.mrf.mxu0 }
 0x8d4   :  { %v9459_v24 = vpop.eup %9458  ;;  %6908 = vst [vmem:[%s14336_s17 + $0x690] sm:$0xff] %v9457_v13  ;;  %9484 = vpow2.f32 %v7265_v12 }
 0x8d5   :  { %v9461_v33 = vpop.eup %9460  ;;  %6910 = vst [vmem:[%s14336_s17 + $0x6a0] sm:$0xff] %v9459_v24  ;;  %9486 = vpow2.f32 %v7266_v54  ;;  %v13725_v38 = vpop.f32.mrf.mxu0 }
 0x8d6   :  { %v9463_v36 = vpop.eup %9462  ;;  %6909 = vst [vmem:[%s14336_s17 + $0x698] sm:$0xff] %v9461_v33  ;;  %9488 = vpow2.f32 %v7267_v30 }
 0x8d7   :  { %v9465_v63 = vpop.eup %9464  ;;  %6911 = vst [vmem:[%s14336_s17 + $0x6a8] sm:$0xff] %v9463_v36  ;;  %9490 = vpow2.f32 %v7272_v47 }
 0x8d8   :  { %v9467_v52 = vpop.eup %9466  ;;  %6915 = vst [vmem:[%s14336_s17 + $0x6c8] sm:$0xff] %v9465_v63  ;;  %9492 = vpow2.f32 %v7273_v59  ;;  %v13727_v59 = vpop.f32.mrf.mxu1 }
 0x8d9   :  { %v9469_v22 = vpop.eup %9468  ;;  %6917 = vst [vmem:[%s14336_s17 + $0x6d8] sm:$0xff] %v9467_v52  ;;  %9494 = vpow2.f32 %v7274_v14  ;;  %v13729_v14 = vpop.f32.mrf.mxu0 }
 0x8da   :  { %v9471_v11 = vpop.eup %9470  ;;  %6916 = vst [vmem:[%s14336_s17 + $0x6d0] sm:$0xff] %v9469_v22  ;;  %9496 = vpow2.f32 %v7279_v50  ;;  %v7704_v50 = vadd.f32 %v13484_v41, %v13477_v16  ;;  %v13733_v22 = vpop.f32.mrf.mxu1 }
 0x8db   :  { %v9473_v17 = vpop.eup %9472  ;;  %6918 = vst [vmem:[%s14336_s17 + $0x6e0] sm:$0xff] %v9471_v11  ;;  %9498 = vpow2.f32 %v7280_v37 }
 0x8dc   :  { %v9475_v8 = vpop.eup %9474  ;;  %v6030_v12 = vadd.f32 1.0, %v9473_v17  ;;  %9500 = vpow2.f32 %v7281_v27  ;;  %v5061_v17 = vadd.f32 %v13486_v46, %v13610_v56  ;;  %v5067_v46 = vadd.f32 %v13502_v55, %v13610_v56 }
 0x8dd   :  { %v9477_v6 = vpop.eup %9476  ;;  %v6031_v61 = vadd.f32 1.0, %v9475_v8  ;;  %9502 = vpow2.f32 %v7286_v58  ;;  %v7707_v8 = vadd.f32 %v13494_v45, %v13488_v42  ;;  %v7710_v42 = vadd.f32 %v13527_v32, %v13506_v3  ;;  %v13748_v45 = vpop.f32.mrf.mxu1 }
 0x8de   :  { %v9479_v54 = vpop.eup %9478  ;;  %9504 = vrcp.f32 %v6030_v12  ;;  %v6032_v48 = vadd.f32 1.0, %v9477_v6  ;;  %v13739_v12 = vpop.f32.mrf.mxu0  ;;  %v5247_v6 = vadd.f32 %v7704_v50, %v13612_v29  ;;  %v5069_v55 = vadd.f32 %v13520_v0, %v13604_v19 }
 0x8df   :  { %v9481_v30 = vpop.eup %9480  ;;  %9506 = vrcp.f32 %v6031_v61  ;;  %v6037_v1 = vadd.f32 1.0, %v9479_v54  ;;  %v5071_v32 = vadd.f32 %v13544_v49, %v13610_v56  ;;  %v7713_v50 = vadd.f32 %v13573_v5, %v13551_v57 }
 0x8e0   :  { %v9483_v13 = vpop.eup %9482  ;;  %9508 = vrcp.f32 %v6032_v48  ;;  %v6038_v47 = vadd.f32 1.0, %v9481_v30  ;;  %v5065_v48 = vadd.f32 %v13490_v10, %v13604_v19  ;;  %v7294_v0 = vmul.f32 -1.442695, %v5067_v46 }
 0x8e1   :  { %v9485_v23 = vpop.eup %9484  ;;  %9510 = vrcp.f32 %v6037_v1  ;;  %v6039_v24 = vadd.f32 1.0, %v9483_v13  ;;  %v5075_v57 = vadd.f32 %v13568_v18, %v13604_v19  ;;  %v7301_v18 = vmul.f32 -1.442695, %v5071_v32 }
 0x8e2   :  { %v9487_v4 = vpop.eup %9486  ;;  %9512 = vrcp.f32 %v6038_v47  ;;  %v6044_v33 = vadd.f32 1.0, %v9485_v23  ;;  %v7287_v23 = vmul.f32 -1.442695, %v5061_v17  ;;  %v7293_v3 = vmul.f32 -1.442695, %v5065_v48 }
 0x8e3   :  { %v9489_v43 = vpop.eup %9488  ;;  %9514 = vrcp.f32 %v6039_v24  ;;  %v6045_v36 = vadd.f32 1.0, %v9487_v4  ;;  %v5252_v24 = vadd.f32 %v7707_v8, %v13612_v29  ;;  %v13751_v4 = vpop.f32.mrf.mxu0  ;;  %v5077_v17 = vadd.f32 %v13584_v34, %v13610_v56 }
 0x8e4   :  { %v9491_v63 = vpop.eup %9490  ;;  %9516 = vrcp.f32 %v6044_v33  ;;  %v6046_v37 = vadd.f32 1.0, %v9489_v43  ;;  %v7288_v43 = vmul.f32 -1.442695, %v5247_v6  ;;  %v7716_v8 = vadd.f32 %v13597_v51, %v13589_v62 }
 0x8e5   :  { %v9493_v52 = vpop.eup %9492  ;;  %9518 = vrcp.f32 %v6045_v36  ;;  %v6051_v27 = vadd.f32 1.0, %v9491_v63  ;;  %v7295_v49 = vmul.f32 -1.442695, %v5252_v24  ;;  %v13773_v5 = vpop.f32.mrf.mxu0  ;;  %v5079_v34 = vadd.f32 %v13595_v44, %v13604_v19 }
 0x8e6   :  { %v9495_v58 = vpop.eup %9494  ;;  %9520 = vrcp.f32 %v6046_v37  ;;  %v6052_v11 = vadd.f32 1.0, %v9493_v52  ;;  %v5255_v37 = vadd.f32 %v7710_v42, %v13612_v29  ;;  %v13766_v52 = vpop.f32.mrf.mxu1  ;;  %v5081_v48 = vadd.f32 %v13606_v35, %v13610_v56 }
 0x8e7   :  { %v9497_v16 = vpop.eup %9496  ;;  %9522 = vrcp.f32 %v6051_v27  ;;  %v6053_v41 = vadd.f32 1.0, %v9495_v58  ;;  %v7308_v44 = vmul.f32 -1.442695, %v5077_v17  ;;  %v5263_v46 = vadd.f32 %v7716_v8, %v13612_v29 }
 0x8e8   :  { %v9499_v61 = vpop.eup %9498  ;;  %9524 = vrcp.f32 %v6052_v11  ;;  %v6058_v54 = vadd.f32 1.0, %v9497_v16  ;;  %v7300_v11 = vmul.f32 -1.442695, %v5069_v55  ;;  %v13791_v62 = vpop.f32.mrf.mxu1  ;;  %v5085_v35 = vadd.f32 %v13618_v31, %v13604_v19 }
 0x8e9   :  { %v9501_v30 = vpop.eup %9500  ;;  %9526 = vrcp.f32 %v6053_v41  ;;  %v6059_v1 = vadd.f32 1.0, %v9499_v61  ;;  %v5260_v41 = vadd.f32 %v7713_v50, %v13612_v29  ;;  %v7302_v61 = vmul.f32 -1.442695, %v5255_v37 }
 0x8ea   :  { %v9503_v13 = vpop.eup %9502  ;;  %9528 = vrcp.f32 %v6058_v54  ;;  %v6060_v47 = vadd.f32 1.0, %v9501_v30  ;;  %v7307_v54 = vmul.f32 -1.442695, %v5075_v57  ;;  %v13798_v30 = vpop.f32.mrf.mxu0  ;;  %v5087_v24 = vadd.f32 %v13629_v9, %v13610_v56 }
 0x8eb   :  { %v9505_v10 = vpop.eup %9504  ;;  %9530 = vrcp.f32 %v6059_v1  ;;  %v6065_v33 = vadd.f32 1.0, %v9503_v13  ;;  %v7309_v13 = vmul.f32 -1.442695, %v5260_v41  ;;  %v7321_v9 = vmul.f32 -1.442695, %v5085_v35 }
 0x8ec   :  { %v9507_v36 = vpop.eup %9506  ;;  %6702 = vst [vmem:[%s14336_s17 + $0x20] sm:$0xff] %v9505_v10  ;;  %9532 = vrcp.f32 %v6060_v47  ;;  %v13814_v10 = vpop.f32.mrf.mxu1  ;;  %v7322_v50 = vmul.f32 -1.442695, %v5087_v24 }
 0x8ed   :  { %v9509_v63 = vpop.eup %9508  ;;  %6703 = vst [vmem:[%s14336_s17 + $0x28] sm:$0xff] %v9507_v36  ;;  %9534 = vrcp.f32 %v6065_v33  ;;  %v13819_v31 = vpop.f32.mrf.mxu0  ;;  %v7316_v36 = vmul.f32 -1.442695, %v5263_v46 }
 0x8ee   :  { %v9511_v27 = vpop.eup %9510  ;;  %6704 = vst [vmem:[%s14336_s17 + $0x30] sm:$0xff] %v9509_v63  ;;  %9536 = vpow2.f32 %v7287_v23  ;;  %v7314_v23 = vmul.f32 -1.442695, %v5079_v34  ;;  %v13830_v63 = vpop.f32.mrf.mxu1 }
 0x8ef   :  { %v9513_v58 = vpop.eup %9512  ;;  %6709 = vst [vmem:[%s14336_s17 + $0x58] sm:$0xff] %v9511_v27  ;;  %9538 = vpow2.f32 %v7288_v43  ;;  %v7315_v43 = vmul.f32 -1.442695, %v5081_v48  ;;  %v13835_v37 = vpop.f32.mrf.mxu0  ;;  %v7719_v48 = vadd.f32 %v13620_v7, %v13608_v2  ;;  %v7722_v2 = vadd.f32 %v13656_v60, %v13635_v21 }
 0x8f0   :  { %v9515_v16 = vpop.eup %9514  ;;  %6710 = vst [vmem:[%s14336_s17 + $0x60] sm:$0xff] %v9513_v58  ;;  %9540 = vpow2.f32 %v7293_v3  ;;  %v13840_v17 = vpop.f32.mrf.mxu1  ;;  %v7725_v21 = vadd.f32 %v13702_v25, %v13681_v20  ;;  %v5097_v25 = vadd.f32 %v13713_v39, %v13610_v56  ;;  %v5099_v39 = vadd.f32 %v13723_v26, %v13604_v19 }
 0x8f1   :  { %v9517_v6 = vpop.eup %9516  ;;  %6711 = vst [vmem:[%s14336_s17 + $0x68] sm:$0xff] %v9515_v16  ;;  %9542 = vpow2.f32 %v7294_v0 }
 0x8f2   :  { %v9519_v51 = vpop.eup %9518  ;;  %6716 = vst [vmem:[%s14336_s17 + $0x90] sm:$0xff] %v9517_v6  ;;  %9544 = vpow2.f32 %v7295_v49  ;;  %v7336_v26 = vmul.f32 -1.442695, %v5097_v25 }
 0x8f3   :  { %v9521_v1 = vpop.eup %9520  ;;  %6717 = vst [vmem:[%s14336_s17 + $0x98] sm:$0xff] %v9519_v51  ;;  %9546 = vpow2.f32 %v7300_v11 }
 0x8f4   :  { %v9523_v42 = vpop.eup %9522  ;;  %6718 = vst [vmem:[%s14336_s17 + $0xa0] sm:$0xff] %v9521_v1  ;;  %9548 = vpow2.f32 %v7301_v18  ;;  %v13842_v18 = vpop.f32.mrf.mxu0 }
 0x8f5   :  { %v9525_v47 = vpop.eup %9524  ;;  %6723 = vst [vmem:[%s14336_s17 + $0xc8] sm:$0xff] %v9523_v42  ;;  %9550 = vpow2.f32 %v7302_v61  ;;  %v13846_v1 = vpop.f32.mrf.mxu1 }
 0x8f6   :  { %v9527_v33 = vpop.eup %9526  ;;  %6724 = vst [vmem:[%s14336_s17 + $0xd0] sm:$0xff] %v9525_v47  ;;  %9552 = vpow2.f32 %v7307_v54  ;;  %v13848_v42 = vpop.f32.mrf.mxu0 }
 0x8f7   :  { %v9529_v55 = vpop.eup %9528  ;;  %6725 = vst [vmem:[%s14336_s17 + $0xd8] sm:$0xff] %v9527_v33  ;;  %9554 = vpow2.f32 %v7308_v44  ;;  %v13853_v7 = vpop.f32.mrf.mxu1 }
 0x8f8   :  { %v9531_v3 = vpop.eup %9530  ;;  %6730 = vst [vmem:[%s14336_s17 + $0x100] sm:$0xff] %v9529_v55  ;;  %9556 = vpow2.f32 %v7309_v13 }
 0x8f9   :  { %v9533_v32 = vpop.eup %9532  ;;  %6731 = vst [vmem:[%s14336_s17 + $0x108] sm:$0xff] %v9531_v3  ;;  %9558 = vpow2.f32 %v7314_v23  ;;  %v5089_v3 = vadd.f32 %v13650_v15, %v13604_v19  ;;  %v5271_v15 = vadd.f32 %v7722_v2, %v13612_v29  ;;  %v5107_v2 = vadd.f32 %v13748_v45, %v13610_v56 }
 0x8fa   :  { %v9535_v0 = vpop.eup %9534  ;;  %6732 = vst [vmem:[%s14336_s17 + $0x110] sm:$0xff] %v9533_v32  ;;  %9560 = vpow2.f32 %v7315_v43  ;;  %v5268_v43 = vadd.f32 %v7719_v48, %v13612_v29 }
 0x8fb   :  { %v9537_v27 = vpop.eup %9536  ;;  %6737 = vst [vmem:[%s14336_s17 + $0x138] sm:$0xff] %v9535_v0  ;;  %9562 = vpow2.f32 %v7316_v36 }
 0x8fc   :  { %v9539_v49 = vpop.eup %9538  ;;  %v6066_v57 = vadd.f32 1.0, %v9537_v27  ;;  %9564 = vpow2.f32 %v7321_v9  ;;  %v13857_v9 = vpop.f32.mrf.mxu0 }
 0x8fd   :  { %v9541_v58 = vpop.eup %9540  ;;  %v6067_v11 = vadd.f32 1.0, %v9539_v49  ;;  %9566 = vpow2.f32 %v7322_v50  ;;  %v5091_v49 = vadd.f32 %v13674_v53, %v13610_v56 }
 0x8fe   :  { %v9543_v8 = vpop.eup %9542  ;;  %9568 = vrcp.f32 %v6066_v57  ;;  %v6072_v16 = vadd.f32 1.0, %v9541_v58  ;;  %v7323_v58 = vmul.f32 -1.442695, %v5268_v43  ;;  %v7342_v43 = vmul.f32 -1.442695, %v5099_v39 }
 0x8ff   :  { %v9545_v41 = vpop.eup %9544  ;;  %9570 = vrcp.f32 %v6067_v11  ;;  %v6073_v6 = vadd.f32 1.0, %v9543_v8  ;;  %v13864_v11 = vpop.f32.mrf.mxu1 }
 0x900   :  { %v9547_v61 = vpop.eup %9546  ;;  %9572 = vrcp.f32 %v6072_v16  ;;  %v6074_v34 = vadd.f32 1.0, %v9545_v41  ;;  %v7328_v41 = vmul.f32 -1.442695, %v5089_v3 }
 0x901   :  { %v9549_v51 = vpop.eup %9548  ;;  %9574 = vrcp.f32 %v6073_v6  ;;  %v6079_v54 = vadd.f32 1.0, %v9547_v61  ;;  %v5095_v6 = vadd.f32 %v13697_v40, %v13604_v19  ;;  %v13868_v61 = vpop.f32.mrf.mxu0  ;;  %v5276_v40 = vadd.f32 %v7725_v21, %v13612_v29 }
 0x902   :  { %v9551_v44 = vpop.eup %9550  ;;  %9576 = vrcp.f32 %v6074_v34  ;;  %v6080_v46 = vadd.f32 1.0, %v9549_v51  ;;  %v7728_v34 = vadd.f32 %v13725_v38, %v13718_v28  ;;  %v13883_v28 = vpop.f32.mrf.mxu1 }
 0x903   :  { %v9553_v13 = vpop.eup %9552  ;;  %9578 = vrcp.f32 %v6079_v54  ;;  %v6081_v35 = vadd.f32 1.0, %v9551_v44  ;;  %v7329_v54 = vmul.f32 -1.442695, %v5091_v49  ;;  %v7330_v44 = vmul.f32 -1.442695, %v5271_v15 }
 0x904   :  { %v9555_v47 = vpop.eup %9554  ;;  %9580 = vrcp.f32 %v6080_v46  ;;  %v6086_v23 = vadd.f32 1.0, %v9553_v13  ;;  %v7335_v46 = vmul.f32 -1.442695, %v5095_v6  ;;  %v5101_v13 = vadd.f32 %v13727_v59, %v13610_v56 }
 0x905   :  { %v9557_v24 = vpop.eup %9556  ;;  %9582 = vrcp.f32 %v6081_v35  ;;  %v6087_v33 = vadd.f32 1.0, %v9555_v47  ;;  %v7731_v35 = vadd.f32 %v13739_v12, %v13729_v14  ;;  %v13892_v47 = vpop.f32.mrf.mxu0  ;;  %v7337_v59 = vmul.f32 -1.442695, %v5276_v40 }
 0x906   :  { %v9559_v55 = vpop.eup %9558  ;;  %9584 = vrcp.f32 %v6086_v23  ;;  %v6088_v36 = vadd.f32 1.0, %v9557_v24  ;;  %v5279_v24 = vadd.f32 %v7728_v34, %v13612_v29  ;;  %v5105_v14 = vadd.f32 %v13733_v22, %v13604_v19 }
 0x907   :  { %v9561_v32 = vpop.eup %9560  ;;  %9586 = vrcp.f32 %v6087_v33  ;;  %v6093_v50 = vadd.f32 1.0, %v9559_v55  ;;  %v7734_v55 = vadd.f32 %v13773_v5, %v13751_v4  ;;  %v7343_v22 = vmul.f32 -1.442695, %v5101_v13 }
 0x908   :  { %v9563_v0 = vpop.eup %9562  ;;  %9588 = vrcp.f32 %v6088_v36  ;;  %v6094_v27 = vadd.f32 1.0, %v9561_v32  ;;  %v13910_v36 = vpop.f32.mrf.mxu1  ;;  %v5284_v32 = vadd.f32 %v7731_v35, %v13612_v29  ;;  %v7344_v45 = vmul.f32 -1.442695, %v5279_v24 }
 0x909   :  { %v9565_v60 = vpop.eup %9564  ;;  %9590 = vrcp.f32 %v6093_v50  ;;  %v6095_v57 = vadd.f32 1.0, %v9563_v0  ;;  %v13916_v50 = vpop.f32.mrf.mxu0  ;;  %v5109_v4 = vadd.f32 %v13766_v52, %v13604_v19  ;;  %v5111_v49 = vadd.f32 %v13791_v62, %v13610_v56 }
 0x90a   :  { %v9567_v8 = vpop.eup %9566  ;;  %9592 = vrcp.f32 %v6094_v27  ;;  %v6100_v16 = vadd.f32 1.0, %v9565_v60  ;;  %v7349_v27 = vmul.f32 -1.442695, %v5105_v14  ;;  %v7350_v60 = vmul.f32 -1.442695, %v5107_v2  ;;  %v13932_v52 = vpop.f32.mrf.mxu1 }
 0x90b   :  { %v9569_v53 = vpop.eup %9568  ;;  %9594 = vrcp.f32 %v6095_v57  ;;  %v6101_v20 = vadd.f32 1.0, %v9567_v8  ;;  %v5287_v57 = vadd.f32 %v7734_v55, %v13612_v29  ;;  %v7351_v15 = vmul.f32 -1.442695, %v5284_v32  ;;  %v13937_v8 = vpop.f32.mrf.mxu0 }
 0x90c   :  { %v9571_v51 = vpop.eup %9570  ;;  %6738 = vst [vmem:[%s14336_s17 + $0x140] sm:$0xff] %v9569_v53  ;;  %9596 = vrcp.f32 %v6100_v16  ;;  %v7356_v16 = vmul.f32 -1.442695, %v5109_v4  ;;  %v7357_v6 = vmul.f32 -1.442695, %v5111_v49  ;;  %v13948_v25 = vpop.f32.mrf.mxu1 }
 0x90d   :  { %v9573_v48 = vpop.eup %9572  ;;  %6739 = vst [vmem:[%s14336_s17 + $0x148] sm:$0xff] %v9571_v51  ;;  %9598 = vrcp.f32 %v6101_v20  ;;  %v7358_v20 = vmul.f32 -1.442695, %v5287_v57  ;;  %v13953_v51 = vpop.f32.mrf.mxu0 }
 0x90e   :  { %v9575_v38 = vpop.eup %9574  ;;  %6744 = vst [vmem:[%s14336_s17 + $0x170] sm:$0xff] %v9573_v48  ;;  %9600 = vpow2.f32 %v7323_v58 }
 0x90f   :  { %v9577_v23 = vpop.eup %9576  ;;  %6745 = vst [vmem:[%s14336_s17 + $0x178] sm:$0xff] %v9575_v38  ;;  %9602 = vpow2.f32 %v7328_v41  ;;  %v13958_v38 = vpop.f32.mrf.mxu1 }
 0x910   :  { %v9579_v33 = vpop.eup %9578  ;;  %6746 = vst [vmem:[%s14336_s17 + $0x180] sm:$0xff] %v9577_v23  ;;  %9604 = vpow2.f32 %v7329_v54  ;;  %v13960_v35 = vpop.f32.mrf.mxu0 }
 0x911   :  { %v9581_v12 = vpop.eup %9580  ;;  %6751 = vst [vmem:[%s14336_s17 + $0x1a8] sm:$0xff] %v9579_v33  ;;  %9606 = vpow2.f32 %v7330_v44 }
 0x912   :  { %v9583_v3 = vpop.eup %9582  ;;  %6752 = vst [vmem:[%s14336_s17 + $0x1b0] sm:$0xff] %v9581_v12  ;;  %9608 = vpow2.f32 %v7335_v46  ;;  %v13962_v12 = vpop.f32.mrf.mxu1 }
 0x913   :  { %v9585_v0 = vpop.eup %9584  ;;  %6753 = vst [vmem:[%s14336_s17 + $0x1b8] sm:$0xff] %v9583_v3  ;;  %9610 = vpow2.f32 %v7336_v26  ;;  %v13964_v55 = vpop.f32.mrf.mxu0 }
 0x914   :  { %v9587_v5 = vpop.eup %9586  ;;  %6758 = vst [vmem:[%s14336_s17 + $0x1e0] sm:$0xff] %v9585_v0  ;;  %9612 = vpow2.f32 %v7337_v59  ;;  %v13970_v49 = vpop.f32.mrf.mxu1 }
 0x915   :  { %v9589_v21 = vpop.eup %9588  ;;  %6759 = vst [vmem:[%s14336_s17 + $0x1e8] sm:$0xff] %v9587_v5  ;;  %9614 = vpow2.f32 %v7342_v43  ;;  %v13972_v57 = vpop.f32.mrf.mxu0 }
 0x916   :  { %v9591_v58 = vpop.eup %9590  ;;  %6760 = vst [vmem:[%s14336_s17 + $0x1f0] sm:$0xff] %v9589_v21  ;;  %9616 = vpow2.f32 %v7343_v22 }
 0x917   :  { %v9593_v62 = vpop.eup %9592  ;;  %6765 = vst [vmem:[%s14336_s17 + $0x218] sm:$0xff] %v9591_v58  ;;  %9618 = vpow2.f32 %v7344_v45  ;;  %v7737_v45 = vadd.f32 %v13819_v31, %v13798_v30  ;;  %v7740_v30 = vadd.f32 %v13842_v18, %v13835_v37  ;;  %v5121_v37 = vadd.f32 %v13846_v1, %v13610_v56 }
 0x918   :  { %v9595_v41 = vpop.eup %9594  ;;  %6766 = vst [vmem:[%s14336_s17 + $0x220] sm:$0xff] %v9593_v62  ;;  %9620 = vpow2.f32 %v7349_v27  ;;  %v5115_v27 = vadd.f32 %v13814_v10, %v13604_v19  ;;  %v5117_v62 = vadd.f32 %v13830_v63, %v13610_v56  ;;  %v7743_v18 = vadd.f32 %v13857_v9, %v13848_v42 }
 0x919   :  { %v9597_v53 = vpop.eup %9596  ;;  %6767 = vst [vmem:[%s14336_s17 + $0x228] sm:$0xff] %v9595_v41  ;;  %9622 = vpow2.f32 %v7350_v60  ;;  %v5292_v10 = vadd.f32 %v7737_v45, %v13612_v29  ;;  %v5125_v1 = vadd.f32 %v13853_v7, %v13604_v19  ;;  %v5127_v9 = vadd.f32 %v13864_v11, %v13610_v56 }
 0x91a   :  { %v9599_v34 = vpop.eup %9598  ;;  %6772 = vst [vmem:[%s14336_s17 + $0x250] sm:$0xff] %v9597_v53  ;;  %9624 = vpow2.f32 %v7351_v15  ;;  %v7363_v53 = vmul.f32 -1.442695, %v5115_v27  ;;  %v7371_v7 = vmul.f32 -1.442695, %v5121_v37 }
 0x91b   :  { %v9601_v54 = vpop.eup %9600  ;;  %6773 = vst [vmem:[%s14336_s17 + $0x258] sm:$0xff] %v9599_v34  ;;  %9626 = vpow2.f32 %v7356_v16  ;;  %v13981_v34 = vpop.f32.mrf.mxu1 }
 0x91c   :  { %v9603_v40 = vpop.eup %9602  ;;  %v6102_v48 = vadd.f32 1.0, %v9601_v54  ;;  %9628 = vpow2.f32 %v7357_v6 }
 0x91d   :  { %v9605_v44 = vpop.eup %9604  ;;  %v6107_v39 = vadd.f32 1.0, %v9603_v40  ;;  %9630 = vpow2.f32 %v7358_v20  ;;  %v5119_v20 = vadd.f32 %v13840_v17, %v13604_v19  ;;  %v13987_v40 = vpop.f32.mrf.mxu0 }
 0x91e   :  { %v9607_v46 = vpop.eup %9606  ;;  %9632 = vrcp.f32 %v6102_v48  ;;  %v6108_v13 = vadd.f32 1.0, %v9605_v44 }
 0x91f   :  { %v9609_v23 = vpop.eup %9608  ;;  %9634 = vrcp.f32 %v6107_v39  ;;  %v6109_v26 = vadd.f32 1.0, %v9607_v46  ;;  %v7364_v39 = vmul.f32 -1.442695, %v5117_v62  ;;  %v5295_v46 = vadd.f32 %v7740_v30, %v13612_v29 }
 0x920   :  { %v9611_v24 = vpop.eup %9610  ;;  %9636 = vrcp.f32 %v6108_v13  ;;  %v6114_v33 = vadd.f32 1.0, %v9609_v23  ;;  %v7365_v13 = vmul.f32 -1.442695, %v5292_v10  ;;  %v7370_v42 = vmul.f32 -1.442695, %v5119_v20 }
 0x921   :  { %v9613_v59 = vpop.eup %9612  ;;  %9638 = vrcp.f32 %v6109_v26  ;;  %v6115_v14 = vadd.f32 1.0, %v9611_v24  ;;  %v7746_v26 = vadd.f32 %v13892_v47, %v13868_v61  ;;  %v14002_v24 = vpop.f32.mrf.mxu1  ;;  %v7372_v11 = vmul.f32 -1.442695, %v5295_v46 }
 0x922   :  { %v9615_v43 = vpop.eup %9614  ;;  %9640 = vrcp.f32 %v6114_v33  ;;  %v6116_v2 = vadd.f32 1.0, %v9613_v59  ;;  %v5300_v59 = vadd.f32 %v7743_v18, %v13612_v29  ;;  %v5129_v61 = vadd.f32 %v13883_v28, %v13604_v19 }
 0x923   :  { %v9617_v3 = vpop.eup %9616  ;;  %9642 = vrcp.f32 %v6115_v14  ;;  %v6121_v22 = vadd.f32 1.0, %v9615_v43  ;;  %v14008_v14 = vpop.f32.mrf.mxu0  ;;  %v7378_v28 = vmul.f32 -1.442695, %v5127_v9  ;;  %v5139_v30 = vadd.f32 %v13958_v38, %v13604_v19 }
 0x924   :  { %v9619_v32 = vpop.eup %9618  ;;  %9644 = vrcp.f32 %v6116_v2  ;;  %v6122_v0 = vadd.f32 1.0, %v9617_v3  ;;  %v7377_v2 = vmul.f32 -1.442695, %v5125_v1  ;;  %v5131_v3 = vadd.f32 %v13910_v36, %v13610_v56  ;;  %v14026_v45 = vpop.f32.mrf.mxu1 }
 0x925   :  { %v9621_v4 = vpop.eup %9620  ;;  %9646 = vrcp.f32 %v6121_v22  ;;  %v6123_v5 = vadd.f32 1.0, %v9619_v32  ;;  %v7749_v22 = vadd.f32 %v13937_v8, %v13916_v50  ;;  %v7379_v36 = vmul.f32 -1.442695, %v5300_v59  ;;  %v14033_v8 = vpop.f32.mrf.mxu0 }
 0x926   :  { %v9623_v21 = vpop.eup %9622  ;;  %9648 = vrcp.f32 %v6122_v0  ;;  %v6128_v60 = vadd.f32 1.0, %v9621_v4  ;;  %v5303_v0 = vadd.f32 %v7746_v26, %v13612_v29  ;;  %v5135_v50 = vadd.f32 %v13932_v52, %v13604_v19 }
 0x927   :  { %v9625_v58 = vpop.eup %9624  ;;  %9650 = vrcp.f32 %v6123_v5  ;;  %v6129_v15 = vadd.f32 1.0, %v9623_v21  ;;  %v7384_v27 = vmul.f32 -1.442695, %v5129_v61  ;;  %v5137_v21 = vadd.f32 %v13948_v25, %v13610_v56  ;;  %v14049_v25 = vpop.f32.mrf.mxu1 }
 0x928   :  { %v9627_v31 = vpop.eup %9626  ;;  %9652 = vrcp.f32 %v6128_v60  ;;  %v6130_v16 = vadd.f32 1.0, %v9625_v58  ;;  %v7385_v58 = vmul.f32 -1.442695, %v5131_v3  ;;  %v5308_v52 = vadd.f32 %v7749_v22, %v13612_v29  ;;  %v14054_v10 = vpop.f32.mrf.mxu0 }
 0x929   :  { %v9629_v41 = vpop.eup %9628  ;;  %9654 = vrcp.f32 %v6129_v15  ;;  %v6135_v6 = vadd.f32 1.0, %v9627_v31  ;;  %v7386_v62 = vmul.f32 -1.442695, %v5303_v0 }
 0x92a   :  { %v9631_v54 = vpop.eup %9630  ;;  %9656 = vrcp.f32 %v6130_v16  ;;  %v6136_v63 = vadd.f32 1.0, %v9629_v41  ;;  %v7391_v16 = vmul.f32 -1.442695, %v5135_v50  ;;  %v7393_v38 = vmul.f32 -1.442695, %v5308_v52  ;;  %v14070_v18 = vpop.f32.mrf.mxu0 }
 0x92b   :  { %v9633_v48 = vpop.eup %9632  ;;  %9658 = vrcp.f32 %v6135_v6  ;;  %v6137_v44 = vadd.f32 1.0, %v9631_v54  ;;  %v7392_v6 = vmul.f32 -1.442695, %v5137_v21  ;;  %v7398_v54 = vmul.f32 -1.442695, %v5139_v30 }
 0x92c   :  { %v9635_v17 = vpop.eup %9634  ;;  %6774 = vst [vmem:[%s14336_s17 + $0x260] sm:$0xff] %v9633_v48  ;;  %9660 = vrcp.f32 %v6136_v63  ;;  %v14065_v63 = vpop.f32.mrf.mxu1  ;;  %v5141_v21 = vadd.f32 %v13962_v12, %v13610_v56  ;;  %v5145_v30 = vadd.f32 %v13970_v49, %v13604_v19  ;;  %v5147_v12 = vadd.f32 %v13981_v34, %v13610_v56 }
 0x92d   :  { %v9637_v23 = vpop.eup %9636  ;;  %6779 = vst [vmem:[%s14336_s17 + $0x288] sm:$0xff] %v9635_v17  ;;  %9662 = vrcp.f32 %v6137_v44  ;;  %v5149_v34 = vadd.f32 %v14002_v24, %v13604_v19 }
 0x92e   :  { %v9639_v33 = vpop.eup %9638  ;;  %6780 = vst [vmem:[%s14336_s17 + $0x290] sm:$0xff] %v9637_v23  ;;  %9664 = vpow2.f32 %v7363_v53  ;;  %v7406_v24 = vmul.f32 -1.442695, %v5147_v12 }
 0x92f   :  { %v9641_v43 = vpop.eup %9640  ;;  %6781 = vst [vmem:[%s14336_s17 + $0x298] sm:$0xff] %v9639_v33  ;;  %9666 = vpow2.f32 %v7364_v39 }
 0x930   :  { %v9643_v47 = vpop.eup %9642  ;;  %6786 = vst [vmem:[%s14336_s17 + $0x2c0] sm:$0xff] %v9641_v43  ;;  %9668 = vpow2.f32 %v7365_v13  ;;  %v14075_v13 = vpop.f32.mrf.mxu1 }
 0x931   :  { %v9645_v32 = vpop.eup %9644  ;;  %6787 = vst [vmem:[%s14336_s17 + $0x2c8] sm:$0xff] %v9643_v47  ;;  %9670 = vpow2.f32 %v7370_v42  ;;  %v14077_v42 = vpop.f32.mrf.mxu0 }
 0x932   :  { %v9647_v4 = vpop.eup %9646  ;;  %6788 = vst [vmem:[%s14336_s17 + $0x2d0] sm:$0xff] %v9645_v32  ;;  %9672 = vpow2.f32 %v7371_v7  ;;  %v7752_v32 = vadd.f32 %v13960_v35, %v13953_v51 }
 0x933   :  { %v9649_v5 = vpop.eup %9648  ;;  %6793 = vst [vmem:[%s14336_s17 + $0x2f8] sm:$0xff] %v9647_v4  ;;  %9674 = vpow2.f32 %v7372_v11  ;;  %v14079_v11 = vpop.f32.mrf.mxu1 }
 0x934   :  { %v9651_v60 = vpop.eup %9650  ;;  %6794 = vst [vmem:[%s14336_s17 + $0x300] sm:$0xff] %v9649_v5  ;;  %9676 = vpow2.f32 %v7377_v2  ;;  %v14081_v2 = vpop.f32.mrf.mxu0  ;;  %v5311_v52 = vadd.f32 %v7752_v32, %v13612_v29 }
 0x935   :  { %v9653_v15 = vpop.eup %9652  ;;  %6795 = vst [vmem:[%s14336_s17 + $0x308] sm:$0xff] %v9651_v60  ;;  %9678 = vpow2.f32 %v7378_v28  ;;  %v14085_v50 = vpop.f32.mrf.mxu1  ;;  %v7755_v60 = vadd.f32 %v13972_v57, %v13964_v55  ;;  %v7758_v55 = vadd.f32 %v14008_v14, %v13987_v40  ;;  %v7405_v40 = vmul.f32 -1.442695, %v5145_v30 }
 0x936   :  { %v9655_v31 = vpop.eup %9654  ;;  %6800 = vst [vmem:[%s14336_s17 + $0x330] sm:$0xff] %v9653_v15  ;;  %9680 = vpow2.f32 %v7379_v36  ;;  %v5151_v14 = vadd.f32 %v14026_v45, %v13610_v56 }
 0x937   :  { %v9657_v41 = vpop.eup %9656  ;;  %6801 = vst [vmem:[%s14336_s17 + $0x338] sm:$0xff] %v9655_v31  ;;  %9682 = vpow2.f32 %v7384_v27  ;;  %v14100_v57 = vpop.f32.mrf.mxu1 }
 0x938   :  { %v9659_v53 = vpop.eup %9658  ;;  %6802 = vst [vmem:[%s14336_s17 + $0x340] sm:$0xff] %v9657_v41  ;;  %9684 = vpow2.f32 %v7385_v58  ;;  %v14091_v58 = vpop.f32.mrf.mxu0 }
 0x939   :  { %v9661_v20 = vpop.eup %9660  ;;  %6807 = vst [vmem:[%s14336_s17 + $0x368] sm:$0xff] %v9659_v53  ;;  %9686 = vpow2.f32 %v7386_v62  ;;  %v7399_v53 = vmul.f32 -1.442695, %v5141_v21 }
 0x93a   :  { %v9663_v37 = vpop.eup %9662  ;;  %6808 = vst [vmem:[%s14336_s17 + $0x370] sm:$0xff] %v9661_v20  ;;  %9688 = vpow2.f32 %v7391_v16  ;;  %v14103_v20 = vpop.f32.mrf.mxu0 }
 0x93b   :  { %v9665_v48 = vpop.eup %9664  ;;  %6809 = vst [vmem:[%s14336_s17 + $0x378] sm:$0xff] %v9663_v37  ;;  %9690 = vpow2.f32 %v7392_v6  ;;  %v7400_v37 = vmul.f32 -1.442695, %v5311_v52 }
 0x93c   :  { %v9667_v44 = vpop.eup %9666  ;;  %v6142_v39 = vadd.f32 1.0, %v9665_v48  ;;  %9692 = vpow2.f32 %v7393_v38  ;;  %v5316_v38 = vadd.f32 %v7755_v60, %v13612_v29 }
 0x93d   :  { %v9669_v46 = vpop.eup %9668  ;;  %v6143_v17 = vadd.f32 1.0, %v9667_v44  ;;  %9694 = vpow2.f32 %v7398_v54  ;;  %v7761_v44 = vadd.f32 %v14054_v10, %v14033_v8  ;;  %v5155_v8 = vadd.f32 %v14049_v25, %v13604_v19  ;;  %v14125_v10 = vpop.f32.mrf.mxu0 }
 0x93e   :  { %v9671_v1 = vpop.eup %9670  ;;  %9696 = vrcp.f32 %v6142_v39  ;;  %v6144_v23 = vadd.f32 1.0, %v9669_v46  ;;  %v5319_v46 = vadd.f32 %v7758_v55, %v13612_v29  ;;  %v7407_v45 = vmul.f32 -1.442695, %v5316_v38 }
 0x93f   :  { %v9673_v9 = vpop.eup %9672  ;;  %9698 = vrcp.f32 %v6143_v17  ;;  %v6149_v26 = vadd.f32 1.0, %v9671_v1  ;;  %v14118_v17 = vpop.f32.mrf.mxu1  ;;  %v7413_v25 = vmul.f32 -1.442695, %v5151_v14 }
 0x940   :  { %v9675_v33 = vpop.eup %9674  ;;  %9700 = vrcp.f32 %v6144_v23  ;;  %v6150_v7 = vadd.f32 1.0, %v9673_v9  ;;  %v7412_v9 = vmul.f32 -1.442695, %v5149_v34 }
 0x941   :  { %v9677_v59 = vpop.eup %9676  ;;  %9702 = vrcp.f32 %v6149_v26  ;;  %v6151_v43 = vadd.f32 1.0, %v9675_v33  ;;  %v5157_v26 = vadd.f32 %v14065_v63, %v13610_v56  ;;  %v7764_v33 = vadd.f32 %v14077_v42, %v14070_v18  ;;  %v14143_v18 = vpop.f32.mrf.mxu1 }
 0x942   :  { %v9679_v61 = vpop.eup %9678  ;;  %9704 = vrcp.f32 %v6150_v7  ;;  %v6156_v47 = vadd.f32 1.0, %v9677_v59  ;;  %v5324_v59 = vadd.f32 %v7761_v44, %v13612_v29  ;;  %v5159_v63 = vadd.f32 %v14075_v13, %v13604_v19 }
 0x943   :  { %v9681_v3 = vpop.eup %9680  ;;  %9706 = vrcp.f32 %v6151_v43  ;;  %v6157_v22 = vadd.f32 1.0, %v9679_v61  ;;  %v7414_v61 = vmul.f32 -1.442695, %v5319_v46  ;;  %v7420_v13 = vmul.f32 -1.442695, %v5157_v26  ;;  %v14166_v21 = vpop.f32.mrf.mxu1 }
 0x944   :  { %v9683_v28 = vpop.eup %9682  ;;  %9708 = vrcp.f32 %v6156_v47  ;;  %v6158_v0 = vadd.f32 1.0, %v9681_v3  ;;  %v7419_v47 = vmul.f32 -1.442695, %v5155_v8  ;;  %v5161_v3 = vadd.f32 %v14079_v11, %v13610_v56 }
 0x945   :  { %v9685_v4 = vpop.eup %9684  ;;  %9710 = vrcp.f32 %v6157_v22  ;;  %v6163_v36 = vadd.f32 1.0, %v9683_v28  ;;  %v14150_v22 = vpop.f32.mrf.mxu0  ;;  %v5327_v28 = vadd.f32 %v7764_v33, %v13612_v29  ;;  %v5165_v11 = vadd.f32 %v14085_v50, %v13604_v19 }
 0x946   :  { %v9687_v5 = vpop.eup %9686  ;;  %9712 = vrcp.f32 %v6158_v0  ;;  %v6164_v27 = vadd.f32 1.0, %v9685_v4  ;;  %v7421_v4 = vmul.f32 -1.442695, %v5324_v59  ;;  %v7767_v46 = vadd.f32 %v14091_v58, %v14081_v2 }
 0x947   :  { %v9689_v51 = vpop.eup %9688  ;;  %9714 = vrcp.f32 %v6163_v36  ;;  %v6165_v35 = vadd.f32 1.0, %v9687_v5  ;;  %v7426_v5 = vmul.f32 -1.442695, %v5159_v63  ;;  %v14171_v50 = vpop.f32.mrf.mxu0  ;;  %v7428_v52 = vmul.f32 -1.442695, %v5327_v28 }
 0x948   :  { %v9691_v15 = vpop.eup %9690  ;;  %9716 = vrcp.f32 %v6164_v27  ;;  %v6170_v62 = vadd.f32 1.0, %v9689_v51  ;;  %v5167_v27 = vadd.f32 %v14100_v57, %v13610_v56  ;;  %v7427_v51 = vmul.f32 -1.442695, %v5161_v3 }
 0x949   :  { %v9693_v31 = vpop.eup %9692  ;;  %9718 = vrcp.f32 %v6165_v35  ;;  %v6171_v16 = vadd.f32 1.0, %v9691_v15  ;;  %v14187_v55 = vpop.f32.mrf.mxu0 }
 0x94a   :  { %v9695_v41 = vpop.eup %9694  ;;  %9720 = vrcp.f32 %v6170_v62  ;;  %v6172_v6 = vadd.f32 1.0, %v9693_v31  ;;  %v7433_v62 = vmul.f32 -1.442695, %v5165_v11  ;;  %v7434_v31 = vmul.f32 -1.442695, %v5167_v27 }
 0x94b   :  { %v9697_v49 = vpop.eup %9696  ;;  %9722 = vrcp.f32 %v6171_v16  ;;  %v6177_v54 = vadd.f32 1.0, %v9695_v41  ;;  %v14182_v16 = vpop.f32.mrf.mxu1 }
 0x94c   :  { %v9699_v48 = vpop.eup %9698  ;;  %6814 = vst [vmem:[%s14336_s17 + $0x3a0] sm:$0xff] %v9697_v49  ;;  %9724 = vrcp.f32 %v6172_v6  ;;  %v7775_v34 = vpop.f32.mrf.mxu0 }
 0x94d   :  { %v9701_v39 = vpop.eup %9700  ;;  %6815 = vst [vmem:[%s14336_s17 + $0x3a8] sm:$0xff] %v9699_v48  ;;  %9726 = vrcp.f32 %v6177_v54  ;;  %v14192_v49 = vpop.f32.mrf.mxu1 }
 0x94e   :  { %v9703_v1 = vpop.eup %9702  ;;  %6816 = vst [vmem:[%s14336_s17 + $0x3b0] sm:$0xff] %v9701_v39  ;;  %9728 = vpow2.f32 %v7399_v53 }
 0x94f   :  { %v9705_v23 = vpop.eup %9704  ;;  %6821 = vst [vmem:[%s14336_s17 + $0x3d8] sm:$0xff] %v9703_v1  ;;  %9730 = vpow2.f32 %v7400_v37  ;;  %v5180_v1 = vpop.f32.mrf.mxu1 }
 0x950   :  { %v9707_v7 = vpop.eup %9706  ;;  %6822 = vst [vmem:[%s14336_s17 + $0x3e0] sm:$0xff] %v9705_v23  ;;  %9732 = vpow2.f32 %v7405_v40  ;;  %v7777_v23 = vpop.f32.mrf.mxu0 }
 0x951   :  { %v9709_v43 = vpop.eup %9708  ;;  %6823 = vst [vmem:[%s14336_s17 + $0x3e8] sm:$0xff] %v9707_v7  ;;  %9734 = vpow2.f32 %v7406_v24  ;;  %v5184_v2 = vpop.f32.mrf.mxu1 }
 0x952   :  { %v9711_v42 = vpop.eup %9710  ;;  %6828 = vst [vmem:[%s14336_s17 + $0x410] sm:$0xff] %v9709_v43  ;;  %9736 = vpow2.f32 %v7407_v45  ;;  %v5332_v43 = vadd.f32 %v7767_v46, %v13612_v29 }
 0x953   :  { %v9713_v32 = vpop.eup %9712  ;;  %6829 = vst [vmem:[%s14336_s17 + $0x418] sm:$0xff] %v9711_v42  ;;  %9738 = vpow2.f32 %v7412_v9  ;;  %v5169_v42 = vadd.f32 %v14118_v17, %v13604_v19  ;;  %v5186_v17 = vpop.f32.mrf.mxu1 }
 0x954   :  { %v9715_v0 = vpop.eup %9714  ;;  %6830 = vst [vmem:[%s14336_s17 + $0x420] sm:$0xff] %v9713_v32  ;;  %9740 = vpow2.f32 %v7413_v25  ;;  %v7435_v11 = vmul.f32 -1.442695, %v5332_v43 }
 0x955   :  { %v9717_v36 = vpop.eup %9716  ;;  %6835 = vst [vmem:[%s14336_s17 + $0x448] sm:$0xff] %v9715_v0  ;;  %9742 = vpow2.f32 %v7414_v61  ;;  %v7770_v61 = vadd.f32 %v14125_v10, %v14103_v20  ;;  %v5171_v0 = vadd.f32 %v14143_v18, %v13610_v56  ;;  %v7773_v20 = vadd.f32 %v14171_v50, %v14150_v22 }
 0x956   :  { %v9719_v60 = vpop.eup %9718  ;;  %6836 = vst [vmem:[%s14336_s17 + $0x450] sm:$0xff] %v9717_v36  ;;  %9744 = vpow2.f32 %v7419_v47  ;;  %v7778_v47 = vpop.f32.mrf.mxu0  ;;  %v5177_v22 = vadd.f32 %v14182_v16, %v13610_v56  ;;  %v7776_v50 = vadd.f32 %v7775_v34, %v14187_v55  ;;  %v5179_v16 = vadd.f32 %v14192_v49, %v13604_v19 }
 0x957   :  { %v9721_v35 = vpop.eup %9720  ;;  %6837 = vst [vmem:[%s14336_s17 + $0x458] sm:$0xff] %v9719_v60  ;;  %9746 = vpow2.f32 %v7420_v13  ;;  %v5335_v36 = vadd.f32 %v7770_v61, %v13612_v29  ;;  %v7440_v60 = vmul.f32 -1.442695, %v5169_v42 }
 0x958   :  { %v9723_v15 = vpop.eup %9722  ;;  %6842 = vst [vmem:[%s14336_s17 + $0x480] sm:$0xff] %v9721_v35  ;;  %9748 = vpow2.f32 %v7421_v4  ;;  %v7780_v35 = vpop.f32.mrf.mxu0  ;;  %v5343_v49 = vadd.f32 %v7776_v50, %v13612_v29 }
 0x959   :  { %v9725_v30 = vpop.eup %9724  ;;  %6843 = vst [vmem:[%s14336_s17 + $0x488] sm:$0xff] %v9723_v15  ;;  %9750 = vpow2.f32 %v7426_v5 }
 0x95a   :  { %v9727_v12 = vpop.eup %9726  ;;  %6844 = vst [vmem:[%s14336_s17 + $0x490] sm:$0xff] %v9725_v30  ;;  %9752 = vpow2.f32 %v7427_v51  ;;  %v5175_v51 = vadd.f32 %v14166_v21, %v13604_v19  ;;  %v5340_v30 = vadd.f32 %v7773_v20, %v13612_v29  ;;  %v7442_v21 = vmul.f32 -1.442695, %v5335_v36 }
 0x95b   :  { %v9729_v57 = vpop.eup %9728  ;;  %6849 = vst [vmem:[%s14336_s17 + $0x4b8] sm:$0xff] %v9727_v12  ;;  %9754 = vpow2.f32 %v7428_v52  ;;  %v5188_v12 = vpop.f32.mrf.mxu1 }
 0x95c   :  { %v9731_v41 = vpop.eup %9730  ;;  %v6178_v6 = vadd.f32 1.0, %v9729_v57  ;;  %9756 = vpow2.f32 %v7433_v62  ;;  %v7441_v62 = vmul.f32 -1.442695, %v5171_v0  ;;  %v7447_v57 = vmul.f32 -1.442695, %v5175_v51 }
 0x95d   :  { %v9733_v53 = vpop.eup %9732  ;;  %v6179_v38 = vadd.f32 1.0, %v9731_v41  ;;  %9758 = vpow2.f32 %v7434_v31  ;;  %v5181_v41 = vadd.f32 %v5180_v1, %v13610_v56  ;;  %v7449_v34 = vmul.f32 -1.442695, %v5340_v30 }
 0x95e   :  { %v9735_v54 = vpop.eup %9734  ;;  %9760 = vrcp.f32 %v6178_v6  ;;  %v6184_v37 = vadd.f32 1.0, %v9733_v53  ;;  %v7779_v6 = vadd.f32 %v7778_v47, %v7777_v23  ;;  %v7781_v53 = vpop.f32.mrf.mxu0  ;;  %v7456_v23 = vmul.f32 -1.442695, %v5343_v49 }
 0x95f   :  { %v9737_v48 = vpop.eup %9736  ;;  %9762 = vrcp.f32 %v6179_v38  ;;  %v6185_v40 = vadd.f32 1.0, %v9735_v54  ;;  %v7448_v54 = vmul.f32 -1.442695, %v5177_v22  ;;  %v7455_v1 = vmul.f32 -1.442695, %v5181_v41 }
 0x960   :  { %v9739_v14 = vpop.eup %9738  ;;  %9764 = vrcp.f32 %v6184_v37  ;;  %v6186_v44 = vadd.f32 1.0, %v9737_v48  ;;  %v5185_v48 = vadd.f32 %v5184_v2, %v13604_v19 }
 0x961   :  { %v9741_v39 = vpop.eup %9740  ;;  %9766 = vrcp.f32 %v6185_v40  ;;  %v6191_v24 = vadd.f32 1.0, %v9739_v14  ;;  %v7454_v14 = vmul.f32 -1.442695, %v5179_v16 }
 0x962   :  { %v9743_v45 = vpop.eup %9742  ;;  %9768 = vrcp.f32 %v6186_v44  ;;  %v6192_v8 = vadd.f32 1.0, %v9741_v39  ;;  %v5187_v44 = vadd.f32 %v5186_v17, %v13610_v56  ;;  %v5190_v39 = vpop.f32.mrf.mxu1 }
 0x963   :  { %v9745_v9 = vpop.eup %9744  ;;  %9770 = vrcp.f32 %v6191_v24  ;;  %v6193_v26 = vadd.f32 1.0, %v9743_v45  ;;  %v7782_v24 = vadd.f32 %v7781_v53, %v7780_v35  ;;  %v5348_v45 = vadd.f32 %v7779_v6, %v13612_v29 }
 0x964   :  { %v9747_v33 = vpop.eup %9746  ;;  %9772 = vrcp.f32 %v6192_v8  ;;  %v6198_v7 = vadd.f32 1.0, %v9745_v9  ;;  %v5189_v9 = vadd.f32 %v5188_v12, %v13604_v19 }
 0x965   :  { %v9749_v25 = vpop.eup %9748  ;;  %9774 = vrcp.f32 %v6193_v26  ;;  %v6199_v59 = vadd.f32 1.0, %v9747_v33  ;;  %v7461_v33 = vmul.f32 -1.442695, %v5185_v48  ;;  %v5351_v43 = vadd.f32 %v7782_v24, %v13612_v29 }
 0x966   :  { %v9751_v58 = vpop.eup %9750  ;;  %9776 = vrcp.f32 %v6198_v7  ;;  %v6200_v63 = vadd.f32 1.0, %v9749_v25  ;;  %v5191_v7 = vadd.f32 %v5190_v39, %v13610_v56  ;;  %v7463_v19 = vmul.f32 -1.442695, %v5348_v45 }
 0x967   :  { %v9753_v3 = vpop.eup %9752  ;;  %9778 = vrcp.f32 %v6199_v59  ;;  %v6205_v32 = vadd.f32 1.0, %v9751_v58  ;;  %v7462_v59 = vmul.f32 -1.442695, %v5187_v44  ;;  %v7468_v56 = vmul.f32 -1.442695, %v5189_v9 }
 0x968   :  { %v9755_v13 = vpop.eup %9754  ;;  %9780 = vrcp.f32 %v6200_v63  ;;  %v6206_v28 = vadd.f32 1.0, %v9753_v3  ;;  %v7469_v29 = vmul.f32 -1.442695, %v5191_v7  ;;  %v7470_v42 = vmul.f32 -1.442695, %v5351_v43 }
 0x969   :  { %v9757_v10 = vpop.eup %9756  ;;  %9782 = vrcp.f32 %v6205_v32  ;;  %v6207_v4 = vadd.f32 1.0, %v9755_v13 }
 0x96a   :  { %v9759_v5 = vpop.eup %9758  ;;  %9784 = vrcp.f32 %v6206_v28  ;;  %v6212_v27 = vadd.f32 1.0, %v9757_v10 }
 0x96b   :  { %v9761_v52 = vpop.eup %9760  ;;  %9786 = vrcp.f32 %v6207_v4  ;;  %v6213_v18 = vadd.f32 1.0, %v9759_v5 }
 0x96c   :  { %v9763_v15 = vpop.eup %9762  ;;  %6850 = vst [vmem:[%s14336_s17 + $0x4c0] sm:$0xff] %v9761_v52  ;;  %9788 = vrcp.f32 %v6212_v27 }
 0x96d   :  { %v9765_v31 = vpop.eup %9764  ;;  %6851 = vst [vmem:[%s14336_s17 + $0x4c8] sm:$0xff] %v9763_v15  ;;  %9790 = vrcp.f32 %v6213_v18 }
 0x96e   :  { %v9767_v55 = vpop.eup %9766  ;;  %6856 = vst [vmem:[%s14336_s17 + $0x4f0] sm:$0xff] %v9765_v31  ;;  %9792 = vpow2.f32 %v7435_v11 }
 0x96f   :  { %v9769_v38 = vpop.eup %9768  ;;  %6857 = vst [vmem:[%s14336_s17 + $0x4f8] sm:$0xff] %v9767_v55  ;;  %9794 = vpow2.f32 %v7440_v60 }
 0x970   :  { %v9771_v37 = vpop.eup %9770  ;;  %6858 = vst [vmem:[%s14336_s17 + $0x500] sm:$0xff] %v9769_v38  ;;  %9796 = vpow2.f32 %v7441_v62 }
 0x971   :  { %v9773_v40 = vpop.eup %9772  ;;  %6863 = vst [vmem:[%s14336_s17 + $0x528] sm:$0xff] %v9771_v37  ;;  %9798 = vpow2.f32 %v7442_v21 }
 0x972   :  { %v9775_v46 = vpop.eup %9774  ;;  %6864 = vst [vmem:[%s14336_s17 + $0x530] sm:$0xff] %v9773_v40  ;;  %9800 = vpow2.f32 %v7447_v57 }
 0x973   :  { %v9777_v8 = vpop.eup %9776  ;;  %6865 = vst [vmem:[%s14336_s17 + $0x538] sm:$0xff] %v9775_v46  ;;  %9802 = vpow2.f32 %v7448_v54 }
 0x974   :  { %v9779_v26 = vpop.eup %9778  ;;  %6870 = vst [vmem:[%s14336_s17 + $0x560] sm:$0xff] %v9777_v8  ;;  %9804 = vpow2.f32 %v7449_v34 }
 0x975   :  { %v9781_v25 = vpop.eup %9780  ;;  %6871 = vst [vmem:[%s14336_s17 + $0x568] sm:$0xff] %v9779_v26  ;;  %9806 = vpow2.f32 %v7454_v14 }
 0x976   :  { %v9783_v61 = vpop.eup %9782  ;;  %6872 = vst [vmem:[%s14336_s17 + $0x570] sm:$0xff] %v9781_v25  ;;  %9808 = vpow2.f32 %v7455_v1 }
 0x977   :  { %v9785_v2 = vpop.eup %9784  ;;  %6877 = vst [vmem:[%s14336_s17 + $0x598] sm:$0xff] %v9783_v61  ;;  %9810 = vpow2.f32 %v7456_v23 }
 0x978   :  { %v9787_v58 = vpop.eup %9786  ;;  %6878 = vst [vmem:[%s14336_s17 + $0x5a0] sm:$0xff] %v9785_v2  ;;  %9812 = vpow2.f32 %v7461_v33 }
 0x979   :  { %v9789_v63 = vpop.eup %9788  ;;  %6879 = vst [vmem:[%s14336_s17 + $0x5a8] sm:$0xff] %v9787_v58  ;;  %9814 = vpow2.f32 %v7462_v59 }
 0x97a   :  { %v9791_v47 = vpop.eup %9790  ;;  %6884 = vst [vmem:[%s14336_s17 + $0x5d0] sm:$0xff] %v9789_v63  ;;  %9816 = vpow2.f32 %v7463_v19 }
 0x97b   :  { %v9793_v3 = vpop.eup %9792  ;;  %6885 = vst [vmem:[%s14336_s17 + $0x5d8] sm:$0xff] %v9791_v47  ;;  %9818 = vpow2.f32 %v7468_v56 }
 0x97c   :  { %v9795_v32 = vpop.eup %9794  ;;  %v6214_v13 = vadd.f32 1.0, %v9793_v3  ;;  %9820 = vpow2.f32 %v7469_v29 }
 0x97d   :  { %v9797_v28 = vpop.eup %9796  ;;  %v6219_v0 = vadd.f32 1.0, %v9795_v32  ;;  %9822 = vpow2.f32 %v7470_v42 }
 0x97e   :  { %v9799_v20 = vpop.eup %9798  ;;  %9824 = vrcp.f32 %v6214_v13  ;;  %v6220_v10 = vadd.f32 1.0, %v9797_v28 }
 0x97f   :  { %v9801_v4 = vpop.eup %9800  ;;  %9826 = vrcp.f32 %v6219_v0  ;;  %v6221_v11 = vadd.f32 1.0, %v9799_v20 }
 0x980   :  { %v9803_v36 = vpop.eup %9802  ;;  %9828 = vrcp.f32 %v6220_v10  ;;  %v6226_v17 = vadd.f32 1.0, %v9801_v4 }
 0x981   :  { %v9805_v5 = vpop.eup %9804  ;;  %9830 = vrcp.f32 %v6221_v11  ;;  %v6227_v27 = vadd.f32 1.0, %v9803_v36 }
 0x982   :  { %v9807_v60 = vpop.eup %9806  ;;  %9832 = vrcp.f32 %v6226_v17  ;;  %v6228_v51 = vadd.f32 1.0, %v9805_v5 }
 0x983   :  { %v9809_v35 = vpop.eup %9808  ;;  %9834 = vrcp.f32 %v6227_v27  ;;  %v6233_v52 = vadd.f32 1.0, %v9807_v60 }
 0x984   :  { %v9811_v18 = vpop.eup %9810  ;;  %9836 = vrcp.f32 %v6228_v51  ;;  %v6234_v22 = vadd.f32 1.0, %v9809_v35 }
 0x985   :  { %v9813_v50 = vpop.eup %9812  ;;  %9838 = vrcp.f32 %v6233_v52  ;;  %v6235_v15 = vadd.f32 1.0, %v9811_v18 }
 0x986   :  { %v9815_v62 = vpop.eup %9814  ;;  %9840 = vrcp.f32 %v6234_v22  ;;  %v6240_v30 = vadd.f32 1.0, %v9813_v50 }
 0x987   :  { %v9817_v31 = vpop.eup %9816  ;;  %9842 = vrcp.f32 %v6235_v15  ;;  %v6241_v21 = vadd.f32 1.0, %v9815_v62 }
 0x988   :  { %v9819_v16 = vpop.eup %9818  ;;  %9844 = vrcp.f32 %v6240_v30  ;;  %v6242_v12 = vadd.f32 1.0, %v9817_v31 }
 0x989   :  { %v9821_v55 = vpop.eup %9820  ;;  %9846 = vrcp.f32 %v6241_v21  ;;  %v6247_v57 = vadd.f32 1.0, %v9819_v16 }
 0x98a   :  { %v9823_v41 = vpop.eup %9822  ;;  %9848 = vrcp.f32 %v6242_v12  ;;  %v6248_v6 = vadd.f32 1.0, %v9821_v55 }
 0x98b   :  { %v9825_v53 = vpop.eup %9824  ;;  %9850 = vrcp.f32 %v6247_v57  ;;  %v6249_v38 = vadd.f32 1.0, %v9823_v41 }
 0x98c   :  { %v9827_v54 = vpop.eup %9826  ;;  %6886 = vst [vmem:[%s14336_s17 + $0x5e0] sm:$0xff] %v9825_v53  ;;  %9852 = vrcp.f32 %v6248_v6 }
 0x98d   :  { %v9829_v49 = vpop.eup %9828  ;;  %6891 = vst [vmem:[%s14336_s17 + $0x608] sm:$0xff] %v9827_v54  ;;  %9854 = vrcp.f32 %v6249_v38 }
 0x98e   :  { %v9831_v37 = vpop.eup %9830  ;;  %6892 = vst [vmem:[%s14336_s17 + $0x610] sm:$0xff] %v9829_v49 }
 0x98f   :  { %v9833_v34 = vpop.eup %9832  ;;  %6893 = vst [vmem:[%s14336_s17 + $0x618] sm:$0xff] %v9831_v37 }
 0x990   :  { %v9835_v48 = vpop.eup %9834  ;;  %6898 = vst [vmem:[%s14336_s17 + $0x640] sm:$0xff] %v9833_v34 }
 0x991   :  { %v9837_v40 = vpop.eup %9836  ;;  %6899 = vst [vmem:[%s14336_s17 + $0x648] sm:$0xff] %v9835_v48 }
 0x992   :  { %v9839_v14 = vpop.eup %9838  ;;  %6900 = vst [vmem:[%s14336_s17 + $0x650] sm:$0xff] %v9837_v40 }
 0x993   :  { %v9841_v44 = vpop.eup %9840  ;;  %6905 = vst [vmem:[%s14336_s17 + $0x678] sm:$0xff] %v9839_v14 }
 0x994   :  { %v9843_v39 = vpop.eup %9842  ;;  %6906 = vst [vmem:[%s14336_s17 + $0x680] sm:$0xff] %v9841_v44 }
 0x995   :  { %v9845_v24 = vpop.eup %9844  ;;  %6907 = vst [vmem:[%s14336_s17 + $0x688] sm:$0xff] %v9843_v39 }
 0x996   :  { %v9847_v46 = vpop.eup %9846  ;;  %6912 = vst [vmem:[%s14336_s17 + $0x6b0] sm:$0xff] %v9845_v24 }
 0x997   :  { %v9849_v1 = vpop.eup %9848  ;;  %6913 = vst [vmem:[%s14336_s17 + $0x6b8] sm:$0xff] %v9847_v46 }
 0x998   :  { %v9851_v45 = vpop.eup %9850  ;;  %6914 = vst [vmem:[%s14336_s17 + $0x6c0] sm:$0xff] %v9849_v1 }
 0x999   :  { %v9853_v8 = vpop.eup %9852  ;;  %6919 = vst [vmem:[%s14336_s17 + $0x6e8] sm:$0xff] %v9851_v45 }
 0x99a   :  { %v9855_v23 = vpop.eup %9854  ;;  %6920 = vst [vmem:[%s14336_s17 + $0x6f0] sm:$0xff] %v9853_v8 }
 0x99b   :  { %6921 = vst [vmem:[%s14336_s17 + $0x6f8] sm:$0xff] %v9855_v23 }

</bundles_post_ra>
